<compile_context>
chip_gen: v5e
topology: v5e:2x2
jax: 0.10.0
libtpu: 0.0.40
codegen_flags: <defaults>
</compile_context>

<pallas_src>
import math
import functools

import jax
import jax.numpy as jnp
from jax.experimental import pallas as pl
from jax.experimental.pallas import tpu as pltpu


_NEG_INF = -1e30                       # finite mask sentinel (avoids -inf NaN footgun)

# Generation-aware VMEM budget / default tile size (review: v5e/v6e have
# 128 MiB VMEM, v7x only 64 MiB).
try:
    _VMEM_CAP = int(pltpu.get_tpu_info().vmem_capacity_bytes)
except Exception:                      # pragma: no cover - conservative fallback
    _VMEM_CAP = 64 * 1024 * 1024
_VMEM_LIMIT = int(_VMEM_CAP * 3 // 4)                     # 96 MiB on v5e/v6e, 48 MiB on v7x
_DEFAULT_ROW_TILE = 512 if _VMEM_CAP >= 96 * 1024 * 1024 else 256


def _pick_row_tile(R, desired):
    """Largest multiple of 8 that divides R and is <= desired (no padding needed)."""
    desired = max(8, min(int(desired), R))
    t = (desired // 8) * 8
    while t >= 8:
        if R % t == 0:
            return t
        t -= 8
    return R                                              # full-extent block is always legal


# ----------------------------- in-kernel helpers -----------------------------

def _layernorm(x, w, b, eps=1e-5):
    x = x.astype(jnp.float32)
    mu = jnp.mean(x, axis=-1, keepdims=True)
    var = jnp.mean(jnp.square(x - mu), axis=-1, keepdims=True)
    return (x - mu) * jax.lax.rsqrt(var + eps) * w + b


def _gelu_tanh(x):
    c = math.sqrt(2.0 / math.pi)
    return 0.5 * x * (1.0 + jnp.tanh(c * (x + 0.044715 * x * x * x)))


# ----------------------------- kernel 1: LN1 + QKV projection ----------------

def _ln_qkv_kernel(x_ref, lnw_ref, lnb_ref, w_ref, b_ref, qkv_ref):
    h = _layernorm(x_ref[...], lnw_ref[...], lnb_ref[...])          # f32 (TR, C)
    acc = jnp.dot(h.astype(jnp.bfloat16), w_ref[...],               # bf16 x bf16 MXU
                  preferred_element_type=jnp.float32) + b_ref[...]  # f32 accumulate
    qkv_ref[...] = acc.astype(qkv_ref.dtype)


def ln_qkv_forward(x2, ln_w, ln_b, w_qkv, b_qkv, row_tile):
    R, C = x2.shape
    C3 = w_qkv.shape[1]
    # NOTE: weight blocks keep a constant block index so Pallas never re-DMAs
    # them across row tiles.  TODO(synk): single-buffer them (pl.Buffered(1))
    # once verified on the target jax version to halve resident-weight VMEM.
    return pl.pallas_call(
        _ln_qkv_kernel,
        out_shape=jax.ShapeDtypeStruct((R, C3), jnp.bfloat16),
        grid_spec=pltpu.PrefetchScalarGridSpec(
            num_scalar_prefetch=0,
            grid=(R // row_tile,),
            in_specs=[
                pl.BlockSpec((row_tile, C), lambda i: (i, 0)),   # streamed activations
                pl.BlockSpec((1, C), lambda i: (0, 0)),          # weights stay resident
                pl.BlockSpec((1, C), lambda i: (0, 0)),
                pl.BlockSpec((C, C3), lambda i: (0, 0)),
                pl.BlockSpec((1, C3), lambda i: (0, 0)),
            ],
            out_specs=pl.BlockSpec((row_tile, C3), lambda i: (i, 0)),
        ),
        compiler_params=pltpu.CompilerParams(
            dimension_semantics=("parallel",),
            vmem_limit_bytes=_VMEM_LIMIT),
    )(x2, ln_w, ln_b, w_qkv, b_qkv)


# ----------------------------- kernel 2: causal attention --------------------

def _attn_kernel(n_head, head_size, qkv_ref, o_ref):
    # One batch per grid step.  qkv_ref is (T, 3C) bf16 laid out [q | k | v],
    # each section head-major in blocks of head_size columns.  The output is a
    # single lane-dense (T, C) store (no 32-wide partial stores to HBM).
    T = qkv_ref.shape[0]
    C = n_head * head_size
    scale = head_size ** -0.5

    row = jax.lax.broadcasted_iota(jnp.int32, (T, T), 0)
    col = jax.lax.broadcasted_iota(jnp.int32, (T, T), 1)
    causal = row >= col

    outs = []
    for h in range(n_head):                               # head split inside the kernel
        q = qkv_ref[:, h * head_size:(h + 1) * head_size]
        k = qkv_ref[:, C + h * head_size:C + (h + 1) * head_size]
        v = qkv_ref[:, 2 * C + h * head_size:2 * C + (h + 1) * head_size]

        # Fold the 1/sqrt(hs) scale into q (T*hs ops) instead of the (T,T) scores.
        qs = (q.astype(jnp.float32) * scale).astype(jnp.bfloat16)

        # scores = q @ k^T  (MXU, bf16 inputs, f32 accumulation)
        s = jax.lax.dot_general(qs, k, (((1,), (1,)), ((), ())),
                                preferred_element_type=jnp.float32)
        s = jnp.where(causal, s, _NEG_INF)                 # finite causal mask

        # softmax (f32); divide replaced by EUP approx reciprocal
        s = s - jnp.max(s, axis=-1, keepdims=True)
        p = jnp.exp(s)
        p = p * pl.reciprocal(jnp.sum(p, axis=-1, keepdims=True), approx=True)

        outs.append(jnp.dot(p.astype(v.dtype), v, preferred_element_type=jnp.float32))

    # Single lane-dense (T, C) store; head merge happens here, not in HBM.
    o_ref[...] = jnp.concatenate(outs, axis=-1).astype(o_ref.dtype)
    # TODO(synk): for long sequences switch to an online-softmax (flash) loop over
    # key tiles (skip fully-masked tiles) so VMEM stays O(T * key_tile), not O(T^2)
    # — required before scaling block_size on v7x's 64 MiB VMEM.


def attention_forward(qkv3, n_head, head_size):
    B, T, C3 = qkv3.shape
    C = C3 // 3
    kern = functools.partial(_attn_kernel, n_head, head_size)
    return pl.pallas_call(
        kern,
        out_shape=jax.ShapeDtypeStruct((B, T, C), jnp.bfloat16),
        grid_spec=pltpu.PrefetchScalarGridSpec(
            num_scalar_prefetch=0,
            grid=(B,),
            in_specs=[pl.BlockSpec((None, T, C3), lambda b: (b, 0, 0))],
            out_specs=pl.BlockSpec((None, T, C), lambda b: (b, 0, 0)),
        ),
        compiler_params=pltpu.CompilerParams(
            dimension_semantics=("parallel",),
            vmem_limit_bytes=_VMEM_LIMIT),
    )(qkv3)


# ------------------- kernel 3: proj + residual + LN2 + MLP + residual --------

def _proj_mlp_kernel(x_ref, a_ref, wproj_ref, bproj_ref, ln2w_ref, ln2b_ref,
                     w1_ref, b1_ref, w2_ref, b2_ref, out_ref):
    x = x_ref[...].astype(jnp.float32)                               # (TR, C) residual
    attn = jnp.dot(a_ref[...], wproj_ref[...],                       # bf16 x bf16
                   preferred_element_type=jnp.float32) + bproj_ref[...]
    x = x + attn                                                     # resid dropout = id

    h = _layernorm(x, ln2w_ref[...], ln2b_ref[...])
    ff = jnp.dot(h.astype(jnp.bfloat16), w1_ref[...],
                 preferred_element_type=jnp.float32) + b1_ref[...]
    ff = _gelu_tanh(ff)                                              # f32 elementwise
    ff = jnp.dot(ff.astype(jnp.bfloat16), w2_ref[...],
                 preferred_element_type=jnp.float32) + b2_ref[...]
    out_ref[...] = (x + ff).astype(out_ref.dtype)


def proj_mlp_forward(x2, a2, blk, row_tile):
    R, C = x2.shape
    C4 = blk['w1'].shape[1]
    res = pl.BlockSpec((row_tile, C), lambda i: (i, 0))
    # TODO(synk): at C >= ~1024 on v7x (64 MiB VMEM) the resident w_proj+w1+w2
    # set should be K-tiled over the 4C hidden dim (accumulator scratch +
    # "arbitrary" axis) instead of staying fully resident.
    return pl.pallas_call(
        _proj_mlp_kernel,
        out_shape=jax.ShapeDtypeStruct((R, C), jnp.float32),
        grid_spec=pltpu.PrefetchScalarGridSpec(
            num_scalar_prefetch=0,
            grid=(R // row_tile,),
            in_specs=[
                res,                                               # residual stream
                pl.BlockSpec((row_tile, C), lambda i: (i, 0)),     # attention output
                pl.BlockSpec((C, C), lambda i: (0, 0)),            # weights resident
                pl.BlockSpec((1, C), lambda i: (0, 0)),
                pl.BlockSpec((1, C), lambda i: (0, 0)),
                pl.BlockSpec((1, C), lambda i: (0, 0)),
                pl.BlockSpec((C, C4), lambda i: (0, 0)),
                pl.BlockSpec((1, C4), lambda i: (0, 0)),
                pl.BlockSpec((C4, C), lambda i: (0, 0)),
                pl.BlockSpec((1, C), lambda i: (0, 0)),
            ],
            out_specs=pl.BlockSpec((row_tile, C), lambda i: (i, 0)),
        ),
        compiler_params=pltpu.CompilerParams(
            dimension_semantics=("parallel",),
            vmem_limit_bytes=_VMEM_LIMIT),
        input_output_aliases={0: 0},      # residual-in == residual-out buffer
    )(x2, a2, blk['w_proj'], blk['b_proj'], blk['ln2_w'], blk['ln2_b'],
      blk['w1'], blk['b1'], blk['w2'], blk['b2'])


# ----------------------------- kernel 4: final LN + tied lm_head -------------

def _head_kernel(x_ref, lnw_ref, lnb_ref, wt_ref, out_ref, h_ref):
    # LN_f is computed once per row tile (vocab axis is the inner, "arbitrary"
    # grid axis) and cached in a bf16 VMEM scratch, so it is not redone for
    # every vocab tile.
    @pl.when(pl.program_id(1) == 0)
    def _():
        h_ref[...] = _layernorm(x_ref[...], lnw_ref[...], lnb_ref[...]
                                ).astype(jnp.bfloat16)
    out_ref[...] = jnp.dot(h_ref[...], wt_ref[...],
                           preferred_element_type=jnp.float32).astype(out_ref.dtype)


def head_forward(x2, lnf_w, lnf_b, wte_t, row_tile, vocab_tile):
    R, C = x2.shape
    V = wte_t.shape[1]
    Vp = -(-V // vocab_tile) * vocab_tile
    if Vp != V:
        wte_t = jnp.pad(wte_t, ((0, 0), (0, Vp - V)))
    logits = pl.pallas_call(
        _head_kernel,
        out_shape=jax.ShapeDtypeStruct((R, Vp), jnp.bfloat16),   # bf16 logits writeback
        grid_spec=pltpu.PrefetchScalarGridSpec(
            num_scalar_prefetch=0,
            grid=(R // row_tile, Vp // vocab_tile),
            in_specs=[
                pl.BlockSpec((row_tile, C), lambda i, j: (i, 0)),
                pl.BlockSpec((1, C), lambda i, j: (0, 0)),
                pl.BlockSpec((1, C), lambda i, j: (0, 0)),
                pl.BlockSpec((C, vocab_tile), lambda i, j: (0, j)),   # vocab streamed
            ],
            out_specs=pl.BlockSpec((row_tile, vocab_tile), lambda i, j: (i, j)),
            scratch_shapes=[pltpu.VMEM((row_tile, C), jnp.bfloat16)],  # cached LN_f(x)
        ),
        compiler_params=pltpu.CompilerParams(
            dimension_semantics=("parallel", "arbitrary"),
            vmem_limit_bytes=_VMEM_LIMIT),
    )(x2, lnf_w, lnf_b, wte_t)
    if Vp != V:
        logits = logits[:, :V]
    return logits


# ----------------------------- parameter init (deterministic) ----------------

def init_params(key, cfg):
    V, C, L = cfg['vocab_size'], cfg['n_embd'], cfg['n_layer']
    std = 0.02
    scaled_std = std * (2 * L) ** (-0.5)          # SCALE_INIT layers (proj, ff2)
    keys = jax.random.split(key, 2 + L)

    wte = std * jax.random.normal(keys[0], (V, C), jnp.float32)
    params = {
        'wte': wte,                                            # f32 for the gather
        'wte_t': wte.T.astype(jnp.bfloat16),                   # tied lm_head, (C, V) bf16
        'wpe': std * jax.random.normal(keys[1], (cfg['block_size'], C), jnp.float32),
        'ln_f_w': jnp.ones((1, C), jnp.float32),
        'ln_f_b': jnp.zeros((1, C), jnp.float32),
        'blocks': [],
    }
    for l in range(L):
        k1, k2, k3, k4 = jax.random.split(keys[2 + l], 4)
        params['blocks'].append(dict(
            ln1_w=jnp.ones((1, C), jnp.float32), ln1_b=jnp.zeros((1, C), jnp.float32),
            w_qkv=(std * jax.random.normal(k1, (C, 3 * C), jnp.float32)).astype(jnp.bfloat16),
            b_qkv=jnp.zeros((1, 3 * C), jnp.float32),
            w_proj=(scaled_std * jax.random.normal(k2, (C, C), jnp.float32)).astype(jnp.bfloat16),
            b_proj=jnp.zeros((1, C), jnp.float32),
            ln2_w=jnp.ones((1, C), jnp.float32), ln2_b=jnp.zeros((1, C), jnp.float32),
            w1=(std * jax.random.normal(k3, (C, 4 * C), jnp.float32)).astype(jnp.bfloat16),
            b1=jnp.zeros((1, 4 * C), jnp.float32),
            w2=(scaled_std * jax.random.normal(k4, (4 * C, C), jnp.float32)).astype(jnp.bfloat16),
            b2=jnp.zeros((1, C), jnp.float32),
        ))
    return params


# ----------------------------- full GPT forward -------------------------------

def gpt_forward(params, idx, cfg):
    B, T = idx.shape
    C, H = cfg['n_embd'], cfg['n_head']
    hs = C // H
    R = B * T
    # row_tile divides B*T so the layer loop never pads / copies activations.
    row_tile = _pick_row_tile(R, cfg.get('row_tile', _DEFAULT_ROW_TILE))

    tok = jnp.take(params['wte'], idx, axis=0)                 # glue gather (B, T, C)
    pos = params['wpe'][:T][None, :, :]
    x2 = (tok + pos).astype(jnp.float32).reshape(R, C)         # emb dropout = identity

    for blk in params['blocks']:
        # LN1 + QKV projection, row-tiled, bf16 output (R, 3C).
        qkv = ln_qkv_forward(x2, blk['ln1_w'], blk['ln1_b'],
                             blk['w_qkv'], blk['b_qkv'], row_tile)
        qkv3 = qkv.reshape(B, T, 3 * C)                        # free view, no HBM shuffle
        # Causal attention: one batch per grid step, lane-dense (T, C) output.
        o = attention_forward(qkv3, H, hs)                     # (B, T, C) bf16
        a2 = o.reshape(R, C)                                   # free view, no transpose
        # proj + residual + LN2 + MLP + residual, row-tiled, aliased residual buffer.
        x2 = proj_mlp_forward(x2, a2, blk, row_tile)           # (R, C) f32

    logits = head_forward(x2, params['ln_f_w'], params['ln_f_b'],
                          params['wte_t'], row_tile, cfg.get('vocab_tile', 256))
    logits = logits.reshape(B, T, -1)                          # bf16 logits
    # TODO(synk): cross-entropy loss path (target is not None) not implemented.
    return logits, None


# ----------------------------- main --------------------------------------------

if __name__ == "__main__":
    cfg = dict(block_size=128, vocab_size=512, n_layer=2, n_head=4, n_embd=128,
               row_tile=128, vocab_tile=256)

    key = jax.random.PRNGKey(0)
    pkey, dkey = jax.random.split(key)
    params = init_params(pkey, cfg)

    B, T = 2, 128
    idx = jax.random.randint(dkey, (B, T), 0, cfg['vocab_size'], dtype=jnp.int32)

    fwd = jax.jit(lambda p, i: gpt_forward(p, i, cfg)[0])
    logits = jax.block_until_ready(fwd(params, idx))

    assert logits.shape == (B, T, cfg['vocab_size']), logits.shape
    assert bool(jnp.all(jnp.isfinite(logits.astype(jnp.float32))))
    print("KERNEL_OK")
</pallas_src>

<mosaic_0001>
module attributes {stable_mosaic.version = 11 : i64} {
  func.func @_ln_qkv_kernel(%arg0: i32, %arg1: memref<128x128xf32, #tpu.memory_space<vmem>>, %arg2: memref<1x128xf32, #tpu.memory_space<vmem>>, %arg3: memref<1x128xf32, #tpu.memory_space<vmem>>, %arg4: memref<128x384xbf16, #tpu.memory_space<vmem>>, %arg5: memref<1x384xf32, #tpu.memory_space<vmem>>, %arg6: memref<128x384xbf16, #tpu.memory_space<vmem>>) attributes {dimension_semantics = [#tpu.dimension_semantics<parallel>], iteration_bounds = array<i64: 2>, scalar_prefetch = 0 : i64, scratch_operands = 0 : i64, tpu.core_type = #tpu.core_type<tc>, window_params = [{transform_indices = @transform_0, window_bounds = array<i64: 128, 128>}, {pipeline_mode = #tpu.pipeline_mode<synchronous>, transform_indices = @transform_1, window_bounds = array<i64: 1, 128>}, {pipeline_mode = #tpu.pipeline_mode<synchronous>, transform_indices = @transform_2, window_bounds = array<i64: 1, 128>}, {pipeline_mode = #tpu.pipeline_mode<synchronous>, transform_indices = @transform_3, window_bounds = array<i64: 128, 384>}, {pipeline_mode = #tpu.pipeline_mode<synchronous>, transform_indices = @transform_4, window_bounds = array<i64: 1, 384>}, {transform_indices = @transform_5, window_bounds = array<i64: 128, 384>}]} {
    %c0 = arith.constant 0 : index
    %c0_0 = arith.constant 0 : index
    %0 = vector.load %arg1[%c0, %c0_0] : memref<128x128xf32, #tpu.memory_space<vmem>>, vector<128x128xf32>
    %c0_1 = arith.constant 0 : index
    %c0_2 = arith.constant 0 : index
    %1 = vector.load %arg2[%c0_1, %c0_2] : memref<1x128xf32, #tpu.memory_space<vmem>>, vector<1x128xf32>
    %c0_3 = arith.constant 0 : index
    %c0_4 = arith.constant 0 : index
    %2 = vector.load %arg3[%c0_3, %c0_4] : memref<1x128xf32, #tpu.memory_space<vmem>>, vector<1x128xf32>
    %cst = arith.constant dense<0.000000e+00> : vector<128xf32>
    %3 = vector.multi_reduction <add>, %0, %cst [1] : vector<128x128xf32> to vector<128xf32>
    %4 = vector.shape_cast %3 : vector<128xf32> to vector<128x1xf32>
    %cst_5 = arith.constant 1.280000e+02 : f32
    %5 = vector.broadcast %cst_5 : f32 to vector<128x1xf32>
    %6 = arith.divf %4, %5 : vector<128x1xf32>
    %7 = vector.broadcast %6 : vector<128x1xf32> to vector<128x128xf32>
    %8 = arith.subf %0, %7 : vector<128x128xf32>
    %9 = arith.mulf %8, %8 : vector<128x128xf32>
    %cst_6 = arith.constant dense<0.000000e+00> : vector<128xf32>
    %10 = vector.multi_reduction <add>, %9, %cst_6 [1] : vector<128x128xf32> to vector<128xf32>
    %11 = vector.shape_cast %10 : vector<128xf32> to vector<128x1xf32>
    %cst_7 = arith.constant 1.280000e+02 : f32
    %12 = vector.broadcast %cst_7 : f32 to vector<128x1xf32>
    %13 = arith.divf %11, %12 : vector<128x1xf32>
    %14 = vector.broadcast %6 : vector<128x1xf32> to vector<128x128xf32>
    %15 = arith.subf %0, %14 : vector<128x128xf32>
    %cst_8 = arith.constant 9.99999974E-6 : f32
    %16 = vector.broadcast %cst_8 : f32 to vector<128x1xf32>
    %17 = arith.addf %13, %16 : vector<128x1xf32>
    %18 = math.rsqrt %17 : vector<128x1xf32>
    %19 = vector.broadcast %18 : vector<128x1xf32> to vector<128x128xf32>
    %20 = arith.mulf %15, %19 : vector<128x128xf32>
    %21 = vector.broadcast %1 : vector<1x128xf32> to vector<128x128xf32>
    %22 = arith.mulf %20, %21 : vector<128x128xf32>
    %23 = vector.broadcast %2 : vector<1x128xf32> to vector<128x128xf32>
    %24 = arith.addf %22, %23 : vector<128x128xf32>
    %25 = arith.truncf %24 : vector<128x128xf32> to vector<128x128xbf16>
    %c0_9 = arith.constant 0 : index
    %c0_10 = arith.constant 0 : index
    %26 = vector.load %arg4[%c0_9, %c0_10] : memref<128x384xbf16, #tpu.memory_space<vmem>>, vector<128x384xbf16>
    %cst_11 = arith.constant dense<0.000000e+00> : vector<128x384xf32>
    %27 = tpu.matmul %25, %26, %cst_11 {dimension_numbers = #tpu.dot_dimension_numbers<[1], [0], [0], [1], [0, 0, 1, 1], [], []>} : vector<128x128xbf16>, vector<128x384xbf16>, vector<128x384xf32> -> vector<128x384xf32>
    %c0_12 = arith.constant 0 : index
    %c0_13 = arith.constant 0 : index
    %28 = vector.load %arg5[%c0_12, %c0_13] : memref<1x384xf32, #tpu.memory_space<vmem>>, vector<1x384xf32>
    %29 = vector.broadcast %28 : vector<1x384xf32> to vector<128x384xf32>
    %30 = arith.addf %27, %29 : vector<128x384xf32>
    %31 = arith.truncf %30 : vector<128x384xf32> to vector<128x384xbf16>
    %c0_14 = arith.constant 0 : index
    %c0_15 = arith.constant 0 : index
    %32 = vector.load %arg6[%c0_14, %c0_15] : memref<128x384xbf16, #tpu.memory_space<vmem>>, vector<128x384xbf16>
    tpu.vector_store %arg6[%c0_14, %c0_15], %31 {strides = array<i32>} : memref<128x384xbf16, #tpu.memory_space<vmem>>, vector<128x384xbf16>,
    return
  }
  func.func @transform_0(%arg0: i32) -> (i32, i32) {
    %c0_i32 = arith.constant 0 : i32
    %c0_i32_0 = arith.constant 0 : i32
    return %arg0, %c0_i32 : i32, i32
  }
  func.func @transform_1(%arg0: i32) -> (i32, i32) {
    %c0_i32 = arith.constant 0 : i32
    %c0_i32_0 = arith.constant 0 : i32
    %c0_i32_1 = arith.constant 0 : i32
    return %c0_i32, %c0_i32_0 : i32, i32
  }
  func.func @transform_2(%arg0: i32) -> (i32, i32) {
    %c0_i32 = arith.constant 0 : i32
    %c0_i32_0 = arith.constant 0 : i32
    %c0_i32_1 = arith.constant 0 : i32
    return %c0_i32, %c0_i32_0 : i32, i32
  }
  func.func @transform_3(%arg0: i32) -> (i32, i32) {
    %c0_i32 = arith.constant 0 : i32
    %c0_i32_0 = arith.constant 0 : i32
    %c0_i32_1 = arith.constant 0 : i32
    return %c0_i32, %c0_i32_0 : i32, i32
  }
  func.func @transform_4(%arg0: i32) -> (i32, i32) {
    %c0_i32 = arith.constant 0 : i32
    %c0_i32_0 = arith.constant 0 : i32
    %c0_i32_1 = arith.constant 0 : i32
    return %c0_i32, %c0_i32_0 : i32, i32
  }
  func.func @transform_5(%arg0: i32) -> (i32, i32) {
    %c0_i32 = arith.constant 0 : i32
    %c0_i32_0 = arith.constant 0 : i32
    return %arg0, %c0_i32 : i32, i32
  }
}

module attributes {stable_mosaic.version = 11 : i64} {
  func.func @_attn_kernel(%arg0: i32, %arg1: memref<1x128x384xbf16, #tpu.memory_space<vmem>>, %arg2: memref<1x128x128xbf16, #tpu.memory_space<vmem>>) attributes {dimension_semantics = [#tpu.dimension_semantics<parallel>], iteration_bounds = array<i64: 2>, scalar_prefetch = 0 : i64, scratch_operands = 0 : i64, tpu.core_type = #tpu.core_type<tc>, window_params = [{transform_indices = @transform_0, window_bounds = array<i64: 1, 128, 384>}, {transform_indices = @transform_1, window_bounds = array<i64: 1, 128, 128>}]} {
    %0 = tpu.iota {dimensions = array<i32: 0>} : vector<128x128xi32>
    %1 = tpu.iota {dimensions = array<i32: 1>} : vector<128x128xi32>
    %2 = arith.cmpi sge, %0, %1 : vector<128x128xi32>
    %c0 = arith.constant 0 : index
    %c0_0 = arith.constant 0 : index
    %c0_1 = arith.constant 0 : index
    %3 = vector.load %arg1[%c0, %c0_0, %c0_1] : memref<1x128x384xbf16, #tpu.memory_space<vmem>>, vector<1x128x32xbf16>
    %4 = vector.shape_cast %3 : vector<1x128x32xbf16> to vector<128x32xbf16>
    %c0_2 = arith.constant 0 : index
    %c0_3 = arith.constant 0 : index
    %c128 = arith.constant 128 : index
    %5 = vector.load %arg1[%c0_2, %c0_3, %c128] : memref<1x128x384xbf16, #tpu.memory_space<vmem>>, vector<1x128x32xbf16>
    %6 = vector.shape_cast %5 : vector<1x128x32xbf16> to vector<128x32xbf16>
    %c0_4 = arith.constant 0 : index
    %c0_5 = arith.constant 0 : index
    %c256 = arith.constant 256 : index
    %7 = vector.load %arg1[%c0_4, %c0_5, %c256] : memref<1x128x384xbf16, #tpu.memory_space<vmem>>, vector<1x128x32xbf16>
    %8 = vector.shape_cast %7 : vector<1x128x32xbf16> to vector<128x32xbf16>
    %9 = arith.extf %4 : vector<128x32xbf16> to vector<128x32xf32>
    %cst = arith.constant 0.176776692 : f32
    %10 = vector.broadcast %cst : f32 to vector<128x32xf32>
    %11 = arith.mulf %9, %10 : vector<128x32xf32>
    %12 = arith.truncf %11 : vector<128x32xf32> to vector<128x32xbf16>
    %cst_6 = arith.constant dense<0.000000e+00> : vector<128x128xf32>
    %13 = tpu.matmul %12, %6, %cst_6 {dimension_numbers = #tpu.dot_dimension_numbers<[1], [1], [0], [0], [0, 0, 1, 0], [], []>} : vector<128x32xbf16>, vector<128x32xbf16>, vector<128x128xf32> -> vector<128x128xf32>
    %cst_7 = arith.constant -1.000000e+30 : f32
    %14 = vector.broadcast %cst_7 : f32 to vector<128x128xf32>
    %15 = arith.select %2, %13, %14 : vector<128x128xi1>, vector<128x128xf32>
    %cst_8 = arith.constant dense<0xFF800000> : vector<128xf32>
    %16 = vector.multi_reduction <maximumf>, %15, %cst_8 [1] : vector<128x128xf32> to vector<128xf32>
    %17 = vector.shape_cast %16 : vector<128xf32> to vector<128x1xf32>
    %18 = vector.broadcast %17 : vector<128x1xf32> to vector<128x128xf32>
    %19 = arith.subf %15, %18 : vector<128x128xf32>
    %20 = math.exp %19 : vector<128x128xf32>
    %cst_9 = arith.constant dense<0.000000e+00> : vector<128xf32>
    %21 = vector.multi_reduction <add>, %20, %cst_9 [1] : vector<128x128xf32> to vector<128xf32>
    %22 = vector.shape_cast %21 : vector<128xf32> to vector<128x1xf32>
    %23 = tpu.reciprocal %22 {approx = true} : vector<128x1xf32> -> vector<128x1xf32>
    %24 = vector.broadcast %23 : vector<128x1xf32> to vector<128x128xf32>
    %25 = arith.mulf %20, %24 : vector<128x128xf32>
    %26 = arith.truncf %25 : vector<128x128xf32> to vector<128x128xbf16>
    %cst_10 = arith.constant dense<0.000000e+00> : vector<128x32xf32>
    %27 = tpu.matmul %26, %8, %cst_10 {dimension_numbers = #tpu.dot_dimension_numbers<[1], [0], [0], [1], [0, 0, 1, 1], [], []>} : vector<128x128xbf16>, vector<128x32xbf16>, vector<128x32xf32> -> vector<128x32xf32>
    %c0_11 = arith.constant 0 : index
    %c0_12 = arith.constant 0 : index
    %c32 = arith.constant 32 : index
    %28 = vector.load %arg1[%c0_11, %c0_12, %c32] : memref<1x128x384xbf16, #tpu.memory_space<vmem>>, vector<1x128x32xbf16>
    %29 = vector.shape_cast %28 : vector<1x128x32xbf16> to vector<128x32xbf16>
    %c0_13 = arith.constant 0 : index
    %c0_14 = arith.constant 0 : index
    %c160 = arith.constant 160 : index
    %30 = vector.load %arg1[%c0_13, %c0_14, %c160] : memref<1x128x384xbf16, #tpu.memory_space<vmem>>, vector<1x128x32xbf16>
    %31 = vector.shape_cast %30 : vector<1x128x32xbf16> to vector<128x32xbf16>
    %c0_15 = arith.constant 0 : index
    %c0_16 = arith.constant 0 : index
    %c288 = arith.constant 288 : index
    %32 = vector.load %arg1[%c0_15, %c0_16, %c288] : memref<1x128x384xbf16, #tpu.memory_space<vmem>>, vector<1x128x32xbf16>
    %33 = vector.shape_cast %32 : vector<1x128x32xbf16> to vector<128x32xbf16>
    %34 = arith.extf %29 : vector<128x32xbf16> to vector<128x32xf32>
    %cst_17 = arith.constant 0.176776692 : f32
    %35 = vector.broadcast %cst_17 : f32 to vector<128x32xf32>
    %36 = arith.mulf %34, %35 : vector<128x32xf32>
    %37 = arith.truncf %36 : vector<128x32xf32> to vector<128x32xbf16>
    %cst_18 = arith.constant dense<0.000000e+00> : vector<128x128xf32>
    %38 = tpu.matmul %37, %31, %cst_18 {dimension_numbers = #tpu.dot_dimension_numbers<[1], [1], [0], [0], [0, 0, 1, 0], [], []>} : vector<128x32xbf16>, vector<128x32xbf16>, vector<128x128xf32> -> vector<128x128xf32>
    %cst_19 = arith.constant -1.000000e+30 : f32
    %39 = vector.broadcast %cst_19 : f32 to vector<128x128xf32>
    %40 = arith.select %2, %38, %39 : vector<128x128xi1>, vector<128x128xf32>
    %cst_20 = arith.constant dense<0xFF800000> : vector<128xf32>
    %41 = vector.multi_reduction <maximumf>, %40, %cst_20 [1] : vector<128x128xf32> to vector<128xf32>
    %42 = vector.shape_cast %41 : vector<128xf32> to vector<128x1xf32>
    %43 = vector.broadcast %42 : vector<128x1xf32> to vector<128x128xf32>
    %44 = arith.subf %40, %43 : vector<128x128xf32>
    %45 = math.exp %44 : vector<128x128xf32>
    %cst_21 = arith.constant dense<0.000000e+00> : vector<128xf32>
    %46 = vector.multi_reduction <add>, %45, %cst_21 [1] : vector<128x128xf32> to vector<128xf32>
    %47 = vector.shape_cast %46 : vector<128xf32> to vector<128x1xf32>
    %48 = tpu.reciprocal %47 {approx = true} : vector<128x1xf32> -> vector<128x1xf32>
    %49 = vector.broadcast %48 : vector<128x1xf32> to vector<128x128xf32>
    %50 = arith.mulf %45, %49 : vector<128x128xf32>
    %51 = arith.truncf %50 : vector<128x128xf32> to vector<128x128xbf16>
    %cst_22 = arith.constant dense<0.000000e+00> : vector<128x32xf32>
    %52 = tpu.matmul %51, %33, %cst_22 {dimension_numbers = #tpu.dot_dimension_numbers<[1], [0], [0], [1], [0, 0, 1, 1], [], []>} : vector<128x128xbf16>, vector<128x32xbf16>, vector<128x32xf32> -> vector<128x32xf32>
    %c0_23 = arith.constant 0 : index
    %c0_24 = arith.constant 0 : index
    %c64 = arith.constant 64 : index
    %53 = vector.load %arg1[%c0_23, %c0_24, %c64] : memref<1x128x384xbf16, #tpu.memory_space<vmem>>, vector<1x128x32xbf16>
    %54 = vector.shape_cast %53 : vector<1x128x32xbf16> to vector<128x32xbf16>
    %c0_25 = arith.constant 0 : index
    %c0_26 = arith.constant 0 : index
    %c192 = arith.constant 192 : index
    %55 = vector.load %arg1[%c0_25, %c0_26, %c192] : memref<1x128x384xbf16, #tpu.memory_space<vmem>>, vector<1x128x32xbf16>
    %56 = vector.shape_cast %55 : vector<1x128x32xbf16> to vector<128x32xbf16>
    %c0_27 = arith.constant 0 : index
    %c0_28 = arith.constant 0 : index
    %c320 = arith.constant 320 : index
    %57 = vector.load %arg1[%c0_27, %c0_28, %c320] : memref<1x128x384xbf16, #tpu.memory_space<vmem>>, vector<1x128x32xbf16>
    %58 = vector.shape_cast %57 : vector<1x128x32xbf16> to vector<128x32xbf16>
    %59 = arith.extf %54 : vector<128x32xbf16> to vector<128x32xf32>
    %cst_29 = arith.constant 0.176776692 : f32
    %60 = vector.broadcast %cst_29 : f32 to vector<128x32xf32>
    %61 = arith.mulf %59, %60 : vector<128x32xf32>
    %62 = arith.truncf %61 : vector<128x32xf32> to vector<128x32xbf16>
    %cst_30 = arith.constant dense<0.000000e+00> : vector<128x128xf32>
    %63 = tpu.matmul %62, %56, %cst_30 {dimension_numbers = #tpu.dot_dimension_numbers<[1], [1], [0], [0], [0, 0, 1, 0], [], []>} : vector<128x32xbf16>, vector<128x32xbf16>, vector<128x128xf32> -> vector<128x128xf32>
    %cst_31 = arith.constant -1.000000e+30 : f32
    %64 = vector.broadcast %cst_31 : f32 to vector<128x128xf32>
    %65 = arith.select %2, %63, %64 : vector<128x128xi1>, vector<128x128xf32>
    %cst_32 = arith.constant dense<0xFF800000> : vector<128xf32>
    %66 = vector.multi_reduction <maximumf>, %65, %cst_32 [1] : vector<128x128xf32> to vector<128xf32>
    %67 = vector.shape_cast %66 : vector<128xf32> to vector<128x1xf32>
    %68 = vector.broadcast %67 : vector<128x1xf32> to vector<128x128xf32>
    %69 = arith.subf %65, %68 : vector<128x128xf32>
    %70 = math.exp %69 : vector<128x128xf32>
    %cst_33 = arith.constant dense<0.000000e+00> : vector<128xf32>
    %71 = vector.multi_reduction <add>, %70, %cst_33 [1] : vector<128x128xf32> to vector<128xf32>
    %72 = vector.shape_cast %71 : vector<128xf32> to vector<128x1xf32>
    %73 = tpu.reciprocal %72 {approx = true} : vector<128x1xf32> -> vector<128x1xf32>
    %74 = vector.broadcast %73 : vector<128x1xf32> to vector<128x128xf32>
    %75 = arith.mulf %70, %74 : vector<128x128xf32>
    %76 = arith.truncf %75 : vector<128x128xf32> to vector<128x128xbf16>
    %cst_34 = arith.constant dense<0.000000e+00> : vector<128x32xf32>
    %77 = tpu.matmul %76, %58, %cst_34 {dimension_numbers = #tpu.dot_dimension_numbers<[1], [0], [0], [1], [0, 0, 1, 1], [], []>} : vector<128x128xbf16>, vector<128x32xbf16>, vector<128x32xf32> -> vector<128x32xf32>
    %c0_35 = arith.constant 0 : index
    %c0_36 = arith.constant 0 : index
    %c96 = arith.constant 96 : index
    %78 = vector.load %arg1[%c0_35, %c0_36, %c96] : memref<1x128x384xbf16, #tpu.memory_space<vmem>>, vector<1x128x32xbf16>
    %79 = vector.shape_cast %78 : vector<1x128x32xbf16> to vector<128x32xbf16>
    %c0_37 = arith.constant 0 : index
    %c0_38 = arith.constant 0 : index
    %c224 = arith.constant 224 : index
    %80 = vector.load %arg1[%c0_37, %c0_38, %c224] : memref<1x128x384xbf16, #tpu.memory_space<vmem>>, vector<1x128x32xbf16>
    %81 = vector.shape_cast %80 : vector<1x128x32xbf16> to vector<128x32xbf16>
    %c0_39 = arith.constant 0 : index
    %c0_40 = arith.constant 0 : index
    %c352 = arith.constant 352 : index
    %82 = vector.load %arg1[%c0_39, %c0_40, %c352] : memref<1x128x384xbf16, #tpu.memory_space<vmem>>, vector<1x128x32xbf16>
    %83 = vector.shape_cast %82 : vector<1x128x32xbf16> to vector<128x32xbf16>
    %84 = arith.extf %79 : vector<128x32xbf16> to vector<128x32xf32>
    %cst_41 = arith.constant 0.176776692 : f32
    %85 = vector.broadcast %cst_41 : f32 to vector<128x32xf32>
    %86 = arith.mulf %84, %85 : vector<128x32xf32>
    %87 = arith.truncf %86 : vector<128x32xf32> to vector<128x32xbf16>
    %cst_42 = arith.constant dense<0.000000e+00> : vector<128x128xf32>
    %88 = tpu.matmul %87, %81, %cst_42 {dimension_numbers = #tpu.dot_dimension_numbers<[1], [1], [0], [0], [0, 0, 1, 0], [], []>} : vector<128x32xbf16>, vector<128x32xbf16>, vector<128x128xf32> -> vector<128x128xf32>
    %cst_43 = arith.constant -1.000000e+30 : f32
    %89 = vector.broadcast %cst_43 : f32 to vector<128x128xf32>
    %90 = arith.select %2, %88, %89 : vector<128x128xi1>, vector<128x128xf32>
    %cst_44 = arith.constant dense<0xFF800000> : vector<128xf32>
    %91 = vector.multi_reduction <maximumf>, %90, %cst_44 [1] : vector<128x128xf32> to vector<128xf32>
    %92 = vector.shape_cast %91 : vector<128xf32> to vector<128x1xf32>
    %93 = vector.broadcast %92 : vector<128x1xf32> to vector<128x128xf32>
    %94 = arith.subf %90, %93 : vector<128x128xf32>
    %95 = math.exp %94 : vector<128x128xf32>
    %cst_45 = arith.constant dense<0.000000e+00> : vector<128xf32>
    %96 = vector.multi_reduction <add>, %95, %cst_45 [1] : vector<128x128xf32> to vector<128xf32>
    %97 = vector.shape_cast %96 : vector<128xf32> to vector<128x1xf32>
    %98 = tpu.reciprocal %97 {approx = true} : vector<128x1xf32> -> vector<128x1xf32>
    %99 = vector.broadcast %98 : vector<128x1xf32> to vector<128x128xf32>
    %100 = arith.mulf %95, %99 : vector<128x128xf32>
    %101 = arith.truncf %100 : vector<128x128xf32> to vector<128x128xbf16>
    %cst_46 = arith.constant dense<0.000000e+00> : vector<128x32xf32>
    %102 = tpu.matmul %101, %83, %cst_46 {dimension_numbers = #tpu.dot_dimension_numbers<[1], [0], [0], [1], [0, 0, 1, 1], [], []>} : vector<128x128xbf16>, vector<128x32xbf16>, vector<128x32xf32> -> vector<128x32xf32>
    %103 = tpu.concatenate %27, %52, %77, %102 in 1 : vector<128x32xf32>, vector<128x32xf32>, vector<128x32xf32>, vector<128x32xf32> -> vector<128x128xf32>
    %104 = arith.truncf %103 : vector<128x128xf32> to vector<128x128xbf16>
    %c0_47 = arith.constant 0 : index
    %c0_48 = arith.constant 0 : index
    %c0_49 = arith.constant 0 : index
    %105 = vector.load %arg2[%c0_47, %c0_48, %c0_49] : memref<1x128x128xbf16, #tpu.memory_space<vmem>>, vector<1x128x128xbf16>
    %106 = vector.shape_cast %105 : vector<1x128x128xbf16> to vector<128x128xbf16>
    %107 = vector.shape_cast %104 : vector<128x128xbf16> to vector<1x128x128xbf16>
    tpu.vector_store %arg2[%c0_47, %c0_48, %c0_49], %107 {strides = array<i32>} : memref<1x128x128xbf16, #tpu.memory_space<vmem>>, vector<1x128x128xbf16>,
    return
  }
  func.func @transform_0(%arg0: i32) -> (i32, i32, i32) {
    %c0_i32 = arith.constant 0 : i32
    %c0_i32_0 = arith.constant 0 : i32
    %c0_i32_1 = arith.constant 0 : i32
    return %arg0, %c0_i32, %c0_i32_0 : i32, i32, i32
  }
  func.func @transform_1(%arg0: i32) -> (i32, i32, i32) {
    %c0_i32 = arith.constant 0 : i32
    %c0_i32_0 = arith.constant 0 : i32
    %c0_i32_1 = arith.constant 0 : i32
    return %arg0, %c0_i32, %c0_i32_0 : i32, i32, i32
  }
}

module attributes {stable_mosaic.version = 11 : i64} {
  func.func @_proj_mlp_kernel(%arg0: i32, %arg1: memref<128x128xf32, #tpu.memory_space<vmem>>, %arg2: memref<128x128xbf16, #tpu.memory_space<vmem>>, %arg3: memref<128x128xbf16, #tpu.memory_space<vmem>>, %arg4: memref<1x128xf32, #tpu.memory_space<vmem>>, %arg5: memref<1x128xf32, #tpu.memory_space<vmem>>, %arg6: memref<1x128xf32, #tpu.memory_space<vmem>>, %arg7: memref<128x512xbf16, #tpu.memory_space<vmem>>, %arg8: memref<1x512xf32, #tpu.memory_space<vmem>>, %arg9: memref<512x128xbf16, #tpu.memory_space<vmem>>, %arg10: memref<1x128xf32, #tpu.memory_space<vmem>>, %arg11: memref<128x128xf32, #tpu.memory_space<vmem>>) attributes {dimension_semantics = [#tpu.dimension_semantics<parallel>], iteration_bounds = array<i64: 2>, scalar_prefetch = 0 : i64, scratch_operands = 0 : i64, tpu.core_type = #tpu.core_type<tc>, window_params = [{transform_indices = @transform_0, window_bounds = array<i64: 128, 128>}, {transform_indices = @transform_1, window_bounds = array<i64: 128, 128>}, {pipeline_mode = #tpu.pipeline_mode<synchronous>, transform_indices = @transform_2, window_bounds = array<i64: 128, 128>}, {pipeline_mode = #tpu.pipeline_mode<synchronous>, transform_indices = @transform_3, window_bounds = array<i64: 1, 128>}, {pipeline_mode = #tpu.pipeline_mode<synchronous>, transform_indices = @transform_4, window_bounds = array<i64: 1, 128>}, {pipeline_mode = #tpu.pipeline_mode<synchronous>, transform_indices = @transform_5, window_bounds = array<i64: 1, 128>}, {pipeline_mode = #tpu.pipeline_mode<synchronous>, transform_indices = @transform_6, window_bounds = array<i64: 128, 512>}, {pipeline_mode = #tpu.pipeline_mode<synchronous>, transform_indices = @transform_7, window_bounds = array<i64: 1, 512>}, {pipeline_mode = #tpu.pipeline_mode<synchronous>, transform_indices = @transform_8, window_bounds = array<i64: 512, 128>}, {pipeline_mode = #tpu.pipeline_mode<synchronous>, transform_indices = @transform_9, window_bounds = array<i64: 1, 128>}, {transform_indices = @transform_10, window_bounds = array<i64: 128, 128>}]} {
    %c0 = arith.constant 0 : index
    %c0_0 = arith.constant 0 : index
    %0 = vector.load %arg1[%c0, %c0_0] : memref<128x128xf32, #tpu.memory_space<vmem>>, vector<128x128xf32>
    %c0_1 = arith.constant 0 : index
    %c0_2 = arith.constant 0 : index
    %1 = vector.load %arg2[%c0_1, %c0_2] : memref<128x128xbf16, #tpu.memory_space<vmem>>, vector<128x128xbf16>
    %c0_3 = arith.constant 0 : index
    %c0_4 = arith.constant 0 : index
    %2 = vector.load %arg3[%c0_3, %c0_4] : memref<128x128xbf16, #tpu.memory_space<vmem>>, vector<128x128xbf16>
    %cst = arith.constant dense<0.000000e+00> : vector<128x128xf32>
    %3 = tpu.matmul %1, %2, %cst {dimension_numbers = #tpu.dot_dimension_numbers<[1], [0], [0], [1], [0, 0, 1, 1], [], []>} : vector<128x128xbf16>, vector<128x128xbf16>, vector<128x128xf32> -> vector<128x128xf32>
    %c0_5 = arith.constant 0 : index
    %c0_6 = arith.constant 0 : index
    %4 = vector.load %arg4[%c0_5, %c0_6] : memref<1x128xf32, #tpu.memory_space<vmem>>, vector<1x128xf32>
    %5 = vector.broadcast %4 : vector<1x128xf32> to vector<128x128xf32>
    %6 = arith.addf %3, %5 : vector<128x128xf32>
    %7 = arith.addf %0, %6 : vector<128x128xf32>
    %c0_7 = arith.constant 0 : index
    %c0_8 = arith.constant 0 : index
    %8 = vector.load %arg5[%c0_7, %c0_8] : memref<1x128xf32, #tpu.memory_space<vmem>>, vector<1x128xf32>
    %c0_9 = arith.constant 0 : index
    %c0_10 = arith.constant 0 : index
    %9 = vector.load %arg6[%c0_9, %c0_10] : memref<1x128xf32, #tpu.memory_space<vmem>>, vector<1x128xf32>
    %cst_11 = arith.constant dense<0.000000e+00> : vector<128xf32>
    %10 = vector.multi_reduction <add>, %7, %cst_11 [1] : vector<128x128xf32> to vector<128xf32>
    %11 = vector.shape_cast %10 : vector<128xf32> to vector<128x1xf32>
    %cst_12 = arith.constant 1.280000e+02 : f32
    %12 = vector.broadcast %cst_12 : f32 to vector<128x1xf32>
    %13 = arith.divf %11, %12 : vector<128x1xf32>
    %14 = vector.broadcast %13 : vector<128x1xf32> to vector<128x128xf32>
    %15 = arith.subf %7, %14 : vector<128x128xf32>
    %16 = arith.mulf %15, %15 : vector<128x128xf32>
    %cst_13 = arith.constant dense<0.000000e+00> : vector<128xf32>
    %17 = vector.multi_reduction <add>, %16, %cst_13 [1] : vector<128x128xf32> to vector<128xf32>
    %18 = vector.shape_cast %17 : vector<128xf32> to vector<128x1xf32>
    %cst_14 = arith.constant 1.280000e+02 : f32
    %19 = vector.broadcast %cst_14 : f32 to vector<128x1xf32>
    %20 = arith.divf %18, %19 : vector<128x1xf32>
    %21 = vector.broadcast %13 : vector<128x1xf32> to vector<128x128xf32>
    %22 = arith.subf %7, %21 : vector<128x128xf32>
    %cst_15 = arith.constant 9.99999974E-6 : f32
    %23 = vector.broadcast %cst_15 : f32 to vector<128x1xf32>
    %24 = arith.addf %20, %23 : vector<128x1xf32>
    %25 = math.rsqrt %24 : vector<128x1xf32>
    %26 = vector.broadcast %25 : vector<128x1xf32> to vector<128x128xf32>
    %27 = arith.mulf %22, %26 : vector<128x128xf32>
    %28 = vector.broadcast %8 : vector<1x128xf32> to vector<128x128xf32>
    %29 = arith.mulf %27, %28 : vector<128x128xf32>
    %30 = vector.broadcast %9 : vector<1x128xf32> to vector<128x128xf32>
    %31 = arith.addf %29, %30 : vector<128x128xf32>
    %32 = arith.truncf %31 : vector<128x128xf32> to vector<128x128xbf16>
    %c0_16 = arith.constant 0 : index
    %c0_17 = arith.constant 0 : index
    %33 = vector.load %arg7[%c0_16, %c0_17] : memref<128x512xbf16, #tpu.memory_space<vmem>>, vector<128x512xbf16>
    %cst_18 = arith.constant dense<0.000000e+00> : vector<128x512xf32>
    %34 = tpu.matmul %32, %33, %cst_18 {dimension_numbers = #tpu.dot_dimension_numbers<[1], [0], [0], [1], [0, 0, 1, 1], [], []>} : vector<128x128xbf16>, vector<128x512xbf16>, vector<128x512xf32> -> vector<128x512xf32>
    %c0_19 = arith.constant 0 : index
    %c0_20 = arith.constant 0 : index
    %35 = vector.load %arg8[%c0_19, %c0_20] : memref<1x512xf32, #tpu.memory_space<vmem>>, vector<1x512xf32>
    %36 = vector.broadcast %35 : vector<1x512xf32> to vector<128x512xf32>
    %37 = arith.addf %34, %36 : vector<128x512xf32>
    %cst_21 = arith.constant 5.000000e-01 : f32
    %38 = vector.broadcast %cst_21 : f32 to vector<128x512xf32>
    %39 = arith.mulf %38, %37 : vector<128x512xf32>
    %cst_22 = arith.constant 4.471500e-02 : f32
    %40 = vector.broadcast %cst_22 : f32 to vector<128x512xf32>
    %41 = arith.mulf %40, %37 : vector<128x512xf32>
    %42 = arith.mulf %41, %37 : vector<128x512xf32>
    %43 = arith.mulf %42, %37 : vector<128x512xf32>
    %44 = arith.addf %37, %43 : vector<128x512xf32>
    %cst_23 = arith.constant 0.797884583 : f32
    %45 = vector.broadcast %cst_23 : f32 to vector<128x512xf32>
    %46 = arith.mulf %45, %44 : vector<128x512xf32>
    %47 = math.tanh %46 : vector<128x512xf32>
    %cst_24 = arith.constant 1.000000e+00 : f32
    %48 = vector.broadcast %cst_24 : f32 to vector<128x512xf32>
    %49 = arith.addf %48, %47 : vector<128x512xf32>
    %50 = arith.mulf %39, %49 : vector<128x512xf32>
    %51 = arith.truncf %50 : vector<128x512xf32> to vector<128x512xbf16>
    %c0_25 = arith.constant 0 : index
    %c0_26 = arith.constant 0 : index
    %52 = vector.load %arg9[%c0_25, %c0_26] : memref<512x128xbf16, #tpu.memory_space<vmem>>, vector<512x128xbf16>
    %cst_27 = arith.constant dense<0.000000e+00> : vector<128x128xf32>
    %53 = tpu.matmul %51, %52, %cst_27 {dimension_numbers = #tpu.dot_dimension_numbers<[1], [0], [0], [1], [0, 0, 1, 1], [], []>} : vector<128x512xbf16>, vector<512x128xbf16>, vector<128x128xf32> -> vector<128x128xf32>
    %c0_28 = arith.constant 0 : index
    %c0_29 = arith.constant 0 : index
    %54 = vector.load %arg10[%c0_28, %c0_29] : memref<1x128xf32, #tpu.memory_space<vmem>>, vector<1x128xf32>
    %55 = vector.broadcast %54 : vector<1x128xf32> to vector<128x128xf32>
    %56 = arith.addf %53, %55 : vector<128x128xf32>
    %57 = arith.addf %7, %56 : vector<128x128xf32>
    %c0_30 = arith.constant 0 : index
    %c0_31 = arith.constant 0 : index
    %58 = vector.load %arg11[%c0_30, %c0_31] : memref<128x128xf32, #tpu.memory_space<vmem>>, vector<128x128xf32>
    tpu.vector_store %arg11[%c0_30, %c0_31], %57 {strides = array<i32>} : memref<128x128xf32, #tpu.memory_space<vmem>>, vector<128x128xf32>,
    return
  }
  func.func @transform_0(%arg0: i32) -> (i32, i32) {
    %c0_i32 = arith.constant 0 : i32
    %c0_i32_0 = arith.constant 0 : i32
    return %arg0, %c0_i32 : i32, i32
  }
  func.func @transform_1(%arg0: i32) -> (i32, i32) {
    %c0_i32 = arith.constant 0 : i32
    %c0_i32_0 = arith.constant 0 : i32
    return %arg0, %c0_i32 : i32, i32
  }
  func.func @transform_2(%arg0: i32) -> (i32, i32) {
    %c0_i32 = arith.constant 0 : i32
    %c0_i32_0 = arith.constant 0 : i32
    %c0_i32_1 = arith.constant 0 : i32
    return %c0_i32, %c0_i32_0 : i32, i32
  }
  func.func @transform_3(%arg0: i32) -> (i32, i32) {
    %c0_i32 = arith.constant 0 : i32
    %c0_i32_0 = arith.constant 0 : i32
    %c0_i32_1 = arith.constant 0 : i32
    return %c0_i32, %c0_i32_0 : i32, i32
  }
  func.func @transform_4(%arg0: i32) -> (i32, i32) {
    %c0_i32 = arith.constant 0 : i32
    %c0_i32_0 = arith.constant 0 : i32
    %c0_i32_1 = arith.constant 0 : i32
    return %c0_i32, %c0_i32_0 : i32, i32
  }
  func.func @transform_5(%arg0: i32) -> (i32, i32) {
    %c0_i32 = arith.constant 0 : i32
    %c0_i32_0 = arith.constant 0 : i32
    %c0_i32_1 = arith.constant 0 : i32
    return %c0_i32, %c0_i32_0 : i32, i32
  }
  func.func @transform_6(%arg0: i32) -> (i32, i32) {
    %c0_i32 = arith.constant 0 : i32
    %c0_i32_0 = arith.constant 0 : i32
    %c0_i32_1 = arith.constant 0 : i32
    return %c0_i32, %c0_i32_0 : i32, i32
  }
  func.func @transform_7(%arg0: i32) -> (i32, i32) {
    %c0_i32 = arith.constant 0 : i32
    %c0_i32_0 = arith.constant 0 : i32
    %c0_i32_1 = arith.constant 0 : i32
    return %c0_i32, %c0_i32_0 : i32, i32
  }
  func.func @transform_8(%arg0: i32) -> (i32, i32) {
    %c0_i32 = arith.constant 0 : i32
    %c0_i32_0 = arith.constant 0 : i32
    %c0_i32_1 = arith.constant 0 : i32
    return %c0_i32, %c0_i32_0 : i32, i32
  }
  func.func @transform_9(%arg0: i32) -> (i32, i32) {
    %c0_i32 = arith.constant 0 : i32
    %c0_i32_0 = arith.constant 0 : i32
    %c0_i32_1 = arith.constant 0 : i32
    return %c0_i32, %c0_i32_0 : i32, i32
  }
  func.func @transform_10(%arg0: i32) -> (i32, i32) {
    %c0_i32 = arith.constant 0 : i32
    %c0_i32_0 = arith.constant 0 : i32
    return %arg0, %c0_i32 : i32, i32
  }
}

module attributes {stable_mosaic.version = 11 : i64} {
  func.func @_head_kernel(%arg0: i32, %arg1: i32, %arg2: memref<128x128xf32, #tpu.memory_space<vmem>>, %arg3: memref<1x128xf32, #tpu.memory_space<vmem>>, %arg4: memref<1x128xf32, #tpu.memory_space<vmem>>, %arg5: memref<128x256xbf16, #tpu.memory_space<vmem>>, %arg6: memref<128x256xbf16, #tpu.memory_space<vmem>>, %arg7: memref<128x128xbf16, #tpu.memory_space<vmem>>) attributes {dimension_semantics = [#tpu.dimension_semantics<parallel>, #tpu.dimension_semantics<arbitrary>], iteration_bounds = array<i64: 2, 2>, scalar_prefetch = 0 : i64, scratch_operands = 1 : i64, tpu.core_type = #tpu.core_type<tc>, window_params = [{transform_indices = @transform_0, window_bounds = array<i64: 128, 128>}, {pipeline_mode = #tpu.pipeline_mode<synchronous>, transform_indices = @transform_1, window_bounds = array<i64: 1, 128>}, {pipeline_mode = #tpu.pipeline_mode<synchronous>, transform_indices = @transform_2, window_bounds = array<i64: 1, 128>}, {transform_indices = @transform_3, window_bounds = array<i64: 128, 256>}, {transform_indices = @transform_4, window_bounds = array<i64: 128, 256>}]} {
    %c0_i32 = arith.constant 0 : i32
    %0 = arith.cmpi eq, %arg1, %c0_i32 : i32
    %1 = arith.extui %0 : i1 to i32
    %c0_i32_0 = arith.constant 0 : i32
    %2 = arith.cmpi ne, %1, %c0_i32_0 : i32
    scf.if %2 {
      %c0_6 = arith.constant 0 : index
      %c0_7 = arith.constant 0 : index
      %8 = vector.load %arg2[%c0_6, %c0_7] : memref<128x128xf32, #tpu.memory_space<vmem>>, vector<128x128xf32>
      %c0_8 = arith.constant 0 : index
      %c0_9 = arith.constant 0 : index
      %9 = vector.load %arg3[%c0_8, %c0_9] : memref<1x128xf32, #tpu.memory_space<vmem>>, vector<1x128xf32>
      %c0_10 = arith.constant 0 : index
      %c0_11 = arith.constant 0 : index
      %10 = vector.load %arg4[%c0_10, %c0_11] : memref<1x128xf32, #tpu.memory_space<vmem>>, vector<1x128xf32>
      %cst_12 = arith.constant dense<0.000000e+00> : vector<128xf32>
      %11 = vector.multi_reduction <add>, %8, %cst_12 [1] : vector<128x128xf32> to vector<128xf32>
      %12 = vector.shape_cast %11 : vector<128xf32> to vector<128x1xf32>
      %cst_13 = arith.constant 1.280000e+02 : f32
      %13 = vector.broadcast %cst_13 : f32 to vector<128x1xf32>
      %14 = arith.divf %12, %13 : vector<128x1xf32>
      %15 = vector.broadcast %14 : vector<128x1xf32> to vector<128x128xf32>
      %16 = arith.subf %8, %15 : vector<128x128xf32>
      %17 = arith.mulf %16, %16 : vector<128x128xf32>
      %cst_14 = arith.constant dense<0.000000e+00> : vector<128xf32>
      %18 = vector.multi_reduction <add>, %17, %cst_14 [1] : vector<128x128xf32> to vector<128xf32>
      %19 = vector.shape_cast %18 : vector<128xf32> to vector<128x1xf32>
      %cst_15 = arith.constant 1.280000e+02 : f32
      %20 = vector.broadcast %cst_15 : f32 to vector<128x1xf32>
      %21 = arith.divf %19, %20 : vector<128x1xf32>
      %22 = vector.broadcast %14 : vector<128x1xf32> to vector<128x128xf32>
      %23 = arith.subf %8, %22 : vector<128x128xf32>
      %cst_16 = arith.constant 9.99999974E-6 : f32
      %24 = vector.broadcast %cst_16 : f32 to vector<128x1xf32>
      %25 = arith.addf %21, %24 : vector<128x1xf32>
      %26 = math.rsqrt %25 : vector<128x1xf32>
      %27 = vector.broadcast %26 : vector<128x1xf32> to vector<128x128xf32>
      %28 = arith.mulf %23, %27 : vector<128x128xf32>
      %29 = vector.broadcast %9 : vector<1x128xf32> to vector<128x128xf32>
      %30 = arith.mulf %28, %29 : vector<128x128xf32>
      %31 = vector.broadcast %10 : vector<1x128xf32> to vector<128x128xf32>
      %32 = arith.addf %30, %31 : vector<128x128xf32>
      %33 = arith.truncf %32 : vector<128x128xf32> to vector<128x128xbf16>
      %c0_17 = arith.constant 0 : index
      %c0_18 = arith.constant 0 : index
      %34 = vector.load %arg7[%c0_17, %c0_18] : memref<128x128xbf16, #tpu.memory_space<vmem>>, vector<128x128xbf16>
      tpu.vector_store %arg7[%c0_17, %c0_18], %33 {strides = array<i32>} : memref<128x128xbf16, #tpu.memory_space<vmem>>, vector<128x128xbf16>,
    } else {
    }
    %c0 = arith.constant 0 : index
    %c0_1 = arith.constant 0 : index
    %3 = vector.load %arg7[%c0, %c0_1] : memref<128x128xbf16, #tpu.memory_space<vmem>>, vector<128x128xbf16>
    %c0_2 = arith.constant 0 : index
    %c0_3 = arith.constant 0 : index
    %4 = vector.load %arg5[%c0_2, %c0_3] : memref<128x256xbf16, #tpu.memory_space<vmem>>, vector<128x256xbf16>
    %cst = arith.constant dense<0.000000e+00> : vector<128x256xf32>
    %5 = tpu.matmul %3, %4, %cst {dimension_numbers = #tpu.dot_dimension_numbers<[1], [0], [0], [1], [0, 0, 1, 1], [], []>} : vector<128x128xbf16>, vector<128x256xbf16>, vector<128x256xf32> -> vector<128x256xf32>
    %6 = arith.truncf %5 : vector<128x256xf32> to vector<128x256xbf16>
    %c0_4 = arith.constant 0 : index
    %c0_5 = arith.constant 0 : index
    %7 = vector.load %arg6[%c0_4, %c0_5] : memref<128x256xbf16, #tpu.memory_space<vmem>>, vector<128x256xbf16>
    tpu.vector_store %arg6[%c0_4, %c0_5], %6 {strides = array<i32>} : memref<128x256xbf16, #tpu.memory_space<vmem>>, vector<128x256xbf16>,
    return
  }
  func.func @transform_0(%arg0: i32, %arg1: i32) -> (i32, i32) {
    %c0_i32 = arith.constant 0 : i32
    %c0_i32_0 = arith.constant 0 : i32
    return %arg0, %c0_i32 : i32, i32
  }
  func.func @transform_1(%arg0: i32, %arg1: i32) -> (i32, i32) {
    %c0_i32 = arith.constant 0 : i32
    %c0_i32_0 = arith.constant 0 : i32
    %c0_i32_1 = arith.constant 0 : i32
    return %c0_i32, %c0_i32_0 : i32, i32
  }
  func.func @transform_2(%arg0: i32, %arg1: i32) -> (i32, i32) {
    %c0_i32 = arith.constant 0 : i32
    %c0_i32_0 = arith.constant 0 : i32
    %c0_i32_1 = arith.constant 0 : i32
    return %c0_i32, %c0_i32_0 : i32, i32
  }
  func.func @transform_3(%arg0: i32, %arg1: i32) -> (i32, i32) {
    %c0_i32 = arith.constant 0 : i32
    %c0_i32_0 = arith.constant 0 : i32
    return %c0_i32, %arg1 : i32, i32
  }
  func.func @transform_4(%arg0: i32, %arg1: i32) -> (i32, i32) {
    %c0_i32 = arith.constant 0 : i32
    return %arg0, %arg1 : i32, i32
  }
}

</mosaic_0001>

<bundles_post_ra>
// kernel: _lambda_.7
= control target key start
LH: loop header
LB: loop body
LE: loop exit
PB: predicated region body
PF: predicated region fallthrough
CT: control target
= control target key end

     0   :  { %s1298_s18 = smov 0   ;;  %s1989_s0 = inlined_call_operand.vmem [shape: f32[256,128], index: 0, kind: input, shape index: {}]   ;;  %s1990_s1 = inlined_call_operand.vmem [shape: f32[1,128], index: 1, kind: input, shape index: {}]   ;;  %s1991_s2 = inlined_call_operand.vmem [shape: f32[1,128], index: 2, kind: input, shape index: {}]   ;;  %s1992_s3 = inlined_call_operand.vmem [shape: bf16[128,384], index: 3, kind: input, shape index: {}]   ;;  %s1993_s4 = inlined_call_operand.vmem [shape: f32[1,384], index: 4, kind: input, shape index: {}]   ;;  %s1994_s5 = inlined_call_operand.vmem [shape: bf16[256,384], index: 5, kind: output, shape index: {}]  }
   0x1 LB: > { %s1058_s19 = sadd.s32 4294967295, %s1265_s18   ;;  %p1062_p0 = scmp.ge.s32.totalorder %s1265_s18, 1  ;;  %s1265_s18 = sphi %s1298_s18, %s15_s18  }
   0x2   : > { %p188_p1 = scmp.lt.s32.totalorder %s1265_s18, 3 }
   0x4   : > { %p189_p2 = pnand %p1062_p0, %p188_p1 }
   0x5   : > { %s1063_s20 = sshll.u32 (!%p189_p2), %s1058_s19, 4 }
   0x6   : > { %192 = sbr.rel (%p189_p2) target bundleno = 601 (0x259), region = 40  ;;  %p218_p3 = scmp.lt.s32.totalorder (!%p189_p2), %s1063_s20, 31 }
   0xb   : > { %s2008_s20 = smov (!%p218_p3, %s1063_s20), 31  ;;  %v1267_v10 = vmov 128.0   ;;  %v1153_v63 = vld [vmem:[%s1992_s3 + $0xa8] sm:$0xf] }
   0xc   : > { %s1064_s21 = sshll.u32 %s2008_s20, 3  ;;  %1225 = vrcp.f32 %v1267_v10  ;;  %v1183_v10 = vld [vmem:[%s1992_s3 + $0x94] sm:$0xf]  ;;  %s1213_s10 = smul.u32 12, %s2008_s20 }
   0xd   : > { %s1312_s24 = scalar_lea.vmem %s1989_s0, %s1064_s21 }
   0xe   : > { %v242_v0 = vld [vmem:[%s1312_s24 + $0x60] sm:$0xff]  ;;  %v232_v2 = vld [vmem:[%s1312_s24 + $0x10] sm:$0xff]  ;;  %v243_v3 = vld [vmem:[%s1312_s24 + $0x68] sm:$0xff]  ;;  %s1854_s12 = scalar_lea.vmem %s1994_s5, %s1213_s10 }
   0xf   : > { %v230_v1 = vld [vmem:[%s1312_s24] sm:$0xff]  ;;  %272 = vadd.xlane.f32.xlu1 %v242_v0  ;;  %252 = vadd.xlane.f32.xlu2 %v232_v2  ;;  %v231_v4 = vld [vmem:[%s1312_s24 + $0x8] sm:$0xff]  ;;  %v233_v5 = vld [vmem:[%s1312_s24 + $0x18] sm:$0xff] }
  0x10   : > { %248 = vadd.xlane.f32.xlu0 %v230_v1  ;;  %v244_v6 = vld [vmem:[%s1312_s24 + $0x70] sm:$0xff]  ;;  %v245_v7 = vld [vmem:[%s1312_s24 + $0x78] sm:$0xff]  ;;  %v234_v8 = vld [vmem:[%s1312_s24 + $0x20] sm:$0xff] }
  0x11   : > { %v1324_v9 = vld [vmem:[%s1312_s24 + $0x28] sm:$0xff]  ;;  %v1347_v33 = vld [vmem:[%s1312_s24 + $0x38] sm:$0xff]  ;;  %v1364_v45 = vld [vmem:[%s1312_s24 + $0x30] sm:$0xff] }
  0x12   : > { %v1226_v11 = vpop.eup %1225  ;;  %v1379_v53 = vld [vmem:[%s1312_s24 + $0x48] sm:$0xff]  ;;  %v1387_v57 = vld [vmem:[%s1312_s24 + $0x50] sm:$0xff]  ;;  %v1391_v59 = vld [vmem:[%s1312_s24 + $0x40] sm:$0xff] }
  0x13   : > { %v281_v12 = vmul.f32 128.0, %v1226_v11  ;;  %vm285_vm0 = vweird.f32 %v1226_v11  ;;  %v1399_v61 = vld [vmem:[%s1312_s24 + $0x58] sm:$0xff] }
  0x15   : > { %v282_v13 = vsub.f32 1.0, %v281_v12  ;;  %v1143_v12 = vld [vmem:[%s1992_s3 + $0x9c] sm:$0xf0] }
  0x17   : > { %274 = vadd.xlane.f32.xlu1 %v243_v3  ;;  %254 = vadd.xlane.f32.xlu2 %v233_v5  ;;  %v283_v14 = vmul.f32 %v1226_v11, %v282_v13  ;;  %v1149_v13 = vld [vmem:[%s1992_s3 + $0x98] sm:$0xf] }
  0x18   : > { %250 = vadd.xlane.f32.xlu0 %v231_v4 }
  0x19   : > { %v284_v15 = vadd.f32 %v1226_v11, %v283_v14  ;;  %v1185_v14 = vld [vmem:[%s1992_s3 + $0xa0] sm:$0xf0] }
  0x1b   : > { %v1327_v16 = vsel %vm285_vm0, %v1226_v11, %v284_v15  ;;  %v1446_v15 = vor.u32 %v1183_v10, %v1143_v12  ;;  %v1081_v10 = vld [vmem:[%s1992_s3 + $0x18] sm:$0xf]  ;;  %v1168_v12 = vld [vmem:[%s1992_s3 + $0x1c] sm:$0xf] }
  0x1f   : > { %278 = vadd.xlane.f32.xlu1 %v245_v7  ;;  %256 = vadd.xlane.f32.xlu2 %v234_v8 }
  0x20   : > { %276 = vadd.xlane.f32.xlu0 %v244_v6 }
  0x28   : > { %258 = vadd.xlane.f32.xlu0 %v1324_v9 }
  0x82   : > { %v273_v17 = vpop.xlane.xlu1 %272  ;;  %v253_v23 = vpop.xlane.xlu2 %252 }
  0x83   : > { %v249_v18 = vpop.xlane.xlu0 %248  ;;  %v299_v19 = vmul.f32 %v1327_v16, %v273_v17  ;;  %v289_v32 = vmul.f32 %v1327_v16, %v253_v23  ;;  %v1448_v17 = vor.u32 %v1185_v14, %v1149_v13 }
  0x84   : > { %v287_v20 = vmul.f32 %v1327_v16, %v249_v18  ;;  %v1129_v18 = vld [vmem:[%s1992_s3 + $0x78] sm:$0xf] }
  0x85   : > { %v1331_v21 = vsub.f32 %v242_v0, %v299_v19  ;;  %v1354_v37 = vsub.f32 %v232_v2, %v289_v32  ;;  %v1187_v0 = vld [vmem:[%s1992_s3 + $0xb0] sm:$0xf0]  ;;  %v1181_v19 = vld [vmem:[%s1992_s3 + $0x80] sm:$0xf0]  ;;  %v1178_v32 = vld [vmem:[%s1992_s3 + $0x68] sm:$0xf0] }
  0x86   : > { %v1333_v22 = vsub.f32 %v230_v1, %v287_v20  ;;  %v1186_v1 = vld [vmem:[%s1992_s3 + $0xac] sm:$0xf]  ;;  %v1154_v2 = vor.u32 %v1187_v0, %v1153_v63  ;;  %v1180_v20 = vld [vmem:[%s1992_s3 + $0x7c] sm:$0xf]  ;;  %v1130_v23 = vor.u32 %v1181_v19, %v1129_v18  ;;  %v1171_v63 = vld [vmem:[%s1992_s3 + $0x34] sm:$0xf] }
  0x87   : > { %v331_v24 = vmul.f32 %v1331_v21, %v1331_v21  ;;  %v321_v42 = vmul.f32 %v1354_v37, %v1354_v37  ;;  %v1083_v19 = vld [vmem:[%s1992_s3 + $0x24] sm:$0xf0] }
  0x88   : > { %v319_v25 = vmul.f32 %v1333_v22, %v1333_v22  ;;  %789 = vmatpush.bf16.msra.mxu0 %v1154_v2  ;;  %1189 = vmatpush.bf16.msra.mxu3 %v1154_v2  ;;  %v1101_v2 = vld [vmem:[%s1992_s3 + $0x38] sm:$0xf] }
  0x89   : > { %359 = vadd.xlane.f32.xlu0 %v331_v24  ;;  %v1131_v24 = vld [vmem:[%s1992_s3 + $0x84] sm:$0xf0] }
  0x8a   : > { %335 = vadd.xlane.f32.xlu1 %v319_v25  ;;  %v275_v26 = vpop.xlane.xlu1 %274  ;;  %v255_v36 = vpop.xlane.xlu2 %254  ;;  %v1137_v25 = vld [vmem:[%s1992_s3 + $0x80] sm:$0xf] }
  0x8b   : > { %v251_v27 = vpop.xlane.xlu0 %250  ;;  %v300_v28 = vmul.f32 %v1327_v16, %v275_v26  ;;  %v290_v44 = vmul.f32 %v1327_v16, %v255_v36  ;;  %v1182_v26 = vld [vmem:[%s1992_s3 + $0x88] sm:$0xf0]  ;;  %v1119_v36 = vld [vmem:[%s1992_s3 + $0x6c] sm:$0xf0] }
  0x8c   : > { %v288_v29 = vmul.f32 %v1327_v16, %v251_v27  ;;  %v1470_v27 = vor.u32 %v1180_v20, %v1131_v24  ;;  %v1089_v20 = vld [vmem:[%s1992_s3 + $0x20] sm:$0xf]  ;;  %v1568_v24 = vor.u32 %v1168_v12, %v1083_v19 }
  0x8d   : > { %v1341_v30 = vsub.f32 %v243_v3, %v300_v28  ;;  %v1371_v48 = vsub.f32 %v233_v5, %v290_v44  ;;  %v1155_v3 = vld [vmem:[%s1992_s3 + $0xb4] sm:$0xf0]  ;;  %v1188_v5 = vld [vmem:[%s1992_s3 + $0xb8] sm:$0xf0]  ;;  %v1472_v28 = vor.u32 %v1182_v26, %v1137_v25  ;;  %v1175_v44 = vld [vmem:[%s1992_s3 + $0x50] sm:$0xf0] }
  0x8e   : > { %v1343_v31 = vsub.f32 %v231_v4, %v288_v29  ;;  %v1161_v4 = vld [vmem:[%s1992_s3 + $0xb0] sm:$0xf]  ;;  %v1117_v29 = vld [vmem:[%s1992_s3 + $0x60] sm:$0xf] }
  0x8f   : > { %v332_v34 = vmul.f32 %v1341_v30, %v1341_v30  ;;  %v322_v52 = vmul.f32 %v1371_v48, %v1371_v48 }
  0x90   : > { %v320_v35 = vmul.f32 %v1343_v31, %v1343_v31 }
  0x91   : > { %262 = vadd.xlane.f32.xlu0 %v1347_v33 }
  0x92   : > { %361 = vadd.xlane.f32.xlu1 %v332_v34  ;;  %337 = vadd.xlane.f32.xlu2 %v320_v35  ;;  %v279_v39 = vpop.xlane.xlu1 %278  ;;  %v257_v49 = vpop.xlane.xlu2 %256  ;;  %v1177_v34 = vld [vmem:[%s1992_s3 + $0x64] sm:$0xf]  ;;  %v1118_v35 = vor.u32 %v1178_v32, %v1117_v29  ;;  %v1069_v32 = vld [vmem:[%s1992_s3] sm:$0xf] }
  0x93   : > { %v277_v38 = vpop.xlane.xlu0 %276  ;;  %v302_v43 = vmul.f32 %v1327_v16, %v279_v39  ;;  %v291_v51 = vmul.f32 %v1327_v16, %v257_v49  ;;  %v1179_v39 = vld [vmem:[%s1992_s3 + $0x70] sm:$0xf0] }
  0x94   : > { %v301_v40 = vmul.f32 %v1327_v16, %v277_v38  ;;  %v1125_v38 = vld [vmem:[%s1992_s3 + $0x68] sm:$0xf] }
  0x95   : > { %v1368_v47 = vsub.f32 %v245_v7, %v302_v43  ;;  %v1382_v54 = vsub.f32 %v234_v8, %v291_v51  ;;  %v1424_v7 = vor.u32 %v1188_v5, %v1161_v4  ;;  %v1141_v8 = vld [vmem:[%s1992_s3 + $0x90] sm:$0xf]  ;;  %v1105_v43 = vld [vmem:[%s1992_s3 + $0x48] sm:$0xf] }
  0x96   : > { %v1357_v41 = vsub.f32 %v244_v6, %v301_v40  ;;  %v1422_v6 = vor.u32 %v1186_v1, %v1155_v3  ;;  %v1494_v40 = vor.u32 %v1177_v34, %v1119_v36  ;;  %v1106_v49 = vor.u32 %v1175_v44, %v1105_v43  ;;  %v1113_v51 = vld [vmem:[%s1992_s3 + $0x50] sm:$0xf]  ;;  %v1095_v1 = vld [vmem:[%s1992_s3 + $0x3c] sm:$0xf0]  ;;  %v1173_v3 = vld [vmem:[%s1992_s3 + $0x40] sm:$0xf0] }
  0x97   : > { %v334_v50 = vmul.f32 %v1368_v47, %v1368_v47  ;;  %v323_v56 = vmul.f32 %v1382_v54, %v1382_v54  ;;  %887 = vmatpush.bf16.msra.mxu2 %v1424_v7  ;;  %v1542_v4 = vor.u32 %v1171_v63, %v1095_v1  ;;  %v1544_v5 = vor.u32 %v1173_v3, %v1101_v2  ;;  %v1166_v34 = vld [vmem:[%s1992_s3 + $0x8] sm:$0xf0]  ;;  %v1167_v43 = vld [vmem:[%s1992_s3 + $0x10] sm:$0xf0] }
  0x98   : > { %v333_v46 = vmul.f32 %v1357_v41, %v1357_v41  ;;  %838 = vmatpush.bf16.msra.mxu1 %v1422_v6  ;;  %v1070_v36 = vor.u32 %v1166_v34, %v1069_v32 }
  0x9a   : > { %339 = vadd.xlane.f32.xlu1 %v321_v42  ;;  %363 = vadd.xlane.f32.xlu0 %v333_v46  ;;  %v1496_v42 = vor.u32 %v1179_v39, %v1125_v38  ;;  %v1174_v46 = vld [vmem:[%s1992_s3 + $0x4c] sm:$0xf]  ;;  %v1071_v38 = vld [vmem:[%s1992_s3 + $0xc] sm:$0xf0]  ;;  %v1077_v39 = vld [vmem:[%s1992_s3 + $0x8] sm:$0xf] }
  0x9b   : > { %260 = vadd.xlane.f32.xlu2 %v1364_v45  ;;  %v259_v55 = vpop.xlane.xlu0 %258  ;;  %888 = vmatpush.bf16.msra.mxu2 %v1448_v17 }
  0x9c   : > { %v292_v58 = vmul.f32 %v1327_v16, %v259_v55  ;;  %839 = vmatpush.bf16.msra.mxu1 %v1446_v15 }
  0x9e   : > { %v1396_v60 = vsub.f32 %v1324_v9, %v292_v58  ;;  %v1184_v9 = vld [vmem:[%s1992_s3 + $0x98] sm:$0xf0]  ;;  %v1093_v58 = vld [vmem:[%s1992_s3 + $0x30] sm:$0xf] }
  0x9f   : > { %v1142_v11 = vor.u32 %v1184_v9, %v1141_v8  ;;  %889 = vmatpush.bf16.msra.mxu2 %v1472_v28 }
  0xa0   : > { %v324_v62 = vmul.f32 %v1396_v60, %v1396_v60  ;;  %840 = vmatpush.bf16.msra.mxu1 %v1470_v27 }
  0xa1   : > { %790 = vmatpush.bf16.msra.mxu0 %v1142_v11  ;;  %1190 = vmatpush.bf16.msra.mxu3 %v1142_v11  ;;  %v1169_v11 = vld [vmem:[%s1992_s3 + $0x20] sm:$0xf0] }
  0xa2   : > { %365 = vadd.xlane.f32.xlu1 %v334_v50  ;;  %266 = vadd.xlane.f32.xlu0 %v1379_v53  ;;  %v1107_v50 = vld [vmem:[%s1992_s3 + $0x54] sm:$0xf0]  ;;  %v1082_v18 = vor.u32 %v1169_v11, %v1081_v10 }
  0xa3   : > { %341 = vadd.xlane.f32.xlu2 %v322_v52  ;;  %890 = vmatpush.bf16.msra.mxu2 %v1496_v42  ;;  %v1176_v52 = vld [vmem:[%s1992_s3 + $0x58] sm:$0xf0]  ;;  %v1518_v55 = vor.u32 %v1174_v46, %v1107_v50  ;;  %v1600_v46 = vor.u32 %v1167_v43, %v1077_v39 }
  0xa4   : > { %841 = vmatpush.bf16.msra.mxu1 %v1494_v40 }
  0xa5   : > { %791 = vmatpush.bf16.msra.mxu0 %v1130_v23  ;;  %1191 = vmatpush.bf16.msra.mxu3 %v1130_v23  ;;  %v1170_v23 = vld [vmem:[%s1992_s3 + $0x28] sm:$0xf0] }
  0xa6   : > { %v1570_v25 = vor.u32 %v1170_v23, %v1089_v20 }
  0xa8   : > { %842 = vmatpush.bf16.msra.mxu1 %v1518_v55 }
  0xa9   : > { %792 = vmatpush.bf16.msra.mxu0 %v1118_v35  ;;  %1192 = vmatpush.bf16.msra.mxu3 %v1118_v35  ;;  %v1165_v35 = vld [vmem:[%s1992_s3 + $0x4] sm:$0xf] }
  0xaa   : > { %343 = vadd.xlane.f32.xlu1 %v323_v56  ;;  %268 = vadd.xlane.f32.xlu0 %v1387_v57  ;;  %v1520_v56 = vor.u32 %v1176_v52, %v1113_v51  ;;  %v1598_v44 = vor.u32 %v1165_v35, %v1071_v38 }
  0xab   : > { %264 = vadd.xlane.f32.xlu2 %v1391_v59 }
  0xac   : > { %891 = vmatpush.bf16.msra.mxu2 %v1520_v56  ;;  %843 = vmatpush.bf16.msra.mxu1 %v1542_v4 }
  0xad   : > { %793 = vmatpush.bf16.msra.mxu0 %v1106_v49  ;;  %1193 = vmatpush.bf16.msra.mxu3 %v1106_v49 }
  0xb0   : > { %892 = vmatpush.bf16.msra.mxu2 %v1544_v5  ;;  %844 = vmatpush.bf16.msra.mxu1 %v1568_v24 }
  0xb2   : > { %270 = vadd.xlane.f32.xlu1 %v1399_v61 }
  0xb3   : > { %345 = vadd.xlane.f32.xlu2 %v324_v62  ;;  %v1172_v62 = vld [vmem:[%s1992_s3 + $0x38] sm:$0xf0] }
  0xb4   : > { %v1094_v0 = vor.u32 %v1172_v62, %v1093_v58  ;;  %893 = vmatpush.bf16.msra.mxu2 %v1570_v25  ;;  %845 = vmatpush.bf16.msra.mxu1 %v1598_v44 }
  0xb6   : > { %794 = vmatpush.bf16.msra.mxu0 %v1094_v0  ;;  %1194 = vmatpush.bf16.msra.mxu3 %v1094_v0 }
  0xb8   : > { %894 = vmatpush.bf16.msra.mxu2 %v1600_v46 }
  0xba   : > { %795 = vmatpush.bf16.msra.mxu0 %v1082_v18  ;;  %1195 = vmatpush.bf16.msra.mxu3 %v1082_v18 }
  0xbe   : > { %796 = vmatpush.bf16.msra.mxu0 %v1070_v36  ;;  %1196 = vmatpush.bf16.msra.mxu3 %v1070_v36 }
  0xc2   : > { %1197 = vmatpush.bf16.msrb.mxu3 %v1422_v6 }
  0xc6   : > { %1198 = vmatpush.bf16.msrb.mxu3 %v1446_v15 }
  0xca   : > { %1199 = vmatpush.bf16.msrb.mxu3 %v1470_v27 }
  0xce   : > { %1200 = vmatpush.bf16.msrb.mxu3 %v1494_v40 }
  0xd2   : > { %1201 = vmatpush.bf16.msrb.mxu3 %v1518_v55 }
  0xd6   : > { %1202 = vmatpush.bf16.msrb.mxu3 %v1542_v4  ;;  %v1710_v4 = vld [vmem:[%s1991_s2] ss:$0 sm:$0xff] }
  0xda   : > { %1203 = vmatpush.bf16.msrb.mxu3 %v1568_v24 }
  0xde   : > { %1204 = vmatpush.bf16.msrb.mxu3 %v1598_v44 }
  0xfc   : > { %v360_v9 = vpop.xlane.xlu0 %359 }
  0xfd   : > { %v336_v8 = vpop.xlane.xlu1 %335  ;;  %v379_v14 = vmul.f32 %v360_v9, %v1327_v16 }
  0xfe   : > { %v367_v13 = vmul.f32 %v336_v8, %v1327_v16 }
  0xff   : > { %v1574_v29 = vadd.f32 1e-05, %v379_v14 }
 0x100   : > { %v1572_v26 = vadd.f32 1e-05, %v367_v13 }
 0x101   : > { %vm525_vm4 = vweird.f32 %v1574_v29 }
 0x102   : > { %1227 = vrsqrt.f32 %v1572_v26  ;;  %vm405_vm2 = vweird.f32 %v1572_v26 }
 0x103   : > { %1229 = vrsqrt.f32 %v1574_v29 }
 0x104   : > { %v263_v50 = vpop.xlane.xlu0 %262 }
 0x105   : > { %v362_v49 = vpop.xlane.xlu1 %361  ;;  %v338_v52 = vpop.xlane.xlu2 %337  ;;  %v294_v58 = vmul.f32 %v1327_v16, %v263_v50 }
 0x106   : > { %v380_v51 = vmul.f32 %v362_v49, %v1327_v16  ;;  %v368_v62 = vmul.f32 %v338_v52, %v1327_v16 }
 0x107   : > { %v1613_v1 = vsub.f32 %v1347_v33, %v294_v58 }
 0x108   : > { %v1608_v63 = vpop.eup %1227  ;;  %v1610_v0 = vadd.f32 1e-05, %v380_v51  ;;  %v1619_v8 = vadd.f32 1e-05, %v368_v62 }
 0x109   : > { %v1615_v2 = vpop.eup %1229  ;;  %v400_v3 = vmul.f32 %v1608_v63, %v1572_v26  ;;  %v326_v33 = vmul.f32 %v1613_v1, %v1613_v1  ;;  %vm406_vm1 = vweird.f32 %v1608_v63 }
 0x10a   : > { %v520_v9 = vmul.f32 %v1615_v2, %v1574_v29  ;;  %1231 = vrsqrt.f32 %v1610_v0  ;;  %vm1649_vm3 = vmor %vm405_vm2, %vm406_vm1  ;;  %vm526_vm5 = vweird.f32 %v1615_v2  ;;  %vm535_vm6 = vweird.f32 %v1610_v0 }
 0x10b   : > { %v401_v6 = vmul.f32 %v1608_v63, %v400_v3  ;;  %1233 = vrsqrt.f32 %v1619_v8  ;;  %349 = vadd.xlane.f32.xlu0 %v326_v33  ;;  %vm1665_vm7 = vmor %vm525_vm4, %vm526_vm5  ;;  %vm415_vm11 = vweird.f32 %v1619_v8 }
 0x10c   : > { %v521_v10 = vmul.f32 %v1615_v2, %v520_v9 }
 0x10d   : > { %v402_v11 = vmul.f32 0.5, %v401_v6  ;;  %v340_v12 = vpop.xlane.xlu1 %339  ;;  %v364_v13 = vpop.xlane.xlu0 %363 }
 0x10e   : > { %v522_v14 = vmul.f32 0.5, %v521_v10  ;;  %v369_v18 = vmul.f32 %v340_v12, %v1327_v16  ;;  %v261_v19 = vpop.xlane.xlu2 %260  ;;  %v381_v20 = vmul.f32 %v364_v13, %v1327_v16 }
 0x10f   : > { %v403_v15 = vsub.f32 1.5, %v402_v11  ;;  %v293_v23 = vmul.f32 %v1327_v16, %v261_v19  ;;  %v1681_v19 = vld [vmem:[%s1990_s1] ss:$0 sm:$0xff] }
 0x110   : > { %v1232_v32 = vpop.eup %1231  ;;  %v523_v34 = vsub.f32 1.5, %v522_v14  ;;  %v1634_v35 = vadd.f32 1e-05, %v369_v18  ;;  %v1636_v36 = vadd.f32 1e-05, %v381_v20 }
 0x111   : > { %v1234_v38 = vpop.eup %1233  ;;  %v404_v39 = vmul.f32 %v1608_v63, %v403_v15  ;;  %v530_v43 = vmul.f32 %v1232_v32, %v1610_v0  ;;  %v1642_v49 = vsub.f32 %v1364_v45, %v293_v23  ;;  %vm536_vm8 = vweird.f32 %v1232_v32 }
 0x112   : > { %v410_v27 = vmul.f32 %v1234_v38, %v1619_v8  ;;  %1235 = vrsqrt.f32 %v1634_v35  ;;  %v524_v52 = vmul.f32 %v1615_v2, %v523_v34  ;;  %vm416_vm9 = vweird.f32 %v1234_v38  ;;  %vm537_vm10 = vmor %vm535_vm6, %vm536_vm8 }
 0x113   : > { %v531_v50 = vmul.f32 %v1232_v32, %v530_v43  ;;  %1237 = vrsqrt.f32 %v1636_v36  ;;  %v408_v40 = vsel %vm1649_vm3, %v1608_v63, %v404_v39  ;;  %v325_v26 = vmul.f32 %v1642_v49, %v1642_v49  ;;  %vm417_vm12 = vmor %vm415_vm11, %vm416_vm9 }
 0x114   : > { %v411_v45 = vmul.f32 %v1234_v38, %v410_v27  ;;  %v559_v13 = vmul.f32 %v408_v40, %v1333_v22  ;;  %v528_v14 = vsel %vm1665_vm7, %v1615_v2, %v524_v52  ;;  %vm545_vm13 = vweird.f32 %v1636_v36 }
 0x115   : > { %v532_v58 = vmul.f32 0.5, %v531_v50  ;;  %v366_v62 = vpop.xlane.xlu1 %365  ;;  %v267_v3 = vpop.xlane.xlu0 %266  ;;  %347 = vadd.xlane.f32.xlu2 %v325_v26  ;;  %v571_v43 = vmul.f32 %v528_v14, %v1331_v21  ;;  %vm425_vm0 = vweird.f32 %v1634_v35 }
 0x116   : > { %v412_v9 = vmul.f32 0.5, %v411_v45  ;;  %v382_v6 = vmul.f32 %v366_v62, %v1327_v16  ;;  %v342_v33 = vpop.xlane.xlu2 %341  ;;  %v296_v29 = vmul.f32 %v1327_v16, %v267_v3  ;;  %v578_v51 = vmul.f32 %v1681_v19, %v559_v13 }
 0x117   : > { %v533_v63 = vsub.f32 1.5, %v532_v58  ;;  %v370_v11 = vmul.f32 %v342_v33, %v1327_v16 }
 0x118   : > { %v1670_v12 = vpop.eup %1235  ;;  %v413_v18 = vsub.f32 1.5, %v412_v9  ;;  %v1676_v55 = vadd.f32 1e-05, %v382_v6  ;;  %v1690_v22 = vsub.f32 %v1379_v53, %v296_v29  ;;  %v590_v6 = vmul.f32 %v1681_v19, %v571_v43 }
 0x119   : > { %v1683_v20 = vpop.eup %1237  ;;  %v534_v15 = vmul.f32 %v1232_v32, %v533_v63  ;;  %v420_v23 = vmul.f32 %v1670_v12, %v1634_v35  ;;  %v1687_v34 = vadd.f32 1e-05, %v370_v11  ;;  %vm426_vm14 = vweird.f32 %v1670_v12 }
 0x11a   : > { %v414_v2 = vmul.f32 %v1234_v38, %v413_v18  ;;  %v540_v39 = vmul.f32 %v1683_v20, %v1636_v36  ;;  %1239 = vrsqrt.f32 %v1676_v55  ;;  %v328_v52 = vmul.f32 %v1690_v22, %v1690_v22  ;;  %vm1752_vm1 = vmor %vm425_vm0, %vm426_vm14 }
 0x11b   : > { %v538_v27 = vsel %vm537_vm10, %v1232_v32, %v534_v15  ;;  %v421_v53 = vmul.f32 %v1670_v12, %v420_v23  ;;  %1241 = vrsqrt.f32 %v1687_v34  ;;  %v597_v63 = vadd.f32 %v1710_v4, %v578_v51 }
 0x11c   : > { %v572_v0 = vmul.f32 %v538_v27, %v1341_v30  ;;  %v418_v50 = vsel %vm417_vm12, %v1234_v38, %v414_v2  ;;  %v541_v8 = vmul.f32 %v1683_v20, %v540_v39  ;;  %vm546_vm15 = vweird.f32 %v1683_v20 }
 0x11d   : > { %v560_v21 = vmul.f32 %v418_v50, %v1343_v31  ;;  %v422_v32 = vmul.f32 0.5, %v421_v53  ;;  %v344_v45 = vpop.xlane.xlu1 %343  ;;  %v269_v30 = vpop.xlane.xlu0 %268  ;;  %353 = vadd.xlane.f32.xlu2 %v328_v52  ;;  %v609_v43 = vadd.f32 %v1710_v4, %v590_v6  ;;  %vm555_vm2 = vweird.f32 %v1676_v55  ;;  %vm1766_vm3 = vmor %vm545_vm13, %vm546_vm15 }
 0x11e   : > { %v542_v38 = vmul.f32 0.5, %v541_v8  ;;  %v371_v40 = vmul.f32 %v344_v45, %v1327_v16  ;;  %v265_v58 = vpop.xlane.xlu2 %264  ;;  %v297_v26 = vmul.f32 %v1327_v16, %v269_v30  ;;  %v591_v62 = vmul.f32 %v1681_v19, %v572_v0 }
 0x11f   : > { %v423_v3 = vsub.f32 1.5, %v422_v32  ;;  %v295_v31 = vmul.f32 %v1327_v16, %v265_v58  ;;  %v579_v9 = vmul.f32 %v1681_v19, %v560_v21  ;;  %vm435_vm7 = vweird.f32 %v1687_v34 }
 0x120   : > { %v1723_v33 = vpop.eup %1239  ;;  %v543_v29 = vsub.f32 1.5, %v542_v38  ;;  %v1726_v10 = vadd.f32 1e-05, %v371_v40  ;;  %v610_v14 = vadd.f32 %v1710_v4, %v591_v62  ;;  %v1740_v23 = vsub.f32 %v1387_v57, %v297_v26 }
 0x121   : > { %v1242_v11 = vpop.eup %1241  ;;  %v550_v24 = vmul.f32 %v1723_v33, %v1676_v55  ;;  %v1733_v13 = vsub.f32 %v1391_v59, %v295_v31  ;;  %v424_v18 = vmul.f32 %v1670_v12, %v423_v3  ;;  %v598_v59 = vadd.f32 %v1710_v4, %v579_v9 }
 0x122   : > { %v430_v15 = vmul.f32 %v1242_v11, %v1687_v34  ;;  %1243 = vrsqrt.f32 %v1726_v10  ;;  %v544_v2 = vmul.f32 %v1683_v20, %v543_v29  ;;  %v1757_v50 = vpack.c.bf16 %v610_v14, %v609_v43 }
 0x123   : > { %v551_v39 = vmul.f32 %v1723_v33, %v550_v24  ;;  %v327_v53 = vmul.f32 %v1733_v13, %v1733_v13  ;;  %v613_v0 = vpack.c.bf16 %v598_v59, %v597_v63  ;;  %v428_v35 = vsel %vm1752_vm1, %v1670_v12, %v424_v18 }
 0x124   : > { %v431_v27 = vmul.f32 %v1242_v11, %v430_v15  ;;  %v329_v32 = vmul.f32 %v1740_v23, %v1740_v23  ;;  %v548_v12 = vsel %vm1766_vm3, %v1683_v20, %v544_v2  ;;  %vm556_vm4 = vweird.f32 %v1723_v33  ;;  %827 = vmatmul.bf16.vlgmr.msra.gmra.mxu3 %v1757_v50 }
 0x125   : > { %v552_v44 = vmul.f32 0.5, %v551_v39  ;;  %v271_v8 = vpop.xlane.xlu1 %270  ;;  %351 = vadd.xlane.f32.xlu1 %v327_v53  ;;  %797 = vmatmul.bf16.vlgmr.msra.gmra.mxu0 %v613_v0  ;;  %vm436_vm5 = vweird.f32 %v1242_v11  ;;  %v561_v26 = vmul.f32 %v428_v35, %v1354_v37  ;;  %v573_v31 = vmul.f32 %v548_v12, %v1357_v41  ;;  %vm557_vm6 = vmor %vm555_vm2, %vm556_vm4 }
 0x126   : > { %v432_v21 = vmul.f32 0.5, %v431_v27  ;;  %v298_v52 = vmul.f32 %v1327_v16, %v271_v8  ;;  %v346_v45 = vpop.xlane.xlu2 %345  ;;  %846 = vmatmul.bf16.vlgmr.msra.gmra.mxu1 %v613_v0  ;;  %895 = vmatmul.bf16.vlgmr.msra.gmra.mxu2 %v613_v0  ;;  %vm437_vm8 = vmor %vm435_vm7, %vm436_vm5  ;;  %vm445_vm9 = vweird.f32 %v1726_v10 }
 0x127   : > { %v553_v30 = vsub.f32 1.5, %v552_v44  ;;  %v372_v36 = vmul.f32 %v346_v45, %v1327_v16  ;;  %355 = vadd.xlane.f32.xlu0 %v329_v32  ;;  %1205 = vmatpush.bf16.msra.mxu3 %v1424_v7  ;;  %v580_v55 = vmul.f32 %v1681_v19, %v561_v26  ;;  %v592_v34 = vmul.f32 %v1681_v19, %v573_v31 }
 0x128   : > { %v1244_v38 = vpop.eup %1243  ;;  %v433_v40 = vsub.f32 1.5, %v432_v21  ;;  %v1780_v58 = vsub.f32 %v1399_v61, %v298_v52 }
 0x129   : > { %v554_v20 = vmul.f32 %v1723_v33, %v553_v30  ;;  %v440_v62 = vmul.f32 %v1244_v38, %v1726_v10  ;;  %v388_v3 = vadd.f32 1e-05, %v372_v36  ;;  %vm446_vm10 = vweird.f32 %v1244_v38 }
 0x12a   : > { %v434_v9 = vmul.f32 %v1242_v11, %v433_v40  ;;  %v330_v37 = vmul.f32 %v1780_v58, %v1780_v58  ;;  %v611_v2 = vadd.f32 %v1710_v4, %v592_v34  ;;  %vm447_vm11 = vmor %vm445_vm9, %vm446_vm10 }
 0x12b   : > { %v558_v61 = vsel %vm557_vm6, %v1723_v33, %v554_v20  ;;  %v441_v6 = vmul.f32 %v1244_v38, %v440_v62  ;;  %1245 = vrsqrt.f32 %v388_v3  ;;  %1206 = vmatpush.bf16.msra.mxu3 %v1448_v17  ;;  %vm455_vm12 = vweird.f32 %v388_v3 }
 0x12c   : > { %v574_v7 = vmul.f32 %v558_v61, %v1368_v47  ;;  %v438_v41 = vsel %vm437_vm8, %v1242_v11, %v434_v9  ;;  %v599_v47 = vadd.f32 %v1710_v4, %v580_v55 }
 0x12d   : > { %v562_v29 = vmul.f32 %v438_v41, %v1371_v48  ;;  %v442_v63 = vmul.f32 0.5, %v441_v6  ;;  %357 = vadd.xlane.f32.xlu1 %v330_v37 }
 0x12e   : > { %v593_v24 = vmul.f32 %v1681_v19, %v574_v7 }
 0x12f   : > { %v443_v33 = vsub.f32 1.5, %v442_v63  ;;  %v581_v14 = vmul.f32 %v1681_v19, %v562_v29  ;;  %1207 = vmatpush.bf16.msra.mxu3 %v1472_v28 }
 0x130   : > { %v612_v18 = vadd.f32 %v1710_v4, %v593_v24  ;;  %v653_v24 = vld [vmem:[%s1993_s4] sm:$0x7] }
 0x131   : > { %v1246_v15 = vpop.eup %1245  ;;  %v600_v48 = vadd.f32 %v1710_v4, %v581_v14  ;;  %v444_v17 = vmul.f32 %v1244_v38, %v443_v33 }
 0x132   : > { %v450_v11 = vmul.f32 %v1246_v15, %v388_v3  ;;  %v620_v43 = vpack.c.bf16 %v612_v18, %v611_v2  ;;  %vm456_vm13 = vweird.f32 %v1246_v15 }
 0x133   : > { %v614_v39 = vpack.c.bf16 %v600_v48, %v599_v47  ;;  %1208 = vmatpush.bf16.msra.mxu3 %v1496_v42  ;;  %v448_v27 = vsel %vm447_vm11, %v1244_v38, %v444_v17  ;;  %vm457_vm14 = vmor %vm455_vm12, %vm456_vm13  ;;  %v1838_v48 = vperm.slane %v653_v24, 0 }
 0x134   : > { %v451_v59 = vmul.f32 %v1246_v15, %v450_v11  ;;  %832 = vmatmul.bf16.gmra.mxu3 %v620_v43  ;;  %v563_v28 = vmul.f32 %v448_v27, %v1382_v54 }
 0x135   : > { %802 = vmatmul.bf16.gmra.mxu0 %v614_v39 }
 0x136   : > { %v452_v53 = vmul.f32 0.5, %v451_v59  ;;  %851 = vmatmul.bf16.gmra.mxu1 %v614_v39  ;;  %900 = vmatmul.bf16.gmra.mxu2 %v614_v39  ;;  %v582_v42 = vmul.f32 %v1681_v19, %v563_v28 }
 0x137   : > { %1209 = vmatpush.bf16.msra.mxu3 %v1520_v56 }
 0x138   : > { %v453_v10 = vsub.f32 1.5, %v452_v53  ;;  %v601_v35 = vadd.f32 %v1710_v4, %v582_v42 }
 0x13a   : > { %v454_v57 = vmul.f32 %v1246_v15, %v453_v10 }
 0x13b   : > { %1210 = vmatpush.bf16.msra.mxu3 %v1544_v5 }
 0x13c   : > { %v458_v44 = vsel %vm457_vm14, %v1246_v15, %v454_v57 }
 0x13d   : > { %v564_v0 = vmul.f32 %v458_v44, %v1396_v60 }
 0x13f   : > { %v583_v8 = vmul.f32 %v1681_v19, %v564_v0  ;;  %1211 = vmatpush.bf16.msra.mxu3 %v1570_v25 }
 0x141   : > { %v602_v51 = vadd.f32 %v1710_v4, %v583_v8 }
 0x143   : > { %v615_v54 = vpack.c.bf16 %v602_v51, %v601_v35  ;;  %1212 = vmatpush.bf16.msra.mxu3 %v1600_v46 }
 0x144   : > { %876 = vmatmul.bf16.vlgmr.msrb.gmra.mxu3 %v1757_v50 }
 0x145   : > { %807 = vmatmul.bf16.gmra.mxu0 %v615_v54 }
 0x146   : > { %856 = vmatmul.bf16.gmra.mxu1 %v615_v54  ;;  %905 = vmatmul.bf16.gmra.mxu2 %v615_v54 }
 0x154   : > { %881 = vmatmul.bf16.gmra.mxu3 %v620_v43 }
 0x164   : > { %925 = vmatmul.bf16.vlgmr.msra.gmra.mxu3 %v1757_v50 }
 0x174   : > { %930 = vmatmul.bf16.gmra.mxu3 %v620_v43 }
 0x17e   : > { %v350_v60 = vpop.xlane.xlu0 %349 }
 0x17f   : > { %v374_v56 = vmul.f32 %v350_v60, %v1327_v16 }
 0x181   : > { %v390_v5 = vadd.f32 1e-05, %v374_v56  ;;  %v1868_v56 = vperm.slane %v653_v24, 2 }
 0x183   : > { %1247 = vrsqrt.f32 %v390_v5  ;;  %vm475_vm15 = vweird.f32 %v390_v5 }
 0x188   : > { %v348_v21 = vpop.xlane.xlu2 %347 }
 0x189   : > { %v1248_v32 = vpop.eup %1247  ;;  %v373_v25 = vmul.f32 %v348_v21, %v1327_v16 }
 0x18a   : > { %v470_v52 = vmul.f32 %v1248_v32, %v390_v5  ;;  %vm476_vm0 = vweird.f32 %v1248_v32 }
 0x18b   : > { %v389_v46 = vadd.f32 1e-05, %v373_v25  ;;  %vm477_vm1 = vmor %vm475_vm15, %vm476_vm0 }
 0x18c   : > { %v471_v45 = vmul.f32 %v1248_v32, %v470_v52 }
 0x18d   : > { %1249 = vrsqrt.f32 %v389_v46  ;;  %vm465_vm3 = vweird.f32 %v389_v46 }
 0x18e   : > { %v472_v12 = vmul.f32 0.5, %v471_v45 }
 0x190   : > { %v354_v30 = vpop.xlane.xlu2 %353  ;;  %v473_v36 = vsub.f32 1.5, %v472_v12 }
 0x191   : > { %v376_v38 = vmul.f32 %v354_v30, %v1327_v16 }
 0x192   : > { %v474_v20 = vmul.f32 %v1248_v32, %v473_v36 }
 0x193   : > { %v1250_v50 = vpop.eup %1249  ;;  %v392_v40 = vadd.f32 1e-05, %v376_v38 }
 0x194   : > { %v460_v26 = vmul.f32 %v1250_v50, %v389_v46  ;;  %v478_v37 = vsel %vm477_vm1, %v1248_v32, %v474_v20  ;;  %vm466_vm2 = vweird.f32 %v1250_v50 }
 0x195   : > { %1251 = vrsqrt.f32 %v392_v40  ;;  %v566_v63 = vmul.f32 %v478_v37, %v1613_v1  ;;  %vm467_vm4 = vmor %vm465_vm3, %vm466_vm2  ;;  %v1840_v1 = vperm.slane %v653_v24, 1  ;;  %vm495_vm5 = vweird.f32 %v392_v40 }
 0x196   : > { %v461_v62 = vmul.f32 %v1250_v50, %v460_v26 }
 0x197   : > { %v585_v2 = vmul.f32 %v1681_v19, %v566_v63 }
 0x198   : > { %v352_v3 = vpop.xlane.xlu1 %351  ;;  %v462_v31 = vmul.f32 0.5, %v461_v62 }
 0x199   : > { %v375_v9 = vmul.f32 %v352_v3, %v1327_v16  ;;  %v604_v0 = vadd.f32 %v1710_v4, %v585_v2 }
 0x19a   : > { %v463_v61 = vsub.f32 1.5, %v462_v31  ;;  %v356_v7 = vpop.xlane.xlu0 %355 }
 0x19b   : > { %v1826_v6 = vadd.f32 1e-05, %v375_v9  ;;  %v1252_v41 = vpop.eup %1251  ;;  %v377_v29 = vmul.f32 %v356_v7, %v1327_v16 }
 0x19c   : > { %v464_v55 = vmul.f32 %v1250_v50, %v463_v61  ;;  %v490_v34 = vmul.f32 %v1252_v41, %v392_v40  ;;  %vm496_vm6 = vweird.f32 %v1252_v41 }
 0x19d   : > { %1253 = vrsqrt.f32 %v1826_v6  ;;  %v1834_v33 = vadd.f32 1e-05, %v377_v29  ;;  %vm1862_vm7 = vmor %vm495_vm5, %vm496_vm6  ;;  %vm485_vm9 = vweird.f32 %v1826_v6 }
 0x19e   : > { %v468_v14 = vsel %vm467_vm4, %v1250_v50, %v464_v55  ;;  %v491_v18 = vmul.f32 %v1252_v41, %v490_v34 }
 0x19f   : > { %v565_v15 = vmul.f32 %v468_v14, %v1642_v49  ;;  %1255 = vrsqrt.f32 %v1834_v33  ;;  %vm505_vm11 = vweird.f32 %v1834_v33 }
 0x1a0   : > { %v358_v47 = vpop.xlane.xlu1 %357  ;;  %v492_v17 = vmul.f32 0.5, %v491_v18 }
 0x1a1   : > { %v378_v11 = vmul.f32 %v358_v47, %v1327_v16  ;;  %v584_v39 = vmul.f32 %v1681_v19, %v565_v15 }
 0x1a2   : > { %v493_v43 = vsub.f32 1.5, %v492_v17  ;;  %v798_v49 = vpop.f32.mrf.mxu0 }
 0x1a3   : > { %v1254_v59 = vpop.eup %1253  ;;  %v1846_v27 = vadd.f32 1e-05, %v378_v11  ;;  %v847_v53 = vpop.f32.mrf.mxu1  ;;  %v799_v28 = vadd.f32 %v798_v49, %v1838_v48  ;;  %v603_v44 = vadd.f32 %v1710_v4, %v584_v39 }
 0x1a4   : > { %v480_v10 = vmul.f32 %v1254_v59, %v1826_v6  ;;  %v848_v57 = vadd.f32 %v847_v53, %v1840_v1  ;;  %v494_v16 = vmul.f32 %v1252_v41, %v493_v43  ;;  %vm486_vm8 = vweird.f32 %v1254_v59 }
 0x1a5   : > { %1257 = vrsqrt.f32 %v1846_v27  ;;  %v1859_v42 = vpop.eup %1255  ;;  %v616_v60 = vpack.c.bf16 %v604_v0, %v603_v44  ;;  %vm487_vm10 = vmor %vm485_vm9, %vm486_vm8  ;;  %vm515_vm12 = vweird.f32 %v1846_v27 }
 0x1a6   : > { %v481_v8 = vmul.f32 %v1254_v59, %v480_v10  ;;  %v936_v35 = vpack.c.bf16 %v848_v57, %v799_v28  ;;  %v500_v54 = vmul.f32 %v1859_v42, %v1834_v33  ;;  %v498_v5 = vsel %vm1862_vm7, %v1252_v41, %v494_v16 }
 0x1a7   : > { %812 = vmatmul.bf16.gmra.mxu0 %v616_v60  ;;  %861 = vmatmul.bf16.gmra.mxu1 %v616_v60  ;;  %v1874_v52 = vpop.f32.mrf.mxu3  ;;  %v568_v12 = vmul.f32 %v498_v5, %v1690_v22  ;;  %vm506_vm13 = vweird.f32 %v1859_v42 }
 0x1a8   : > { %v482_v21 = vmul.f32 0.5, %v481_v8  ;;  %968 = vst [vmem:[%s1854_s12] sm:$0xff] %v936_v35  ;;  %v501_v25 = vmul.f32 %v1859_v42, %v500_v54  ;;  %910 = vmatmul.bf16.gmra.mxu2 %v616_v60  ;;  %vm1900_vm15 = vmor %vm505_vm11, %vm506_vm13 }
 0x1a9   : > { %v896_v46 = vpop.f32.mrf.mxu2  ;;  %v587_v61 = vmul.f32 %v1681_v19, %v568_v12 }
 0x1aa   : > { %v483_v32 = vsub.f32 1.5, %v482_v21  ;;  %v897_v30 = vadd.f32 %v896_v46, %v1868_v56  ;;  %v800_v36 = vpop.f32.mrf.mxu0  ;;  %v502_v31 = vmul.f32 0.5, %v501_v25 }
 0x1ab   : > { %v1258_v45 = vpop.eup %1257  ;;  %v849_v38 = vpop.f32.mrf.mxu1  ;;  %v801_v26 = vadd.f32 %v800_v36, %v1838_v48  ;;  %v606_v18 = vadd.f32 %v1710_v4, %v587_v61 }
 0x1ac   : > { %v484_v50 = vmul.f32 %v1254_v59, %v483_v32  ;;  %v510_v40 = vmul.f32 %v1258_v45, %v1846_v27  ;;  %v937_v20 = vpack.c.bf16 %v897_v30, %v897_v30  ;;  %v850_v62 = vadd.f32 %v849_v38, %v1840_v1 }
 0x1ad   : > { %v503_v41 = vsub.f32 1.5, %v502_v31  ;;  %vm516_vm14 = vweird.f32 %v1258_v45 }
 0x1ae   : > { %v488_v3 = vsel %vm487_vm10, %v1254_v59, %v484_v50  ;;  %v511_v9 = vmul.f32 %v1258_v45, %v510_v40  ;;  %969 = vst [vmem:[%s1854_s12 + $0x8] sm:$0xf] %v937_v20  ;;  %v938_v37 = vpack.c.bf16 %v850_v62, %v801_v26  ;;  %vm517_vm0 = vmor %vm515_vm12, %vm516_vm14  ;;  %v829_v50 = vadd.f32 %v1874_v52, %v1838_v48 }
 0x1af   : > { %v567_v22 = vmul.f32 %v488_v3, %v1733_v13  ;;  %v1889_v63 = vpop.f32.mrf.mxu3  ;;  %v504_v39 = vmul.f32 %v1859_v42, %v503_v41 }
 0x1b0   : > { %v512_v7 = vmul.f32 0.5, %v511_v9  ;;  %970 = vst [vmem:[%s1854_s12 + $0xc] sm:$0xff] %v938_v37  ;;  %v831_v61 = vadd.f32 %v1889_v63, %v1838_v48 }
 0x1b1   : > { %v586_v6 = vmul.f32 %v1681_v19, %v567_v22  ;;  %v898_v55 = vpop.f32.mrf.mxu2  ;;  %v508_v53 = vsel %vm1900_vm15, %v1859_v42, %v504_v39 }
 0x1b2   : > { %v513_v29 = vsub.f32 1.5, %v512_v7  ;;  %v899_v13 = vadd.f32 %v898_v55, %v1868_v56  ;;  %v803_v34 = vpop.f32.mrf.mxu0  ;;  %v569_v8 = vmul.f32 %v508_v53, %v1740_v23 }
 0x1b3   : > { %v852_v24 = vpop.f32.mrf.mxu1  ;;  %v605_v14 = vadd.f32 %v1710_v4, %v586_v6  ;;  %v804_v47 = vadd.f32 %v803_v34, %v1838_v48 }
 0x1b4   : > { %v514_v15 = vmul.f32 %v1258_v45, %v513_v29  ;;  %v853_v17 = vadd.f32 %v852_v24, %v1840_v1  ;;  %v939_v11 = vpack.c.bf16 %v899_v13, %v899_v13 }
 0x1b5   : > { %v617_v2 = vpack.c.bf16 %v606_v18, %v605_v14 }
 0x1b6   : > { %v940_v43 = vpack.c.bf16 %v853_v17, %v804_v47  ;;  %971 = vst [vmem:[%s1854_s12 + $0x14] sm:$0xf] %v939_v11  ;;  %v518_v49 = vsel %vm517_vm0, %v1258_v45, %v514_v15 }
 0x1b7   : > { %817 = vmatmul.bf16.gmra.mxu0 %v617_v2  ;;  %866 = vmatmul.bf16.gmra.mxu1 %v617_v2  ;;  %v833_v33 = vpop.f32.mrf.mxu3  ;;  %v570_v28 = vmul.f32 %v518_v49, %v1780_v58  ;;  %v588_v58 = vmul.f32 %v1681_v19, %v569_v8 }
 0x1b8   : > { %972 = vst [vmem:[%s1854_s12 + $0x18] sm:$0xff] %v940_v43  ;;  %915 = vmatmul.bf16.gmra.mxu2 %v617_v2  ;;  %v834_v13 = vadd.f32 %v833_v33, %v1838_v48 }
 0x1b9   : > { %v901_v10 = vpop.f32.mrf.mxu2  ;;  %v589_v42 = vmul.f32 %v1681_v19, %v570_v28  ;;  %v607_v12 = vadd.f32 %v1710_v4, %v588_v58 }
 0x1ba   : > { %v902_v57 = vadd.f32 %v901_v10, %v1868_v56  ;;  %v805_v27 = vpop.f32.mrf.mxu0 }
 0x1bb   : > { %v854_v16 = vpop.f32.mrf.mxu1  ;;  %v806_v44 = vadd.f32 %v805_v27, %v1838_v48  ;;  %v608_v25 = vadd.f32 %v1710_v4, %v589_v42 }
 0x1bc   : > { %v855_v0 = vadd.f32 %v854_v16, %v1840_v1  ;;  %v941_v35 = vpack.c.bf16 %v902_v57, %v902_v57 }
 0x1bd   : > { %v618_v36 = vpack.c.bf16 %v608_v25, %v607_v12 }
 0x1be   : > { %v942_v51 = vpack.c.bf16 %v855_v0, %v806_v44  ;;  %973 = vst [vmem:[%s1854_s12 + $0x20] sm:$0xf] %v941_v35 }
 0x1bf   : > { %v835_v54 = vpop.f32.mrf.mxu3 }
 0x1c0   : > { %974 = vst [vmem:[%s1854_s12 + $0x24] sm:$0xff] %v942_v51  ;;  %v836_v63 = vadd.f32 %v835_v54, %v1838_v48 }
 0x1c1   : > { %v903_v60 = vpop.f32.mrf.mxu2 }
 0x1c2   : > { %v904_v5 = vadd.f32 %v903_v60, %v1868_v56  ;;  %v808_v21 = vpop.f32.mrf.mxu0 }
 0x1c3   : > { %v857_v32 = vpop.f32.mrf.mxu1  ;;  %v809_v23 = vadd.f32 %v808_v21, %v1838_v48 }
 0x1c4   : > { %v858_v46 = vadd.f32 %v857_v32, %v1840_v1  ;;  %v943_v45 = vpack.c.bf16 %v904_v5, %v904_v5 }
 0x1c6   : > { %v944_v30 = vpack.c.bf16 %v858_v46, %v809_v23  ;;  %975 = vst [vmem:[%s1854_s12 + $0x2c] sm:$0xf] %v943_v45 }
 0x1c7   : > { %822 = vmatmul.bf16.gmra.mxu0 %v618_v36  ;;  %871 = vmatmul.bf16.gmra.mxu1 %v618_v36  ;;  %v877_v19 = vpop.f32.mrf.mxu3 }
 0x1c8   : > { %976 = vst [vmem:[%s1854_s12 + $0x30] sm:$0xff] %v944_v30  ;;  %920 = vmatmul.bf16.gmra.mxu2 %v618_v36  ;;  %v878_v40 = vadd.f32 %v877_v19, %v1840_v1 }
 0x1c9   : > { %v906_v38 = vpop.f32.mrf.mxu2 }
 0x1ca   : > { %v907_v26 = vadd.f32 %v906_v38, %v1868_v56  ;;  %v810_v4 = vpop.f32.mrf.mxu0  ;;  %v960_v31 = vpack.c.bf16 %v878_v40, %v829_v50 }
 0x1cb   : > { %v859_v20 = vpop.f32.mrf.mxu1  ;;  %v811_v62 = vadd.f32 %v810_v4, %v1838_v48 }
 0x1cc   : > { %v860_v3 = vadd.f32 %v859_v20, %v1840_v1  ;;  %v945_v9 = vpack.c.bf16 %v907_v26, %v907_v26  ;;  %992 = vst [vmem:[%s1854_s12 + $0x90] sm:$0xff] %v960_v31 }
 0x1ce   : > { %v946_v22 = vpack.c.bf16 %v860_v3, %v811_v62  ;;  %977 = vst [vmem:[%s1854_s12 + $0x38] sm:$0xf] %v945_v9 }
 0x1cf   : > { %v879_v52 = vpop.f32.mrf.mxu3 }
 0x1d0   : > { %978 = vst [vmem:[%s1854_s12 + $0x3c] sm:$0xff] %v946_v22  ;;  %v880_v7 = vadd.f32 %v879_v52, %v1840_v1 }
 0x1d1   : > { %v908_v37 = vpop.f32.mrf.mxu2 }
 0x1d2   : > { %v909_v6 = vadd.f32 %v908_v37, %v1868_v56  ;;  %v962_v41 = vpack.c.bf16 %v880_v7, %v831_v61 }
 0x1d4   : > { %v947_v29 = vpack.c.bf16 %v909_v6, %v909_v6  ;;  %994 = vst [vmem:[%s1854_s12 + $0x9c] sm:$0xff] %v962_v41 }
 0x1d6   : > { %979 = vst [vmem:[%s1854_s12 + $0x44] sm:$0xf] %v947_v29 }
 0x1d7   : > { %v882_v55 = vpop.f32.mrf.mxu3 }
 0x1d8   : > { %v883_v34 = vadd.f32 %v882_v55, %v1840_v1 }
 0x1da   : > { %v964_v24 = vpack.c.bf16 %v883_v34, %v834_v13 }
 0x1dc   : > { %996 = vst [vmem:[%s1854_s12 + $0xa8] sm:$0xff] %v964_v24 }
 0x1df   : > { %v884_v14 = vpop.f32.mrf.mxu3 }
 0x1e0   : > { %v885_v18 = vadd.f32 %v884_v14, %v1840_v1 }
 0x1e2   : > { %v966_v15 = vpack.c.bf16 %v885_v18, %v836_v63 }
 0x1e4   : > { %998 = vst [vmem:[%s1854_s12 + $0xb4] sm:$0xff] %v966_v15 }
 0x1e7   : > { %v926_v47 = vpop.f32.mrf.mxu3 }
 0x1e8   : > { %v927_v17 = vadd.f32 %v926_v47, %v1868_v56 }
 0x1ea   : > { %v961_v11 = vpack.c.bf16 %v927_v17, %v927_v17 }
 0x1ec   : > { %993 = vst [vmem:[%s1854_s12 + $0x98] sm:$0xf] %v961_v11 }
 0x1ef   : > { %v928_v2 = vpop.f32.mrf.mxu3 }
 0x1f0   : > { %v929_v39 = vadd.f32 %v928_v2, %v1868_v56 }
 0x1f2   : > { %v963_v59 = vpack.c.bf16 %v929_v39, %v929_v39 }
 0x1f4   : > { %995 = vst [vmem:[%s1854_s12 + $0xa4] sm:$0xf] %v963_v59 }
 0x1f7   : > { %v931_v43 = vpop.f32.mrf.mxu3 }
 0x1f8   : > { %v932_v49 = vadd.f32 %v931_v43, %v1868_v56 }
 0x1fa   : > { %v965_v53 = vpack.c.bf16 %v932_v49, %v932_v49 }
 0x1fc   : > { %997 = vst [vmem:[%s1854_s12 + $0xb0] sm:$0xf] %v965_v53 }
 0x1ff   : > { %v933_v33 = vpop.f32.mrf.mxu3 }
 0x200   : > { %v934_v10 = vadd.f32 %v933_v33, %v1868_v56 }
 0x202   : > { %v967_v28 = vpack.c.bf16 %v934_v10, %v934_v10 }
 0x204   : > { %999 = vst [vmem:[%s1854_s12 + $0xbc] sm:$0xf] %v967_v28 }
 0x224   : > { %v813_v57 = vpop.f32.mrf.mxu0  ;;  %v862_v27 = vpop.f32.mrf.mxu1 }
 0x225   : > { %v814_v16 = vadd.f32 %v813_v57, %v1838_v48  ;;  %v863_v44 = vadd.f32 %v862_v27, %v1840_v1 }
 0x227   : > { %v948_v0 = vpack.c.bf16 %v863_v44, %v814_v16 }
 0x229   : > { %980 = vst [vmem:[%s1854_s12 + $0x48] sm:$0xff] %v948_v0 }
 0x22b   : > { %v911_v8 = vpop.f32.mrf.mxu2 }
 0x22c   : > { %v912_v35 = vadd.f32 %v911_v8, %v1868_v56  ;;  %v815_v51 = vpop.f32.mrf.mxu0  ;;  %v864_v42 = vpop.f32.mrf.mxu1 }
 0x22d   : > { %v816_v58 = vadd.f32 %v815_v51, %v1838_v48  ;;  %v865_v54 = vadd.f32 %v864_v42, %v1840_v1 }
 0x22e   : > { %v949_v60 = vpack.c.bf16 %v912_v35, %v912_v35 }
 0x22f   : > { %v950_v5 = vpack.c.bf16 %v865_v54, %v816_v58 }
 0x230   : > { %981 = vst [vmem:[%s1854_s12 + $0x50] sm:$0xf] %v949_v60 }
 0x231   : > { %982 = vst [vmem:[%s1854_s12 + $0x54] sm:$0xff] %v950_v5 }
 0x233   : > { %v913_v21 = vpop.f32.mrf.mxu2 }
 0x234   : > { %v914_v32 = vadd.f32 %v913_v21, %v1868_v56  ;;  %v818_v25 = vpop.f32.mrf.mxu0  ;;  %v867_v23 = vpop.f32.mrf.mxu1 }
 0x235   : > { %v819_v46 = vadd.f32 %v818_v25, %v1838_v48  ;;  %v868_v45 = vadd.f32 %v867_v23, %v1840_v1 }
 0x236   : > { %v951_v12 = vpack.c.bf16 %v914_v32, %v914_v32 }
 0x237   : > { %v952_v30 = vpack.c.bf16 %v868_v45, %v819_v46 }
 0x238   : > { %983 = vst [vmem:[%s1854_s12 + $0x5c] sm:$0xf] %v951_v12 }
 0x239   : > { %984 = vst [vmem:[%s1854_s12 + $0x60] sm:$0xff] %v952_v30 }
 0x23b   : > { %v916_v36 = vpop.f32.mrf.mxu2 }
 0x23c   : > { %v917_v19 = vadd.f32 %v916_v36, %v1868_v56  ;;  %v820_v38 = vpop.f32.mrf.mxu0  ;;  %v869_v50 = vpop.f32.mrf.mxu1 }
 0x23d   : > { %v821_v40 = vadd.f32 %v820_v38, %v1838_v48  ;;  %v870_v26 = vadd.f32 %v869_v50, %v1840_v1 }
 0x23e   : > { %v953_v4 = vpack.c.bf16 %v917_v19, %v917_v19 }
 0x23f   : > { %v954_v20 = vpack.c.bf16 %v870_v26, %v821_v40 }
 0x240   : > { %985 = vst [vmem:[%s1854_s12 + $0x68] sm:$0xf] %v953_v4 }
 0x241   : > { %986 = vst [vmem:[%s1854_s12 + $0x6c] sm:$0xff] %v954_v20 }
 0x243   : > { %v918_v62 = vpop.f32.mrf.mxu2 }
 0x244   : > { %v919_v3 = vadd.f32 %v918_v62, %v1868_v56  ;;  %v823_v31 = vpop.f32.mrf.mxu0  ;;  %v872_v9 = vpop.f32.mrf.mxu1 }
 0x245   : > { %v824_v22 = vadd.f32 %v823_v31, %v1838_v48  ;;  %v873_v52 = vadd.f32 %v872_v9, %v1840_v1 }
 0x246   : > { %v955_v37 = vpack.c.bf16 %v919_v3, %v919_v3 }
 0x247   : > { %v956_v61 = vpack.c.bf16 %v873_v52, %v824_v22 }
 0x248   : > { %987 = vst [vmem:[%s1854_s12 + $0x74] sm:$0xf] %v955_v37 }
 0x249   : > { %988 = vst [vmem:[%s1854_s12 + $0x78] sm:$0xff] %v956_v61 }
 0x24b   : > { %v921_v7 = vpop.f32.mrf.mxu2 }
 0x24c   : > { %v922_v6 = vadd.f32 %v921_v7, %v1868_v56  ;;  %v825_v41 = vpop.f32.mrf.mxu0  ;;  %v874_v29 = vpop.f32.mrf.mxu1 }
 0x24d   : > { %v826_v55 = vadd.f32 %v825_v41, %v1838_v48  ;;  %v875_v13 = vadd.f32 %v874_v29, %v1840_v1 }
 0x24e   : > { %v957_v34 = vpack.c.bf16 %v922_v6, %v922_v6 }
 0x24f   : > { %v958_v24 = vpack.c.bf16 %v875_v13, %v826_v55 }
 0x250   : > { %989 = vst [vmem:[%s1854_s12 + $0x80] sm:$0xf] %v957_v34 }
 0x251   : > { %990 = vst [vmem:[%s1854_s12 + $0x84] sm:$0xff] %v958_v24 }
 0x253   : > { %v923_v14 = vpop.f32.mrf.mxu2 }
 0x254   : > { %v924_v63 = vadd.f32 %v923_v14, %v1868_v56 }
 0x256   : > { %v959_v18 = vpack.c.bf16 %v924_v63, %v924_v63 }
 0x258   : > { %991 = vst [vmem:[%s1854_s12 + $0x8c] sm:$0xf] %v959_v18 }
 0x259 PF: > { %s15_s18 = sadd.s32 1, %s1265_s18  }
 0x25a   : > { %p12_p4 = scmp.ge.s32.totalorder %s15_s18, 4  }
 0x25c   :  { %14 = sbr.rel (!%p12_p4) target bundleno = 1 (0x1), region = 70 }

// kernel: _lambda_.8
= control target key start
LH: loop header
LB: loop body
LE: loop exit
PB: predicated region body
PF: predicated region fallthrough
CT: control target
= control target key end

     0   :  { %s2685_s6 = smov 0   ;;  %s4117_s0 = inlined_call_operand.vmem [shape: bf16[2,128,384], index: 0, kind: input, shape index: {}]   ;;  %s4118_s1 = inlined_call_operand.vmem [shape: bf16[2,128,128], index: 1, kind: output, shape index: {}]  }
   0x1 LB: > { %s2090_s7 = sadd.s32 4294967295, %s2670_s6   ;;  %p2094_p0 = scmp.ge.s32.totalorder %s2670_s6, 1  ;;  %s2670_s6 = sphi %s2685_s6, %s11_s6  }
   0x2   : > { %p87_p1 = scmp.lt.s32.totalorder %s2670_s6, 3 }
   0x4   : > { %p88_p2 = pnand %p2094_p0, %p87_p1 }
   0x6   : > { %91 = sbr.rel (%p88_p2) target bundleno = 1713 (0x6b1), region = 24 }
   0xb   : > { %p107_p3 = scmp.lt.s32.totalorder %s2090_s7, 1  ;;  %vm280_vm0 = vcmask 261120   ;;  %s2672_s12 = smov 96  }
   0xc   : > { %s2673_s13 = smov 64   ;;  %s2674_s14 = smov 32  }
   0xd   : > { %s4196_s7 = smov (!%p107_p3, %s2090_s7), 1 }
   0xe   : > { %s2276_s8 = smul.u32 192, %s4196_s7  ;;  %s2196_s15 = sshll.u32 %s4196_s7, 6 }
   0xf   : > { %s4030_s18 = scalar_lea.vmem %s4118_s1, %s2196_s15 }
  0x10   : > { %s2699_s11 = scalar_lea.vmem %s4117_s0, %s2276_s8 }
  0x11   : > { %v2128_v0 = vld [vmem:[%s2699_s11 + $0xac] sm:$0xf]  ;;  %v2204_v1 = vld [vmem:[%s2699_s11 + $0xb4] sm:$0xf0]  ;;  %v2124_v2 = vld [vmem:[%s2699_s11 + $0x94] sm:$0xf] }
  0x12   : > { %v2704_v3 = vor.u32 %v2204_v1, %v2128_v0  ;;  %v2203_v4 = vld [vmem:[%s2699_s11 + $0x9c] sm:$0xf0]  ;;  %v2120_v5 = vld [vmem:[%s2699_s11 + $0x7c] sm:$0xf]  ;;  %v2202_v6 = vld [vmem:[%s2699_s11 + $0x84] sm:$0xf0] }
  0x13   : > { %v2709_v7 = vor.u32 %v2202_v6, %v2120_v5  ;;  %v2715_v9 = vor.u32 %v2203_v4, %v2124_v2  ;;  %v2112_v10 = vld [vmem:[%s2699_s11 + $0x4c] sm:$0xf]  ;;  %v2200_v11 = vld [vmem:[%s2699_s11 + $0x54] sm:$0xf0]  ;;  %v2116_v13 = vld [vmem:[%s2699_s11 + $0x64] sm:$0xf] }
  0x14   : > { %681 = vrot.lane.b32.xlu1 %v2704_v3, %s2672_s12  ;;  %v327_v8 = vsel %vm280_vm0, %v2704_v3, 0  ;;  %v2723_v12 = vor.u32 %v2200_v11, %v2112_v10  ;;  %v2201_v14 = vld [vmem:[%s2699_s11 + $0x6c] sm:$0xf0]  ;;  %v2108_v17 = vld [vmem:[%s2699_s11 + $0x34] sm:$0xf] }
  0x15   : > { %329 = vmatpush.bf16.xpose.msra.mxu0 %v327_v8  ;;  %677 = vrot.lane.b32.xlu0 %v2709_v7, %s2672_s12  ;;  %v324_v15 = vsel %vm280_vm0, %v2715_v9, 0  ;;  %v2729_v16 = vor.u32 %v2201_v14, %v2116_v13  ;;  %v2199_v18 = vld [vmem:[%s2699_s11 + $0x3c] sm:$0xf0]  ;;  %v321_v20 = vsel %vm280_vm0, %v2709_v7, 0  ;;  %v2104_v21 = vld [vmem:[%s2699_s11 + $0x1c] sm:$0xf] }
  0x16   : > { %679 = vrot.lane.b32.xlu2 %v2715_v9, %s2672_s12  ;;  %v2737_v19 = vor.u32 %v2199_v18, %v2108_v17  ;;  %v2198_v22 = vld [vmem:[%s2699_s11 + $0x24] sm:$0xf0]  ;;  %v2100_v23 = vld [vmem:[%s2699_s11 + $0x4] sm:$0xf]  ;;  %v2197_v24 = vld [vmem:[%s2699_s11 + $0xc] sm:$0xf0] }
  0x17   : > { %v2747_v25 = vor.u32 %v2197_v24, %v2100_v23  ;;  %v2749_v26 = vor.u32 %v2198_v22, %v2104_v21  ;;  %v318_v27 = vsel %vm280_vm0, %v2729_v16, 0  ;;  %v158_v28 = vld [vmem:[%s2699_s11 + $0x48] sm:$0xf]  ;;  %v159_v29 = vld [vmem:[%s2699_s11 + $0x54] sm:$0xf]  ;;  %v315_v41 = vsel %vm280_vm0, %v2723_v12, 0 }
  0x18   : > { %v206_v30 = vunpack.c.l.bf16 %v158_v28  ;;  %v207_v31 = vunpack.c.l.bf16 %v159_v29  ;;  %v152_v34 = vld [vmem:[%s2699_s11] sm:$0xf]  ;;  %v153_v35 = vld [vmem:[%s2699_s11 + $0xc] sm:$0xf]  ;;  %v162_v43 = vld [vmem:[%s2699_s11 + $0x78] sm:$0xf] }
  0x19   : > { %v200_v36 = vunpack.c.l.bf16 %v152_v34  ;;  %v201_v38 = vunpack.c.l.bf16 %v153_v35  ;;  %v163_v44 = vld [vmem:[%s2699_s11 + $0x84] sm:$0xf]  ;;  %v154_v45 = vld [vmem:[%s2699_s11 + $0x18] sm:$0xf]  ;;  %v210_v46 = vunpack.c.l.bf16 %v162_v43  ;;  %v312_v55 = vsel %vm280_vm0, %v2737_v19, 0 }
  0x1a   : > { %v222_v32 = vmul.f32 0.17677669, %v206_v30  ;;  %v223_v33 = vmul.f32 0.17677669, %v207_v31  ;;  %v211_v47 = vunpack.c.l.bf16 %v163_v44  ;;  %v155_v48 = vld [vmem:[%s2699_s11 + $0x24] sm:$0xf]  ;;  %v202_v49 = vunpack.c.l.bf16 %v154_v45 }
  0x1b   : > { %v216_v39 = vmul.f32 0.17677669, %v200_v36  ;;  %v217_v40 = vmul.f32 0.17677669, %v201_v38  ;;  %v203_v50 = vunpack.c.l.bf16 %v155_v48  ;;  %v226_v53 = vmul.f32 0.17677669, %v210_v46 }
  0x1c   : > { %673 = vrot.lane.b32.xlu1 %v2723_v12, %s2672_s12  ;;  %v2761_v37 = vpack.c.bf16 %v223_v33, %v222_v32  ;;  %v218_v51 = vmul.f32 0.17677669, %v202_v49  ;;  %v227_v54 = vmul.f32 0.17677669, %v211_v47  ;;  %v309_v58 = vsel %vm280_vm0, %v2749_v26, 0 }
  0x1d   : > { %330 = vmatpush.bf16.xpose.msra.mxu0 %v324_v15  ;;  %v2767_v42 = vpack.c.bf16 %v217_v40, %v216_v39  ;;  %v219_v52 = vmul.f32 0.17677669, %v203_v50  ;;  %v156_v59 = vld [vmem:[%s2699_s11 + $0x30] sm:$0xf]  ;;  %v157_v60 = vld [vmem:[%s2699_s11 + $0x3c] sm:$0xf] }
  0x1e   : > { %675 = vrot.lane.b32.xlu2 %v2729_v16, %s2672_s12  ;;  %657 = vrot.lane.b32.xlu0 %v2761_v37, %s2672_s12  ;;  %v2781_v57 = vpack.c.bf16 %v227_v54, %v226_v53  ;;  %v204_v61 = vunpack.c.l.bf16 %v156_v59  ;;  %v205_v62 = vunpack.c.l.bf16 %v157_v60  ;;  %v306_v2 = vsel %vm280_vm0, %v2747_v25, 0  ;;  %v160_v4 = vld [vmem:[%s2699_s11 + $0x60] sm:$0xf]  ;;  %v161_v5 = vld [vmem:[%s2699_s11 + $0x6c] sm:$0xf] }
  0x1f   : > { %v2779_v56 = vpack.c.bf16 %v219_v52, %v218_v51  ;;  %v208_v6 = vunpack.c.l.bf16 %v160_v4  ;;  %v209_v8 = vunpack.c.l.bf16 %v161_v5  ;;  %v166_v10 = vld [vmem:[%s2699_s11 + $0xa8] sm:$0xf]  ;;  %v167_v11 = vld [vmem:[%s2699_s11 + $0xb4] sm:$0xf]  ;;  %v165_v23 = vld [vmem:[%s2699_s11 + $0x9c] sm:$0xf]  ;;  %v117_v54 = vlaneseq }
  0x20   : > { %v220_v63 = vmul.f32 0.17677669, %v204_v61  ;;  %v221_v0 = vmul.f32 0.17677669, %v205_v62  ;;  %v214_v15 = vunpack.c.l.bf16 %v166_v10  ;;  %v215_v17 = vunpack.c.l.bf16 %v167_v11  ;;  %v2168_v40 = vld [vmem:[%s2699_s11 + $0xb0] sm:$0xf] }
  0x21   : > { %v224_v13 = vmul.f32 0.17677669, %v208_v6  ;;  %v225_v14 = vmul.f32 0.17677669, %v209_v8  ;;  %v2164_v44 = vld [vmem:[%s2699_s11 + $0x98] sm:$0xf] }
  0x22   : > { %v2793_v1 = vpack.c.bf16 %v221_v0, %v220_v63  ;;  %v231_v21 = vmul.f32 0.17677669, %v215_v17  ;;  %v2211_v45 = vld [vmem:[%s2699_s11 + $0xa0] sm:$0xf0]  ;;  %v2160_v47 = vld [vmem:[%s2699_s11 + $0x80] sm:$0xf] }
  0x23   : > { %v2809_v18 = vpack.c.bf16 %v225_v14, %v224_v13  ;;  %v2886_v46 = vor.u32 %v2211_v45, %v2164_v44  ;;  %v2210_v48 = vld [vmem:[%s2699_s11 + $0x88] sm:$0xf0]  ;;  %v2156_v52 = vld [vmem:[%s2699_s11 + $0x68] sm:$0xf]  ;;  %v2209_v53 = vld [vmem:[%s2699_s11 + $0x70] sm:$0xf0] }
  0x24   : > { %671 = vrot.lane.b32.xlu1 %v2737_v19, %s2672_s12  ;;  %v2891_v49 = vor.u32 %v2210_v48, %v2160_v47  ;;  %v2906_v59 = vshrl.u32 %v117_v54, 7  ;;  %v2908_v60 = vand.u32 127, %v117_v54  ;;  %v2148_v63 = vld [vmem:[%s2699_s11 + $0x38] sm:$0xf]  ;;  %v2207_v0 = vld [vmem:[%s2699_s11 + $0x40] sm:$0xf0] }
  0x25   : > { %331 = vmatpush.bf16.xpose.msra.mxu0 %v321_v20  ;;  %v230_v20 = vmul.f32 0.17677669, %v214_v15  ;;  %v2917_v4 = vor.u32 %v2207_v0, %v2148_v63  ;;  %v2144_v8 = vld [vmem:[%s2699_s11 + $0x20] sm:$0xf]  ;;  %v2206_v10 = vld [vmem:[%s2699_s11 + $0x28] sm:$0xf0] }
  0x26   : > { %667 = vrot.lane.b32.xlu2 %v2747_v25, %s2672_s12  ;;  %1049 = vrot.lane.b32.xlu0 %v2715_v9, %s2673_s13  ;;  %4139 = vst [vmem:[#allocation2_spill] sm:$0xff] %v2906_v59  ;;  %vm136_vm1 = vcmp.ge.s32.totalorder %v2906_v59, %v2908_v60  ;;  %v2929_v11 = vadd.s32 8, %v2906_v59  ;;  %v2931_v13 = vor.u32 %v2206_v10, %v2144_v8  ;;  %v2140_v17 = vld [vmem:[%s2699_s11 + $0x8] sm:$0xf]  ;;  %v3043_v10 = vadd.s32 64, %v2906_v59 }
  0x27   : > { %v2815_v22 = vpack.c.bf16 %v231_v21, %v230_v20  ;;  %v2205_v20 = vld [vmem:[%s2699_s11 + $0x10] sm:$0xf0] }
  0x28   : > { %4140 = vst [vmem:[#allocation3_spill] sm:$0xff] %v2929_v11  ;;  %vm137_vm2 = vcmp.ge.s32.totalorder %v2929_v11, %v2908_v60  ;;  %vm144_vm9 = vcmp.ge.s32.totalorder %v3043_v10, %v2908_v60 }
  0x2c   : > { %669 = vrot.lane.b32.xlu1 %v2749_v26, %s2672_s12 }
  0x2d   : > { %332 = vmatpush.bf16.xpose.msra.mxu0 %v318_v27  ;;  %v213_v27 = vunpack.c.l.bf16 %v165_v23 }
  0x2e   : > { %661 = vrot.lane.b32.xlu0 %v2781_v57, %s2672_s12  ;;  %655 = vrot.lane.b32.xlu2 %v2793_v1, %s2672_s12 }
  0x2f   : > { %v229_v29 = vmul.f32 0.17677669, %v213_v27 }
  0x34   : > { %651 = vrot.lane.b32.xlu1 %v2767_v42, %s2672_s12 }
  0x35   : > { %333 = vmatpush.bf16.xpose.msra.mxu0 %v315_v41  ;;  %v2212_v41 = vld [vmem:[%s2699_s11 + $0xb8] sm:$0xf0] }
  0x36   : > { %1047 = vrot.lane.b32.xlu0 %v2709_v7, %s2673_s13  ;;  %1051 = vrot.lane.b32.xlu2 %v2704_v3, %s2673_s13 }
  0x3c   : > { %653 = vrot.lane.b32.xlu1 %v2779_v56, %s2672_s12 }
  0x3d   : > { %334 = vmatpush.bf16.xpose.msra.mxu0 %v312_v55  ;;  %v2901_v55 = vor.u32 %v2209_v53, %v2156_v52 }
  0x3e   : > { %1041 = vrot.lane.b32.xlu0 %v2737_v19, %s2673_s13 }
  0x44   : > { %659 = vrot.lane.b32.xlu1 %v2809_v18, %s2672_s12 }
  0x45   : > { %335 = vmatpush.bf16.xpose.msra.mxu0 %v309_v58  ;;  %v2208_v58 = vld [vmem:[%s2699_s11 + $0x58] sm:$0xf0] }
  0x46   : > { %1419 = vrot.lane.b32.xlu0 %v2715_v9, %s2674_s14  ;;  %v164_v9 = vld [vmem:[%s2699_s11 + $0x90] sm:$0xf] }
  0x47   : > { %v212_v24 = vunpack.c.l.bf16 %v164_v9  ;;  %v2941_v9 = vor.u32 %v2205_v20, %v2140_v17 }
  0x49   : > { %v228_v28 = vmul.f32 0.17677669, %v212_v24 }
  0x4b   : > { %v2839_v30 = vpack.c.bf16 %v229_v29, %v228_v28  ;;  %v2952_v28 = vadd.s32 16, %v2906_v59 }
  0x4c   : > { %1045 = vrot.lane.b32.xlu1 %v2729_v16, %s2673_s13 }
  0x4d   : > { %336 = vmatpush.bf16.xpose.msra.mxu0 %v306_v2  ;;  %663 = vrot.lane.b32.xlu2 %v2839_v30, %s2672_s12  ;;  %4141 = vst [vmem:[#allocation4_spill] sm:$0xff] %v2952_v28  ;;  %vm138_vm3 = vcmp.ge.s32.totalorder %v2952_v28, %v2908_v60 }
  0x4e   : > { %665 = vrot.lane.b32.xlu0 %v2815_v22, %s2672_s12 }
  0x54   : > { %2130 = vmatmul.msk.bf16.vlgmr.msra.gmra.mxu0 %vm280_vm0, %v2767_v42  ;;  %1043 = vrot.lane.b32.xlu1 %v2723_v12, %s2673_s13 }
  0x55   : > { %1421 = vrot.lane.b32.xlu2 %v2704_v3, %s2674_s14 }
  0x56   : > { %1037 = vrot.lane.b32.xlu0 %v2747_v25, %s2673_s13 }
  0x5c   : > { %1039 = vrot.lane.b32.xlu1 %v2749_v26, %s2673_s13 }
  0x5d   : > { %1417 = vrot.lane.b32.xlu2 %v2709_v7, %s2674_s14 }
  0x5e   : > { %1415 = vrot.lane.b32.xlu0 %v2729_v16, %s2674_s14 }
  0x64   : > { %2131 = vmatmul.msk.bf16.gmra.mxu0 %vm280_vm0, %v2779_v56  ;;  %1413 = vrot.lane.b32.xlu1 %v2723_v12, %s2674_s14 }
  0x65   : > { %1411 = vrot.lane.b32.xlu2 %v2737_v19, %s2674_s14 }
  0x66   : > { %1021 = vrot.lane.b32.xlu0 %v2767_v42, %s2673_s13 }
  0x6c   : > { %1409 = vrot.lane.b32.xlu1 %v2749_v26, %s2674_s14 }
  0x6d   : > { %1407 = vrot.lane.b32.xlu2 %v2747_v25, %s2674_s14 }
  0x6e   : > { %1023 = vrot.lane.b32.xlu0 %v2779_v56, %s2673_s13 }
  0x70   : > { %v680_v31 = vpop.permute.xlu2 %679 }
  0x71   : > { %v726_v26 = vsel %vm280_vm0, %v680_v31, 0 }
  0x74   : > { %2132 = vmatmul.msk.bf16.gmra.mxu0 %vm280_vm0, %v2793_v1  ;;  %1391 = vrot.lane.b32.xlu1 %v2767_v42, %s2674_s14  ;;  %v2880_v42 = vor.u32 %v2212_v41, %v2168_v40  ;;  %v2991_v41 = vadd.s32 40, %v2906_v59 }
  0x76   : > { %1025 = vrot.lane.b32.xlu0 %v2793_v1, %s2673_s13  ;;  %594 = vmatpush.bf16.msra.mxu1 %v2880_v42  ;;  %vm141_vm6 = vcmp.ge.s32.totalorder %v2991_v41, %v2908_v60 }
  0x78   : > { %v676_v3 = vpop.permute.xlu2 %675 }
  0x79   : > { %v720_v34 = vsel %vm280_vm0, %v676_v3, 0 }
  0x7a   : > { %595 = vmatpush.bf16.msra.mxu1 %v2886_v46 }
  0x7c   : > { %1027 = vrot.lane.b32.xlu1 %v2761_v37, %s2673_s13 }
  0x7e   : > { %596 = vmatpush.bf16.msra.mxu1 %v2891_v49 }
  0x80   : > { %v668_v39 = vpop.permute.xlu2 %667 }
  0x81   : > { %v708_v43 = vsel %vm280_vm0, %v668_v39, 0 }
  0x82   : > { %597 = vmatpush.bf16.msra.mxu1 %v2901_v55 }
  0x84   : > { %2133 = vmatmul.msk.bf16.gmra.mxu0 %vm280_vm0, %v2761_v37  ;;  %1393 = vrot.lane.b32.xlu1 %v2779_v56, %s2674_s14  ;;  %v2152_v56 = vld [vmem:[%s2699_s11 + $0x50] sm:$0xf] }
  0x85   : > { %v2910_v61 = vor.u32 %v2208_v58, %v2152_v56 }
  0x86   : > { %v682_v12 = vpop.permute.xlu1 %681 }
  0x87   : > { %v729_v16 = vsel %vm280_vm0, %v682_v12, 0  ;;  %v678_v32 = vpop.permute.xlu0 %677  ;;  %598 = vmatpush.bf16.msra.mxu1 %v2910_v61 }
  0x88   : > { %731 = vmatpush.bf16.xpose.msra.mxu2 %v729_v16  ;;  %v723_v33 = vsel %vm280_vm0, %v678_v32, 0  ;;  %v656_v2 = vpop.permute.xlu2 %655 }
  0x8b   : > { %599 = vmatpush.bf16.msra.mxu1 %v2917_v4 }
  0x8e   : > { %v674_v35 = vpop.permute.xlu1 %673 }
  0x8f   : > { %v717_v7 = vsel %vm280_vm0, %v674_v35, 0  ;;  %600 = vmatpush.bf16.msra.mxu1 %v2931_v13 }
  0x90   : > { %732 = vmatpush.bf16.xpose.msra.mxu2 %v726_v26  ;;  %v2893_v50 = vpop.permute.xlu0 %657  ;;  %v1052_v21 = vpop.permute.xlu2 %1051  ;;  %v2964_v26 = vadd.s32 24, %v2906_v59 }
  0x91   : > { %v1099_v24 = vsel %vm280_vm0, %v1052_v21, 0 }
  0x92   : > { %4142 = vst [vmem:[#allocation5_spill] sm:$0xff] %v2964_v26  ;;  %vm139_vm4 = vcmp.ge.s32.totalorder %v2964_v26, %v2908_v60 }
  0x93   : > { %601 = vmatpush.bf16.msra.mxu1 %v2941_v9 }
  0x94   : > { %2134 = vmatmul.msk.bf16.gmra.mxu0 %vm280_vm0, %v2809_v18 }
  0x96   : > { %v672_v36 = vpop.permute.xlu1 %671 }
  0x97   : > { %v714_v19 = vsel %vm280_vm0, %v672_v36, 0  ;;  %1101 = vmatpush.bf16.xpose.msrb.mxu1 %v1099_v24 }
  0x98   : > { %733 = vmatpush.bf16.xpose.msra.mxu2 %v723_v33  ;;  %v1050_v62 = vpop.permute.xlu0 %1049 }
  0x99   : > { %v1096_v16 = vsel %vm280_vm0, %v1050_v62, 0  ;;  %v3027_v62 = vadd.s32 56, %v2906_v59 }
  0x9b   : > { %vm143_vm8 = vcmp.ge.s32.totalorder %v3027_v62, %v2908_v60 }
  0x9e   : > { %v670_v38 = vpop.permute.xlu1 %669 }
  0x9f   : > { %v711_v25 = vsel %vm280_vm0, %v670_v38, 0  ;;  %1102 = vmatpush.bf16.xpose.msrb.mxu1 %v1096_v16 }
  0xa0   : > { %734 = vmatpush.bf16.xpose.msra.mxu2 %v720_v34  ;;  %v2933_v15 = vpop.permute.xlu0 %661 }
  0xa4   : > { %2135 = vmatmul.msk.bf16.gmra.mxu0 %vm280_vm0, %v2781_v57 }
  0xa6   : > { %v652_v51 = vpop.permute.xlu1 %651 }
  0xa7   : > { %v2979_v36 = vpop.permute.xlu2 %663 }
  0xa8   : > { %735 = vmatpush.bf16.xpose.msra.mxu2 %v717_v7  ;;  %v1048_v29 = vpop.permute.xlu0 %1047  ;;  %v2977_v7 = vadd.s32 32, %v2906_v59 }
  0xa9   : > { %v1093_v34 = vsel %vm280_vm0, %v1048_v29, 0  ;;  %v3059_v29 = vadd.s32 72, %v2906_v59 }
  0xaa   : > { %1103 = vmatpush.bf16.xpose.msrb.mxu1 %v1093_v34  ;;  %vm140_vm5 = vcmp.ge.s32.totalorder %v2977_v7, %v2908_v60 }
  0xab   : > { %vm145_vm10 = vcmp.ge.s32.totalorder %v3059_v29, %v2908_v60 }
  0xae   : > { %v654_v14 = vpop.permute.xlu1 %653 }
  0xb0   : > { %736 = vmatpush.bf16.xpose.msra.mxu2 %v714_v19  ;;  %v1042_v33 = vpop.permute.xlu0 %1041 }
  0xb1   : > { %v1084_v54 = vsel %vm280_vm0, %v1042_v33, 0 }
  0xb4   : > { %2136 = vmatmul.msk.bf16.gmra.mxu0 %vm280_vm0, %v2839_v30 }
  0xb6   : > { %v660_v32 = vpop.permute.xlu1 %659 }
  0xb8   : > { %737 = vmatpush.bf16.xpose.msra.mxu2 %v711_v25  ;;  %v1420_v40 = vpop.permute.xlu0 %1419 }
  0xb9   : > { %v3017_v56 = vsel %vm280_vm0, %v1420_v40, 0  ;;  %v3092_v40 = vadd.s32 88, %v2906_v59 }
  0xbb   : > { %4143 = vst [vmem:[#allocation6_spill] sm:$0xff] %v3092_v40  ;;  %vm147_vm12 = vcmp.ge.s32.totalorder %v3092_v40, %v2908_v60 }
  0xbe   : > { %v1046_v19 = vpop.permute.xlu1 %1045 }
  0xbf   : > { %v1090_v25 = vsel %vm280_vm0, %v1046_v19, 0 }
  0xc0   : > { %738 = vmatpush.bf16.xpose.msra.mxu2 %v708_v43  ;;  %1104 = vmatpush.bf16.xpose.msrb.mxu1 %v1090_v25  ;;  %v1422_v43 = vpop.permute.xlu2 %1421  ;;  %v3011_v52 = vpop.permute.xlu0 %665 }
  0xc1   : > { %v2999_v48 = vsel %vm280_vm0, %v1422_v43, 0 }
  0xc2   : > { %1471 = vmatpush.bf16.xpose.msrb.mxu0 %v2999_v48 }
  0xc4   : > { %2137 = vmatmul.msk.bf16.gmra.mxu0 %vm280_vm0, %v2815_v22 }
  0xc6   : > { %v1044_v44 = vpop.permute.xlu1 %1043 }
  0xc7   : > { %2170 = vmatmul.msk.bf16.vlgmr.msra.gmra.mxu2 %vm280_vm0, %v652_v51  ;;  %v1087_v47 = vsel %vm280_vm0, %v1044_v44, 0 }
  0xc8   : > { %1105 = vmatpush.bf16.xpose.msrb.mxu1 %v1087_v47  ;;  %v1038_v63 = vpop.permute.xlu0 %1037  ;;  %v1418_v0 = vpop.permute.xlu2 %1417 }
  0xca   : > { %1472 = vmatpush.bf16.xpose.msrb.mxu0 %v3017_v56 }
  0xd0   : > { %1106 = vmatpush.bf16.xpose.msrb.mxu1 %v1084_v54  ;;  %v1416_v17 = vpop.permute.xlu0 %1415  ;;  %v1412_v34 = vpop.permute.xlu2 %1411 }
  0xd1   : > { %v338_v5 = vpop.f32.mrf.mxu0 }
  0xd2   : > { %v2923_v6 = vsel %vm136_vm1, %v338_v5, -1e+30  ;;  %v3033_v5 = vsel %vm280_vm0, %v1418_v0, 0 }
  0xd3   : > { %394 = vmax.xlane.f32.xlu0 %v2923_v6  ;;  %1473 = vmatpush.bf16.xpose.msrb.mxu0 %v3033_v5 }
  0xd7   : > { %2171 = vmatmul.msk.bf16.gmra.mxu2 %vm280_vm0, %v654_v14  ;;  %v1040_v14 = vpop.permute.xlu1 %1039 }
  0xd8   : > { %v1081_v21 = vsel %vm280_vm0, %v1040_v14, 0  ;;  %v3098_v43 = vpop.permute.xlu0 %1021  ;;  %v1408_v54 = vpop.permute.xlu2 %1407 }
  0xd9   : > { %v340_v23 = vpop.f32.mrf.mxu0  ;;  %1107 = vmatpush.bf16.xpose.msrb.mxu1 %v1081_v21  ;;  %v3116_v0 = vsel %vm280_vm0, %v1408_v54, 0 }
  0xda   : > { %v2948_v27 = vsel %vm137_vm2, %v340_v23, -1e+30  ;;  %v3049_v23 = vsel %vm280_vm0, %v1416_v17, 0  ;;  %v3128_v17 = vadd.s32 104, %v2906_v59 }
  0xdb   : > { %396 = vmax.xlane.f32.xlu0 %v2948_v27  ;;  %1474 = vmatpush.bf16.xpose.msrb.mxu0 %v3049_v23 }
  0xdc   : > { %4145 = vst [vmem:[#allocation8_spill] sm:$0xff] %v3128_v17  ;;  %vm149_vm14 = vcmp.ge.s32.totalorder %v3128_v17, %v2908_v60 }
  0xe0   : > { %v3123_v14 = vpop.permute.xlu0 %1023 }
  0xe1   : > { %v343_v12 = vpop.f32.mrf.mxu0 }
  0xe2   : > { %v2960_v31 = vsel %vm138_vm3, %v343_v12, -1e+30  ;;  %v1414_v12 = vpop.permute.xlu1 %1413 }
  0xe3   : > { %398 = vmax.xlane.f32.xlu1 %v2960_v31  ;;  %v3067_v33 = vsel %vm280_vm0, %v1414_v12, 0 }
  0xe4   : > { %1475 = vmatpush.bf16.xpose.msrb.mxu0 %v3067_v33 }
  0xe7   : > { %2172 = vmatmul.msk.bf16.gmra.mxu2 %vm280_vm0, %v656_v2 }
  0xe9   : > { %v345_v3 = vpop.f32.mrf.mxu0 }
  0xea   : > { %v2973_v35 = vsel %vm139_vm4, %v345_v3, -1e+30  ;;  %v1410_v44 = vpop.permute.xlu1 %1409 }
  0xeb   : > { %400 = vmax.xlane.f32.xlu2 %v2973_v35  ;;  %v3101_v47 = vsel %vm280_vm0, %v1410_v44, 0  ;;  %v3157_v44 = vadd.s32 120, %v2906_v59 }
  0xed   : > { %4149 = vst [vmem:[#allocation12_spill] sm:$0xff] %v3157_v44 }
  0xf1   : > { %v348_v38 = vpop.f32.mrf.mxu0 }
  0xf2   : > { %v2987_v39 = vsel %vm140_vm5, %v348_v38, -1e+30  ;;  %v3082_v38 = vsel %vm280_vm0, %v1412_v34, 0 }
  0xf3   : > { %402 = vmax.xlane.f32.xlu0 %v2987_v39  ;;  %1476 = vmatpush.bf16.xpose.msrb.mxu0 %v3082_v38 }
  0xf7   : > { %2173 = vmatmul.msk.bf16.gmra.mxu2 %vm280_vm0, %v2893_v50  ;;  %v3009_v50 = vadd.s32 48, %v2906_v59 }
  0xf9   : > { %v350_v45 = vpop.f32.mrf.mxu0  ;;  %vm142_vm7 = vcmp.ge.s32.totalorder %v3009_v50, %v2908_v60 }
  0xfa   : > { %v3004_v51 = vsel %vm141_vm6, %v350_v45, -1e+30 }
  0xfb   : > { %404 = vmax.xlane.f32.xlu2 %v3004_v51  ;;  %1477 = vmatpush.bf16.xpose.msrb.mxu0 %v3101_v47 }
 0x101   : > { %v353_v53 = vpop.f32.mrf.mxu0 }
 0x102   : > { %v3022_v58 = vsel %vm142_vm7, %v353_v53, -1e+30 }
 0x103   : > { %406 = vmax.xlane.f32.xlu1 %v3022_v58  ;;  %1478 = vmatpush.bf16.xpose.msrb.mxu0 %v3116_v0 }
 0x107   : > { %2174 = vmatmul.msk.bf16.gmra.mxu2 %vm280_vm0, %v660_v32  ;;  %v1078_v32 = vsel %vm280_vm0, %v1038_v63, 0 }
 0x108   : > { %1108 = vmatpush.bf16.xpose.msrb.mxu1 %v1078_v32  ;;  %v3144_v32 = vpop.permute.xlu0 %1025 }
 0x109   : > { %v355_v2 = vpop.f32.mrf.mxu0  ;;  %4147 = vst [vmem:[#allocation10_spill] sm:$0xff] %v3144_v32 }
 0x10a   : > { %v3038_v8 = vsel %vm143_vm8, %v355_v2, -1e+30 }
 0x10b   : > { %408 = vmax.xlane.f32.xlu0 %v3038_v8 }
 0x111   : > { %v358_v20 = vpop.f32.mrf.mxu0 }
 0x112   : > { %v3054_v24 = vsel %vm144_vm9, %v358_v20, -1e+30  ;;  %v1392_v20 = vpop.permute.xlu1 %1391 }
 0x113   : > { %410 = vmax.xlane.f32.xlu0 %v3054_v24  ;;  %2186 = vmatmul.msk.bf16.vlgmr.msrb.gmra.mxu0 %vm280_vm0, %v1392_v20 }
 0x117   : > { %2175 = vmatmul.msk.bf16.gmra.mxu2 %vm280_vm0, %v2933_v15  ;;  %v3077_v15 = vadd.s32 80, %v2906_v59 }
 0x119   : > { %v360_v16 = vpop.f32.mrf.mxu0  ;;  %vm146_vm11 = vcmp.ge.s32.totalorder %v3077_v15, %v2908_v60 }
 0x11a   : > { %v3072_v3 = vsel %vm145_vm10, %v360_v16, -1e+30  ;;  %v3142_v16 = vadd.s32 112, %v2906_v59  ;;  %v3146_v34 = vpop.permute.xlu1 %1027 }
 0x11b   : > { %412 = vmax.xlane.f32.xlu2 %v3072_v3  ;;  %4148 = vst [vmem:[#allocation11_spill] sm:$0xff] %v3146_v34 }
 0x11c   : > { %4146 = vst [vmem:[#allocation9_spill] sm:$0xff] %v3142_v16  ;;  %vm4138_vm15 = vcmp.ge.s32.totalorder %v3142_v16, %v2908_v60 }
 0x121   : > { %v363_v19 = vpop.f32.mrf.mxu0 }
 0x122   : > { %v3087_v25 = vsel %vm146_vm11, %v363_v19, -1e+30 }
 0x123   : > { %414 = vmax.xlane.f32.xlu0 %v3087_v25 }
 0x127   : > { %2176 = vmatmul.msk.bf16.gmra.mxu2 %vm280_vm0, %v2979_v36  ;;  %v3111_v36 = vadd.s32 96, %v2906_v59 }
 0x129   : > { %v365_v45 = vpop.f32.mrf.mxu0  ;;  %4144 = vst [vmem:[#allocation7_spill] sm:$0xff] %v3111_v36  ;;  %vm4119_vm13 = vcmp.ge.s32.totalorder %v3111_v36, %v2908_v60 }
 0x12a   : > { %v3106_v53 = vsel %vm147_vm12, %v365_v45, -1e+30 }
 0x12b   : > { %416 = vmax.xlane.f32.xlu1 %v3106_v53 }
 0x131   : > { %v368_v63 = vpop.f32.mrf.mxu0 }
 0x132   : > { %v3121_v2 = vsel %vm4119_vm13, %v368_v63, -1e+30  ;;  %vm151_vm13 = vcmp.ge.s32.totalorder %v3157_v44, %v2908_v60  ;;  %v1394_v63 = vpop.permute.xlu1 %1393 }
 0x133   : > { %418 = vmax.xlane.f32.xlu0 %v3121_v2  ;;  %2187 = vmatmul.msk.bf16.gmra.mxu0 %vm280_vm0, %v1394_v63 }
 0x137   : > { %2177 = vmatmul.msk.bf16.gmra.mxu2 %vm280_vm0, %v3011_v52 }
 0x139   : > { %v370_v21 = vpop.f32.mrf.mxu0 }
 0x13a   : > { %v3138_v12 = vsel %vm149_vm14, %v370_v21, -1e+30 }
 0x13b   : > { %420 = vmax.xlane.f32.xlu0 %v3138_v12 }
 0x141   : > { %v373_v52 = vpop.f32.mrf.mxu0 }
 0x142   : > { %v3153_v19 = vsel %vm4138_vm15, %v373_v52, -1e+30 }
 0x143   : > { %422 = vmax.xlane.f32.xlu1 %v3153_v19 }
 0x146   : > { %v395_v45 = vpop.xlane.xlu0 %394 }
 0x147   : > { %v426_v54 = vsub.f32 %v2923_v6, %v395_v45 }
 0x149   : > { %v442_v20 = vmul.f32 1.442695, %v426_v54  ;;  %v375_v21 = vpop.f32.mrf.mxu0 }
 0x14a   : > { %v740_v36 = vpop.f32.mrf.mxu2  ;;  %v3166_v52 = vsel %vm151_vm13, %v375_v21, -1e+30 }
 0x14b   : > { %2408 = vpow2.f32 %v442_v20  ;;  %424 = vmax.xlane.f32.xlu1 %v3166_v52  ;;  %v3172_v6 = vsel %vm136_vm1, %v740_v36, -1e+30 }
 0x14c   : > { %796 = vmax.xlane.f32.xlu2 %v3172_v6 }
 0x14e   : > { %v397_v45 = vpop.xlane.xlu0 %396 }
 0x14f   : > { %v427_v63 = vsub.f32 %v2948_v27, %v397_v45 }
 0x151   : > { %v3175_v54 = vpop.eup %2408  ;;  %v444_v21 = vmul.f32 1.442695, %v427_v63 }
 0x152   : > { %474 = vadd.xlane.f32.xlu0 %v3175_v54  ;;  %v742_v44 = vpop.f32.mrf.mxu2 }
 0x153   : > { %v3182_v20 = vsel %vm137_vm2, %v742_v44, -1e+30  ;;  %2410 = vpow2.f32 %v444_v21 }
 0x156   : > { %v399_v16 = vpop.xlane.xlu1 %398 }
 0x157   : > { %v428_v36 = vsub.f32 %v2960_v31, %v399_v16 }
 0x159   : > { %v446_v59 = vmul.f32 1.442695, %v428_v36  ;;  %v3186_v34 = vpop.eup %2410 }
 0x15a   : > { %798 = vmax.xlane.f32.xlu0 %v3182_v20 }
 0x15b   : > { %2412 = vpow2.f32 %v446_v59 }
 0x15e   : > { %v401_v17 = vpop.xlane.xlu2 %400 }
 0x15f   : > { %v429_v27 = vsub.f32 %v2973_v35, %v401_v17 }
 0x161   : > { %v448_v45 = vmul.f32 1.442695, %v429_v27  ;;  %v3190_v11 = vpop.eup %2412 }
 0x162   : > { %476 = vadd.xlane.f32.xlu0 %v3186_v34 }
 0x163   : > { %2414 = vpow2.f32 %v448_v45 }
 0x166   : > { %v403_v63 = vpop.xlane.xlu0 %402 }
 0x167   : > { %v430_v44 = vsub.f32 %v2987_v39, %v403_v63 }
 0x169   : > { %v450_v21 = vmul.f32 1.442695, %v430_v44  ;;  %v3194_v16 = vpop.eup %2414 }
 0x16a   : > { %478 = vadd.xlane.f32.xlu0 %v3190_v11 }
 0x16b   : > { %2416 = vpow2.f32 %v450_v21 }
 0x16e   : > { %v405_v31 = vpop.xlane.xlu2 %404 }
 0x16f   : > { %v431_v59 = vsub.f32 %v3004_v51, %v405_v31 }
 0x171   : > { %v452_v36 = vmul.f32 1.442695, %v431_v59  ;;  %v3198_v17 = vpop.eup %2416 }
 0x172   : > { %480 = vadd.xlane.f32.xlu0 %v3194_v16 }
 0x173   : > { %2418 = vpow2.f32 %v452_v36 }
 0x176   : > { %v407_v35 = vpop.xlane.xlu1 %406 }
 0x177   : > { %v432_v27 = vsub.f32 %v3022_v58, %v407_v35 }
 0x179   : > { %v454_v45 = vmul.f32 1.442695, %v432_v27  ;;  %v3203_v44 = vpop.eup %2418 }
 0x17a   : > { %482 = vadd.xlane.f32.xlu0 %v3198_v17 }
 0x17b   : > { %2420 = vpow2.f32 %v454_v45 }
 0x17e   : > { %v409_v39 = vpop.xlane.xlu0 %408 }
 0x17f   : > { %v433_v63 = vsub.f32 %v3038_v8, %v409_v39 }
 0x181   : > { %v456_v40 = vmul.f32 1.442695, %v433_v63  ;;  %v3207_v31 = vpop.eup %2420 }
 0x182   : > { %484 = vadd.xlane.f32.xlu0 %v3203_v44 }
 0x183   : > { %2422 = vpow2.f32 %v456_v40 }
 0x186   : > { %v411_v51 = vpop.xlane.xlu0 %410 }
 0x187   : > { %v434_v21 = vsub.f32 %v3054_v24, %v411_v51 }
 0x189   : > { %v3209_v58 = vpop.eup %2422  ;;  %v458_v59 = vmul.f32 1.442695, %v434_v21 }
 0x18a   : > { %488 = vadd.xlane.f32.xlu2 %v3209_v58  ;;  %486 = vadd.xlane.f32.xlu0 %v3207_v31 }
 0x18b   : > { %2424 = vpow2.f32 %v458_v59  ;;  %v745_v59 = vpop.f32.mrf.mxu2 }
 0x18e   : > { %v413_v8 = vpop.xlane.xlu2 %412 }
 0x18f   : > { %v435_v36 = vsub.f32 %v3072_v3, %v413_v8 }
 0x191   : > { %v3214_v35 = vpop.eup %2424  ;;  %v460_v27 = vmul.f32 1.442695, %v435_v36 }
 0x192   : > { %490 = vadd.xlane.f32.xlu1 %v3214_v35 }
 0x193   : > { %2426 = vpow2.f32 %v460_v27 }
 0x196   : > { %v415_v24 = vpop.xlane.xlu0 %414 }
 0x197   : > { %v436_v40 = vsub.f32 %v3087_v25, %v415_v24 }
 0x199   : > { %v3218_v45 = vpop.eup %2426  ;;  %v462_v39 = vmul.f32 1.442695, %v436_v40 }
 0x19a   : > { %492 = vadd.xlane.f32.xlu0 %v3218_v45 }
 0x19b   : > { %2428 = vpow2.f32 %v462_v39 }
 0x19e   : > { %v417_v63 = vpop.xlane.xlu1 %416 }
 0x19f   : > { %v437_v51 = vsub.f32 %v3106_v53, %v417_v63  ;;  %v747_v53 = vpop.f32.mrf.mxu2 }
 0x1a1   : > { %v3222_v21 = vpop.eup %2428  ;;  %v464_v3 = vmul.f32 1.442695, %v437_v51  ;;  %v3235_v51 = vsel %vm139_vm4, %v747_v53, -1e+30 }
 0x1a2   : > { %494 = vadd.xlane.f32.xlu1 %v3222_v21 }
 0x1a3   : > { %2430 = vpow2.f32 %v464_v3 }
 0x1a6   : > { %v419_v8 = vpop.xlane.xlu0 %418 }
 0x1a7   : > { %v438_v36 = vsub.f32 %v3121_v2, %v419_v8 }
 0x1a9   : > { %v3226_v25 = vpop.eup %2430  ;;  %v466_v27 = vmul.f32 1.442695, %v438_v36 }
 0x1aa   : > { %496 = vadd.xlane.f32.xlu2 %v3226_v25 }
 0x1ab   : > { %2432 = vpow2.f32 %v466_v27 }
 0x1ae   : > { %v421_v24 = vpop.xlane.xlu0 %420 }
 0x1af   : > { %v439_v40 = vsub.f32 %v3138_v12, %v421_v24 }
 0x1b1   : > { %v3230_v39 = vpop.eup %2432  ;;  %v468_v63 = vmul.f32 1.442695, %v439_v40 }
 0x1b2   : > { %802 = vmax.xlane.f32.xlu2 %v3235_v51  ;;  %498 = vadd.xlane.f32.xlu1 %v3230_v39 }
 0x1b3   : > { %2434 = vpow2.f32 %v468_v63  ;;  %v750_v63 = vpop.f32.mrf.mxu2 }
 0x1b6   : > { %v423_v2 = vpop.xlane.xlu1 %422 }
 0x1b7   : > { %v440_v3 = vsub.f32 %v3153_v19, %v423_v2  ;;  %v3252_v19 = vsel %vm138_vm3, %v745_v59, -1e+30 }
 0x1b9   : > { %v3240_v8 = vpop.eup %2434  ;;  %v470_v12 = vmul.f32 1.442695, %v440_v3 }
 0x1ba   : > { %500 = vadd.xlane.f32.xlu0 %v3240_v8 }
 0x1bb   : > { %2436 = vpow2.f32 %v470_v12  ;;  %v752_v2 = vpop.f32.mrf.mxu2 }
 0x1bc   : > { %v3263_v3 = vsel %vm141_vm6, %v752_v2, -1e+30 }
 0x1be   : > { %v425_v36 = vpop.xlane.xlu1 %424 }
 0x1bf   : > { %v441_v27 = vsub.f32 %v3166_v52, %v425_v36 }
 0x1c1   : > { %v3244_v24 = vpop.eup %2436  ;;  %v472_v40 = vmul.f32 1.442695, %v441_v27 }
 0x1c2   : > { %502 = vadd.xlane.f32.xlu1 %v3244_v24 }
 0x1c3   : > { %2438 = vpow2.f32 %v472_v40 }
 0x1c5   : > { %v475_v53 = vpop.xlane.xlu0 %474 }
 0x1c6   : > { %2440 = vrcp.f32 %v475_v53 }
 0x1c9   : > { %v3247_v26 = vpop.eup %2438 }
 0x1ca   : > { %800 = vmax.xlane.f32.xlu1 %v3252_v19  ;;  %504 = vadd.xlane.f32.xlu2 %v3247_v26 }
 0x1cc   : > { %v2441_v12 = vpop.eup %2440 }
 0x1cd   : > { %v3256_v52 = vpop.xlane.xlu0 %798  ;;  %v522_v40 = vmul.f32 %v2441_v12, %v3175_v54  ;;  %v755_v12 = vpop.f32.mrf.mxu2 }
 0x1ce   : > { %1029 = vrot.lane.b32.xlu0 %v2809_v18, %s2673_s13 }
 0x1d2   : > { %806 = vmax.xlane.f32.xlu1 %v3263_v3 }
 0x1d5   : > { %v477_v59 = vpop.xlane.xlu0 %476 }
 0x1d6   : > { %2442 = vrcp.f32 %v477_v59 }
 0x1dc   : > { %v2443_v36 = vpop.eup %2442 }
 0x1dd   : > { %v479_v27 = vpop.xlane.xlu0 %478  ;;  %v523_v28 = vmul.f32 %v2443_v36, %v3186_v34 }
 0x1de   : > { %2444 = vrcp.f32 %v479_v27  ;;  %v3299_v27 = vsel %vm142_vm7, %v755_v12, -1e+30 }
 0x1df   : > { %v538_v32 = vpack.c.bf16 %v523_v28, %v522_v40 }
 0x1e1   : > { %602 = vmatmul.bf16.vlgmr.msra.gmra.mxu1 %v538_v32 }
 0x1e2   : > { %2260 = vmatpush.bf16.xpose.msra.mxu1 %v2999_v48  ;;  %1395 = vrot.lane.b32.xlu2 %v2793_v1, %s2674_s14 }
 0x1e4   : > { %v2445_v53 = vpop.eup %2444 }
 0x1e5   : > { %v481_v2 = vpop.xlane.xlu0 %480  ;;  %v524_v32 = vmul.f32 %v2445_v53, %v3190_v11  ;;  %v3286_v11 = vsel %vm140_vm5, %v750_v63, -1e+30 }
 0x1e6   : > { %2446 = vrcp.f32 %v481_v2 }
 0x1ea   : > { %2261 = vmatpush.bf16.xpose.msra.mxu1 %v3017_v56  ;;  %962 = vrot.lane.b32.xlu2 %v2880_v42, %s2672_s12  ;;  %v797_v56 = vpop.xlane.xlu2 %796 }
 0x1eb   : > { %1031 = vrot.lane.b32.xlu1 %v2781_v57, %s2673_s13 }
 0x1ec   : > { %v2447_v34 = vpop.eup %2446 }
 0x1ed   : > { %v483_v28 = vpop.xlane.xlu0 %482  ;;  %v525_v48 = vmul.f32 %v2447_v34, %v3194_v16 }
 0x1ee   : > { %2448 = vrcp.f32 %v483_v28 }
 0x1ef   : > { %v539_v54 = vpack.c.bf16 %v525_v48, %v524_v32 }
 0x1f1   : > { %607 = vmatmul.bf16.gmra.mxu1 %v539_v54 }
 0x1f2   : > { %2262 = vmatpush.bf16.xpose.msra.mxu1 %v3033_v5  ;;  %1397 = vrot.lane.b32.xlu2 %v2761_v37, %s2674_s14 }
 0x1f3   : > { %956 = vrot.lane.b32.xlu1 %v2901_v55, %s2672_s12 }
 0x1f4   : > { %v2449_v16 = vpop.eup %2448 }
 0x1f5   : > { %v485_v1 = vpop.xlane.xlu0 %484  ;;  %v526_v5 = vmul.f32 %v2449_v16, %v3198_v17  ;;  %v757_v16 = vpop.f32.mrf.mxu2 }
 0x1f6   : > { %2450 = vrcp.f32 %v485_v1 }
 0x1f8   : > { %804 = vmax.xlane.f32.xlu0 %v3286_v11 }
 0x1fa   : > { %2263 = vmatpush.bf16.xpose.msra.mxu1 %v3049_v23  ;;  %960 = vrot.lane.b32.xlu2 %v2886_v46, %s2672_s12 }
 0x1fb   : > { %954 = vrot.lane.b32.xlu1 %v2910_v61, %s2672_s12 }
 0x1fc   : > { %v2451_v37 = vpop.eup %2450 }
 0x1fd   : > { %v527_v59 = vmul.f32 %v2451_v37, %v3203_v44  ;;  %v489_v36 = vpop.xlane.xlu2 %488  ;;  %v487_v63 = vpop.xlane.xlu0 %486 }
 0x1fe   : > { %2452 = vrcp.f32 %v489_v36 }
 0x1ff   : > { %v540_v23 = vpack.c.bf16 %v527_v59, %v526_v5  ;;  %2454 = vrcp.f32 %v487_v63 }
 0x200   : > { %808 = vmax.xlane.f32.xlu0 %v3299_v27 }
 0x201   : > { %612 = vmatmul.bf16.gmra.mxu1 %v540_v23 }
 0x202   : > { %2264 = vmatpush.bf16.xpose.msra.mxu1 %v3067_v33  ;;  %958 = vrot.lane.b32.xlu2 %v2891_v49, %s2672_s12 }
 0x203   : > { %1399 = vrot.lane.b32.xlu1 %v2809_v18, %s2674_s14 }
 0x204   : > { %v2453_v17 = vpop.eup %2452 }
 0x205   : > { %v2455_v44 = vpop.eup %2454  ;;  %v529_v2 = vmul.f32 %v2453_v17, %v3209_v58  ;;  %v491_v28 = vpop.xlane.xlu1 %490  ;;  %v828_v58 = vsub.f32 %v3172_v6, %v797_v56  ;;  %v829_v56 = vsub.f32 %v3182_v20, %v3256_v52 }
 0x206   : > { %v528_v40 = vmul.f32 %v2455_v44, %v3207_v31 }
 0x207   : > { %v844_v1 = vmul.f32 1.442695, %v828_v58  ;;  %v846_v36 = vmul.f32 1.442695, %v829_v56 }
 0x208   : > { %v541_v34 = vpack.c.bf16 %v529_v2, %v528_v40  ;;  %v760_v2 = vpop.f32.mrf.mxu2 }
 0x20a   : > { %2265 = vmatpush.bf16.xpose.msra.mxu1 %v3082_v38 }
 0x20d   : > { %v493_v53 = vpop.xlane.xlu0 %492 }
 0x20e   : > { %2456 = vrcp.f32 %v493_v53 }
 0x20f   : > { %2458 = vrcp.f32 %v491_v28 }
 0x211   : > { %617 = vmatmul.bf16.gmra.mxu1 %v541_v34 }
 0x212   : > { %2266 = vmatpush.bf16.xpose.msra.mxu1 %v3101_v47 }
 0x214   : > { %1033 = vrot.lane.b32.xlu0 %v2839_v30, %s2673_s13  ;;  %v2457_v18 = vpop.eup %2456 }
 0x215   : > { %v2459_v33 = vpop.eup %2458  ;;  %v531_v38 = vmul.f32 %v2457_v18, %v3218_v45  ;;  %v495_v54 = vpop.xlane.xlu1 %494 }
 0x216   : > { %v530_v31 = vmul.f32 %v2459_v33, %v3214_v35 }
 0x218   : > { %v542_v48 = vpack.c.bf16 %v531_v38, %v530_v31 }
 0x21a   : > { %2267 = vmatpush.bf16.xpose.msra.mxu1 %v3116_v0  ;;  %v3320_v0 = vsel %vm143_vm8, %v757_v16, -1e+30 }
 0x21d   : > { %v497_v32 = vpop.xlane.xlu2 %496 }
 0x21e   : > { %2460 = vrcp.f32 %v497_v32 }
 0x21f   : > { %2462 = vrcp.f32 %v495_v54 }
 0x220   : > { %2464 = vpow2.f32 %v844_v1  ;;  %v762_v1 = vpop.f32.mrf.mxu2 }
 0x221   : > { %622 = vmatmul.bf16.gmra.mxu1 %v542_v48 }
 0x224   : > { %v2461_v47 = vpop.eup %2460 }
 0x225   : > { %v2463_v37 = vpop.eup %2462  ;;  %v533_v6 = vmul.f32 %v2461_v47, %v3226_v25  ;;  %v499_v12 = vpop.xlane.xlu1 %498 }
 0x226   : > { %v3324_v35 = vpop.eup %2464  ;;  %v532_v45 = vmul.f32 %v2463_v37, %v3222_v21  ;;  %v803_v63 = vpop.xlane.xlu2 %802 }
 0x228   : > { %v543_v59 = vpack.c.bf16 %v533_v6, %v532_v45  ;;  %v765_v45 = vpop.f32.mrf.mxu2 }
 0x22b   : > { %810 = vmax.xlane.f32.xlu2 %v3320_v0 }
 0x22d   : > { %876 = vadd.xlane.f32.xlu1 %v3324_v35  ;;  %v501_v5 = vpop.xlane.xlu0 %500 }
 0x22e   : > { %2466 = vrcp.f32 %v501_v5 }
 0x22f   : > { %2468 = vrcp.f32 %v499_v12  ;;  %v3378_v12 = vsel %vm146_vm11, %v765_v45, -1e+30 }
 0x230   : > { %2470 = vpow2.f32 %v846_v36 }
 0x231   : > { %627 = vmatmul.bf16.gmra.mxu1 %v543_v59 }
 0x234   : > { %v2467_v23 = vpop.eup %2466 }
 0x235   : > { %v2469_v25 = vpop.eup %2468  ;;  %v535_v17 = vmul.f32 %v2467_v23, %v3240_v8  ;;  %v503_v52 = vpop.xlane.xlu1 %502  ;;  %v3340_v8 = vsel %vm144_vm9, %v760_v2, -1e+30 }
 0x236   : > { %v3331_v44 = vpop.eup %2470  ;;  %v534_v21 = vmul.f32 %v2469_v25, %v3230_v39  ;;  %v4152_v25 = vld [vmem:[#allocation10_spill] sm:$0xff] }
 0x238   : > { %v544_v20 = vpack.c.bf16 %v535_v17, %v534_v21 }
 0x23d   : > { %v505_v40 = vpop.xlane.xlu2 %504  ;;  %v801_v18 = vpop.xlane.xlu1 %800 }
 0x23e   : > { %878 = vadd.xlane.f32.xlu0 %v3331_v44  ;;  %2472 = vrcp.f32 %v505_v40  ;;  %v830_v54 = vsub.f32 %v3252_v19, %v801_v18  ;;  %v831_v19 = vsub.f32 %v3235_v51, %v803_v63  ;;  %v767_v63 = vpop.f32.mrf.mxu2 }
 0x23f   : > { %2474 = vrcp.f32 %v503_v52  ;;  %v3391_v21 = vsel %vm147_vm12, %v767_v63, -1e+30 }
 0x240   : > { %v848_v47 = vmul.f32 1.442695, %v830_v54  ;;  %v1030_v37 = vpop.permute.xlu0 %1029 }
 0x241   : > { %632 = vmatmul.bf16.gmra.mxu1 %v544_v20 }
 0x242   : > { %2476 = vpow2.f32 %v848_v47 }
 0x243   : > { %952 = vrot.lane.b32.xlu2 %v2917_v4, %s2672_s12 }
 0x244   : > { %v2473_v39 = vpop.eup %2472 }
 0x245   : > { %v1396_v53 = vpop.permute.xlu2 %1395  ;;  %v2475_v34 = vpop.eup %2474  ;;  %v537_v28 = vmul.f32 %v2473_v39, %v3247_v26 }
 0x246   : > { %812 = vmax.xlane.f32.xlu0 %v3340_v8  ;;  %950 = vrot.lane.b32.xlu1 %v2931_v13, %s2672_s12  ;;  %v536_v38 = vmul.f32 %v2475_v34, %v3244_v24  ;;  %v807_v32 = vpop.xlane.xlu1 %806  ;;  %v4156_v34 = vld [vmem:[#allocation11_spill] sm:$0xff] }
 0x247   : > { %2188 = vmatmul.msk.bf16.gmra.mxu0 %vm280_vm0, %v1396_v53  ;;  %v833_v20 = vsub.f32 %v3263_v3, %v807_v32  ;;  %v770_v53 = vpop.f32.mrf.mxu2 }
 0x248   : > { %v545_v31 = vpack.c.bf16 %v537_v28, %v536_v38  ;;  %v3371_v5 = vpop.eup %2476 }
 0x249   : > { %v854_v52 = vmul.f32 1.442695, %v833_v20 }
 0x24b   : > { %948 = vrot.lane.b32.xlu2 %v2941_v9, %s2672_s12 }
 0x24d   : > { %v963_v33 = vpop.permute.xlu2 %962 }
 0x24e   : > { %1401 = vrot.lane.b32.xlu1 %v2781_v57, %s2674_s14  ;;  %972 = vmatpush.bf16.msra.mxu3 %v963_v33 }
 0x24f   : > { %v772_v3 = vpop.f32.mrf.mxu2 }
 0x250   : > { %v3415_v38 = vsel %vm149_vm14, %v772_v3, -1e+30 }
 0x251   : > { %637 = vmatmul.bf16.gmra.mxu1 %v545_v31 }
 0x255   : > { %v1398_v58 = vpop.permute.xlu2 %1397 }
 0x257   : > { %2189 = vmatmul.msk.bf16.gmra.mxu0 %vm280_vm0, %v1398_v58 }
 0x25a   : > { %1035 = vrot.lane.b32.xlu0 %v2815_v22, %s2673_s13 }
 0x25d   : > { %v961_v48 = vpop.permute.xlu2 %960  ;;  %v3355_v26 = vpop.permute.xlu1 %1031 }
 0x25e   : > { %973 = vmatpush.bf16.msra.mxu3 %v961_v48  ;;  %v3362_v6 = vpop.f32.mrf.mxu1 }
 0x25f   : > { %4150 = vst [vmem:[#allocation13_spill] sm:$0xff] %v3362_v6 }
 0x261   : > { %2178 = vmatmul.msk.bf16.vlgmr.msrb.gmra.mxu1 %vm280_vm0, %v3098_v43  ;;  %v3367_v43 = vsel %vm145_vm10, %v762_v1, -1e+30 }
 0x265   : > { %v959_v24 = vpop.permute.xlu2 %958  ;;  %v957_v57 = vpop.permute.xlu1 %956 }
 0x266   : > { %974 = vmatpush.bf16.msra.mxu3 %v959_v24  ;;  %v3380_v36 = vpop.f32.mrf.mxu1 }
 0x267   : > { %4151 = vst [vmem:[#allocation14_spill] sm:$0xff] %v3380_v36 }
 0x26a   : > { %975 = vmatpush.bf16.msra.mxu3 %v957_v57 }
 0x26b   : > { %v805_v59 = vpop.xlane.xlu0 %804 }
 0x26c   : > { %v832_v51 = vsub.f32 %v3286_v11, %v805_v59 }
 0x26d   : > { %v955_v16 = vpop.permute.xlu1 %954 }
 0x26e   : > { %976 = vmatpush.bf16.msra.mxu3 %v955_v16  ;;  %v852_v23 = vmul.f32 1.442695, %v832_v51  ;;  %v3396_v11 = vpop.f32.mrf.mxu1 }
 0x26f   : > { %4154 = vst [vmem:[#allocation10_spill] sm:$0xff] %v3396_v11 }
 0x271   : > { %2179 = vmatmul.msk.bf16.gmra.mxu1 %vm280_vm0, %v3123_v14  ;;  %v850_v14 = vmul.f32 1.442695, %v831_v19 }
 0x273   : > { %2478 = vpow2.f32 %v850_v14  ;;  %v809_v58 = vpop.xlane.xlu0 %808 }
 0x274   : > { %814 = vmax.xlane.f32.xlu2 %v3367_v43  ;;  %2480 = vpow2.f32 %v852_v23  ;;  %v834_v1 = vsub.f32 %v3299_v27, %v809_v58 }
 0x275   : > { %v1400_v56 = vpop.permute.xlu1 %1399  ;;  %2482 = vpow2.f32 %v854_v52 }
 0x276   : > { %2190 = vmatmul.msk.bf16.gmra.mxu0 %vm280_vm0, %v1400_v56  ;;  %v3401_v39 = vpop.f32.mrf.mxu1 }
 0x277   : > { %4155 = vst [vmem:[#allocation6_spill] sm:$0xff] %v3401_v39 }
 0x278   : > { %880 = vadd.xlane.f32.xlu1 %v3371_v5 }
 0x279   : > { %v3386_v17 = vpop.eup %2478 }
 0x27a   : > { %v3398_v2 = vpop.eup %2480 }
 0x27b   : > { %v3407_v28 = vpop.eup %2482 }
 0x27c   : > { %816 = vmax.xlane.f32.xlu2 %v3378_v12 }
 0x27e   : > { %v3410_v18 = vpop.f32.mrf.mxu1 }
 0x281   : > { %2180 = vmatmul.msk.bf16.gmra.mxu1 %vm280_vm0, %v4152_v25 }
 0x284   : > { %882 = vadd.xlane.f32.xlu0 %v3386_v17  ;;  %818 = vmax.xlane.f32.xlu2 %v3391_v21 }
 0x286   : > { %v3422_v48 = vpop.f32.mrf.mxu1  ;;  %v1034_v54 = vpop.permute.xlu0 %1033 }
 0x28c   : > { %884 = vadd.xlane.f32.xlu0 %v3398_v2 }
 0x28e   : > { %v3428_v47 = vpop.f32.mrf.mxu1 }
 0x28f   : > { %4158 = vst [vmem:[#allocation11_spill] sm:$0xff] %v3428_v47 }
 0x291   : > { %2181 = vmatmul.msk.bf16.gmra.mxu1 %vm280_vm0, %v4156_v34  ;;  %1405 = vrot.lane.b32.xlu1 %v2815_v22, %s2674_s14 }
 0x294   : > { %886 = vadd.xlane.f32.xlu0 %v3407_v28 }
 0x296   : > { %v3438_v14 = vpop.f32.mrf.mxu1 }
 0x297   : > { %4160 = vst [vmem:[#allocation8_spill] sm:$0xff] %v3438_v14 }
 0x29c   : > { %1403 = vrot.lane.b32.xlu2 %v2839_v30, %s2674_s14  ;;  %822 = vmax.xlane.f32.xlu0 %v3415_v38  ;;  %v775_v30 = vpop.f32.mrf.mxu2 }
 0x29d   : > { %v3435_v45 = vsel %vm4138_vm15, %v775_v30, -1e+30 }
 0x29e   : > { %v811_v31 = vpop.xlane.xlu2 %810 }
 0x29f   : > { %v835_v22 = vsub.f32 %v3320_v0, %v811_v31  ;;  %v856_v0 = vmul.f32 1.442695, %v834_v1 }
 0x2a0   : > { %v877_v16 = vpop.xlane.xlu1 %876 }
 0x2a1   : > { %v858_v32 = vmul.f32 1.442695, %v835_v22  ;;  %2182 = vmatmul.msk.bf16.gmra.mxu1 %vm280_vm0, %v1030_v37  ;;  %v4159_v37 = vld [vmem:[#allocation9_spill] sm:$0xff] }
 0x2a3   : > { %2484 = vpow2.f32 %v858_v32 }
 0x2a4   : > { %v777_v56 = vpop.f32.mrf.mxu2 }
 0x2a6   : > { %v953_v24 = vpop.permute.xlu2 %952 }
 0x2a7   : > { %977 = vmatpush.bf16.msra.mxu3 %v953_v24 }
 0x2a9   : > { %v3424_v57 = vpop.eup %2484 }
 0x2aa   : > { %890 = vadd.xlane.f32.xlu0 %v3424_v57 }
 0x2ae   : > { %v949_v34 = vpop.permute.xlu2 %948 }
 0x2b1   : > { %v879_v19 = vpop.xlane.xlu0 %878  ;;  %2183 = vmatmul.msk.bf16.gmra.mxu1 %vm280_vm0, %v3355_v26  ;;  %v3443_v26 = vsel %vm151_vm13, %v777_v56, -1e+30 }
 0x2b2   : > { %2486 = vrcp.f32 %v879_v19  ;;  %824 = vmax.xlane.f32.xlu0 %v3435_v45 }
 0x2b3   : > { %2488 = vrcp.f32 %v877_v16 }
 0x2b4   : > { %2490 = vpow2.f32 %v856_v0 }
 0x2b8   : > { %v2487_v27 = vpop.eup %2486  ;;  %v951_v59 = vpop.permute.xlu1 %950 }
 0x2b9   : > { %v2489_v51 = vpop.eup %2488  ;;  %v813_v63 = vpop.xlane.xlu0 %812  ;;  %978 = vmatpush.bf16.msra.mxu3 %v951_v59  ;;  %v925_v52 = vmul.f32 %v2487_v27, %v3331_v44  ;;  %v4163_v44 = vld [vmem:[#allocation7_spill] sm:$0xff] }
 0x2ba   : > { %v3445_v25 = vpop.eup %2490  ;;  %v836_v20 = vsub.f32 %v3340_v8, %v813_v63  ;;  %826 = vmax.xlane.f32.xlu0 %v3443_v26  ;;  %v924_v31 = vmul.f32 %v2489_v51, %v3324_v35  ;;  %v3454_v8 = vpop.f32.mrf.mxu1  ;;  %vm4164_vm15 = vcmp.ge.s32.totalorder %v4163_v44, %v2908_v60 }
 0x2bb   : > { %888 = vadd.xlane.f32.xlu1 %v3445_v25  ;;  %4162 = vst [vmem:[#allocation9_spill] sm:$0xff] %v3454_v8  ;;  %v3461_v24 = vsel %vm4164_vm15, %v770_v53, -1e+30 }
 0x2bc   : > { %v860_v3 = vmul.f32 1.442695, %v836_v20  ;;  %v940_v22 = vpack.c.bf16 %v925_v52, %v924_v31 }
 0x2bd   : > { %979 = vmatpush.bf16.msra.mxu3 %v949_v34 }
 0x2be   : > { %2492 = vpow2.f32 %v860_v3 }
 0x2c0   : > { %980 = vmatmul.bf16.vlgmr.msra.gmra.mxu3 %v940_v22  ;;  %v1402_v58 = vpop.permute.xlu1 %1401 }
 0x2c1   : > { %2184 = vmatmul.msk.bf16.gmra.mxu1 %vm280_vm0, %v1034_v54  ;;  %2191 = vmatmul.msk.bf16.gmra.mxu0 %vm280_vm0, %v1402_v58 }
 0x2c2   : > { %v3465_v35 = vpop.f32.mrf.mxu1 }
 0x2c3   : > { %4165 = vst [vmem:[#allocation12_spill] sm:$0xff] %v3465_v35 }
 0x2c4   : > { %v3456_v32 = vpop.eup %2492 }
 0x2c5   : > { %820 = vmax.xlane.f32.xlu2 %v3461_v24  ;;  %892 = vadd.xlane.f32.xlu0 %v3456_v32 }
 0x2ca   : > { %v3468_v54 = vpop.f32.mrf.mxu1 }
 0x2cb   : > { %4166 = vst [vmem:[#allocation7_spill] sm:$0xff] %v3468_v54 }
 0x2cc   : > { %v1036_v30 = vpop.permute.xlu0 %1035 }
 0x2d1   : > { %2185 = vmatmul.msk.bf16.gmra.mxu1 %vm280_vm0, %v1036_v30 }
 0x2d2   : > { %v3470_v1 = vpop.f32.mrf.mxu1 }
 0x2d3   : > { %4167 = vst [vmem:[#allocation15_spill] sm:$0xff] %v3470_v1 }
 0x2da   : > { %v3473_v19 = vpop.f32.mrf.mxu1 }
 0x2db   : > { %4168 = vst [vmem:[#allocation16_spill] sm:$0xff] %v3473_v19 }
 0x2e2   : > { %v3479_v20 = vpop.f32.mrf.mxu1 }
 0x2e3   : > { %4169 = vst [vmem:[#allocation17_spill] sm:$0xff] %v3479_v20 }
 0x2e7   : > { %v815_v0 = vpop.xlane.xlu2 %814 }
 0x2e8   : > { %v837_v16 = vsub.f32 %v3367_v43, %v815_v0 }
 0x2ea   : > { %v862_v53 = vmul.f32 1.442695, %v837_v16  ;;  %v3485_v58 = vpop.f32.mrf.mxu1 }
 0x2eb   : > { %v881_v63 = vpop.xlane.xlu1 %880  ;;  %4170 = vst [vmem:[#allocation18_spill] sm:$0xff] %v3485_v58 }
 0x2ec   : > { %2494 = vpow2.f32 %v862_v53 }
 0x2ef   : > { %v817_v56 = vpop.xlane.xlu2 %816 }
 0x2f0   : > { %v838_v27 = vsub.f32 %v3378_v12, %v817_v56  ;;  %v1480_v56 = vpop.f32.mrf.mxu0 }
 0x2f2   : > { %v3476_v59 = vpop.eup %2494  ;;  %v864_v51 = vmul.f32 1.442695, %v838_v27 }
 0x2f3   : > { %894 = vadd.xlane.f32.xlu2 %v3476_v59 }
 0x2f4   : > { %2496 = vpow2.f32 %v864_v51 }
 0x2f5   : > { %2498 = vrcp.f32 %v881_v63  ;;  %v3495_v63 = vsel %vm136_vm1, %v1480_v56, -1e+30 }
 0x2f7   : > { %v883_v52 = vpop.xlane.xlu0 %882  ;;  %v819_v34 = vpop.xlane.xlu2 %818 }
 0x2f8   : > { %2500 = vrcp.f32 %v883_v52  ;;  %v839_v43 = vsub.f32 %v3391_v21, %v819_v34 }
 0x2fa   : > { %v3482_v3 = vpop.eup %2496  ;;  %v866_v31 = vmul.f32 1.442695, %v839_v43 }
 0x2fb   : > { %896 = vadd.xlane.f32.xlu2 %v3482_v3  ;;  %v2499_v12 = vpop.eup %2498 }
 0x2fc   : > { %2502 = vpow2.f32 %v866_v31  ;;  %v926_v16 = vmul.f32 %v2499_v12, %v3371_v5 }
 0x2fe   : > { %v2501_v22 = vpop.eup %2500 }
 0x2ff   : > { %v885_v30 = vpop.xlane.xlu0 %884  ;;  %v1404_v0 = vpop.permute.xlu2 %1403  ;;  %v927_v53 = vmul.f32 %v2501_v22, %v3386_v17 }
 0x300   : > { %2192 = vmatmul.msk.bf16.gmra.mxu0 %vm280_vm0, %v1404_v0  ;;  %2504 = vrcp.f32 %v885_v30  ;;  %v3500_v17 = vpop.f32.mrf.mxu1 }
 0x301   : > { %v941_v21 = vpack.c.bf16 %v927_v53, %v926_v16  ;;  %4172 = vst [vmem:[#allocation2_spill] sm:$0xff] %v3500_v17 }
 0x302   : > { %v3490_v27 = vpop.eup %2502 }
 0x303   : > { %1536 = vmax.xlane.f32.xlu2 %v3495_v63  ;;  %898 = vadd.xlane.f32.xlu0 %v3490_v27  ;;  %v1406_v52 = vpop.permute.xlu1 %1405 }
 0x304   : > { %985 = vmatmul.bf16.gmra.mxu3 %v941_v21  ;;  %2193 = vmatmul.msk.bf16.vlgmr.msra.gmra.mxu1 %vm280_vm0, %v1406_v52 }
 0x306   : > { %v2505_v34 = vpop.eup %2504 }
 0x307   : > { %v887_v5 = vpop.xlane.xlu0 %886  ;;  %v928_v12 = vmul.f32 %v2505_v34, %v3398_v2 }
 0x308   : > { %2506 = vrcp.f32 %v887_v5  ;;  %v1110_v56 = vpop.f32.mrf.mxu1 }
 0x30e   : > { %v2507_v43 = vpop.eup %2506 }
 0x30f   : > { %v823_v31 = vpop.xlane.xlu0 %822  ;;  %v929_v22 = vmul.f32 %v2507_v43, %v3407_v28 }
 0x310   : > { %v841_v0 = vsub.f32 %v3415_v38, %v823_v31  ;;  %v1112_v21 = vpop.f32.mrf.mxu1 }
 0x311   : > { %v942_v16 = vpack.c.bf16 %v929_v22, %v928_v12  ;;  %v3511_v58 = vsel %vm137_vm2, %v1112_v21, -1e+30 }
 0x312   : > { %v870_v53 = vmul.f32 1.442695, %v841_v0 }
 0x314   : > { %2508 = vpow2.f32 %v870_v53  ;;  %990 = vmatmul.bf16.gmra.mxu3 %v942_v16 }
 0x318   : > { %v1115_v38 = vpop.f32.mrf.mxu1 }
 0x319   : > { %v3518_v31 = vsel %vm138_vm3, %v1115_v38, -1e+30 }
 0x31a   : > { %v3505_v30 = vpop.eup %2508 }
 0x31b   : > { %902 = vadd.xlane.f32.xlu1 %v3505_v30 }
 0x31d   : > { %v891_v5 = vpop.xlane.xlu0 %890 }
 0x320   : > { %v1117_v16 = vpop.f32.mrf.mxu1 }
 0x321   : > { %v3529_v38 = vsel %vm139_vm4, %v1117_v16, -1e+30  ;;  %v1482_v16 = vpop.f32.mrf.mxu0 }
 0x323   : > { %1168 = vmax.xlane.f32.xlu1 %v3511_v58 }
 0x325   : > { %v825_v2 = vpop.xlane.xlu0 %824 }
 0x326   : > { %v842_v28 = vsub.f32 %v3435_v45, %v825_v2 }
 0x328   : > { %v872_v34 = vmul.f32 1.442695, %v842_v28  ;;  %v1120_v17 = vpop.f32.mrf.mxu1 }
 0x32a   : > { %2510 = vpow2.f32 %v872_v34 }
 0x32b   : > { %1170 = vmax.xlane.f32.xlu1 %v3518_v31  ;;  %2512 = vrcp.f32 %v891_v5 }
 0x32e   : > { %v889_v12 = vpop.xlane.xlu1 %888 }
 0x32f   : > { %2514 = vrcp.f32 %v889_v12 }
 0x330   : > { %v3521_v22 = vpop.eup %2510  ;;  %v1122_v52 = vpop.f32.mrf.mxu1 }
 0x331   : > { %904 = vadd.xlane.f32.xlu2 %v3521_v22  ;;  %v2513_v0 = vpop.eup %2512  ;;  %v3595_v28 = vsel %vm141_vm6, %v1122_v52, -1e+30 }
 0x332   : > { %v931_v21 = vmul.f32 %v2513_v0, %v3424_v57  ;;  %v3547_v0 = vsel %vm136_vm1, %v1110_v56, -1e+30  ;;  %vm4176_vm1 = vmmov %vm4164_vm15 }
 0x335   : > { %v2515_v45 = vpop.eup %2514 }
 0x336   : > { %v930_v53 = vmul.f32 %v2515_v45, %v3445_v25  ;;  %v3536_v25 = vsel %vm140_vm5, %v1120_v17, -1e+30 }
 0x338   : > { %v821_v2 = vpop.xlane.xlu2 %820  ;;  %v943_v5 = vpack.c.bf16 %v931_v21, %v930_v53  ;;  %v3556_v53 = vsel %vm137_vm2, %v1482_v16, -1e+30  ;;  %vm4177_vm2 = vmmov %vm4176_vm1 }
 0x339   : > { %v840_v34 = vsub.f32 %v3461_v24, %v821_v2  ;;  %1172 = vmax.xlane.f32.xlu2 %v3529_v38  ;;  %v827_v24 = vpop.xlane.xlu0 %826 }
 0x33a   : > { %995 = vmatmul.bf16.gmra.mxu3 %v943_v5  ;;  %v843_v17 = vsub.f32 %v3443_v26, %v827_v24 }
 0x33b   : > { %v868_v12 = vmul.f32 1.442695, %v840_v34 }
 0x33c   : > { %v874_v45 = vmul.f32 1.442695, %v843_v17  ;;  %v1125_v17 = vpop.f32.mrf.mxu1 }
 0x33d   : > { %2516 = vpow2.f32 %v868_v12  ;;  %v1485_v12 = vpop.f32.mrf.mxu0 }
 0x33e   : > { %2518 = vpow2.f32 %v874_v45  ;;  %v3573_v45 = vsel %vm142_vm7, %v1125_v17, -1e+30 }
 0x341   : > { %1174 = vmax.xlane.f32.xlu2 %v3536_v25  ;;  %v893_v26 = vpop.xlane.xlu0 %892 }
 0x342   : > { %2520 = vrcp.f32 %v893_v26 }
 0x343   : > { %v3539_v57 = vpop.eup %2516 }
 0x344   : > { %900 = vadd.xlane.f32.xlu0 %v3539_v57  ;;  %1332 = vrot.lane.b32.xlu1 %v2880_v42, %s2673_s13  ;;  %v3561_v51 = vpop.eup %2518  ;;  %v1127_v17 = vpop.f32.mrf.mxu1 }
 0x345   : > { %v3603_v43 = vsel %vm143_vm8, %v1127_v17, -1e+30 }
 0x348   : > { %v2521_v21 = vpop.eup %2520 }
 0x349   : > { %v932_v5 = vmul.f32 %v2521_v21, %v3456_v32  ;;  %v1487_v32 = vpop.f32.mrf.mxu0 }
 0x34a   : > { %v3579_v21 = vsel %vm139_vm4, %v1487_v32, -1e+30 }
 0x34c   : > { %1166 = vmax.xlane.f32.xlu0 %v3547_v0  ;;  %1326 = vrot.lane.b32.xlu1 %v2901_v55, %s2673_s13  ;;  %v1130_v54 = vpop.f32.mrf.mxu1 }
 0x354   : > { %1538 = vmax.xlane.f32.xlu0 %v3556_v53 }
 0x359   : > { %1330 = vrot.lane.b32.xlu2 %v2886_v46, %s2673_s13 }
 0x35c   : > { %906 = vadd.xlane.f32.xlu0 %v3561_v51 }
 0x361   : > { %1324 = vrot.lane.b32.xlu2 %v2910_v61, %s2673_s13 }
 0x366   : > { %v895_v56 = vpop.xlane.xlu2 %894 }
 0x367   : > { %2522 = vrcp.f32 %v895_v56 }
 0x36d   : > { %v2523_v2 = vpop.eup %2522 }
 0x36e   : > { %v933_v34 = vmul.f32 %v2523_v2, %v3476_v59  ;;  %v897_v16 = vpop.xlane.xlu2 %896 }
 0x36f   : > { %2524 = vrcp.f32 %v897_v16 }
 0x370   : > { %1328 = vrot.lane.b32.xlu0 %v2891_v49, %s2673_s13  ;;  %v944_v24 = vpack.c.bf16 %v933_v34, %v932_v5 }
 0x372   : > { %1000 = vmatmul.bf16.gmra.mxu3 %v944_v24  ;;  %v3587_v24 = vsel %vm138_vm3, %v1485_v12, -1e+30  ;;  %vm4178_vm3 = vcmp.ge.s32.totalorder %v4159_v37, %v2908_v60 }
 0x373   : > { %vm4179_vm4 = vmmov %vm4178_vm3 }
 0x375   : > { %v2525_v59 = vpop.eup %2524 }
 0x376   : > { %1178 = vmax.xlane.f32.xlu1 %v3573_v45  ;;  %v899_v26 = vpop.xlane.xlu0 %898  ;;  %v934_v2 = vmul.f32 %v2525_v59, %v3482_v3 }
 0x377   : > { %2526 = vrcp.f32 %v899_v26 }
 0x37d   : > { %v2527_v56 = vpop.eup %2526 }
 0x37e   : > { %1542 = vmax.xlane.f32.xlu1 %v3579_v21  ;;  %v935_v5 = vmul.f32 %v2527_v56, %v3490_v27  ;;  %v3598_v27 = vpop.xlane.xlu2 %1536 }
 0x380   : > { %v945_v34 = vpack.c.bf16 %v935_v5, %v934_v2 }
 0x382   : > { %1005 = vmatmul.bf16.gmra.mxu3 %v945_v34 }
 0x38a   : > { %1540 = vmax.xlane.f32.xlu2 %v3587_v24 }
 0x38e   : > { %v903_v3 = vpop.xlane.xlu1 %902 }
 0x38f   : > { %2528 = vrcp.f32 %v903_v3 }
 0x395   : > { %v2529_v34 = vpop.eup %2528 }
 0x396   : > { %v1169_v12 = vpop.xlane.xlu1 %1168 }
 0x397   : > { %1318 = vrot.lane.b32.xlu1 %v2941_v9, %s2673_s13  ;;  %v1199_v32 = vsub.f32 %v3511_v58, %v1169_v12  ;;  %v937_v12 = vmul.f32 %v2529_v34, %v3505_v30  ;;  %v3639_v34 = vpop.f32.mrf.mxu3 }
 0x399   : > { %v1216_v56 = vmul.f32 1.442695, %v1199_v32 }
 0x39a   : > { %1176 = vmax.xlane.f32.xlu0 %v3595_v28 }
 0x39e   : > { %v3608_v26 = vpop.xlane.xlu1 %1170 }
 0x3a2   : > { %1320 = vrot.lane.b32.xlu2 %v2931_v13, %s2673_s13  ;;  %1180 = vmax.xlane.f32.xlu0 %v3603_v43 }
 0x3a4   : > { %v905_v16 = vpop.xlane.xlu2 %904 }
 0x3ac   : > { %v1173_v52 = vpop.xlane.xlu2 %1172 }
 0x3ad   : > { %v1201_v20 = vsub.f32 %v3529_v38, %v1173_v52 }
 0x3b4   : > { %v3611_v59 = vpop.xlane.xlu2 %1174 }
 0x3b5   : > { %v1202_v41 = vsub.f32 %v3536_v25, %v3611_v59 }
 0x3b6   : > { %1322 = vrot.lane.b32.xlu0 %v2917_v4, %s2673_s13  ;;  %v1333_v2 = vpop.permute.xlu1 %1332 }
 0x3b7   : > { %v901_v5 = vpop.xlane.xlu0 %900  ;;  %1342 = vmatpush.bf16.msrb.mxu3 %v1333_v2  ;;  %v1490_v2 = vpop.f32.mrf.mxu0 }
 0x3b8   : > { %2530 = vrcp.f32 %v901_v5  ;;  %v1132_v5 = vpop.f32.mrf.mxu1 }
 0x3b9   : > { %2532 = vpow2.f32 %v1216_v56  ;;  %v1220_v56 = vmul.f32 1.442695, %v1201_v20 }
 0x3bb   : > { %2534 = vpow2.f32 %v1220_v56  ;;  %v1200_v56 = vsub.f32 %v3518_v31, %v3608_v26 }
 0x3bc   : > { %v1331_v17 = vpop.permute.xlu2 %1330  ;;  %2536 = vrcp.f32 %v905_v16 }
 0x3bd   : > { %1343 = vmatpush.bf16.msrb.mxu3 %v1331_v17  ;;  %v3626_v17 = vsel %vm140_vm5, %v1490_v2, -1e+30  ;;  %v3645_v2 = vpop.f32.mrf.mxu3  ;;  %vm1969_vm5 = vcmask 523264  }
 0x3be   : > { %v2531_v1 = vpop.eup %2530 }
 0x3bf   : > { %v1167_v19 = vpop.xlane.xlu0 %1166  ;;  %v936_v58 = vmul.f32 %v2531_v1, %v3539_v57  ;;  %v3617_v3 = vpop.eup %2532  ;;  %v3632_v1 = vsel %vm145_vm10, %v1132_v5, -1e+30 }
 0x3c0   : > { %v1198_v38 = vsub.f32 %v3547_v0, %v1167_v19  ;;  %v1327_v0 = vpop.permute.xlu1 %1326  ;;  %v1135_v26 = vpop.f32.mrf.mxu1 }
 0x3c1   : > { %1248 = vadd.xlane.f32.xlu1 %v3617_v3  ;;  %v946_v32 = vpack.c.bf16 %v937_v12, %v936_v58  ;;  %v3635_v30 = vpop.eup %2534 }
 0x3c2   : > { %v2537_v7 = vpop.eup %2536  ;;  %v1214_v57 = vmul.f32 1.442695, %v1198_v38 }
 0x3c3   : > { %1010 = vmatmul.bf16.gmra.mxu3 %v946_v32  ;;  %v938_v58 = vmul.f32 %v2537_v7, %v3521_v22  ;;  %v3653_v22 = vsel %vm144_vm9, %v1130_v54, -1e+30 }
 0x3c4   : > { %v1325_v5 = vpop.permute.xlu2 %1324 }
 0x3c7   : > { %v3621_v8 = vpop.xlane.xlu0 %1538 }
 0x3c9   : > { %1544 = vmax.xlane.f32.xlu1 %v3626_v17 }
 0x3cb   : > { %1184 = vmax.xlane.f32.xlu2 %v3632_v1 }
 0x3cf   : > { %v907_v20 = vpop.xlane.xlu0 %906 }
 0x3d0   : > { %2538 = vrcp.f32 %v907_v20  ;;  %v1218_v20 = vmul.f32 1.442695, %v1200_v56 }
 0x3d1   : > { %1252 = vadd.xlane.f32.xlu1 %v3635_v30  ;;  %2540 = vpow2.f32 %v1214_v57 }
 0x3d2   : > { %2542 = vpow2.f32 %v1218_v20 }
 0x3d6   : > { %v2539_v52 = vpop.eup %2538 }
 0x3d7   : > { %v939_v12 = vmul.f32 %v2539_v52, %v3561_v51  ;;  %v3643_v16 = vpop.eup %2540  ;;  %v3655_v51 = vpop.f32.mrf.mxu3  ;;  %v1222_v52 = vmul.f32 1.442695, %v1202_v41 }
 0x3d8   : > { %v3672_v31 = vpop.eup %2542 }
 0x3d9   : > { %v947_v32 = vpack.c.bf16 %v939_v12, %v938_v58  ;;  %v1137_v58 = vpop.f32.mrf.mxu1  ;;  %2544 = vpow2.f32 %v1222_v52 }
 0x3da   : > { %v3688_v12 = vsel %vm147_vm12, %v1137_v58, -1e+30 }
 0x3db   : > { %1015 = vmatmul.bf16.gmra.mxu3 %v947_v32 }
 0x3df   : > { %v3670_v38 = vpop.f32.mrf.mxu3 }
 0x3e0   : > { %1246 = vadd.xlane.f32.xlu0 %v3643_v16 }
 0x3e2   : > { %v1329_v19 = vpop.permute.xlu0 %1328 }
 0x3e3   : > { %1702 = vrot.lane.b32.xlu2 %v2880_v42, %s2674_s14  ;;  %1344 = vmatpush.bf16.msrb.mxu3 %v1329_v19  ;;  %v1492_v42 = vpop.f32.mrf.mxu0 }
 0x3e4   : > { %v3667_v54 = vsel %vm141_vm6, %v1492_v42, -1e+30  ;;  %vm1986_vm6 = vcmask 785408  }
 0x3e7   : > { %1345 = vmatpush.bf16.msrb.mxu3 %v1327_v0  ;;  %v3701_v0 = vpop.eup %2544 }
 0x3e8   : > { %1182 = vmax.xlane.f32.xlu0 %v3653_v22 }
 0x3e9   : > { %v1179_v50 = vpop.xlane.xlu1 %1178 }
 0x3ea   : > { %1698 = vrot.lane.b32.xlu1 %v2891_v49, %s2674_s14  ;;  %v3675_v49 = vpop.f32.mrf.mxu3 }
 0x3eb   : > { %1696 = vrot.lane.b32.xlu2 %v2901_v55, %s2674_s14  ;;  %1346 = vmatpush.bf16.msrb.mxu3 %v1325_v5  ;;  %v1495_v57 = vpop.f32.mrf.mxu0 }
 0x3ec   : > { %v3693_v32 = vsel %vm142_vm7, %v1495_v57, -1e+30 }
 0x3f0   : > { %1546 = vmax.xlane.f32.xlu0 %v3667_v54 }
 0x3f2   : > { %v3677_v55 = vpop.f32.mrf.mxu3 }
 0x3f8   : > { %1250 = vadd.xlane.f32.xlu0 %v3672_v31 }
 0x3fa   : > { %v3683_v7 = vpop.f32.mrf.mxu3 }
 0x3fd   : > { %v1541_v20 = vpop.xlane.xlu2 %1540 }
 0x402   : > { %v3699_v59 = vpop.f32.mrf.mxu3 }
 0x405   : > { %v1321_v57 = vpop.permute.xlu2 %1320 }
 0x40a   : > { %v3704_v56 = vpop.f32.mrf.mxu3 }
 0x40c   : > { %1700 = vrot.lane.b32.xlu0 %v2886_v46, %s2674_s14  ;;  %v1568_v46 = vsub.f32 %v3495_v63, %v3598_v27  ;;  %v3711_v63 = vpop.xlane.xlu1 %1542 }
 0x40d   : > { %v1177_v25 = vpop.xlane.xlu0 %1176 }
 0x40e   : > { %v1584_v19 = vmul.f32 1.442695, %v1568_v46  ;;  %v3724_v46 = vsel %vm146_vm11, %v1135_v26, -1e+30  ;;  %v1569_v26 = vsub.f32 %v3556_v53, %v3621_v8  ;;  %v1140_v53 = vpop.f32.mrf.mxu1  ;;  %v1570_v8 = vsub.f32 %v3587_v24, %v1541_v20 }
 0x40f   : > { %v3759_v39 = vsel %vm4176_vm1, %v1140_v53, -1e+30 }
 0x410   : > { %2546 = vpow2.f32 %v1584_v19  ;;  %v1203_v19 = vsub.f32 %v3595_v28, %v1177_v25  ;;  %v1586_v28 = vmul.f32 1.442695, %v1569_v26  ;;  %v1588_v53 = vmul.f32 1.442695, %v1570_v8 }
 0x412   : > { %v3713_v41 = vpop.f32.mrf.mxu3  ;;  %v1224_v35 = vmul.f32 1.442695, %v1203_v19 }
 0x414   : > { %1188 = vmax.xlane.f32.xlu2 %v3688_v12  ;;  %1548 = vmax.xlane.f32.xlu1 %v3693_v32  ;;  %v1319_v52 = vpop.permute.xlu1 %1318  ;;  %2548 = vpow2.f32 %v1224_v35 }
 0x415   : > { %v3706_v5 = vpop.xlane.xlu0 %1180  ;;  %2550 = vpow2.f32 %v1586_v28 }
 0x416   : > { %v3708_v42 = vpop.eup %2546  ;;  %v3766_v36 = vpop.f32.mrf.mxu1  ;;  %v1205_v15 = vsub.f32 %v3603_v43, %v3706_v5 }
 0x41a   : > { %v3717_v58 = vpop.f32.mrf.mxu3  ;;  %v3742_v25 = vpop.eup %2548 }
 0x41c   : > { %1254 = vadd.xlane.f32.xlu1 %v3701_v0 }
 0x41e   : > { %v3784_v24 = vpop.f32.mrf.mxu1 }
 0x424   : > { %1616 = vadd.xlane.f32.xlu1 %v3708_v42 }
 0x426   : > { %v1147_v8 = vpop.f32.mrf.mxu1 }
 0x428   : > { %v1323_v27 = vpop.permute.xlu0 %1322 }
 0x429   : > { %1347 = vmatpush.bf16.msrb.mxu3 %v1323_v27  ;;  %v1497_v27 = vpop.f32.mrf.mxu0 }
 0x42c   : > { %1694 = vrot.lane.b32.xlu2 %v2910_v61, %s2674_s14  ;;  %v3731_v61 = vsel %vm143_vm8, %v1497_v27, -1e+30 }
 0x42d   : > { %1348 = vmatpush.bf16.msrb.mxu3 %v1321_v57 }
 0x431   : > { %1349 = vmatpush.bf16.msrb.mxu3 %v1319_v52  ;;  %v1500_v47 = vpop.f32.mrf.mxu0 }
 0x434   : > { %1688 = vrot.lane.b32.xlu2 %v2941_v9, %s2674_s14  ;;  %v3735_v9 = vpop.f32.mrf.mxu3  ;;  %v1249_v27 = vpop.xlane.xlu1 %1248 }
 0x435   : > { %2552 = vrcp.f32 %v1249_v27 }
 0x436   : > { %1186 = vmax.xlane.f32.xlu0 %v3724_v46 }
 0x43c   : > { %v3761_v6 = vpop.xlane.xlu1 %1544 }
 0x43d   : > { %1692 = vrot.lane.b32.xlu1 %v2917_v4, %s2674_s14  ;;  %v3747_v4 = vpop.eup %2550  ;;  %v1572_v23 = vsub.f32 %v3626_v17, %v3761_v6 }
 0x43e   : > { %v3737_v57 = vpop.xlane.xlu2 %1184  ;;  %1550 = vmax.xlane.f32.xlu0 %v3731_v61  ;;  %v2553_v26 = vpop.eup %2552 }
 0x43f   : > { %v1295_v11 = vmul.f32 %v2553_v26, %v3617_v3  ;;  %v1502_v3 = vpop.f32.mrf.mxu0 }
 0x440   : > { %v3773_v26 = vsel %vm145_vm10, %v1502_v3, -1e+30 }
 0x446   : > { %v3744_v52 = vpop.f32.mrf.mxu3  ;;  %1256 = vadd.xlane.f32.xlu0 %v3742_v25  ;;  %v1703_v62 = vpop.permute.xlu2 %1702 }
 0x447   : > { %1712 = vmatpush.bf16.msrb.mxu2 %v1703_v62  ;;  %2268 = vmatpush.bf16.msra.mxu3 %v1703_v62  ;;  %v1505_v3 = vpop.f32.mrf.mxu0 }
 0x44e   : > { %v3749_v19 = vpop.f32.mrf.mxu3  ;;  %1618 = vadd.xlane.f32.xlu0 %v3747_v4 }
 0x453   : > { %v1247_v35 = vpop.xlane.xlu0 %1246 }
 0x454   : > { %2554 = vrcp.f32 %v1247_v35  ;;  %v1204_v35 = vsub.f32 %v3573_v45, %v1179_v50  ;;  %v1571_v45 = vsub.f32 %v3579_v21, %v3711_v63 }
 0x456   : > { %v1590_v29 = vmul.f32 1.442695, %v1571_v45  ;;  %v3801_v45 = vsel %vm151_vm13, %v1147_v8, -1e+30 }
 0x45a   : > { %v2555_v14 = vpop.eup %2554 }
 0x45b   : > { %v1183_v28 = vpop.xlane.xlu0 %1182  ;;  %v1294_v62 = vmul.f32 %v2555_v14, %v3643_v16  ;;  %v1226_v14 = vmul.f32 1.442695, %v1204_v35 }
 0x45c   : > { %v1206_v21 = vsub.f32 %v3653_v22, %v1183_v28  ;;  %v1207_v22 = vsub.f32 %v3632_v1, %v3737_v57  ;;  %v3810_v28 = vsel %vm146_vm11, %v1505_v3, -1e+30  ;;  %v1507_v1 = vpop.f32.mrf.mxu0  ;;  %v1697_v57 = vpop.permute.xlu2 %1696 }
 0x45d   : > { %1190 = vmax.xlane.f32.xlu2 %v3759_v39  ;;  %v1310_v27 = vpack.c.bf16 %v1295_v11, %v1294_v62  ;;  %v3779_v11 = vsel %vm144_vm9, %v1500_v47, -1e+30  ;;  %2556 = vpow2.f32 %v1226_v14 }
 0x45e   : > { %2558 = vpow2.f32 %v1588_v53  ;;  %v1230_v14 = vmul.f32 1.442695, %v1206_v21  ;;  %v1515_v21 = vpop.f32.mrf.mxu1 }
 0x45f   : > { %1350 = vmatmul.bf16.vlgmr.msrb.gmra.mxu3 %v1310_v27 }
 0x462   : > { %1690 = vrot.lane.b32.xlu0 %v2931_v13, %s2674_s14  ;;  %v1253_v13 = vpop.xlane.xlu1 %1252 }
 0x463   : > { %v1547_v16 = vpop.xlane.xlu0 %1546  ;;  %2560 = vrcp.f32 %v1253_v13  ;;  %v3786_v20 = vpop.eup %2556 }
 0x464   : > { %v3789_v10 = vpop.eup %2558 }
 0x465   : > { %1554 = vmax.xlane.f32.xlu2 %v3773_v26 }
 0x466   : > { %v1517_v44 = vpop.f32.mrf.mxu1 }
 0x467   : > { %1552 = vmax.xlane.f32.xlu1 %v3779_v11 }
 0x469   : > { %v2561_v47 = vpop.eup %2560 }
 0x46a   : > { %v1297_v27 = vmul.f32 %v2561_v47, %v3635_v30  ;;  %v1573_v30 = vsub.f32 %v3667_v54, %v1547_v16  ;;  %v1699_v54 = vpop.permute.xlu1 %1698 }
 0x46b   : > { %v1251_v50 = vpop.xlane.xlu0 %1250 }
 0x46c   : > { %2562 = vrcp.f32 %v1251_v50  ;;  %v1594_v13 = vmul.f32 1.442695, %v1573_v30 }
 0x46d   : > { %1258 = vadd.xlane.f32.xlu2 %v3786_v20  ;;  %2564 = vpow2.f32 %v1590_v29 }
 0x46e   : > { %2566 = vpow2.f32 %v1230_v14  ;;  %v3829_v14 = vsel %vm149_vm14, %v3766_v36, -1e+30 }
 0x46f   : > { %1620 = vadd.xlane.f32.xlu1 %v3789_v10 }
 0x472   : > { %v2563_v63 = vpop.eup %2562 }
 0x473   : > { %v1296_v62 = vmul.f32 %v2563_v63, %v3672_v31  ;;  %v3795_v35 = vpop.eup %2564  ;;  %v1232_v31 = vmul.f32 1.442695, %v1207_v22 }
 0x474   : > { %v3813_v29 = vpop.eup %2566 }
 0x475   : > { %1622 = vadd.xlane.f32.xlu2 %v3795_v35  ;;  %v1311_v53 = vpack.c.bf16 %v1297_v27, %v1296_v62  ;;  %2568 = vpow2.f32 %v1232_v31  ;;  %v1510_v62 = vpop.f32.mrf.mxu0  ;;  %v1228_v27 = vmul.f32 1.442695, %v1205_v15  ;;  %v3850_v31 = vsel %vm151_vm13, %v1517_v44, -1e+30 }
 0x476   : > { %2570 = vpow2.f32 %v1594_v13  ;;  %v3834_v5 = vsel %vm4177_vm2, %v1510_v62, -1e+30  ;;  %v3861_v13 = vsel %vm4179_vm4, %v3784_v24, -1e+30  ;;  %v3872_v15 = vsel %vm147_vm12, %v1507_v1, -1e+30 }
 0x477   : > { %1196 = vmax.xlane.f32.xlu1 %v3801_v45  ;;  %1355 = vmatmul.bf16.gmra.mxu3 %v1311_v53  ;;  %2572 = vpow2.f32 %v1228_v27 }
 0x47b   : > { %v3816_v16 = vpop.eup %2568 }
 0x47c   : > { %v3821_v47 = vpop.eup %2570 }
 0x47d   : > { %1556 = vmax.xlane.f32.xlu2 %v3810_v28  ;;  %v3845_v30 = vpop.eup %2572 }
 0x47e   : > { %v1701_v50 = vpop.permute.xlu0 %1700 }
 0x47f   : > { %1262 = vadd.xlane.f32.xlu1 %v3813_v29  ;;  %1713 = vmatpush.bf16.msrb.mxu2 %v1701_v50 }
 0x480   : > { %2269 = vmatpush.bf16.msra.mxu3 %v1701_v50 }
 0x483   : > { %1714 = vmatpush.bf16.msrb.mxu2 %v1699_v54 }
 0x484   : > { %2270 = vmatpush.bf16.msra.mxu3 %v1699_v54  ;;  %v1592_v54 = vmul.f32 1.442695, %v1572_v23 }
 0x485   : > { %1264 = vadd.xlane.f32.xlu2 %v3816_v16 }
 0x487   : > { %v1189_v63 = vpop.xlane.xlu2 %1188  ;;  %1626 = vadd.xlane.f32.xlu1 %v3821_v47  ;;  %1715 = vmatpush.bf16.msrb.mxu2 %v1697_v57  ;;  %v1549_v43 = vpop.xlane.xlu1 %1548 }
 0x488   : > { %v1209_v8 = vsub.f32 %v3688_v12, %v1189_v63  ;;  %2271 = vmatpush.bf16.msra.mxu3 %v1697_v57  ;;  %v3841_v12 = vsel %vm4178_vm3, %v1515_v21, -1e+30  ;;  %v1574_v36 = vsub.f32 %v3693_v32, %v1549_v43  ;;  %v1512_v63 = vpop.f32.mrf.mxu0 }
 0x489   : > { %v3882_v40 = vsel %vm149_vm14, %v1512_v63, -1e+30 }
 0x48a   : > { %v1236_v3 = vmul.f32 1.442695, %v1209_v8  ;;  %v1596_v22 = vmul.f32 1.442695, %v1574_v36 }
 0x48c   : > { %1192 = vmax.xlane.f32.xlu0 %v3829_v14  ;;  %2574 = vpow2.f32 %v1236_v3 }
 0x48d   : > { %1560 = vmax.xlane.f32.xlu2 %v3834_v5  ;;  %2576 = vpow2.f32 %v1596_v22 }
 0x48e   : > { %2578 = vpow2.f32 %v1592_v54 }
 0x48f   : > { %1564 = vmax.xlane.f32.xlu1 %v3841_v12  ;;  %v1695_v53 = vpop.permute.xlu2 %1694  ;;  %v1255_v57 = vpop.xlane.xlu1 %1254 }
 0x490   : > { %1716 = vmatpush.bf16.msrb.mxu2 %v1695_v53  ;;  %2272 = vmatpush.bf16.msra.mxu3 %v1695_v53 }
 0x492   : > { %v3854_v32 = vpop.eup %2574 }
 0x493   : > { %v3863_v50 = vpop.eup %2576 }
 0x494   : > { %1260 = vadd.xlane.f32.xlu0 %v3845_v30  ;;  %v3875_v21 = vpop.eup %2578 }
 0x495   : > { %1566 = vmax.xlane.f32.xlu2 %v3850_v31 }
 0x497   : > { %1268 = vadd.xlane.f32.xlu1 %v3854_v32  ;;  %v1617_v37 = vpop.xlane.xlu1 %1616 }
 0x49c   : > { %1194 = vmax.xlane.f32.xlu0 %v3861_v13 }
 0x49d   : > { %1628 = vadd.xlane.f32.xlu2 %v3863_v50 }
 0x4a4   : > { %1558 = vmax.xlane.f32.xlu0 %v3872_v15 }
 0x4a9   : > { %v1187_v24 = vpop.xlane.xlu0 %1186 }
 0x4aa   : > { %v1208_v6 = vsub.f32 %v3724_v46, %v1187_v24 }
 0x4ac   : > { %1624 = vadd.xlane.f32.xlu0 %v3875_v21  ;;  %v1234_v8 = vmul.f32 1.442695, %v1208_v6 }
 0x4ae   : > { %2580 = vpow2.f32 %v1234_v8 }
 0x4af   : > { %v1693_v17 = vpop.permute.xlu1 %1692  ;;  %2582 = vrcp.f32 %v1255_v57 }
 0x4b0   : > { %1717 = vmatpush.bf16.msrb.mxu2 %v1693_v17  ;;  %2273 = vmatpush.bf16.msra.mxu3 %v1693_v17 }
 0x4b1   : > { %v1551_v62 = vpop.xlane.xlu0 %1550 }
 0x4b2   : > { %v1575_v1 = vsub.f32 %v3731_v61, %v1551_v62  ;;  %v1689_v61 = vpop.permute.xlu2 %1688 }
 0x4b4   : > { %1562 = vmax.xlane.f32.xlu0 %v3882_v40  ;;  %v1598_v27 = vmul.f32 1.442695, %v1575_v1  ;;  %v3886_v46 = vpop.eup %2580 }
 0x4b5   : > { %v2583_v3 = vpop.eup %2582 }
 0x4b6   : > { %v1298_v60 = vmul.f32 %v2583_v3, %v3701_v0 }
 0x4b9   : > { %v1257_v43 = vpop.xlane.xlu0 %1256 }
 0x4ba   : > { %2584 = vrcp.f32 %v1257_v43 }
 0x4bb   : > { %2586 = vpow2.f32 %v1598_v27 }
 0x4bc   : > { %1266 = vadd.xlane.f32.xlu0 %v3886_v46 }
 0x4c0   : > { %v2585_v36 = vpop.eup %2584 }
 0x4c1   : > { %v1299_v33 = vmul.f32 %v2585_v36, %v3742_v25  ;;  %v3891_v53 = vpop.eup %2586  ;;  %v1619_v22 = vpop.xlane.xlu0 %1618 }
 0x4c2   : > { %2588 = vrcp.f32 %v1619_v22 }
 0x4c3   : > { %v1312_v44 = vpack.c.bf16 %v1299_v33, %v1298_v60  ;;  %2590 = vrcp.f32 %v1617_v37 }
 0x4c4   : > { %1630 = vadd.xlane.f32.xlu0 %v3891_v53 }
 0x4c5   : > { %1360 = vmatmul.bf16.gmra.mxu3 %v1312_v44 }
 0x4c8   : > { %v2589_v54 = vpop.eup %2588 }
 0x4c9   : > { %v2591_v17 = vpop.eup %2590  ;;  %v1665_v0 = vmul.f32 %v2589_v54, %v3747_v4 }
 0x4ca   : > { %v1664_v63 = vmul.f32 %v2591_v17, %v3708_v42 }
 0x4cc   : > { %v1680_v62 = vpack.c.bf16 %v1665_v0, %v1664_v63 }
 0x4d0   : > { %v1191_v23 = vpop.xlane.xlu2 %1190 }
 0x4d1   : > { %v1210_v57 = vsub.f32 %v3759_v39, %v1191_v23 }
 0x4d3   : > { %v1238_v24 = vmul.f32 1.442695, %v1210_v57 }
 0x4d4   : > { %v1691_v6 = vpop.permute.xlu0 %1690 }
 0x4d5   : > { %2592 = vpow2.f32 %v1238_v24  ;;  %1718 = vmatpush.bf16.msrb.mxu2 %v1691_v6  ;;  %2274 = vmatpush.bf16.msra.mxu3 %v1691_v6 }
 0x4d8   : > { %v1555_v25 = vpop.xlane.xlu2 %1554 }
 0x4d9   : > { %v1577_v8 = vsub.f32 %v3773_v26, %v1555_v25  ;;  %1719 = vmatpush.bf16.msrb.mxu2 %v1689_v61  ;;  %2275 = vmatpush.bf16.msra.mxu3 %v1689_v61 }
 0x4da   : > { %v1553_v37 = vpop.xlane.xlu1 %1552 }
 0x4db   : > { %v3898_v1 = vpop.eup %2592  ;;  %v1602_v39 = vmul.f32 1.442695, %v1577_v8  ;;  %v1576_v27 = vsub.f32 %v3779_v11, %v1553_v37 }
 0x4dc   : > { %1270 = vadd.xlane.f32.xlu1 %v3898_v1  ;;  %1720 = vmatmul.bf16.vlgmr.msrb.gmra.mxu2 %v1680_v62 }
 0x4dd   : > { %2594 = vpow2.f32 %v1602_v39  ;;  %v1600_v43 = vmul.f32 1.442695, %v1576_v27 }
 0x4df   : > { %2596 = vpow2.f32 %v1600_v43 }
 0x4e0   : > { %v1259_v4 = vpop.xlane.xlu2 %1258 }
 0x4e2   : > { %v1621_v3 = vpop.xlane.xlu1 %1620 }
 0x4e3   : > { %v3902_v42 = vpop.eup %2594  ;;  %2598 = vrcp.f32 %v1621_v3 }
 0x4e4   : > { %1634 = vadd.xlane.f32.xlu1 %v3902_v42 }
 0x4e5   : > { %v3905_v26 = vpop.eup %2596 }
 0x4e6   : > { %1632 = vadd.xlane.f32.xlu0 %v3905_v26 }
 0x4e8   : > { %v1623_v36 = vpop.xlane.xlu2 %1622 }
 0x4e9   : > { %2600 = vrcp.f32 %v1623_v36  ;;  %v2599_v33 = vpop.eup %2598 }
 0x4ea   : > { %v1197_v11 = vpop.xlane.xlu1 %1196  ;;  %v1666_v23 = vmul.f32 %v2599_v33, %v3789_v10 }
 0x4eb   : > { %v1213_v60 = vsub.f32 %v3801_v45, %v1197_v11 }
 0x4ed   : > { %v1244_v44 = vmul.f32 1.442695, %v1213_v60 }
 0x4ef   : > { %v2601_v61 = vpop.eup %2600  ;;  %2602 = vpow2.f32 %v1244_v44 }
 0x4f0   : > { %v1557_v22 = vpop.xlane.xlu2 %1556  ;;  %v1667_v57 = vmul.f32 %v2601_v61, %v3795_v35 }
 0x4f1   : > { %v1578_v54 = vsub.f32 %v3810_v28, %v1557_v22 }
 0x4f2   : > { %v1681_v24 = vpack.c.bf16 %v1667_v57, %v1666_v23  ;;  %v1263_v37 = vpop.xlane.xlu1 %1262  ;;  %v3933_v23 = vpop.f32.mrf.mxu3 }
 0x4f3   : > { %v1604_v6 = vmul.f32 1.442695, %v1578_v54 }
 0x4f4   : > { %1725 = vmatmul.bf16.gmra.mxu2 %v1681_v24 }
 0x4f5   : > { %v3912_v17 = vpop.eup %2602  ;;  %2604 = vpow2.f32 %v1604_v6 }
 0x4f6   : > { %1276 = vadd.xlane.f32.xlu0 %v3912_v17 }
 0x4f8   : > { %v1265_v45 = vpop.xlane.xlu2 %1264 }
 0x4fa   : > { %v1627_v11 = vpop.xlane.xlu1 %1626 }
 0x4fb   : > { %v3915_v0 = vpop.eup %2604 }
 0x4fc   : > { %1636 = vadd.xlane.f32.xlu1 %v3915_v0 }
 0x4ff   : > { %v1193_v25 = vpop.xlane.xlu0 %1192 }
 0x500   : > { %v1211_v10 = vsub.f32 %v3829_v14, %v1193_v25  ;;  %v1561_v63 = vpop.xlane.xlu2 %1560 }
 0x501   : > { %v1580_v35 = vsub.f32 %v3834_v5, %v1561_v63 }
 0x502   : > { %v1240_v28 = vmul.f32 1.442695, %v1211_v10  ;;  %v1565_v24 = vpop.xlane.xlu1 %1564 }
 0x503   : > { %v1608_v8 = vmul.f32 1.442695, %v1580_v35  ;;  %v1018_v35 = vpop.f32.mrf.mxu3 }
 0x504   : > { %2606 = vpow2.f32 %v1240_v28 }
 0x505   : > { %2608 = vpow2.f32 %v1608_v8 }
 0x506   : > { %2610 = vrcp.f32 %v1259_v4 }
 0x507   : > { %v1261_v62 = vpop.xlane.xlu0 %1260 }
 0x508   : > { %2612 = vrcp.f32 %v1261_v62  ;;  %v1567_v39 = vpop.xlane.xlu2 %1566 }
 0x509   : > { %v1583_v27 = vsub.f32 %v3850_v31, %v1567_v39 }
 0x50a   : > { %v3921_v43 = vpop.eup %2606 }
 0x50b   : > { %v3923_v3 = vpop.eup %2608  ;;  %v1614_v36 = vmul.f32 1.442695, %v1583_v27  ;;  %1272 = vadd.xlane.f32.xlu2 %v3921_v43  ;;  %v1351_v27 = vpop.f32.mrf.mxu3 }
 0x50c   : > { %v2611_v14 = vpop.eup %2610  ;;  %1640 = vadd.xlane.f32.xlu0 %v3923_v3 }
 0x50d   : > { %2614 = vpow2.f32 %v1614_v36  ;;  %v1300_v4 = vmul.f32 %v2611_v14, %v3786_v20 }
 0x50e   : > { %v2613_v5 = vpop.eup %2612  ;;  %2616 = vrcp.f32 %v1265_v45  ;;  %v1582_v45 = vsub.f32 %v3841_v12, %v1565_v24  ;;  %v2298_v12 = vpack.i.bf16 %v3677_v55, %v3675_v49  ;;  %v2313_v49 = vpack.i.bf16 %v3735_v9, %v3717_v58 }
 0x50f   : > { %v1195_v60 = vpop.xlane.xlu0 %1194  ;;  %v1301_v33 = vmul.f32 %v2613_v5, %v3845_v30 }
 0x510   : > { %v1212_v31 = vsub.f32 %v3861_v13, %v1195_v60  ;;  %v1612_v28 = vmul.f32 1.442695, %v1582_v45  ;;  %v1269_v60 = vpop.xlane.xlu1 %1268 }
 0x511   : > { %v1313_v44 = vpack.c.bf16 %v1301_v33, %v1300_v4 }
 0x512   : > { %v1242_v61 = vmul.f32 1.442695, %v1212_v31 }
 0x513   : > { %v3930_v22 = vpop.eup %2614  ;;  %1365 = vmatmul.bf16.gmra.mxu3 %v1313_v44 }
 0x514   : > { %2618 = vpow2.f32 %v1242_v61  ;;  %1646 = vadd.xlane.f32.xlu0 %v3930_v22  ;;  %v2617_v20 = vpop.eup %2616 }
 0x515   : > { %2620 = vrcp.f32 %v1263_v37  ;;  %v1303_v25 = vmul.f32 %v2617_v20, %v3816_v16 }
 0x517   : > { %v1559_v57 = vpop.xlane.xlu0 %1558 }
 0x518   : > { %v1579_v54 = vsub.f32 %v3872_v15, %v1559_v57 }
 0x51a   : > { %v3936_v30 = vpop.eup %2618  ;;  %v1606_v13 = vmul.f32 1.442695, %v1579_v54 }
 0x51b   : > { %1274 = vadd.xlane.f32.xlu2 %v3936_v30  ;;  %v2621_v6 = vpop.eup %2620 }
 0x51c   : > { %2622 = vpow2.f32 %v1606_v13  ;;  %v1302_v63 = vmul.f32 %v2621_v6, %v3813_v29  ;;  %v2293_v6 = vpack.i.bf16 %v3670_v38, %v3655_v51  ;;  %v2303_v51 = vpack.i.bf16 %v3699_v59, %v3683_v7 }
 0x51d   : > { %2624 = vrcp.f32 %v1627_v11 }
 0x51e   : > { %v1314_v15 = vpack.c.bf16 %v1303_v25, %v1302_v63  ;;  %v2288_v25 = vpack.i.bf16 %v3645_v2, %v3639_v34  ;;  %v4180_v2 = vpack.i.bf16 %v3749_v19, %v3744_v52 }
 0x51f   : > { %v1625_v10 = vpop.xlane.xlu0 %1624 }
 0x520   : > { %2626 = vrcp.f32 %v1625_v10 }
 0x521   : > { %2628 = vpow2.f32 %v1612_v28 }
 0x522   : > { %v3942_v8 = vpop.eup %2622 }
 0x523   : > { %1638 = vadd.xlane.f32.xlu2 %v3942_v8  ;;  %1370 = vmatmul.bf16.gmra.mxu3 %v1314_v15  ;;  %v2625_v37 = vpop.eup %2624 }
 0x524   : > { %v1669_v29 = vmul.f32 %v2625_v37, %v3821_v47 }
 0x526   : > { %v2627_v62 = vpop.eup %2626 }
 0x527   : > { %v1563_v16 = vpop.xlane.xlu0 %1562  ;;  %v1668_v39 = vmul.f32 %v2627_v62, %v3875_v21  ;;  %v3951_v5 = vpop.eup %2628 }
 0x528   : > { %v1581_v36 = vsub.f32 %v3882_v40, %v1563_v16  ;;  %2299 = vrot.lane.b32.xlu0 %v2298_v12, %s2674_s14  ;;  %v1353_v21 = vpop.f32.mrf.mxu3  ;;  %v1629_v40 = vpop.xlane.xlu2 %1628 }
 0x529   : > { %v1682_v14 = vpack.c.bf16 %v1669_v29, %v1668_v39  ;;  %v2328_v31 = vpack.i.bf16 %v1353_v21, %v1351_v27 }
 0x52a   : > { %v1610_v11 = vmul.f32 1.442695, %v1581_v36 }
 0x52b   : > { %1730 = vmatmul.bf16.gmra.mxu2 %v1682_v14  ;;  %1644 = vadd.xlane.f32.xlu2 %v3951_v5 }
 0x52c   : > { %2630 = vpow2.f32 %v1610_v11 }
 0x52d   : > { %2632 = vrcp.f32 %v1269_v60 }
 0x52f   : > { %v1267_v55 = vpop.xlane.xlu0 %1266 }
 0x530   : > { %2634 = vrcp.f32 %v1267_v55  ;;  %2314 = vrot.lane.b32.xlu0 %v2313_v49, %s2674_s14  ;;  %v1356_v57 = vpop.f32.mrf.mxu3 }
 0x531   : > { %2636 = vrcp.f32 %v1629_v40 }
 0x532   : > { %v3957_v47 = vpop.eup %2630 }
 0x533   : > { %1642 = vadd.xlane.f32.xlu1 %v3957_v47  ;;  %v2633_v4 = vpop.eup %2632 }
 0x534   : > { %v1305_v58 = vmul.f32 %v2633_v4, %v3854_v32 }
 0x536   : > { %v2635_v33 = vpop.eup %2634 }
 0x537   : > { %v1631_v44 = vpop.xlane.xlu0 %1630  ;;  %v1304_v61 = vmul.f32 %v2635_v33, %v3886_v46  ;;  %v2637_v54 = vpop.eup %2636  ;;  %v2308_v46 = vpack.i.bf16 %v3713_v41, %v3704_v56 }
 0x538   : > { %2638 = vrcp.f32 %v1631_v44  ;;  %2329 = vrot.lane.b32.xlu0 %v2328_v31, %s2673_s13  ;;  %v1670_v24 = vmul.f32 %v2637_v54, %v3863_v50  ;;  %v1358_v32 = vpop.f32.mrf.mxu3 }
 0x539   : > { %v1315_v9 = vpack.c.bf16 %v1305_v58, %v1304_v61  ;;  %v2333_v28 = vpack.i.bf16 %v1358_v32, %v1356_v57 }
 0x53b   : > { %1375 = vmatmul.bf16.gmra.mxu3 %v1315_v9 }
 0x53e   : > { %v2639_v20 = vpop.eup %2638 }
 0x53f   : > { %v1671_v13 = vmul.f32 %v2639_v20, %v3891_v53  ;;  %v2323_v53 = vpack.i.bf16 %v1018_v35, %v3933_v23 }
 0x541   : > { %v1683_v45 = vpack.c.bf16 %v1671_v13, %v1670_v24 }
 0x543   : > { %1735 = vmatmul.bf16.gmra.mxu2 %v1683_v45  ;;  %2294 = vrot.lane.b32.xlu2 %v2293_v6, %s2674_s14 }
 0x548   : > { %v1361_v10 = vpop.f32.mrf.mxu3 }
 0x54b   : > { %2309 = vrot.lane.b32.xlu2 %v2308_v46, %s2674_s14 }
 0x54c   : > { %2289 = vrot.lane.b32.xlu1 %v2288_v25, %s2674_s14 }
 0x54f   : > { %v1271_v50 = vpop.xlane.xlu1 %1270 }
 0x550   : > { %v1363_v38 = vpop.f32.mrf.mxu3 }
 0x551   : > { %v2338_v41 = vpack.i.bf16 %v1363_v38, %v1361_v10 }
 0x553   : > { %2324 = vrot.lane.b32.xlu2 %v2323_v53, %s2674_s14 }
 0x554   : > { %2304 = vrot.lane.b32.xlu1 %v2303_v51, %s2674_s14 }
 0x557   : > { %v1635_v56 = vpop.xlane.xlu1 %1634 }
 0x558   : > { %2640 = vrcp.f32 %v1635_v56 }
 0x559   : > { %v1633_v34 = vpop.xlane.xlu0 %1632 }
 0x55a   : > { %2642 = vrcp.f32 %v1633_v34 }
 0x55b   : > { %2339 = vrot.lane.b32.xlu2 %v2338_v41, %s2673_s13  ;;  %2644 = vrcp.f32 %v1271_v50 }
 0x55c   : > { %2319 = vrot.lane.b32.xlu1 %v4180_v2, %s2674_s14 }
 0x55e   : > { %v2641_v23 = vpop.eup %2640 }
 0x55f   : > { %v1721_v63 = vpop.f32.mrf.mxu2  ;;  %v1673_v35 = vmul.f32 %v2641_v23, %v3902_v42 }
 0x560   : > { %v2643_v7 = vpop.eup %2642 }
 0x561   : > { %v1672_v59 = vmul.f32 %v2643_v7, %v3905_v26  ;;  %v2645_v26 = vpop.eup %2644 }
 0x562   : > { %v1306_v42 = vmul.f32 %v2645_v26, %v3898_v1  ;;  %v4182_v26 = vld [vmem:[#allocation13_spill] sm:$0xff] }
 0x563   : > { %v1684_v15 = vpack.c.bf16 %v1673_v35, %v1672_v59 }
 0x564   : > { %2334 = vrot.lane.b32.xlu1 %v2333_v28, %s2673_s13 }
 0x565   : > { %1740 = vmatmul.bf16.gmra.mxu2 %v1684_v15 }
 0x567   : > { %v1723_v37 = vpop.f32.mrf.mxu2 }
 0x568   : > { %v2343_v62 = vpack.i.bf16 %v1723_v37, %v1721_v63 }
 0x569   : > { %v1277_v27 = vpop.xlane.xlu0 %1276 }
 0x56a   : > { %2344 = vrot.lane.b32.xlu2 %v2343_v62, %s2672_s12 }
 0x56f   : > { %v1637_v60 = vpop.xlane.xlu1 %1636 }
 0x577   : > { %v1726_v12 = vpop.f32.mrf.mxu2 }
 0x57e   : > { %v1273_v52 = vpop.xlane.xlu2 %1272 }
 0x57f   : > { %2646 = vrcp.f32 %v1273_v52  ;;  %v1728_v19 = vpop.f32.mrf.mxu2  ;;  %v1641_v11 = vpop.xlane.xlu0 %1640 }
 0x580   : > { %v2348_v16 = vpack.i.bf16 %v1728_v19, %v1726_v12  ;;  %2648 = vrcp.f32 %v1277_v27  ;;  %v4181_v19 = vld [vmem:[#allocation14_spill] sm:$0xff] }
 0x582   : > { %2349 = vrot.lane.b32.xlu0 %v2348_v16, %s2672_s12 }
 0x585   : > { %v2647_v39 = vpop.eup %2646 }
 0x586   : > { %v1307_v29 = vmul.f32 %v2647_v39, %v3921_v43  ;;  %v2649_v49 = vpop.eup %2648 }
 0x587   : > { %v1309_v33 = vmul.f32 %v2649_v49, %v3912_v17  ;;  %v1647_v43 = vpop.xlane.xlu0 %1646 }
 0x588   : > { %v1316_v36 = vpack.c.bf16 %v1307_v29, %v1306_v42 }
 0x58a   : > { %1380 = vmatmul.bf16.gmra.mxu3 %v1316_v36 }
 0x58e   : > { %v1275_v14 = vpop.xlane.xlu2 %1274 }
 0x58f   : > { %2650 = vrcp.f32 %v1275_v14 }
 0x590   : > { %2652 = vrcp.f32 %v1637_v60 }
 0x595   : > { %v2651_v55 = vpop.eup %2650 }
 0x596   : > { %v1639_v21 = vpop.xlane.xlu2 %1638  ;;  %v1366_v40 = vpop.f32.mrf.mxu3  ;;  %v1308_v4 = vmul.f32 %v2651_v55, %v3936_v30 }
 0x597   : > { %2654 = vrcp.f32 %v1639_v21  ;;  %v2653_v31 = vpop.eup %2652 }
 0x598   : > { %v1317_v1 = vpack.c.bf16 %v1309_v33, %v1308_v4  ;;  %2656 = vrcp.f32 %v1647_v43  ;;  %v1674_v9 = vmul.f32 %v2653_v31, %v3915_v0 }
 0x59a   : > { %1385 = vmatmul.bf16.gmra.mxu3 %v1317_v1  ;;  %v2300_v53 = vpop.permute.xlu0 %2299 }
 0x59b   : > { %v2302_v2 = vunpack.i.h.bf16 %v2300_v53  ;;  %v2301_v23 = vunpack.i.l.bf16 %v2300_v53 }
 0x59d   : > { %v2655_v44 = vpop.eup %2654  ;;  %v1958_v35 = vsel %vm280_vm0, %v3422_v48, %v2302_v2  ;;  %v1957_v28 = vsel %vm280_vm0, %v3410_v18, %v2301_v23 }
 0x59e   : > { %v1368_v61 = vpop.f32.mrf.mxu3  ;;  %v1645_v58 = vpop.xlane.xlu2 %1644  ;;  %v1675_v57 = vmul.f32 %v2655_v44, %v3942_v8 }
 0x59f   : > { %v2363_v54 = vpack.i.bf16 %v1368_v61, %v1366_v40  ;;  %2658 = vrcp.f32 %v1645_v58  ;;  %v2657_v17 = vpop.eup %2656 }
 0x5a0   : > { %v1685_v20 = vpack.c.bf16 %v1675_v57, %v1674_v9  ;;  %2660 = vrcp.f32 %v1641_v11  ;;  %v1679_v24 = vmul.f32 %v2657_v17, %v3930_v22 }
 0x5a1   : > { %2364 = vrot.lane.b32.xlu0 %v2363_v54, %s2673_s13 }
 0x5a2   : > { %1745 = vmatmul.bf16.gmra.mxu2 %v1685_v20  ;;  %v4007_v41 = vpop.permute.xlu0 %2314 }
 0x5a5   : > { %v2659_v30 = vpop.eup %2658 }
 0x5a6   : > { %v1678_v13 = vmul.f32 %v2659_v30, %v3951_v5  ;;  %v3998_v6 = vpop.permute.xlu2 %2294  ;;  %v1643_v45 = vpop.xlane.xlu1 %1642 }
 0x5a7   : > { %2662 = vrcp.f32 %v1643_v45  ;;  %v2661_v0 = vpop.eup %2660  ;;  %v1371_v22 = vpop.f32.mrf.mxu3  ;;  %v2297_v9 = vunpack.i.h.bf16 %v3998_v6  ;;  %v2296_v57 = vunpack.i.l.bf16 %v3998_v6  ;;  %v4184_v45 = vld [vmem:[#allocation10_spill] sm:$0xff] }
 0x5a8   : > { %v1687_v32 = vpack.c.bf16 %v1679_v24, %v1678_v13  ;;  %v1676_v10 = vmul.f32 %v2661_v0, %v3923_v3  ;;  %v4183_v24 = vld [vmem:[#allocation6_spill] sm:$0xff] }
 0x5a9   : > { %v1956_v13 = vsel %vm280_vm0, %v4183_v24, %v2297_v9 }
 0x5aa   : > { %1755 = vmatmul.bf16.vlgmr.msra.gmra.mxu3 %v1687_v32  ;;  %v2330_v52 = vpop.permute.xlu0 %2329  ;;  %v1955_v32 = vsel %vm280_vm0, %v4184_v45, %v2296_v57  ;;  %v4187_v57 = vld [vmem:[#allocation12_spill] sm:$0xff] }
 0x5ab   : > { %v2332_v42 = vunpack.i.h.bf16 %v2330_v52  ;;  %v2331_v18 = vunpack.i.l.bf16 %v2330_v52 }
 0x5ad   : > { %v2663_v8 = vpop.eup %2662 }
 0x5ae   : > { %v1731_v46 = vpop.f32.mrf.mxu2  ;;  %v4000_v25 = vpop.permute.xlu2 %2309  ;;  %v1677_v50 = vmul.f32 %v2663_v8, %v3957_v47 }
 0x5af   : > { %v1373_v34 = vpop.f32.mrf.mxu3 }
 0x5b0   : > { %v1686_v51 = vpack.c.bf16 %v1677_v50, %v1676_v10  ;;  %v2373_v63 = vpack.i.bf16 %v1373_v34, %v1371_v22 }
 0x5b2   : > { %1750 = vmatmul.bf16.gmra.mxu2 %v1686_v51 }
 0x5b6   : > { %v1733_v5 = vpop.f32.mrf.mxu2  ;;  %v4004_v56 = vpop.permute.xlu2 %2324 }
 0x5b7   : > { %v2353_v38 = vpack.i.bf16 %v1733_v5, %v1731_v46 }
 0x5b9   : > { %2354 = vrot.lane.b32.xlu1 %v2353_v38, %s2672_s12 }
 0x5be   : > { %v2340_v3 = vpop.permute.xlu2 %2339  ;;  %v2290_v7 = vpop.permute.xlu1 %2289 }
 0x5bf   : > { %v2342_v47 = vunpack.i.h.bf16 %v2340_v3  ;;  %v2341_v59 = vunpack.i.l.bf16 %v2340_v3  ;;  %v2292_v62 = vunpack.i.h.bf16 %v2290_v7  ;;  %v2291_v12 = vunpack.i.l.bf16 %v2290_v7  ;;  %v1376_v60 = vpop.f32.mrf.mxu3 }
 0x5c1   : > { %2374 = vrot.lane.b32.xlu1 %v2373_v63, %s2673_s13  ;;  %v4015_v15 = vsel %vm1969_vm5, %v1958_v35, %v2342_v47  ;;  %v4018_v37 = vsel %vm1969_vm5, %v1957_v28, %v2341_v59  ;;  %v1954_v16 = vsel %vm280_vm0, %v4181_v19, %v2292_v62  ;;  %v1953_v48 = vsel %vm280_vm0, %v4182_v26, %v2291_v12  ;;  %v4185_v35 = vld [vmem:[#allocation8_spill] sm:$0xff]  ;;  %v4186_v62 = vld [vmem:[#allocation11_spill] sm:$0xff] }
 0x5c2   : > { %v1970_v14 = vsel %vm1969_vm5, %v1953_v48, %v2331_v18  ;;  %v1971_v11 = vsel %vm1969_vm5, %v1954_v16, %v2332_v42 }
 0x5c6   : > { %v1736_v39 = vpop.f32.mrf.mxu2  ;;  %v2345_v29 = vpop.permute.xlu2 %2344 }
 0x5c7   : > { %v2347_v27 = vunpack.i.h.bf16 %v2345_v29  ;;  %v2346_v36 = vunpack.i.l.bf16 %v2345_v29  ;;  %v1378_v33 = vpop.f32.mrf.mxu3  ;;  %v2305_v43 = vpop.permute.xlu1 %2304 }
 0x5c8   : > { %v2378_v1 = vpack.i.bf16 %v1378_v33, %v1376_v60  ;;  %v2307_v3 = vunpack.i.h.bf16 %v2305_v43  ;;  %v2306_v7 = vunpack.i.l.bf16 %v2305_v43 }
 0x5c9   : > { %v1987_v49 = vsel %vm1986_vm6, %v1970_v14, %v2346_v36  ;;  %v1988_v55 = vsel %vm1986_vm6, %v1971_v11, %v2347_v27 }
 0x5ca   : > { %v2216_v21 = vpack.c.bf16 %v1988_v55, %v1987_v49  ;;  %v1960_v28 = vsel %vm280_vm0, %v4185_v35, %v2307_v3  ;;  %v1959_v12 = vsel %vm280_vm0, %v4186_v62, %v2306_v7  ;;  %v2317_v35 = vunpack.i.h.bf16 %v4007_v41 }
 0x5cc   : > { %2217 = vst [vmem:[%s4030_s18] sm:$0xff] %v2216_v21  }
 0x5ce   : > { %v1738_v40 = vpop.f32.mrf.mxu2 }
 0x5cf   : > { %v2358_v4 = vpack.i.bf16 %v1738_v40, %v1736_v39  ;;  %v4037_v31 = vpop.permute.xlu1 %2319 }
 0x5d1   : > { %2359 = vrot.lane.b32.xlu2 %v2358_v4, %s2672_s12 }
 0x5d7   : > { %v2335_v61 = vpop.permute.xlu1 %2334 }
 0x5d8   : > { %v2337_v20 = vunpack.i.h.bf16 %v2335_v61  ;;  %v2336_v17 = vunpack.i.l.bf16 %v2335_v61 }
 0x5d9   : > { %2379 = vrot.lane.b32.xlu2 %v2378_v1, %s2673_s13 }
 0x5da   : > { %v1973_v46 = vsel %vm1969_vm5, %v1956_v13, %v2337_v20  ;;  %v1972_v10 = vsel %vm1969_vm5, %v1955_v32, %v2336_v17  ;;  %v4188_v20 = vld [vmem:[#allocation9_spill] sm:$0xff] }
 0x5e8   : > { %v1741_v44 = vpop.f32.mrf.mxu2 }
 0x5f0   : > { %v1743_v58 = vpop.f32.mrf.mxu2 }
 0x5f1   : > { %v2368_v54 = vpack.i.bf16 %v1743_v58, %v1741_v44  ;;  %v2311_v44 = vunpack.i.l.bf16 %v4000_v25 }
 0x5f3   : > { %2369 = vrot.lane.b32.xlu0 %v2368_v54, %s2672_s12  ;;  %v1961_v17 = vsel %vm280_vm0, %v4188_v20, %v2311_v44 }
 0x5f4   : > { %v2350_v30 = vpop.permute.xlu0 %2349 }
 0x5f5   : > { %v2352_v0 = vunpack.i.h.bf16 %v2350_v30  ;;  %v2351_v8 = vunpack.i.l.bf16 %v2350_v30 }
 0x5f7   : > { %v1989_v6 = vsel %vm1986_vm6, %v1972_v10, %v2351_v8  ;;  %v1990_v50 = vsel %vm1986_vm6, %v1973_v46, %v2352_v0  ;;  %v2322_v10 = vunpack.i.h.bf16 %v4037_v31 }
 0x5f8   : > { %v2221_v53 = vpack.c.bf16 %v1990_v50, %v1989_v6  ;;  %v2321_v6 = vunpack.i.l.bf16 %v4037_v31 }
 0x5fa   : > { %2253 = vst [vmem:[%s4030_s18 + $0x8] sm:$0xff] %v2221_v53  }
 0x60d   : > { %v1381_v51 = vpop.f32.mrf.mxu3 }
 0x613   : > { %v2365_v23 = vpop.permute.xlu0 %2364 }
 0x614   : > { %v2367_v47 = vunpack.i.h.bf16 %v2365_v23  ;;  %v2366_v59 = vunpack.i.l.bf16 %v2365_v23 }
 0x615   : > { %v1383_v22 = vpop.f32.mrf.mxu3 }
 0x616   : > { %v2383_v5 = vpack.i.bf16 %v1383_v22, %v1381_v51  ;;  %v1976_v42 = vsel %vm1969_vm5, %v1959_v12, %v2366_v59  ;;  %v1977_v18 = vsel %vm1969_vm5, %v1960_v28, %v2367_v47  ;;  %v2316_v28 = vunpack.i.l.bf16 %v4007_v41 }
 0x618   : > { %2384 = vrot.lane.b32.xlu0 %v2383_v5, %s2673_s13  ;;  %v4189_v5 = vld [vmem:[#allocation17_spill] sm:$0xff] }
 0x61d   : > { %v1386_v38 = vpop.f32.mrf.mxu3 }
 0x625   : > { %v1388_v34 = vpop.f32.mrf.mxu3  ;;  %v1746_v2 = vpop.f32.mrf.mxu2 }
 0x626   : > { %v2388_v63 = vpack.i.bf16 %v1388_v34, %v1386_v38  ;;  %v1966_v38 = vsel %vm280_vm0, %v4189_v5, %v2322_v10  ;;  %v4190_v34 = vld [vmem:[#allocation16_spill] sm:$0xff] }
 0x628   : > { %2389 = vrot.lane.b32.xlu1 %v2388_v63, %s2673_s13 }
 0x62b   : > { %v2360_v52 = vpop.permute.xlu2 %2359  ;;  %v2355_v19 = vpop.permute.xlu1 %2354 }
 0x62c   : > { %v2362_v16 = vunpack.i.h.bf16 %v2360_v52  ;;  %v2361_v26 = vunpack.i.l.bf16 %v2360_v52  ;;  %v2357_v48 = vunpack.i.h.bf16 %v2355_v19  ;;  %v2356_v39 = vunpack.i.l.bf16 %v2355_v19  ;;  %v4191_v19 = vld [vmem:[#allocation15_spill] sm:$0xff] }
 0x62d   : > { %v1748_v29 = vpop.f32.mrf.mxu2  ;;  %v1756_v27 = vpop.f32.mrf.mxu3 }
 0x62e   : > { %v1993_v36 = vsel %vm1986_vm6, %v1976_v42, %v2361_v26  ;;  %v1994_v14 = vsel %vm1986_vm6, %v1977_v18, %v2362_v16  ;;  %v1992_v11 = vsel %vm1986_vm6, %v4015_v15, %v2357_v48  ;;  %v1991_v60 = vsel %vm1986_vm6, %v4018_v37, %v2356_v39  ;;  %v4192_v26 = vld [vmem:[#allocation7_spill] sm:$0xff] }
 0x62f   : > { %v2231_v49 = vpack.c.bf16 %v1994_v14, %v1993_v36  ;;  %v2226_v55 = vpack.c.bf16 %v1992_v11, %v1991_v60  ;;  %v2393_v21 = vpack.i.bf16 %v1748_v29, %v1746_v2  ;;  %v2312_v37 = vunpack.i.h.bf16 %v4000_v25 }
 0x630   : > { %v1965_v2 = vsel %vm280_vm0, %v4190_v34, %v2321_v6  ;;  %v1964_v16 = vsel %vm280_vm0, %v4191_v19, %v2317_v35  ;;  %v1963_v48 = vsel %vm280_vm0, %v4192_v26, %v2316_v28  ;;  %v2327_v14 = vunpack.i.h.bf16 %v4004_v56 }
 0x631   : > { %2255 = vst [vmem:[%s4030_s18 + $0x18] sm:$0xff] %v2231_v49   ;;  %2394 = vrot.lane.b32.xlu1 %v2393_v21, %s2672_s12  ;;  %v1962_v54 = vsel %vm280_vm0, %v4187_v57, %v2312_v37  ;;  %v2326_v11 = vunpack.i.l.bf16 %v4004_v56  ;;  %v4193_v21 = vld [vmem:[#allocation2_spill] sm:$0xff] }
 0x632   : > { %2254 = vst [vmem:[%s4030_s18 + $0x10] sm:$0xff] %v2226_v55  }
 0x633   : > { %v2375_v15 = vpop.permute.xlu1 %2374  ;;  %v2380_v8 = vpop.permute.xlu2 %2379 }
 0x634   : > { %v2377_v61 = vunpack.i.h.bf16 %v2375_v15  ;;  %v2376_v58 = vunpack.i.l.bf16 %v2375_v15  ;;  %v2382_v62 = vunpack.i.h.bf16 %v2380_v8  ;;  %v2381_v12 = vunpack.i.l.bf16 %v2380_v8 }
 0x635   : > { %v1758_v40 = vpop.f32.mrf.mxu3  ;;  %v1751_v4 = vpop.f32.mrf.mxu2 }
 0x636   : > { %v2403_v33 = vpack.i.bf16 %v1758_v40, %v1756_v27  ;;  %v1979_v13 = vsel %vm1969_vm5, %v1962_v54, %v2377_v61  ;;  %v1978_v45 = vsel %vm1969_vm5, %v1961_v17, %v2376_v58  ;;  %v1981_v18 = vsel %vm1969_vm5, %v1964_v16, %v2382_v62 }
 0x637   : > { %v1980_v29 = vsel %vm1969_vm5, %v1963_v48, %v2381_v12  ;;  %v1968_v40 = vsel %vm280_vm0, %v4193_v21, %v2327_v14 }
 0x638   : > { %2404 = vrot.lane.b32.xlu0 %v2403_v33, %s2672_s12 }
 0x63d   : > { %v1753_v1 = vpop.f32.mrf.mxu2 }
 0x63e   : > { %v2398_v43 = vpack.i.bf16 %v1753_v1, %v1751_v4  ;;  %v4194_v4 = vld [vmem:[#allocation18_spill] sm:$0xff] }
 0x63f   : > { %v1967_v33 = vsel %vm280_vm0, %v4194_v4, %v2326_v11 }
 0x640   : > { %2399 = vrot.lane.b32.xlu2 %v2398_v43, %s2672_s12 }
 0x665   : > { %v2370_v9 = vpop.permute.xlu0 %2369 }
 0x666   : > { %v2372_v30 = vunpack.i.h.bf16 %v2370_v9  ;;  %v2371_v24 = vunpack.i.l.bf16 %v2370_v9 }
 0x668   : > { %v1995_v32 = vsel %vm1986_vm6, %v1978_v45, %v2371_v24  ;;  %v1996_v0 = vsel %vm1986_vm6, %v1979_v13, %v2372_v30 }
 0x669   : > { %v2236_v25 = vpack.c.bf16 %v1996_v0, %v1995_v32 }
 0x66b   : > { %2256 = vst [vmem:[%s4030_s18 + $0x20] sm:$0xff] %v2236_v25  }
 0x68a   : > { %v2385_v46 = vpop.permute.xlu0 %2384 }
 0x68b   : > { %v2387_v50 = vunpack.i.h.bf16 %v2385_v46  ;;  %v2386_v53 = vunpack.i.l.bf16 %v2385_v46 }
 0x68d   : > { %v1982_v3 = vsel %vm1969_vm5, %v1965_v2, %v2386_v53  ;;  %v1983_v7 = vsel %vm1969_vm5, %v1966_v38, %v2387_v50 }
 0x69a   : > { %v2390_v51 = vpop.permute.xlu1 %2389  ;;  %v2400_v22 = vpop.permute.xlu2 %2399 }
 0x69b   : > { %v2402_v23 = vunpack.i.h.bf16 %v2400_v22  ;;  %v2401_v63 = vunpack.i.l.bf16 %v2400_v22  ;;  %v2392_v60 = vunpack.i.h.bf16 %v2390_v51  ;;  %v2391_v49 = vunpack.i.l.bf16 %v2390_v51 }
 0x69d   : > { %v1999_v47 = vsel %vm1986_vm6, %v1982_v3, %v2401_v63  ;;  %v2000_v31 = vsel %vm1986_vm6, %v1983_v7, %v2402_v23  ;;  %v1985_v15 = vsel %vm1969_vm5, %v1968_v40, %v2392_v60  ;;  %v1984_v37 = vsel %vm1969_vm5, %v1967_v33, %v2391_v49 }
 0x69e   : > { %v2246_v59 = vpack.c.bf16 %v2000_v31, %v1999_v47 }
 0x6a0   : > { %2258 = vst [vmem:[%s4030_s18 + $0x30] sm:$0xff] %v2246_v59  }
 0x6a3   : > { %v2395_v52 = vpop.permute.xlu1 %2394 }
 0x6a4   : > { %v2397_v39 = vunpack.i.h.bf16 %v2395_v52  ;;  %v2396_v42 = vunpack.i.l.bf16 %v2395_v52 }
 0x6a6   : > { %v1998_v27 = vsel %vm1986_vm6, %v1981_v18, %v2397_v39  ;;  %v1997_v41 = vsel %vm1986_vm6, %v1980_v29, %v2396_v42 }
 0x6a7   : > { %v2241_v36 = vpack.c.bf16 %v1998_v27, %v1997_v41 }
 0x6a9   : > { %2257 = vst [vmem:[%s4030_s18 + $0x28] sm:$0xff] %v2241_v36  }
 0x6aa   : > { %v2405_v55 = vpop.permute.xlu0 %2404 }
 0x6ab   : > { %v2407_v1 = vunpack.i.h.bf16 %v2405_v55  ;;  %v2406_v43 = vunpack.i.l.bf16 %v2405_v55 }
 0x6ad   : > { %v2001_v44 = vsel %vm1986_vm6, %v1984_v37, %v2406_v43  ;;  %v2002_v56 = vsel %vm1986_vm6, %v1985_v15, %v2407_v1 }
 0x6ae   : > { %v2251_v61 = vpack.c.bf16 %v2002_v56, %v2001_v44 }
 0x6b0   : > { %2259 = vst [vmem:[%s4030_s18 + $0x38] sm:$0xff] %v2251_v61  }
 0x6b1 PF: > { %s11_s6 = sadd.s32 1, %s2670_s6  }
 0x6b2   : > { %p8_p4 = scmp.ge.s32.totalorder %s11_s6, 4  }
 0x6b4   :  { %10 = sbr.rel (!%p8_p4) target bundleno = 1 (0x1), region = 54 }

// kernel: _lambda_.13
= control target key start
LH: loop header
LB: loop body
LE: loop exit
PB: predicated region body
PF: predicated region fallthrough
CT: control target
= control target key end

     0   :  { %s2236_s0 = inlined_call_operand.vmem [shape: f32[256,128], index: 0, kind: input, shape index: {}]   ;;  %s2237_s1 = inlined_call_operand.vmem [shape: f32[1,128], index: 1, kind: input, shape index: {}]   ;;  %s2238_s2 = inlined_call_operand.vmem [shape: f32[1,128], index: 2, kind: input, shape index: {}]   ;;  %s2239_s3 = inlined_call_operand.vmem [shape: bf16[128,512], index: 3, kind: input, shape index: {}]   ;;  %s2240_s4 = inlined_call_operand.hbm [shape: bf16[256,512], index: 4, kind: output, shape index: {}]  }
   0x1   :  { %2241 = sst [smem:[#allocation7_spill]] %s2239_s3 }
   0x2   :  { %9 = vsyncpa [#allocation5], 0 }
   0x3   :  { %11 = vsyncpa [#allocation5 + $0x1], 0  ;;  %s1626_s15 = smov 0   ;;  %s1628_s16 = smov 0  }
   0x4   :  { %s1630_s17 = smov 0   ;;  %s1632_s18 = smov 0  }
   0x5   :  { %s1634_s19 = smov 0   ;;  %s1636_s20 = smov 0  }
   0x6   :  { %s1638_s21 = smov 0   ;;  %s1640_s22 = smov 0  }
   0x7   :  { %s1642_s23 = smov 0   ;;  %s1644_s24 = smov 0  }
   0x8 LB: > { %s1153_s25 = sadd.s32 4294967295, %s1595_s24   ;;  %s1154_s26 = sadd.s32 4294967294, %s1595_s24   ;;  %s1595_s24 = sphi %s1644_s24, %s17_s24   ;;  %s1591_s23 = sphi %s1642_s23, %s2262_s23   ;;  %s1587_s22 = sphi %s1640_s22, %s2261_s22   ;;  %s1583_s21 = sphi %s1638_s21, %s2260_s21   ;;  %s1579_s20 = sphi %s1636_s20, %s2259_s20   ;;  %s1575_s19 = sphi %s1634_s19, %s2258_s19   ;;  %s1571_s18 = sphi %s1632_s18, %s2257_s18   ;;  %s1567_s17 = sphi %s1630_s17, %s2256_s17   ;;  %s1563_s16 = sphi %s1628_s16, %s2255_s16   ;;  %s1559_s15 = sphi %s1626_s15, %s2254_s15  }
   0x9   : > { %s26_s27 = sadd.s32 1, %s1587_s22  ;;  %s29_s28 = sadd.s32 1, %s1591_s23 }
   0xa   : > { %p27_p0 = scmp.ge.s32.totalorder %s26_s27, 2  ;;  %s104_s29 = sadd.s32 1, %s1575_s19 }
   0xb   : > { %p111_p1 = scmp.ne.s32.totalorder %s1575_s19, %s1571_s18  ;;  %p112_p2 = scmp.eq.s32.totalorder %s1595_s24, 0 }
   0xc   : > { %s2264_s27 = smov (%p27_p0, %s26_s27), 0  ;;  %s2266_s28 = smov (!%p27_p0, %s29_s28), %s1591_s23 }
   0xd   : > { %s101_s30 = ssub.s32 %s1587_s22, %s2264_s27  ;;  %p1689_p3 = por %p112_p2, %p111_p1 }
   0xe   : > { %p31_p4 = scmp.ge.s32.totalorder %s2266_s28, 2  ;;  %p102_p5 = scmp.eq.s32.totalorder %s101_s30, 0 }
   0xf   : > { %s132_s6 = sadd.s32 1, %s1567_s17  ;;  %p142_p6 = scmp.ne.s32.totalorder %s1567_s17, %s1563_s16 }
  0x10   : > { %s2268_s28 = smov (%p31_p4, %s2266_s28), 0  ;;  %p143_p7 = scmp.eq.s32.totalorder %s1153_s25, 3 }
  0x11   : > { %s1699_s7 = scalar_select %p102_p5, %s1575_s19, %s104_s29  }
  0x12   : > { %s127_s8 = ssub.s32 %s1591_s23, %s2268_s28  ;;  %p148_p8 = scmp.ne.s32.totalorder %s1563_s16, %s1559_s15 }
  0x13   : > { %s129_s9 = sor.u32 %s127_s8, %s101_s30  ;;  %p1705_p10 = por %p143_p7, %p142_p6 }
  0x14   : > { %p130_p9 = scmp.eq.s32.totalorder %s129_s9, 0  ;;  %p149_p11 = scmp.eq.s32.totalorder %s1154_s26, 3 }
  0x15   : > { %p1156_p13 = scmp.ge.s32.totalorder %s1595_s24, 4 }
  0x16   : > { %s1710_s11 = scalar_select %p130_p9, %s1567_s17, %s132_s6  }
  0x17   : > { %p1712_p12 = por %p149_p11, %p148_p8  ;;  %171 = sbr.rel (%p1156_p13) target bundleno = 54 (0x36), region = 24 }
  0x1c   : > { %183 = sbr.rel (!%p1689_p3) target bundleno = 54 (0x36), region = 32  ;;  %s185_s13 = sand.u32 (%p1689_p3), 1, %s1575_s19  }
  0x1d   : > { %s1269_s14 = sshll.u32 (%p1689_p3), %s1587_s22, 3  ;;  %s1157_s25 = sshll.u32 (%p1689_p3), %s185_s13, 7 }
  0x1e   : > { %s2245_s3 = sld [smem:[#allocation7_spill]] (%p1689_p3)  ;;  %s187_s5 = scalar_lea.vmem (%p1689_p3), [#allocation3], %s1157_s25 }
  0x24   : > { %s1724_s26 = scalar_lea.vmem %s2245_s3, %s1269_s14 }
  0x25   : > { %v249_v0 = vld [vmem:[%s1724_s26] sm:$0xff]  ;;  %v251_v1 = vld [vmem:[%s1724_s26 + $0x10] sm:$0xff] }
  0x26   : > { %v253_v2 = vld [vmem:[%s1724_s26 + $0x20] sm:$0xff]  ;;  %250 = vst [vmem:[%s187_s5] sm:$0xff] %v249_v0  ;;  %v255_v3 = vld [vmem:[%s1724_s26 + $0x30] sm:$0xff] }
  0x27   : > { %252 = vst [vmem:[%s187_s5 + $0x8] sm:$0xff] %v251_v1  ;;  %v257_v4 = vld [vmem:[%s1724_s26 + $0x40] sm:$0xff]  ;;  %v259_v5 = vld [vmem:[%s1724_s26 + $0x50] sm:$0xff] }
  0x28   : > { %254 = vst [vmem:[%s187_s5 + $0x10] sm:$0xff] %v253_v2  ;;  %v261_v6 = vld [vmem:[%s1724_s26 + $0x60] sm:$0xff]  ;;  %v263_v7 = vld [vmem:[%s1724_s26 + $0x70] sm:$0xff] }
  0x29   : > { %256 = vst [vmem:[%s187_s5 + $0x18] sm:$0xff] %v255_v3  ;;  %v265_v8 = vld [vmem:[%s1724_s26 + $0x80] sm:$0xff]  ;;  %v267_v9 = vld [vmem:[%s1724_s26 + $0x90] sm:$0xff] }
  0x2a   : > { %258 = vst [vmem:[%s187_s5 + $0x20] sm:$0xff] %v257_v4  ;;  %v269_v10 = vld [vmem:[%s1724_s26 + $0xa0] sm:$0xff]  ;;  %v271_v11 = vld [vmem:[%s1724_s26 + $0xb0] sm:$0xff] }
  0x2b   : > { %260 = vst [vmem:[%s187_s5 + $0x28] sm:$0xff] %v259_v5  ;;  %v273_v12 = vld [vmem:[%s1724_s26 + $0xc0] sm:$0xff]  ;;  %v275_v13 = vld [vmem:[%s1724_s26 + $0xd0] sm:$0xff] }
  0x2c   : > { %262 = vst [vmem:[%s187_s5 + $0x30] sm:$0xff] %v261_v6  ;;  %v277_v14 = vld [vmem:[%s1724_s26 + $0xe0] sm:$0xff]  ;;  %v279_v15 = vld [vmem:[%s1724_s26 + $0xf0] sm:$0xff] }
  0x2d   : > { %264 = vst [vmem:[%s187_s5 + $0x38] sm:$0xff] %v263_v7 }
  0x2e   : > { %266 = vst [vmem:[%s187_s5 + $0x40] sm:$0xff] %v265_v8 }
  0x2f   : > { %268 = vst [vmem:[%s187_s5 + $0x48] sm:$0xff] %v267_v9 }
  0x30   : > { %270 = vst [vmem:[%s187_s5 + $0x50] sm:$0xff] %v269_v10 }
  0x31   : > { %272 = vst [vmem:[%s187_s5 + $0x58] sm:$0xff] %v271_v11 }
  0x32   : > { %274 = vst [vmem:[%s187_s5 + $0x60] sm:$0xff] %v273_v12 }
  0x33   : > { %276 = vst [vmem:[%s187_s5 + $0x68] sm:$0xff] %v275_v13 }
  0x34   : > { %278 = vst [vmem:[%s187_s5 + $0x70] sm:$0xff] %v277_v14 }
  0x35   : > { %280 = vst [vmem:[%s187_s5 + $0x78] sm:$0xff] %v279_v15 }
  0x36 PF: > { %p1160_p0 = scmp.ge.s32.totalorder %s1595_s24, 1  ;;  %p285_p1 = scmp.lt.s32.totalorder %s1595_s24, 5 }
  0x38   : > { %p286_p2 = pnand %p1160_p0, %p285_p1 }
  0x39   : > { %s292_s6 = sand.u32 (!%p286_p2), 1, %s1571_s18   ;;  %s319_s8 = sand.u32 (!%p286_p2), 1, %s1563_s16  }
  0x3a   : > { %289 = sbr.rel (%p286_p2) target bundleno = 617 (0x269), region = 70  ;;  %s1161_s9 = sshll.u32 (!%p286_p2), %s292_s6, 7 }
  0x3b   : > { %s1162_s13 = sshll.u32 (!%p286_p2), %s319_s8, 7  ;;  %s1163_s14 = sshll.u32 (!%p286_p2), %s1583_s21, 4 }
  0x3c   : > { %p323_p3 = scmp.lt.s32.totalorder (!%p286_p2), %s1163_s14, 31  ;;  %s1754_s5 = scalar_lea.vmem (!%p286_p2), [#allocation3], %s1161_s9 }
  0x3d   : > { %s1756_s3 = scalar_lea.vmem (!%p286_p2), [#allocation4], %s1162_s13  ;;  %p1165_p4 = scmp.ne.s32.totalorder (!%p286_p2), %s1579_s20, 0 }
  0x3f   : > { %s2270_s14 = smov (!%p323_p3, %s1163_s14), 31  ;;  %334 = sbr.rel (%p1165_p4) target bundleno = 387 (0x183), region = 78 }
  0x40   : > { %s1164_s25 = sshll.u32 %s2270_s14, 3 }
  0x41   : > { %s1752_s26 = scalar_lea.vmem %s2236_s0, %s1164_s25 }
  0x44   : > { %v1760_v16 = vld [vmem:[%s1752_s26 + $0x20] sm:$0xff]  ;;  %v337_v17 = vld [vmem:[%s1752_s26 + $0x10] sm:$0xff]  ;;  %v340_v19 = vld [vmem:[%s1752_s26 + $0x28] sm:$0xff]  ;;  %v1597_v32 = vmov 128.0  }
  0x45   : > { %v335_v18 = vld [vmem:[%s1752_s26] sm:$0xff]  ;;  %361 = vadd.xlane.f32.xlu2 %v1760_v16  ;;  %357 = vadd.xlane.f32.xlu1 %v337_v17  ;;  %v338_v20 = vld [vmem:[%s1752_s26 + $0x18] sm:$0xff]  ;;  %v336_v21 = vld [vmem:[%s1752_s26 + $0x8] sm:$0xff]  ;;  %1451 = vrcp.f32 %v1597_v32 }
  0x46   : > { %353 = vadd.xlane.f32.xlu0 %v335_v18  ;;  %v343_v22 = vld [vmem:[%s1752_s26 + $0x40] sm:$0xff]  ;;  %v1770_v23 = vld [vmem:[%s1752_s26 + $0x38] sm:$0xff]  ;;  %v341_v24 = vld [vmem:[%s1752_s26 + $0x30] sm:$0xff] }
  0x47   : > { %v1775_v25 = vld [vmem:[%s1752_s26 + $0x58] sm:$0xff]  ;;  %v1778_v26 = vld [vmem:[%s1752_s26 + $0x50] sm:$0xff]  ;;  %v1781_v27 = vld [vmem:[%s1752_s26 + $0x48] sm:$0xff] }
  0x48   : > { %v1787_v28 = vld [vmem:[%s1752_s26 + $0x70] sm:$0xff]  ;;  %v1790_v29 = vld [vmem:[%s1752_s26 + $0x68] sm:$0xff]  ;;  %v1793_v30 = vld [vmem:[%s1752_s26 + $0x60] sm:$0xff] }
  0x49   : > { %v1799_v31 = vld [vmem:[%s1752_s26 + $0x78] sm:$0xff] }
  0x4b   : > { %v1452_v33 = vpop.eup %1451 }
  0x4c   : > { %v386_v34 = vmul.f32 128.0, %v1452_v33  ;;  %vm390_vm0 = vweird.f32 %v1452_v33 }
  0x4d   : > { %363 = vadd.xlane.f32.xlu2 %v340_v19  ;;  %359 = vadd.xlane.f32.xlu1 %v338_v20 }
  0x4e   : > { %355 = vadd.xlane.f32.xlu0 %v336_v21  ;;  %v387_v35 = vsub.f32 1.0, %v386_v34 }
  0x50   : > { %v388_v36 = vmul.f32 %v1452_v33, %v387_v35 }
  0x52   : > { %v389_v37 = vadd.f32 %v1452_v33, %v388_v36 }
  0x54   : > { %v1802_v38 = vsel %vm390_vm0, %v1452_v33, %v389_v37 }
  0x55   : > { %369 = vadd.xlane.f32.xlu2 %v343_v22  ;;  %367 = vadd.xlane.f32.xlu1 %v1770_v23 }
  0x56   : > { %365 = vadd.xlane.f32.xlu0 %v341_v24 }
  0x5d   : > { %375 = vadd.xlane.f32.xlu2 %v1775_v25  ;;  %373 = vadd.xlane.f32.xlu1 %v1778_v26 }
  0x5e   : > { %371 = vadd.xlane.f32.xlu0 %v1781_v27 }
  0x65   : > { %381 = vadd.xlane.f32.xlu2 %v1787_v28  ;;  %379 = vadd.xlane.f32.xlu1 %v1790_v29 }
  0x66   : > { %377 = vadd.xlane.f32.xlu0 %v1793_v30 }
  0x6e   : > { %383 = vadd.xlane.f32.xlu0 %v1799_v31 }
  0xb8   : > { %v362_v39 = vpop.xlane.xlu2 %361  ;;  %v358_v40 = vpop.xlane.xlu1 %357 }
  0xb9   : > { %v394_v41 = vmul.f32 %v1802_v38, %v358_v40  ;;  %v354_v42 = vpop.xlane.xlu0 %353  ;;  %v396_v59 = vmul.f32 %v1802_v38, %v362_v39 }
  0xba   : > { %v392_v43 = vmul.f32 %v1802_v38, %v354_v42 }
  0xbb   : > { %v1806_v44 = vsub.f32 %v337_v17, %v394_v41  ;;  %v1832_v1 = vsub.f32 %v1760_v16, %v396_v59 }
  0xbc   : > { %v1808_v45 = vsub.f32 %v335_v18, %v392_v43 }
  0xbd   : > { %v426_v46 = vmul.f32 %v1806_v44, %v1806_v44  ;;  %v428_v7 = vmul.f32 %v1832_v1, %v1832_v1 }
  0xbe   : > { %v424_v47 = vmul.f32 %v1808_v45, %v1808_v45 }
  0xbf   : > { %444 = vadd.xlane.f32.xlu0 %v426_v46 }
  0xc0   : > { %440 = vadd.xlane.f32.xlu1 %v424_v47  ;;  %v364_v48 = vpop.xlane.xlu2 %363  ;;  %v360_v49 = vpop.xlane.xlu1 %359 }
  0xc1   : > { %v397_v50 = vmul.f32 %v1802_v38, %v364_v48  ;;  %v395_v51 = vmul.f32 %v1802_v38, %v360_v49  ;;  %v356_v52 = vpop.xlane.xlu0 %355 }
  0xc2   : > { %v393_v53 = vmul.f32 %v1802_v38, %v356_v52 }
  0xc3   : > { %v1817_v54 = vsub.f32 %v340_v19, %v397_v50  ;;  %v1819_v55 = vsub.f32 %v338_v20, %v395_v51 }
  0xc4   : > { %v1821_v56 = vsub.f32 %v336_v21, %v393_v53 }
  0xc5   : > { %v429_v57 = vmul.f32 %v1817_v54, %v1817_v54  ;;  %v427_v58 = vmul.f32 %v1819_v55, %v1819_v55 }
  0xc6   : > { %v425_v60 = vmul.f32 %v1821_v56, %v1821_v56 }
  0xc7   : > { %450 = vadd.xlane.f32.xlu0 %v429_v57 }
  0xc8   : > { %446 = vadd.xlane.f32.xlu1 %v427_v58  ;;  %442 = vadd.xlane.f32.xlu2 %v425_v60  ;;  %v370_v61 = vpop.xlane.xlu2 %369  ;;  %v368_v62 = vpop.xlane.xlu1 %367 }
  0xc9   : > { %v400_v63 = vmul.f32 %v1802_v38, %v370_v61  ;;  %v366_v0 = vpop.xlane.xlu0 %365  ;;  %v399_v5 = vmul.f32 %v1802_v38, %v368_v62 }
  0xca   : > { %v398_v2 = vmul.f32 %v1802_v38, %v366_v0 }
  0xcb   : > { %v1835_v3 = vsub.f32 %v343_v22, %v400_v63  ;;  %v1847_v10 = vsub.f32 %v1770_v23, %v399_v5 }
  0xcc   : > { %v1837_v4 = vsub.f32 %v341_v24, %v398_v2 }
  0xcd   : > { %v432_v6 = vmul.f32 %v1835_v3, %v1835_v3  ;;  %v431_v17 = vmul.f32 %v1847_v10, %v1847_v10 }
  0xce   : > { %v430_v8 = vmul.f32 %v1837_v4, %v1837_v4 }
  0xcf   : > { %456 = vadd.xlane.f32.xlu0 %v432_v6 }
  0xd0   : > { %448 = vadd.xlane.f32.xlu2 %v428_v7  ;;  %452 = vadd.xlane.f32.xlu1 %v430_v8  ;;  %v376_v9 = vpop.xlane.xlu2 %375  ;;  %v374_v11 = vpop.xlane.xlu1 %373 }
  0xd1   : > { %v403_v12 = vmul.f32 %v1802_v38, %v376_v9  ;;  %v372_v13 = vpop.xlane.xlu0 %371  ;;  %v402_v18 = vmul.f32 %v1802_v38, %v374_v11 }
  0xd2   : > { %v401_v14 = vmul.f32 %v1802_v38, %v372_v13 }
  0xd3   : > { %v1852_v15 = vsub.f32 %v1775_v25, %v403_v12  ;;  %v1865_v22 = vsub.f32 %v1778_v26, %v402_v18 }
  0xd4   : > { %v1855_v16 = vsub.f32 %v1781_v27, %v401_v14 }
  0xd5   : > { %v435_v19 = vmul.f32 %v1852_v15, %v1852_v15  ;;  %v434_v34 = vmul.f32 %v1865_v22, %v1865_v22 }
  0xd6   : > { %v433_v20 = vmul.f32 %v1855_v16, %v1855_v16 }
  0xd7   : > { %462 = vadd.xlane.f32.xlu0 %v435_v19 }
  0xd8   : > { %454 = vadd.xlane.f32.xlu2 %v431_v17  ;;  %458 = vadd.xlane.f32.xlu1 %v433_v20  ;;  %v382_v21 = vpop.xlane.xlu2 %381  ;;  %v380_v25 = vpop.xlane.xlu1 %379 }
  0xd9   : > { %v406_v23 = vmul.f32 %v1802_v38, %v382_v21  ;;  %v378_v24 = vpop.xlane.xlu0 %377  ;;  %v405_v35 = vmul.f32 %v1802_v38, %v380_v25 }
  0xda   : > { %v404_v27 = vmul.f32 %v1802_v38, %v378_v24 }
  0xdb   : > { %v1870_v32 = vsub.f32 %v1787_v28, %v406_v23  ;;  %v1883_v28 = vsub.f32 %v1790_v29, %v405_v35 }
  0xdc   : > { %v1873_v33 = vsub.f32 %v1793_v30, %v404_v27 }
  0xdd   : > { %v438_v26 = vmul.f32 %v1870_v32, %v1870_v32  ;;  %v437_v40 = vmul.f32 %v1883_v28, %v1883_v28 }
  0xde   : > { %v436_v36 = vmul.f32 %v1873_v33, %v1873_v33 }
  0xdf   : > { %468 = vadd.xlane.f32.xlu0 %v438_v26 }
  0xe0   : > { %460 = vadd.xlane.f32.xlu2 %v434_v34  ;;  %464 = vadd.xlane.f32.xlu1 %v436_v36 }
  0xe1   : > { %v384_v37 = vpop.xlane.xlu0 %383 }
  0xe2   : > { %v407_v30 = vmul.f32 %v1802_v38, %v384_v37 }
  0xe4   : > { %v1887_v39 = vsub.f32 %v1799_v31, %v407_v30 }
  0xe6   : > { %v439_v41 = vmul.f32 %v1887_v39, %v1887_v39 }
  0xe8   : > { %466 = vadd.xlane.f32.xlu2 %v437_v40  ;;  %470 = vadd.xlane.f32.xlu1 %v439_v41 }
 0x132   : > { %v445_v42 = vpop.xlane.xlu0 %444 }
 0x133   : > { %v441_v43 = vpop.xlane.xlu1 %440  ;;  %v474_v46 = vmul.f32 %v445_v42, %v1802_v38 }
 0x134   : > { %v472_v29 = vmul.f32 %v441_v43, %v1802_v38 }
 0x135   : > { %v490_v47 = vadd.f32 1e-05, %v474_v46  ;;  %v1939_v46 = vld [vmem:[%s2237_s1] ss:$0 sm:$0xff] }
 0x136   : > { %v488_v48 = vadd.f32 1e-05, %v472_v29 }
 0x137   : > { %1453 = vrsqrt.f32 %v490_v47  ;;  %vm530_vm3 = vweird.f32 %v490_v47 }
 0x138   : > { %1455 = vrsqrt.f32 %v488_v48  ;;  %vm510_vm4 = vweird.f32 %v488_v48 }
 0x13a   : > { %v451_v31 = vpop.xlane.xlu0 %450 }
 0x13b   : > { %v447_v49 = vpop.xlane.xlu1 %446  ;;  %v443_v50 = vpop.xlane.xlu2 %442  ;;  %v477_v51 = vmul.f32 %v451_v31, %v1802_v38 }
 0x13c   : > { %v475_v52 = vmul.f32 %v447_v49, %v1802_v38  ;;  %v473_v53 = vmul.f32 %v443_v50, %v1802_v38 }
 0x13d   : > { %v1454_v57 = vpop.eup %1453  ;;  %v1898_v58 = vadd.f32 1e-05, %v477_v51 }
 0x13e   : > { %v1456_v59 = vpop.eup %1455  ;;  %v525_v60 = vmul.f32 %v1454_v57, %v490_v47  ;;  %v1900_v61 = vadd.f32 1e-05, %v475_v52  ;;  %v1902_v62 = vadd.f32 1e-05, %v473_v53  ;;  %vm531_vm1 = vweird.f32 %v1454_v57 }
 0x13f   : > { %v505_v63 = vmul.f32 %v1456_v59, %v488_v48  ;;  %1457 = vrsqrt.f32 %v1898_v58  ;;  %vm511_vm2 = vweird.f32 %v1456_v59  ;;  %vm1919_vm5 = vmor %vm530_vm3, %vm531_vm1  ;;  %vm560_vm7 = vweird.f32 %v1898_v58 }
 0x140   : > { %v526_v0 = vmul.f32 %v1454_v57, %v525_v60  ;;  %1459 = vrsqrt.f32 %v1900_v61  ;;  %vm512_vm6 = vmor %vm510_vm4, %vm511_vm2  ;;  %vm540_vm9 = vweird.f32 %v1900_v61  ;;  %vm520_vm11 = vweird.f32 %v1902_v62  ;;  %v1954_v60 = vld [vmem:[%s2238_s2] ss:$0 sm:$0xff] }
 0x141   : > { %v506_v2 = vmul.f32 %v1456_v59, %v505_v63  ;;  %1461 = vrsqrt.f32 %v1902_v62 }
 0x142   : > { %v527_v5 = vmul.f32 0.5, %v526_v0  ;;  %v457_v6 = vpop.xlane.xlu0 %456 }
 0x143   : > { %v507_v7 = vmul.f32 0.5, %v506_v2  ;;  %v449_v8 = vpop.xlane.xlu2 %448  ;;  %v453_v9 = vpop.xlane.xlu1 %452  ;;  %v480_v14 = vmul.f32 %v457_v6, %v1802_v38 }
 0x144   : > { %v528_v11 = vsub.f32 1.5, %v527_v5  ;;  %v476_v12 = vmul.f32 %v449_v8, %v1802_v38  ;;  %v478_v13 = vmul.f32 %v453_v9, %v1802_v38 }
 0x145   : > { %v1910_v17 = vpop.eup %1457  ;;  %v508_v18 = vsub.f32 1.5, %v507_v7  ;;  %v1931_v30 = vadd.f32 1e-05, %v480_v14 }
 0x146   : > { %v1460_v19 = vpop.eup %1459  ;;  %v529_v20 = vmul.f32 %v1454_v57, %v528_v11  ;;  %v555_v21 = vmul.f32 %v1910_v17, %v1898_v58  ;;  %v1914_v23 = vadd.f32 1e-05, %v476_v12  ;;  %v1924_v35 = vadd.f32 1e-05, %v478_v13 }
 0x147   : > { %v1916_v24 = vpop.eup %1461  ;;  %v509_v25 = vmul.f32 %v1456_v59, %v508_v18  ;;  %v535_v34 = vmul.f32 %v1460_v19, %v1900_v61  ;;  %vm561_vm8 = vweird.f32 %v1910_v17  ;;  %vm541_vm10 = vweird.f32 %v1460_v19 }
 0x148   : > { %v533_v26 = vsel %vm1919_vm5, %v1454_v57, %v529_v20  ;;  %v515_v36 = vmul.f32 %v1916_v24, %v1902_v62  ;;  %v556_v37 = vmul.f32 %v1910_v17, %v555_v21  ;;  %1463 = vrsqrt.f32 %v1914_v23  ;;  %vm1962_vm13 = vmor %vm560_vm7, %vm561_vm8 }
 0x149   : > { %v513_v40 = vsel %vm512_vm6, %v1456_v59, %v509_v25  ;;  %v536_v41 = vmul.f32 %v1460_v19, %v535_v34  ;;  %v666_v47 = vmul.f32 %v533_v26, %v1806_v44  ;;  %1465 = vrsqrt.f32 %v1924_v35  ;;  %vm542_vm14 = vmor %vm540_vm9, %vm541_vm10 }
 0x14a   : > { %v516_v42 = vmul.f32 %v1916_v24, %v515_v36  ;;  %v557_v43 = vmul.f32 0.5, %v556_v37  ;;  %v664_v29 = vmul.f32 %v513_v40, %v1808_v45  ;;  %1467 = vrsqrt.f32 %v1931_v30  ;;  %v463_v57 = vpop.xlane.xlu0 %462 }
 0x14b   : > { %v537_v48 = vmul.f32 0.5, %v536_v41  ;;  %v455_v31 = vpop.xlane.xlu2 %454  ;;  %v459_v53 = vpop.xlane.xlu1 %458  ;;  %vm521_vm12 = vweird.f32 %v1916_v24  ;;  %v685_v0 = vmul.f32 %v1939_v46, %v666_v47  ;;  %vm550_vm15 = vweird.f32 %v1914_v23 }
 0x14c   : > { %v517_v49 = vmul.f32 0.5, %v516_v42  ;;  %v558_v50 = vsub.f32 1.5, %v557_v43  ;;  %v479_v52 = vmul.f32 %v455_v31, %v1802_v38  ;;  %v683_v63 = vmul.f32 %v1939_v46, %v664_v29  ;;  %vm522_vm0 = vmor %vm520_vm11, %vm521_vm12 }
 0x14d   : > { %v538_v51 = vsub.f32 1.5, %v537_v48  ;;  %v481_v9 = vmul.f32 %v459_v53, %v1802_v38  ;;  %v483_v12 = vmul.f32 %v463_v57, %v1802_v38  ;;  %v704_v21 = vadd.f32 %v1954_v60, %v685_v0 }
 0x14e   : > { %v518_v45 = vsub.f32 1.5, %v517_v49  ;;  %v559_v44 = vmul.f32 %v1910_v17, %v558_v50  ;;  %v1464_v59 = vpop.eup %1463  ;;  %v1966_v6 = vadd.f32 1e-05, %v479_v52  ;;  %v702_v62 = vadd.f32 %v1954_v60, %v683_v63 }
 0x14f   : > { %v539_v2 = vmul.f32 %v1460_v19, %v538_v51  ;;  %v545_v8 = vmul.f32 %v1464_v59, %v1914_v23  ;;  %v1975_v11 = vpop.eup %1465  ;;  %vm551_vm1 = vweird.f32 %v1464_v59  ;;  %v2002_v40 = vadd.f32 1e-05, %v481_v9 }
 0x150   : > { %v519_v7 = vmul.f32 %v1916_v24, %v518_v45  ;;  %v563_v61 = vsel %vm1962_vm13, %v1910_v17, %v559_v44  ;;  %1469 = vrsqrt.f32 %v1966_v6  ;;  %v1986_v13 = vpop.eup %1467  ;;  %v565_v20 = vmul.f32 %v1975_v11, %v1924_v35  ;;  %vm552_vm3 = vmor %vm550_vm15, %vm551_vm1 }
 0x151   : > { %v543_v58 = vsel %vm542_vm14, %v1460_v19, %v539_v2  ;;  %v546_v19 = vmul.f32 %v1464_v59, %v545_v8  ;;  %v585_v25 = vmul.f32 %v1986_v13, %v1931_v30  ;;  %v669_v36 = vmul.f32 %v563_v61, %v1817_v54 }
 0x152   : > { %v667_v14 = vmul.f32 %v543_v58, %v1819_v55  ;;  %v523_v18 = vsel %vm522_vm0, %v1916_v24, %v519_v7  ;;  %v566_v55 = vmul.f32 %v1975_v11, %v565_v20  ;;  %v2005_v43 = vadd.f32 1e-05, %v483_v12 }
 0x153   : > { %v665_v17 = vmul.f32 %v523_v18, %v1821_v56  ;;  %v461_v27 = vpop.xlane.xlu2 %460  ;;  %v547_v26 = vmul.f32 0.5, %v546_v19  ;;  %v586_v37 = vmul.f32 %v1986_v13, %v585_v25  ;;  %vm571_vm2 = vweird.f32 %v1975_v11  ;;  %v465_v54 = vpop.xlane.xlu1 %464 }
 0x154   : > { %v686_v34 = vmul.f32 %v1939_v46, %v667_v14  ;;  %v567_v42 = vmul.f32 0.5, %v566_v55  ;;  %1471 = vrsqrt.f32 %v2002_v40  ;;  %vm570_vm4 = vweird.f32 %v1924_v35 }
 0x155   : > { %v684_v24 = vmul.f32 %v1939_v46, %v665_v17  ;;  %v548_v41 = vsub.f32 1.5, %v547_v26  ;;  %v587_v48 = vmul.f32 0.5, %v586_v37  ;;  %1473 = vrsqrt.f32 %v2005_v43  ;;  %vm2025_vm5 = vmor %vm570_vm4, %vm571_vm2 }
 0x156   : > { %v705_v56 = vadd.f32 %v1954_v60, %v686_v34  ;;  %v2007_v29 = vpop.eup %1469  ;;  %v568_v50 = vsub.f32 1.5, %v567_v42  ;;  %v688_v45 = vmul.f32 %v1939_v46, %v669_v36  ;;  %vm590_vm6 = vweird.f32 %v1931_v30 }
 0x157   : > { %v703_v47 = vadd.f32 %v1954_v60, %v684_v24  ;;  %v549_v49 = vmul.f32 %v1464_v59, %v548_v41  ;;  %v575_v51 = vmul.f32 %v2007_v29, %v1966_v6  ;;  %v588_v53 = vsub.f32 1.5, %v587_v48 }
 0x158   : > { %v1303_v31 = vpack.c.bf16 %v705_v56, %v704_v21  ;;  %v569_v57 = vmul.f32 %v1975_v11, %v568_v50  ;;  %v482_v35 = vmul.f32 %v461_v27, %v1802_v38  ;;  %vm591_vm7 = vweird.f32 %v1986_v13 }
 0x159   : > { %v1298_v52 = vpack.c.bf16 %v703_v47, %v702_v62  ;;  %v553_v44 = vsel %vm552_vm3, %v1464_v59, %v549_v49  ;;  %v576_v63 = vmul.f32 %v2007_v29, %v575_v51  ;;  %vm580_vm8 = vweird.f32 %v1966_v6  ;;  %vm2054_vm10 = vmor %vm590_vm6, %vm591_vm7 }
 0x15a   : > { %1335 = vst [vmem:[#allocation2] sm:$0xff] %v1303_v31   ;;  %v668_v0 = vmul.f32 %v553_v44, %v1832_v1  ;;  %v573_v59 = vsel %vm2025_vm5, %v1975_v11, %v569_v57  ;;  %v469_v1 = vpop.xlane.xlu0 %468  ;;  %v1472_v5 = vpop.eup %1471  ;;  %v589_v8 = vmul.f32 %v1986_v13, %v588_v53  ;;  %v2038_v9 = vadd.f32 1e-05, %v482_v35 }
 0x15b   : > { %1299 = vst [vmem:[#allocation2 + $0x30] sm:$0xff] %v1298_v52   ;;  %v577_v2 = vmul.f32 0.5, %v576_v63  ;;  %v484_v58 = vmul.f32 %v465_v54, %v1802_v38  ;;  %v467_v61 = vpop.xlane.xlu2 %466  ;;  %v707_v12 = vadd.f32 %v1954_v60, %v688_v45  ;;  %vm581_vm9 = vweird.f32 %v2007_v29  ;;  %v2044_v18 = vpop.eup %1473 }
 0x15c   : > { %v687_v7 = vmul.f32 %v1939_v46, %v668_v0  ;;  %v595_v11 = vmul.f32 %v1472_v5, %v2002_v40  ;;  %v670_v20 = vmul.f32 %v573_v59, %v1837_v4  ;;  %1475 = vrsqrt.f32 %v2038_v9  ;;  %vm582_vm11 = vmor %vm580_vm8, %vm581_vm9  ;;  %v471_v55 = vpop.xlane.xlu1 %470 }
 0x15d   : > { %v578_v14 = vsub.f32 1.5, %v577_v2  ;;  %v486_v62 = vmul.f32 %v469_v1, %v1802_v38  ;;  %v615_v27 = vmul.f32 %v2044_v18, %v2005_v43  ;;  %v485_v4 = vmul.f32 %v467_v61, %v1802_v38 }
 0x15e   : > { %v706_v19 = vadd.f32 %v1954_v60, %v687_v7  ;;  %v596_v25 = vmul.f32 %v1472_v5, %v595_v11  ;;  %v593_v26 = vsel %vm2054_vm10, %v1986_v13, %v589_v8  ;;  %vm600_vm12 = vweird.f32 %v2002_v40 }
 0x15f   : > { %v579_v17 = vmul.f32 %v2007_v29, %v578_v14  ;;  %v2068_v30 = vadd.f32 1e-05, %v484_v58  ;;  %vm601_vm13 = vweird.f32 %v1472_v5  ;;  %v616_v37 = vmul.f32 %v2044_v18, %v615_v27 }
 0x160   : > { %v1308_v34 = vpack.c.bf16 %v707_v12, %v706_v19  ;;  %v597_v36 = vmul.f32 0.5, %v596_v25  ;;  %v689_v56 = vmul.f32 %v1939_v46, %v670_v20  ;;  %v2075_v6 = vadd.f32 1e-05, %v486_v62  ;;  %vm602_vm0 = vmor %vm600_vm12, %vm601_vm13 }
 0x161   : > { %v583_v24 = vsel %vm582_vm11, %v2007_v29, %v579_v17  ;;  %1477 = vrsqrt.f32 %v2068_v30  ;;  %v617_v42 = vmul.f32 0.5, %v616_v37  ;;  %v2077_v47 = vadd.f32 1e-05, %v485_v4 }
 0x162   : > { %1336 = vst [vmem:[#allocation2 + $0x18] sm:$0xff] %v1308_v34   ;;  %v671_v41 = vmul.f32 %v583_v24, %v1847_v10  ;;  %v598_v13 = vsub.f32 1.5, %v597_v36  ;;  %v487_v48 = vmul.f32 %v471_v55, %v1802_v38  ;;  %v1476_v29 = vpop.eup %1475  ;;  %v672_v54 = vmul.f32 %v593_v26, %v1835_v3 }
 0x163   : > { %vm620_vm14 = vweird.f32 %v2005_v43  ;;  %1479 = vrsqrt.f32 %v2075_v6  ;;  %v618_v49 = vsub.f32 1.5, %v617_v42  ;;  %vm621_vm15 = vweird.f32 %v2044_v18 }
 0x164   : > { %v690_v31 = vmul.f32 %v1939_v46, %v671_v41  ;;  %v599_v10 = vmul.f32 %v1472_v5, %v598_v13  ;;  %v605_v50 = vmul.f32 %v1476_v29, %v2038_v9  ;;  %v708_v51 = vadd.f32 %v1954_v60, %v689_v56  ;;  %vm622_vm1 = vmor %vm620_vm14, %vm621_vm15 }
 0x165   : > { %1481 = vrsqrt.f32 %v2077_v47  ;;  %v2092_v38 = vadd.f32 1e-05, %v487_v48  ;;  %v619_v53 = vmul.f32 %v2044_v18, %v618_v49  ;;  %v691_v57 = vmul.f32 %v1939_v46, %v672_v54 }
 0x166   : > { %v709_v52 = vadd.f32 %v1954_v60, %v690_v31  ;;  %v603_v3 = vsel %vm602_vm0, %v1472_v5, %v599_v10  ;;  %v606_v45 = vmul.f32 %v1476_v29, %v605_v50  ;;  %vm611_vm2 = vweird.f32 %v1476_v29 }
 0x167   : > { %v1478_v44 = vpop.eup %1477  ;;  %v673_v0 = vmul.f32 %v603_v3, %v1855_v16  ;;  %1483 = vrsqrt.f32 %v2092_v38  ;;  %v623_v40 = vsel %vm622_vm1, %v2044_v18, %v619_v53  ;;  %v710_v43 = vadd.f32 %v1954_v60, %v691_v57 }
 0x168   : > { %v1313_v63 = vpack.c.bf16 %v709_v52, %v708_v51  ;;  %v607_v23 = vmul.f32 0.5, %v606_v45  ;;  %v625_v35 = vmul.f32 %v1478_v44, %v2068_v30  ;;  %v675_v58 = vmul.f32 %v623_v40, %v1852_v15 }
 0x169   : > { %v1480_v59 = vpop.eup %1479  ;;  %v692_v2 = vmul.f32 %v1939_v46, %v673_v0  ;;  %vm610_vm3 = vweird.f32 %v2038_v9  ;;  %vm630_vm5 = vweird.f32 %v2068_v30  ;;  %vm631_vm6 = vweird.f32 %v1478_v44 }
 0x16a   : > { %1337 = vst [vmem:[#allocation2 + $0x10] sm:$0xff] %v1313_v63   ;;  %v608_v1 = vsub.f32 1.5, %v607_v23  ;;  %v626_v5 = vmul.f32 %v1478_v44, %v625_v35  ;;  %v645_v7 = vmul.f32 %v1480_v59, %v2075_v6  ;;  %vm612_vm4 = vmor %vm610_vm3, %vm611_vm2  ;;  %v694_v15 = vmul.f32 %v1939_v46, %v675_v58 }
 0x16b   : > { %v1482_v16 = vpop.eup %1481  ;;  %v711_v8 = vadd.f32 %v1954_v60, %v692_v2  ;;  %vm650_vm7 = vweird.f32 %v2075_v6  ;;  %vm651_vm8 = vweird.f32 %v1480_v59  ;;  %vm632_vm9 = vmor %vm630_vm5, %vm631_vm6  ;;  %vm640_vm12 = vweird.f32 %v2077_v47 }
 0x16c   : > { %v609_v61 = vmul.f32 %v1476_v29, %v608_v1  ;;  %v627_v12 = vmul.f32 0.5, %v626_v5  ;;  %v646_v14 = vmul.f32 %v1480_v59, %v645_v7  ;;  %v635_v11 = vmul.f32 %v1482_v16, %v2077_v47  ;;  %vm652_vm11 = vmor %vm650_vm7, %vm651_vm8 }
 0x16d   : > { %v1484_v18 = vpop.eup %1483  ;;  %v1318_v19 = vpack.c.bf16 %v711_v8, %v710_v43  ;;  %vm641_vm10 = vweird.f32 %v1482_v16  ;;  %vm660_vm15 = vweird.f32 %v2092_v38 }
 0x16e   : > { %v613_v20 = vsel %vm612_vm4, %v1476_v29, %v609_v61  ;;  %v628_v62 = vsub.f32 1.5, %v627_v12  ;;  %v647_v21 = vmul.f32 0.5, %v646_v14  ;;  %v636_v17 = vmul.f32 %v1482_v16, %v635_v11  ;;  %vm642_vm13 = vmor %vm640_vm12, %vm641_vm10 }
 0x16f   : > { %1338 = vst [vmem:[#allocation2 + $0x8] sm:$0xff] %v1318_v19   ;;  %v674_v9 = vmul.f32 %v613_v20, %v1865_v22  ;;  %v655_v25 = vmul.f32 %v1484_v18, %v2092_v38  ;;  %v713_v22 = vadd.f32 %v1954_v60, %v694_v15  ;;  %vm661_vm14 = vweird.f32 %v1484_v18 }
 0x170   : > { %v629_v27 = vmul.f32 %v1478_v44, %v628_v62  ;;  %v648_v4 = vsub.f32 1.5, %v647_v21  ;;  %v637_v34 = vmul.f32 0.5, %v636_v17  ;;  %vm662_vm0 = vmor %vm660_vm15, %vm661_vm14 }
 0x171   : > { %v693_v26 = vmul.f32 %v1939_v46, %v674_v9  ;;  %v656_v55 = vmul.f32 %v1484_v18, %v655_v25 }
 0x172   : > { %v633_v24 = vsel %vm632_vm9, %v1478_v44, %v629_v27  ;;  %v649_v36 = vmul.f32 %v1480_v59, %v648_v4  ;;  %v638_v37 = vsub.f32 1.5, %v637_v34 }
 0x173   : > { %v712_v56 = vadd.f32 %v1954_v60, %v693_v26  ;;  %v676_v41 = vmul.f32 %v633_v24, %v1873_v33  ;;  %v657_v13 = vmul.f32 0.5, %v656_v55 }
 0x174   : > { %v653_v42 = vsel %vm652_vm11, %v1480_v59, %v649_v36  ;;  %v639_v48 = vmul.f32 %v1482_v16, %v638_v37 }
 0x175   : > { %v1323_v30 = vpack.c.bf16 %v713_v22, %v712_v56  ;;  %v658_v29 = vsub.f32 1.5, %v657_v13  ;;  %v678_v54 = vmul.f32 %v653_v42, %v1870_v32  ;;  %v695_v10 = vmul.f32 %v1939_v46, %v676_v41 }
 0x176   : > { %v643_v31 = vsel %vm642_vm13, %v1482_v16, %v639_v48 }
 0x177   : > { %1339 = vst [vmem:[#allocation2 + $0x20] sm:$0xff] %v1323_v30   ;;  %v677_v33 = vmul.f32 %v643_v31, %v1883_v28  ;;  %v659_v49 = vmul.f32 %v1484_v18, %v658_v29  ;;  %v697_v47 = vmul.f32 %v1939_v46, %v678_v54  ;;  %v714_v52 = vadd.f32 %v1954_v60, %v695_v10 }
 0x179   : > { %v696_v6 = vmul.f32 %v1939_v46, %v677_v33  ;;  %v663_v50 = vsel %vm662_vm0, %v1484_v18, %v659_v49  ;;  %v716_v28 = vadd.f32 %v1954_v60, %v697_v47 }
 0x17a   : > { %v679_v51 = vmul.f32 %v663_v50, %v1887_v39 }
 0x17b   : > { %v715_v32 = vadd.f32 %v1954_v60, %v696_v6 }
 0x17c   : > { %v698_v3 = vmul.f32 %v1939_v46, %v679_v51 }
 0x17d   : > { %v1328_v53 = vpack.c.bf16 %v715_v32, %v714_v52 }
 0x17e   : > { %v717_v45 = vadd.f32 %v1954_v60, %v698_v3 }
 0x17f   : > { %1340 = vst [vmem:[#allocation2 + $0x28] sm:$0xff] %v1328_v53  }
 0x180   : > { %v1333_v38 = vpack.c.bf16 %v717_v45, %v716_v28 }
 0x182   : > { %1341 = vst [vmem:[#allocation2 + $0x38] sm:$0xff] %v1333_v38  }
 0x183 PF: > { %v1256_v39 = vld [vmem:[%s1754_s5 + $0x70] sm:$0xf]  ;;  %v1293_v46 = vld [vmem:[%s1754_s5 + $0x74] sm:$0xf0]  ;;  %v1292_v44 = vld [vmem:[%s1754_s5 + $0x74] sm:$0xf] }
 0x184   : > { %v1257_v57 = vor.u32 %v1293_v46, %v1256_v39  ;;  %v1258_v60 = vld [vmem:[%s1754_s5 + $0x78] sm:$0xf0]  ;;  %v1248_v63 = vld [vmem:[%s1754_s5 + $0x60] sm:$0xf]  ;;  %v1291_v0 = vld [vmem:[%s1754_s5 + $0x64] sm:$0xf0] }
 0x185   : > { %v1261_v40 = vor.u32 %v1292_v44, %v1258_v60  ;;  %v1290_v23 = vld [vmem:[%s1754_s5 + $0x64] sm:$0xf]  ;;  %v1250_v35 = vld [vmem:[%s1754_s5 + $0x68] sm:$0xf0]  ;;  %v1249_v59 = vor.u32 %v1291_v0, %v1248_v63  ;;  %v1240_v1 = vld [vmem:[%s1754_s5 + $0x50] sm:$0xf] }
 0x186   : > { %910 = vmatpush.bf16.msra.mxu0 %v1257_v57  ;;  %1342 = vmatpush.bf16.msra.mxu2 %v1257_v57  ;;  %v1253_v2 = vor.u32 %v1290_v23, %v1250_v35  ;;  %v1289_v5 = vld [vmem:[%s1754_s5 + $0x54] sm:$0xf0]  ;;  %v1288_v7 = vld [vmem:[%s1754_s5 + $0x54] sm:$0xf]  ;;  %v1242_v16 = vld [vmem:[%s1754_s5 + $0x58] sm:$0xf0] }
 0x187   : > { %959 = vmatpush.bf16.msra.mxu1 %v1261_v40  ;;  %1350 = vmatpush.bf16.msra.mxu3 %v1261_v40  ;;  %v1241_v43 = vor.u32 %v1289_v5, %v1240_v1  ;;  %v1245_v8 = vor.u32 %v1288_v7, %v1242_v16  ;;  %v1232_v58 = vld [vmem:[%s1754_s5 + $0x40] sm:$0xf]  ;;  %v1287_v61 = vld [vmem:[%s1754_s5 + $0x44] sm:$0xf0]  ;;  %v1286_v12 = vld [vmem:[%s1754_s5 + $0x44] sm:$0xf] }
 0x188   : > { %v1234_v14 = vld [vmem:[%s1754_s5 + $0x48] sm:$0xf0]  ;;  %v1233_v11 = vor.u32 %v1287_v61, %v1232_v58  ;;  %v1224_v19 = vld [vmem:[%s1754_s5 + $0x30] sm:$0xf]  ;;  %v1285_v20 = vld [vmem:[%s1754_s5 + $0x34] sm:$0xf0] }
 0x189   : > { %v1237_v18 = vor.u32 %v1286_v12, %v1234_v14  ;;  %v1284_v62 = vld [vmem:[%s1754_s5 + $0x34] sm:$0xf]  ;;  %v1226_v21 = vld [vmem:[%s1754_s5 + $0x38] sm:$0xf0]  ;;  %v1225_v17 = vor.u32 %v1285_v20, %v1224_v19  ;;  %v1216_v9 = vld [vmem:[%s1754_s5 + $0x20] sm:$0xf] }
 0x18a   : > { %911 = vmatpush.bf16.msra.mxu0 %v1249_v59  ;;  %1343 = vmatpush.bf16.msra.mxu2 %v1249_v59  ;;  %v1229_v15 = vor.u32 %v1284_v62, %v1226_v21  ;;  %v1283_v25 = vld [vmem:[%s1754_s5 + $0x24] sm:$0xf0]  ;;  %v1282_v27 = vld [vmem:[%s1754_s5 + $0x24] sm:$0xf]  ;;  %v1218_v4 = vld [vmem:[%s1754_s5 + $0x28] sm:$0xf0] }
 0x18b   : > { %960 = vmatpush.bf16.msra.mxu1 %v1253_v2  ;;  %1351 = vmatpush.bf16.msra.mxu3 %v1253_v2  ;;  %v1217_v34 = vor.u32 %v1283_v25, %v1216_v9  ;;  %v1221_v26 = vor.u32 %v1282_v27, %v1218_v4  ;;  %v1208_v55 = vld [vmem:[%s1754_s5 + $0x10] sm:$0xf]  ;;  %v1281_v24 = vld [vmem:[%s1754_s5 + $0x14] sm:$0xf0]  ;;  %v1280_v36 = vld [vmem:[%s1754_s5 + $0x14] sm:$0xf] }
 0x18c   : > { %v1210_v37 = vld [vmem:[%s1754_s5 + $0x18] sm:$0xf0]  ;;  %v1209_v22 = vor.u32 %v1281_v24, %v1208_v55  ;;  %v1200_v41 = vld [vmem:[%s1754_s5] sm:$0xf]  ;;  %v1279_v13 = vld [vmem:[%s1754_s5 + $0x4] sm:$0xf0] }
 0x18d   : > { %v1213_v56 = vor.u32 %v1280_v36, %v1210_v37  ;;  %v1278_v42 = vld [vmem:[%s1754_s5 + $0x4] sm:$0xf]  ;;  %v1202_v48 = vld [vmem:[%s1754_s5 + $0x8] sm:$0xf0]  ;;  %v1201_v30 = vor.u32 %v1279_v13, %v1200_v41  ;;  %v1270_v54 = vld [vmem:[#allocation2 + $0x30] sm:$0xff]  ;;  %s1264_s14 = sshll.u32 %s1579_s20, 1 }
 0x18e   : > { %912 = vmatpush.bf16.msra.mxu0 %v1241_v43  ;;  %1344 = vmatpush.bf16.msra.mxu2 %v1241_v43  ;;  %v1205_v29 = vor.u32 %v1278_v42, %v1202_v48  ;;  %v1274_v31 = vld [vmem:[#allocation2 + $0x8] sm:$0xff]  ;;  %v1271_v10 = vld [vmem:[#allocation2] sm:$0xff]  ;;  %v1272_v49 = vld [vmem:[#allocation2 + $0x18] sm:$0xff]  ;;  %s1294_s25 = sshll.u32 %s1583_s21, 6  ;;  %s1056_s21 = sshll.u32 %s1756_s3, 4  ;;  %s1057_s21 = int_to_ptr.vmem [resolvable:$true] %s1056_s21 }
 0x18f   : > { %961 = vmatpush.bf16.msra.mxu1 %v1245_v8  ;;  %1352 = vmatpush.bf16.msra.mxu3 %v1245_v8  ;;  %v1275_v33 = vld [vmem:[#allocation2 + $0x20] sm:$0xff]  ;;  %v1276_v6 = vld [vmem:[#allocation2 + $0x28] sm:$0xff]  ;;  %v1273_v50 = vld [vmem:[#allocation2 + $0x10] sm:$0xff]  ;;  %s1053_s29 = sadd.s32 %s1294_s25, %s1264_s14  ;;  %s1041_s6 = scalar_lea.sflag [#allocation5], %s319_s8 }
 0x190   : > { %v1277_v47 = vld [vmem:[#allocation2 + $0x38] sm:$0xff]  ;;  %s1266_s30 = sshll.u32 %s1053_s29, 2  ;;  %s1505_s29 = scalar_lea.hbm %s2240_s4, 512 }
 0x191   : > { %s1055_s20 = scalar_lea.hbm %s2240_s4, %s1266_s30 }
 0x192   : > { %913 = vmatpush.bf16.msra.mxu0 %v1233_v11  ;;  %1345 = vmatpush.bf16.msra.mxu2 %v1233_v11  ;;  %s1058_s18 = sshll.u32 %s1055_s20, 4  ;;  %s1059_s18 = int_to_ptr.hbm [resolvable:$true] %s1058_s18 }
 0x193   : > { %962 = vmatpush.bf16.msra.mxu1 %v1237_v18  ;;  %1353 = vmatpush.bf16.msra.mxu3 %v1237_v18  ;;  %s1499_s9 = sshra.s32 %s1059_s18, 4  ;;  %s1500_s9 = int_to_ptr.hbm [resolvable:$true] %s1499_s9 }
 0x194   : > { %s1501_s13 = scalar_lea.hbm %s1500_s9, 128  ;;  %p1506_p8 = scmp.lt.s32.totalorder %s1500_s9, %s2240_s4 }
 0x195   : > { %p1502_p5 = scmp.ne.s32.totalorder %s1500_s9, %s1501_s13  ;;  %p1507_p9 = scmp.lt.s32.totalorder %s1505_s29, %s1501_s13 }
 0x196   : > { %914 = vmatpush.bf16.msra.mxu0 %v1225_v17  ;;  %1346 = vmatpush.bf16.msra.mxu2 %v1225_v17 }
 0x197   : > { %963 = vmatpush.bf16.msra.mxu1 %v1229_v15  ;;  %1354 = vmatpush.bf16.msra.mxu3 %v1229_v15  ;;  %p1503_p6 = pnand %p1502_p5, %p1705_p10  ;;  %p1508_p11 = por %p1507_p9, %p1506_p8 }
 0x199   : > { %p1504_p7 = pneg %p1503_p6 }
 0x19a   : > { %915 = vmatpush.bf16.msra.mxu0 %v1217_v34  ;;  %1347 = vmatpush.bf16.msra.mxu2 %v1217_v34 }
 0x19b   : > { %964 = vmatpush.bf16.msra.mxu1 %v1221_v26  ;;  %1355 = vmatpush.bf16.msra.mxu3 %v1221_v26  ;;  %p1509_p13 = pnand %p1508_p11, %p1504_p7 }
 0x19e   : > { %916 = vmatpush.bf16.msra.mxu0 %v1209_v22  ;;  %1348 = vmatpush.bf16.msra.mxu2 %v1209_v22 }
 0x19f   : > { %965 = vmatpush.bf16.msra.mxu1 %v1213_v56  ;;  %1356 = vmatpush.bf16.msra.mxu3 %v1213_v56 }
 0x1a2   : > { %917 = vmatpush.bf16.msra.mxu0 %v1201_v30  ;;  %1349 = vmatpush.bf16.msra.mxu2 %v1201_v30 }
 0x1a3   : > { %966 = vmatpush.bf16.msra.mxu1 %v1205_v29  ;;  %1357 = vmatpush.bf16.msra.mxu3 %v1205_v29 }
 0x1a5   : > { %918 = vmatmul.bf16.vlgmr.msra.gmra.mxu0 %v1270_v54  ;;  %938 = vmatmul.bf16.vlgmr.msra.gmra.mxu2 %v1274_v31 }
 0x1a6   : > { %967 = vmatmul.bf16.vlgmr.msra.gmra.mxu1 %v1270_v54  ;;  %987 = vmatmul.bf16.vlgmr.msra.gmra.mxu3 %v1274_v31 }
 0x1b5   : > { %923 = vmatmul.bf16.gmra.mxu0 %v1271_v10  ;;  %943 = vmatmul.bf16.gmra.mxu2 %v1275_v33 }
 0x1b6   : > { %972 = vmatmul.bf16.gmra.mxu1 %v1271_v10  ;;  %992 = vmatmul.bf16.gmra.mxu3 %v1275_v33 }
 0x1c5   : > { %928 = vmatmul.bf16.gmra.mxu0 %v1272_v49  ;;  %948 = vmatmul.bf16.gmra.mxu2 %v1276_v6 }
 0x1c6   : > { %977 = vmatmul.bf16.gmra.mxu1 %v1272_v49  ;;  %997 = vmatmul.bf16.gmra.mxu3 %v1276_v6 }
 0x1d5   : > { %933 = vmatmul.bf16.gmra.mxu0 %v1273_v50  ;;  %953 = vmatmul.bf16.gmra.mxu2 %v1277_v47 }
 0x1d6   : > { %982 = vmatmul.bf16.gmra.mxu1 %v1273_v50  ;;  %1002 = vmatmul.bf16.gmra.mxu3 %v1277_v47 }
 0x222   : > { %v919_v51 = vpop.f32.mrf.mxu0 }
 0x223   : > { %v968_v52 = vpop.f32.mrf.mxu1 }
 0x224   : > { %v1008_v32 = vpack.c.bf16 %v968_v52, %v919_v51 }
 0x226   : > { %1024 = vst [vmem:[%s1756_s3] sm:$0xff] %v1008_v32 }
 0x228   : > { %v939_v3 = vpop.f32.mrf.mxu2 }
 0x229   : > { %v988_v53 = vpop.f32.mrf.mxu3 }
 0x22a   : > { %v1016_v28 = vpack.c.bf16 %v988_v53, %v939_v3  ;;  %v921_v45 = vpop.f32.mrf.mxu0 }
 0x22b   : > { %v970_v38 = vpop.f32.mrf.mxu1 }
 0x22c   : > { %1032 = vst [vmem:[%s1756_s3 + $0x40] sm:$0xff] %v1016_v28  ;;  %v1009_v39 = vpack.c.bf16 %v970_v38, %v921_v45 }
 0x22e   : > { %1025 = vst [vmem:[%s1756_s3 + $0x8] sm:$0xff] %v1009_v39 }
 0x230   : > { %v941_v46 = vpop.f32.mrf.mxu2 }
 0x231   : > { %v990_v44 = vpop.f32.mrf.mxu3 }
 0x232   : > { %v1017_v57 = vpack.c.bf16 %v990_v44, %v941_v46  ;;  %v924_v60 = vpop.f32.mrf.mxu0 }
 0x233   : > { %v973_v63 = vpop.f32.mrf.mxu1 }
 0x234   : > { %1033 = vst [vmem:[%s1756_s3 + $0x48] sm:$0xff] %v1017_v57  ;;  %v1010_v0 = vpack.c.bf16 %v973_v63, %v924_v60 }
 0x236   : > { %1026 = vst [vmem:[%s1756_s3 + $0x10] sm:$0xff] %v1010_v0 }
 0x238   : > { %v944_v40 = vpop.f32.mrf.mxu2 }
 0x239   : > { %v993_v23 = vpop.f32.mrf.mxu3 }
 0x23a   : > { %v1018_v35 = vpack.c.bf16 %v993_v23, %v944_v40  ;;  %v926_v59 = vpop.f32.mrf.mxu0 }
 0x23b   : > { %v975_v2 = vpop.f32.mrf.mxu1 }
 0x23c   : > { %1034 = vst [vmem:[%s1756_s3 + $0x50] sm:$0xff] %v1018_v35  ;;  %v1011_v1 = vpack.c.bf16 %v975_v2, %v926_v59 }
 0x23e   : > { %1027 = vst [vmem:[%s1756_s3 + $0x18] sm:$0xff] %v1011_v1 }
 0x240   : > { %v946_v5 = vpop.f32.mrf.mxu2 }
 0x241   : > { %v995_v7 = vpop.f32.mrf.mxu3 }
 0x242   : > { %v1019_v16 = vpack.c.bf16 %v995_v7, %v946_v5  ;;  %v929_v43 = vpop.f32.mrf.mxu0 }
 0x243   : > { %v978_v8 = vpop.f32.mrf.mxu1 }
 0x244   : > { %1035 = vst [vmem:[%s1756_s3 + $0x58] sm:$0xff] %v1019_v16  ;;  %v1012_v58 = vpack.c.bf16 %v978_v8, %v929_v43 }
 0x246   : > { %1028 = vst [vmem:[%s1756_s3 + $0x20] sm:$0xff] %v1012_v58 }
 0x248   : > { %v949_v61 = vpop.f32.mrf.mxu2 }
 0x249   : > { %v998_v12 = vpop.f32.mrf.mxu3 }
 0x24a   : > { %v1020_v14 = vpack.c.bf16 %v998_v12, %v949_v61  ;;  %v931_v11 = vpop.f32.mrf.mxu0 }
 0x24b   : > { %v980_v18 = vpop.f32.mrf.mxu1 }
 0x24c   : > { %1036 = vst [vmem:[%s1756_s3 + $0x60] sm:$0xff] %v1020_v14  ;;  %v1013_v19 = vpack.c.bf16 %v980_v18, %v931_v11 }
 0x24e   : > { %1029 = vst [vmem:[%s1756_s3 + $0x28] sm:$0xff] %v1013_v19 }
 0x250   : > { %v951_v20 = vpop.f32.mrf.mxu2 }
 0x251   : > { %v1000_v62 = vpop.f32.mrf.mxu3 }
 0x252   : > { %v1021_v21 = vpack.c.bf16 %v1000_v62, %v951_v20  ;;  %v934_v17 = vpop.f32.mrf.mxu0 }
 0x253   : > { %v983_v15 = vpop.f32.mrf.mxu1 }
 0x254   : > { %1037 = vst [vmem:[%s1756_s3 + $0x68] sm:$0xff] %v1021_v21  ;;  %v1014_v9 = vpack.c.bf16 %v983_v15, %v934_v17 }
 0x256   : > { %1030 = vst [vmem:[%s1756_s3 + $0x30] sm:$0xff] %v1014_v9 }
 0x258   : > { %v954_v25 = vpop.f32.mrf.mxu2 }
 0x259   : > { %v1003_v27 = vpop.f32.mrf.mxu3 }
 0x25a   : > { %v1022_v4 = vpack.c.bf16 %v1003_v27, %v954_v25  ;;  %v936_v34 = vpop.f32.mrf.mxu0 }
 0x25b   : > { %v985_v26 = vpop.f32.mrf.mxu1 }
 0x25c   : > { %1038 = vst [vmem:[%s1756_s3 + $0x70] sm:$0xff] %v1022_v4  ;;  %v1015_v55 = vpack.c.bf16 %v985_v26, %v936_v34 }
 0x25e   : > { %1031 = vst [vmem:[%s1756_s3 + $0x38] sm:$0xff] %v1015_v55 }
 0x260   : > { %v956_v24 = vpop.f32.mrf.mxu2 }
 0x261   : > { %v1005_v36 = vpop.f32.mrf.mxu3 }
 0x262   : > { %v1023_v37 = vpack.c.bf16 %v1005_v36, %v956_v24 }
 0x264   : > { %1039 = vst [vmem:[%s1756_s3 + $0x78] sm:$0xff] %v1023_v37 }
 0x265   : > { %1512 = shalt.err (!%p1509_p13)
}
 0x266   : > { %s1598_s3 = smov 128   ;;  %s1599_s8 = smov 256  }
 0x267   : > { %s1600_s5 = smov 8  }
 0x268   : > { %1358 = dma.vmem_to_hbm [thread:$0]  (%p1705_p10), %s1057_s21, 2048, %s1059_s18, %s1041_s6, %s1598_s3, %s1599_s8, %s1600_s5  }
 0x269 PF: > { %p1364_p0 = scmp.ge.s32.totalorder %s1595_s24, 2  ;;  %s1073_s20 = sand.u32 1, %s1559_s15  }
 0x26a   : > { %s1074_s9 = scalar_lea.sflag [#allocation5], %s1073_s20 }
 0x26b   : > { %p1361_p1 = pnand %p1364_p0, %p1712_p12 }
 0x26d   : > { %p1362_p2 = pneg %p1361_p1 }
 0x26f   : > { %1554 = dma.done.wait (%p1362_p2), %s1074_s9, 2048  }
 0x270   : > { %1556 = vsyncadd (%p1362_p2), %s1074_s9, 4294965248  ;;  %s17_s24 = sadd.s32 1, %s1595_s24   ;;  %s2254_s15 = smov %s1563_s16 }
 0x271   : > { %p14_p3 = scmp.ge.s32.totalorder %s17_s24, 6   ;;  %s2255_s16 = smov %s1567_s17 }
 0x272   : > { %s2256_s17 = smov %s1710_s11  ;;  %s2257_s18 = smov %s1575_s19 }
 0x273   : > { %s2258_s19 = smov %s1699_s7  ;;  %s2259_s20 = smov %s1587_s22 }
 0x274   : > { %s2260_s21 = smov %s1591_s23  ;;  %s2261_s22 = smov %s2264_s27 }
 0x275   : > { %s2262_s23 = smov %s2268_s28  ;;  %16 = sbr.rel (!%p14_p3) target bundleno = 8 (0x8), region = 121 }
 0x27a   :  { %1080 = vsyncpa [#allocation5], 1 }
 0x27b   :  { %1082 = vsyncpa [#allocation5 + $0x1], 1 }

// kernel: _lambda_.9
= control target key start
LH: loop header
LB: loop body
LE: loop exit
PB: predicated region body
PF: predicated region fallthrough
CT: control target
= control target key end

     0   :  { %s3213_s13 = smov 0   ;;  %s4779_s0 = inlined_call_operand.vmem [shape: f32[256,128], index: 0, kind: input, shape index: {}, may-alias: {0,10}]   ;;  %s4780_s1 = inlined_call_operand.vmem [shape: bf16[256,128], index: 1, kind: input, shape index: {}]   ;;  %s4781_s2 = inlined_call_operand.vmem [shape: bf16[128,128], index: 2, kind: input, shape index: {}]   ;;  %s4782_s3 = inlined_call_operand.vmem [shape: f32[1,128], index: 3, kind: input, shape index: {}]   ;;  %s4783_s4 = inlined_call_operand.vmem [shape: f32[1,128], index: 4, kind: input, shape index: {}]   ;;  %s4784_s5 = inlined_call_operand.vmem [shape: f32[1,128], index: 5, kind: input, shape index: {}]   ;;  %s4785_s6 = inlined_call_operand.vmem [shape: bf16[128,512], index: 6, kind: input, shape index: {}]   ;;  %s4786_s7 = inlined_call_operand.vmem [shape: f32[1,512], index: 7, kind: input, shape index: {}]   ;;  %s4787_s8 = inlined_call_operand.vmem [shape: bf16[512,128], index: 8, kind: input, shape index: {}]   ;;  %s4788_s9 = inlined_call_operand.vmem [shape: f32[1,128], index: 9, kind: input, shape index: {}]   ;;  %s4789_s10 = inlined_call_operand.vmem [shape: f32[256,128], index: 10, kind: output, shape index: {}, may-alias: {0,10}]  }
   0x1 LB: > { %s2535_s14 = sadd.s32 4294967295, %s3155_s13   ;;  %p2539_p0 = scmp.ge.s32.totalorder %s3155_s13, 1  ;;  %s3155_s13 = sphi %s3213_s13, %s20_s13  }
   0x2   : > { %p324_p1 = scmp.lt.s32.totalorder %s3155_s13, 3 }
   0x4   : > { %p325_p2 = pnand %p2539_p0, %p324_p1 }
   0x6   : > { %328 = sbr.rel (%p325_p2) target bundleno = 1023 (0x3ff), region = 60 }
   0xb   : > { %v2883_v0 = vld [vmem:[%s4781_s2 + $0x38] sm:$0xff]  ;;  %v2882_v1 = vld [vmem:[%s4781_s2 + $0x30] sm:$0xff]  ;;  %v2881_v2 = vld [vmem:[%s4781_s2 + $0x28] sm:$0xff]  ;;  %s2540_s23 = sshll.u32 %s2535_s14, 4  ;;  %v3157_v45 = vmov 128.0  }
   0xc   : > { %533 = vmatpush.bf16.msra.mxu0 %v2883_v0  ;;  %2948 = vmatpush.bf16.msra.mxu1 %v2883_v0  ;;  %v2880_v3 = vld [vmem:[%s4781_s2 + $0x20] sm:$0xff]  ;;  %v2879_v4 = vld [vmem:[%s4781_s2 + $0x18] sm:$0xff]  ;;  %p368_p3 = scmp.lt.s32.totalorder %s2540_s23, 31  ;;  %v2878_v5 = vld [vmem:[%s4781_s2 + $0x10] sm:$0xff]  ;;  %2985 = vrcp.f32 %v3157_v45 }
   0xd   : > { %2949 = vmatpush.bf16.msra.mxu2 %v2883_v0  ;;  %2950 = vmatpush.bf16.msra.mxu3 %v2883_v0  ;;  %v2877_v6 = vld [vmem:[%s4781_s2 + $0x8] sm:$0xff]  ;;  %v2876_v7 = vld [vmem:[%s4781_s2] sm:$0xff] }
   0xe   : > { %s4844_s23 = smov (!%p368_p3, %s2540_s23), 31  ;;  %v3271_v15 = vld [vmem:[%s4782_s3] ss:$0 sm:$0xff] }
   0xf   : > { %s2543_s30 = sshll.u32 %s4844_s23, 2  ;;  %s2541_s17 = sshll.u32 %s4844_s23, 3 }
  0x10   : > { %534 = vmatpush.bf16.msra.mxu0 %v2882_v1  ;;  %2951 = vmatpush.bf16.msra.mxu1 %v2882_v1  ;;  %s3251_s16 = scalar_lea.vmem %s4780_s1, %s2543_s30  ;;  %s3266_s20 = scalar_lea.vmem %s4779_s0, %s2541_s17 }
  0x11   : > { %2952 = vmatpush.bf16.msra.mxu2 %v2882_v1  ;;  %2953 = vmatpush.bf16.msra.mxu3 %v2882_v1  ;;  %v2868_v8 = vld [vmem:[%s3251_s16] sm:$0xff]  ;;  %v2870_v9 = vld [vmem:[%s3251_s16 + $0x10] sm:$0xff]  ;;  %v2869_v11 = vld [vmem:[%s3251_s16 + $0x8] sm:$0xff]  ;;  %s4720_s14 = scalar_lea.vmem %s4789_s10, %s2541_s17 }
  0x12   : > { %v2872_v10 = vld [vmem:[%s3251_s16 + $0x20] sm:$0xff]  ;;  %v2871_v12 = vld [vmem:[%s3251_s16 + $0x18] sm:$0xff]  ;;  %v2873_v13 = vld [vmem:[%s3251_s16 + $0x28] sm:$0xff]  ;;  %v2986_v46 = vpop.eup %2985 }
  0x13   : > { %v2874_v14 = vld [vmem:[%s3251_s16 + $0x30] sm:$0xff]  ;;  %v385_v16 = vld [vmem:[%s3266_s20] sm:$0xff]  ;;  %v2875_v24 = vld [vmem:[%s3251_s16 + $0x38] sm:$0xff]  ;;  %v633_v47 = vmul.f32 128.0, %v2986_v46  ;;  %vm637_vm0 = vweird.f32 %v2986_v46 }
  0x14   : > { %535 = vmatpush.bf16.msra.mxu0 %v2881_v2  ;;  %2954 = vmatpush.bf16.msra.mxu1 %v2881_v2  ;;  %v389_v18 = vld [vmem:[%s3266_s20 + $0x20] sm:$0xff]  ;;  %v386_v25 = vld [vmem:[%s3266_s20 + $0x8] sm:$0xff]  ;;  %v387_v33 = vld [vmem:[%s3266_s20 + $0x10] sm:$0xff] }
  0x15   : > { %2955 = vmatpush.bf16.msra.mxu2 %v2881_v2  ;;  %2956 = vmatpush.bf16.msra.mxu3 %v2881_v2  ;;  %v390_v27 = vld [vmem:[%s3266_s20 + $0x28] sm:$0xff]  ;;  %v391_v35 = vld [vmem:[%s3266_s20 + $0x30] sm:$0xff]  ;;  %v388_v41 = vld [vmem:[%s3266_s20 + $0x18] sm:$0xff]  ;;  %v634_v48 = vsub.f32 1.0, %v633_v47 }
  0x16   : > { %v392_v62 = vld [vmem:[%s3266_s20 + $0x38] sm:$0xff] }
  0x17   : > { %v635_v49 = vmul.f32 %v2986_v46, %v634_v48  ;;  %v396_v45 = vld [vmem:[%s3266_s20 + $0x58] sm:$0xff] }
  0x18   : > { %536 = vmatpush.bf16.msra.mxu0 %v2880_v3  ;;  %2957 = vmatpush.bf16.msra.mxu1 %v2880_v3 }
  0x19   : > { %2958 = vmatpush.bf16.msra.mxu2 %v2880_v3  ;;  %2959 = vmatpush.bf16.msra.mxu3 %v2880_v3  ;;  %v636_v50 = vadd.f32 %v2986_v46, %v635_v49 }
  0x1b   : > { %v3309_v51 = vsel %vm637_vm0, %v2986_v46, %v636_v50  ;;  %v398_v46 = vld [vmem:[%s3266_s20 + $0x68] sm:$0xff] }
  0x1c   : > { %537 = vmatpush.bf16.msra.mxu0 %v2879_v4  ;;  %2960 = vmatpush.bf16.msra.mxu1 %v2879_v4 }
  0x1d   : > { %2961 = vmatpush.bf16.msra.mxu2 %v2879_v4  ;;  %2962 = vmatpush.bf16.msra.mxu3 %v2879_v4  ;;  %v393_v4 = vld [vmem:[%s3266_s20 + $0x40] sm:$0xff] }
  0x20   : > { %538 = vmatpush.bf16.msra.mxu0 %v2878_v5  ;;  %2963 = vmatpush.bf16.msra.mxu1 %v2878_v5 }
  0x21   : > { %2964 = vmatpush.bf16.msra.mxu2 %v2878_v5  ;;  %2965 = vmatpush.bf16.msra.mxu3 %v2878_v5 }
  0x24   : > { %539 = vmatpush.bf16.msra.mxu0 %v2877_v6  ;;  %2966 = vmatpush.bf16.msra.mxu1 %v2877_v6 }
  0x25   : > { %2967 = vmatpush.bf16.msra.mxu2 %v2877_v6  ;;  %2968 = vmatpush.bf16.msra.mxu3 %v2877_v6 }
  0x28   : > { %540 = vmatpush.bf16.msra.mxu0 %v2876_v7  ;;  %2969 = vmatpush.bf16.msra.mxu1 %v2876_v7 }
  0x29   : > { %2970 = vmatpush.bf16.msra.mxu2 %v2876_v7  ;;  %2971 = vmatpush.bf16.msra.mxu3 %v2876_v7 }
  0x2b   : > { %541 = vmatmul.bf16.vlgmr.msra.gmra.mxu0 %v2868_v8  ;;  %551 = vmatmul.bf16.vlgmr.msra.gmra.mxu1 %v2870_v9 }
  0x2c   : > { %561 = vmatmul.bf16.vlgmr.msra.gmra.mxu2 %v2872_v10  ;;  %571 = vmatmul.bf16.vlgmr.msra.gmra.mxu3 %v2874_v14 }
  0x3b   : > { %546 = vmatmul.bf16.gmra.mxu0 %v2869_v11  ;;  %556 = vmatmul.bf16.gmra.mxu1 %v2871_v12 }
  0x3c   : > { %566 = vmatmul.bf16.gmra.mxu2 %v2873_v13  ;;  %576 = vmatmul.bf16.gmra.mxu3 %v2875_v24 }
  0xa8   : > { %v542_v17 = vpop.f32.mrf.mxu0  ;;  %v552_v19 = vpop.f32.mrf.mxu1 }
  0xa9   : > { %v543_v20 = vadd.f32 %v3271_v15, %v542_v17  ;;  %v553_v21 = vadd.f32 %v3271_v15, %v552_v19 }
  0xab   : > { %v3277_v22 = vadd.f32 %v543_v20, %v385_v16  ;;  %v3279_v23 = vadd.f32 %v553_v21, %v389_v18  ;;  %v394_v20 = vld [vmem:[%s3266_s20 + $0x48] sm:$0xff] }
  0xad   : > { %4803 = vst [vmem:[#allocation2_spill] sm:$0xff] %v3279_v23  ;;  %608 = vadd.xlane.f32.xlu2 %v3279_v23  ;;  %600 = vadd.xlane.f32.xlu0 %v3277_v22 }
  0xaf   : > { %v562_v59 = vpop.f32.mrf.mxu2  ;;  %v572_v13 = vpop.f32.mrf.mxu3 }
  0xb0   : > { %v544_v26 = vpop.f32.mrf.mxu0  ;;  %v554_v28 = vpop.f32.mrf.mxu1  ;;  %v563_v2 = vadd.f32 %v3271_v15, %v562_v59  ;;  %v573_v50 = vadd.f32 %v3271_v15, %v572_v13  ;;  %v2914_v59 = vld [vmem:[%s4785_s6 + $0xec] sm:$0xf0] }
  0xb1   : > { %v545_v29 = vadd.f32 %v3271_v15, %v544_v26  ;;  %v555_v30 = vadd.f32 %v3271_v15, %v554_v28 }
  0xb2   : > { %v3331_v8 = vadd.f32 %v563_v2, %v393_v4  ;;  %v2915_v2 = vld [vmem:[%s4785_s6 + $0xf4] sm:$0xf0] }
  0xb3   : > { %v3288_v31 = vadd.f32 %v545_v29, %v386_v25  ;;  %v3290_v32 = vadd.f32 %v555_v30, %v390_v27 }
  0xb4   : > { %4808 = vst [vmem:[#allocation7_spill] sm:$0xff] %v3331_v8 }
  0xb5   : > { %4804 = vst [vmem:[#allocation3_spill] sm:$0xff] %v3290_v32  ;;  %610 = vadd.xlane.f32.xlu2 %v3290_v32  ;;  %602 = vadd.xlane.f32.xlu0 %v3288_v31 }
  0xb7   : > { %v564_v7 = vpop.f32.mrf.mxu2 }
  0xb8   : > { %v547_v34 = vpop.f32.mrf.mxu0  ;;  %v557_v36 = vpop.f32.mrf.mxu1  ;;  %v565_v18 = vadd.f32 %v3271_v15, %v564_v7 }
  0xb9   : > { %v548_v37 = vadd.f32 %v3271_v15, %v547_v34  ;;  %v558_v38 = vadd.f32 %v3271_v15, %v557_v36  ;;  %v395_v34 = vld [vmem:[%s3266_s20 + $0x50] sm:$0xff] }
  0xba   : > { %v3355_v28 = vadd.f32 %v565_v18, %v394_v20  ;;  %v2911_v18 = vld [vmem:[%s4785_s6 + $0xd4] sm:$0xf0] }
  0xbb   : > { %v3298_v39 = vadd.f32 %v548_v37, %v387_v33  ;;  %v3300_v40 = vadd.f32 %v558_v38, %v391_v35  ;;  %v574_v35 = vpop.f32.mrf.mxu3 }
  0xbc   : > { %4809 = vst [vmem:[#allocation8_spill] sm:$0xff] %v3355_v28 }
  0xbd   : > { %4805 = vst [vmem:[#allocation4_spill] sm:$0xff] %v3300_v40  ;;  %612 = vadd.xlane.f32.xlu2 %v3300_v40  ;;  %604 = vadd.xlane.f32.xlu1 %v3298_v39 }
  0xbf   : > { %v567_v19 = vpop.f32.mrf.mxu2 }
  0xc0   : > { %v549_v42 = vpop.f32.mrf.mxu0  ;;  %v559_v57 = vpop.f32.mrf.mxu1  ;;  %v568_v29 = vadd.f32 %v3271_v15, %v567_v19 }
  0xc1   : > { %v550_v43 = vadd.f32 %v3271_v15, %v549_v42  ;;  %v560_v60 = vadd.f32 %v3271_v15, %v559_v57 }
  0xc2   : > { %v3366_v36 = vadd.f32 %v568_v29, %v395_v34  ;;  %v2906_v29 = vld [vmem:[%s4785_s6 + $0xac] sm:$0xf0]  ;;  %v2904_v34 = vld [vmem:[%s4785_s6 + $0xa4] sm:$0xf] }
  0xc3   : > { %v3306_v44 = vadd.f32 %v550_v43, %v388_v41  ;;  %v3323_v0 = vadd.f32 %v560_v60, %v392_v62  ;;  %v575_v43 = vadd.f32 %v3271_v15, %v574_v35  ;;  %v577_v49 = vpop.f32.mrf.mxu3  ;;  %v2912_v60 = vld [vmem:[%s4785_s6 + $0xe4] sm:$0xf]  ;;  %v2726_v62 = vld [vmem:[%s4785_s6 + $0xf0] sm:$0xf0] }
  0xc4   : > { %4810 = vst [vmem:[#allocation9_spill] sm:$0xff] %v3366_v36 }
  0xc5   : > { %4806 = vst [vmem:[#allocation5_spill] sm:$0xff] %v3306_v44  ;;  %606 = vadd.xlane.f32.xlu1 %v3306_v44  ;;  %v3379_v48 = vadd.f32 %v575_v43, %v398_v46  ;;  %v2702_v46 = vld [vmem:[%s4785_s6 + $0xb8] sm:$0xf0] }
  0xc6   : > { %4807 = vst [vmem:[#allocation6_spill] sm:$0xff] %v3323_v0 }
  0xc7   : > { %v569_v37 = vpop.f32.mrf.mxu2  ;;  %4812 = vst [vmem:[#allocation11_spill] sm:$0xff] %v3379_v48 }
  0xc8   : > { %v570_v42 = vadd.f32 %v3271_v15, %v569_v37  ;;  %v2694_v37 = vld [vmem:[%s4785_s6 + $0xb0] sm:$0xf0] }
  0xca   : > { %v3377_v47 = vadd.f32 %v570_v42, %v396_v45  ;;  %v2697_v42 = vor.u32 %v2904_v34, %v2694_v37  ;;  %v2905_v45 = vld [vmem:[%s4785_s6 + $0xac] sm:$0xf]  ;;  %v2895_v34 = vld [vmem:[%s4785_s6 + $0x54] sm:$0xf0] }
  0xcc   : > { %4811 = vst [vmem:[#allocation10_spill] sm:$0xff] %v3377_v47 }
 0x120   : > { %v601_v52 = vpop.xlane.xlu0 %600  ;;  %v609_v56 = vpop.xlane.xlu2 %608 }
 0x121   : > { %v639_v53 = vmul.f32 %v3309_v51, %v601_v52  ;;  %v643_v24 = vmul.f32 %v3309_v51, %v609_v56  ;;  %v578_v52 = vadd.f32 %v3271_v15, %v577_v49  ;;  %v2705_v49 = vor.u32 %v2905_v45, %v2702_v46  ;;  %v2890_v45 = vld [vmem:[%s4785_s6 + $0x2c] sm:$0xf0]  ;;  %v2888_v46 = vld [vmem:[%s4785_s6 + $0x24] sm:$0xf] }
 0x123   : > { %v3313_v54 = vsub.f32 %v3277_v22, %v639_v53  ;;  %v3360_v30 = vsub.f32 %v3279_v23, %v643_v24  ;;  %v397_v53 = vld [vmem:[%s3266_s20 + $0x60] sm:$0xff]  ;;  %v2909_v24 = vld [vmem:[%s4785_s6 + $0xcc] sm:$0xf] }
 0x124   : > { %v3387_v56 = vadd.f32 %v573_v50, %v397_v53  ;;  %v2676_v50 = vld [vmem:[%s4785_s6 + $0x80] sm:$0xf]  ;;  %v2900_v53 = vld [vmem:[%s4785_s6 + $0x84] sm:$0xf]  ;;  %v2941_v23 = vld [vmem:[%s4787_s8 + $0xc8] sm:$0xff] }
 0x125   : > { %v671_v55 = vmul.f32 %v3313_v54, %v3313_v54  ;;  %v675_v38 = vmul.f32 %v3360_v30, %v3360_v30 }
 0x126   : > { %4813 = vst [vmem:[#allocation12_spill] sm:$0xff] %v3387_v56 }
 0x127   : > { %687 = vadd.xlane.f32.xlu0 %v671_v55  ;;  %v399_v55 = vld [vmem:[%s3266_s20 + $0x70] sm:$0xff] }
 0x128   : > { %v603_v58 = vpop.xlane.xlu0 %602  ;;  %v611_v3 = vpop.xlane.xlu2 %610  ;;  %v3389_v57 = vadd.f32 %v578_v52, %v399_v55  ;;  %v2902_v52 = vld [vmem:[%s4785_s6 + $0x8c] sm:$0xf0] }
 0x129   : > { %v640_v61 = vmul.f32 %v3309_v51, %v603_v58  ;;  %v644_v10 = vmul.f32 %v3309_v51, %v611_v3  ;;  %v2724_v58 = vld [vmem:[%s4785_s6 + $0xe0] sm:$0xf]  ;;  %v2729_v3 = vor.u32 %v2912_v60, %v2726_v62  ;;  %v2677_v55 = vor.u32 %v2902_v52, %v2676_v50  ;;  %v2903_v60 = vld [vmem:[%s4785_s6 + $0x94] sm:$0xf0]  ;;  %v2630_v50 = vld [vmem:[%s4785_s6 + $0x30] sm:$0xf0] }
 0x12a   : > { %4814 = vst [vmem:[#allocation13_spill] sm:$0xff] %v3389_v57  ;;  %v2636_v52 = vld [vmem:[%s4785_s6 + $0x28] sm:$0xf] }
 0x12b   : > { %v3321_v63 = vsub.f32 %v3288_v31, %v640_v61  ;;  %v3341_v14 = vsub.f32 %v3290_v32, %v644_v10  ;;  %v2725_v61 = vor.u32 %v2914_v59, %v2724_v58  ;;  %1224 = vmatpush.bf16.msrb.mxu2 %v2729_v3  ;;  %v2708_v10 = vld [vmem:[%s4785_s6 + $0xc0] sm:$0xf]  ;;  %v2678_v58 = vld [vmem:[%s4785_s6 + $0x90] sm:$0xf0]  ;;  %v2684_v59 = vld [vmem:[%s4785_s6 + $0x88] sm:$0xf] }
 0x12c   : > { %v2685_v62 = vor.u32 %v2903_v60, %v2684_v59  ;;  %v2889_v60 = vld [vmem:[%s4785_s6 + $0x2c] sm:$0xf] }
 0x12d   : > { %v672_v1 = vmul.f32 %v3321_v63, %v3321_v63  ;;  %v676_v27 = vmul.f32 %v3341_v14, %v3341_v14  ;;  %1175 = vmatpush.bf16.msrb.mxu1 %v2725_v61  ;;  %v2681_v61 = vor.u32 %v2900_v53, %v2678_v58  ;;  %v2891_v53 = vld [vmem:[%s4785_s6 + $0x34] sm:$0xf0]  ;;  %v2633_v58 = vor.u32 %v2888_v46, %v2630_v50 }
 0x12e   : > { %v2637_v59 = vor.u32 %v2891_v53, %v2636_v52 }
 0x12f   : > { %614 = vadd.xlane.f32.xlu0 %v3323_v0  ;;  %689 = vadd.xlane.f32.xlu1 %v672_v1  ;;  %v2732_v1 = vld [vmem:[%s4785_s6 + $0xe8] sm:$0xf] }
 0x130   : > { %v605_v5 = vpop.xlane.xlu1 %604  ;;  %v613_v17 = vpop.xlane.xlu2 %612  ;;  %v2733_v4 = vor.u32 %v2915_v2, %v2732_v1  ;;  %v2901_v1 = vld [vmem:[%s4785_s6 + $0x8c] sm:$0xf]  ;;  %v2686_v2 = vld [vmem:[%s4785_s6 + $0x98] sm:$0xf0] }
 0x131   : > { %v641_v6 = vmul.f32 %v3309_v51, %v605_v5  ;;  %v645_v25 = vmul.f32 %v3309_v51, %v613_v17  ;;  %v2913_v5 = vld [vmem:[%s4785_s6 + $0xec] sm:$0xf]  ;;  %v2716_v17 = vld [vmem:[%s4785_s6 + $0xc8] sm:$0xf]  ;;  %v2689_v3 = vor.u32 %v2901_v1, %v2686_v2  ;;  %v2612_v2 = vld [vmem:[%s4785_s6] sm:$0xf] }
 0x132   : > { %1273 = vmatpush.bf16.msrb.mxu3 %v2733_v4  ;;  %v2717_v20 = vor.u32 %v2911_v18, %v2716_v17  ;;  %v2660_v4 = vld [vmem:[%s4785_s6 + $0x60] sm:$0xf]  ;;  %v2897_v17 = vld [vmem:[%s4785_s6 + $0x6c] sm:$0xf]  ;;  %v2670_v18 = vld [vmem:[%s4785_s6 + $0x78] sm:$0xf0] }
 0x133   : > { %v3334_v9 = vsub.f32 %v3298_v39, %v641_v6  ;;  %v3363_v33 = vsub.f32 %v3300_v40, %v645_v25  ;;  %v2734_v6 = vld [vmem:[%s4785_s6 + $0xf8] sm:$0xf0] }
 0x134   : > { %v2737_v7 = vor.u32 %v2913_v5, %v2734_v6  ;;  %v2718_v25 = vld [vmem:[%s4785_s6 + $0xd8] sm:$0xf0]  ;;  %v2898_v5 = vld [vmem:[%s4785_s6 + $0x6c] sm:$0xf0]  ;;  %v2896_v6 = vld [vmem:[%s4785_s6 + $0x64] sm:$0xf] }
 0x135   : > { %v673_v11 = vmul.f32 %v3334_v9, %v3334_v9  ;;  %v677_v41 = vmul.f32 %v3363_v33, %v3363_v33 }
 0x136   : > { %1322 = vmatpush.bf16.msrb.mxu0 %v2737_v7  ;;  %1274 = vmatpush.bf16.msrb.mxu3 %v2717_v20  ;;  %v2661_v7 = vor.u32 %v2898_v5, %v2660_v4  ;;  %v2644_v20 = vld [vmem:[%s4785_s6 + $0x40] sm:$0xf]  ;;  %v2884_v4 = vld [vmem:[%s4785_s6 + $0x4] sm:$0xf] }
 0x137   : > { %616 = vadd.xlane.f32.xlu0 %v3331_v8  ;;  %691 = vadd.xlane.f32.xlu1 %v673_v11  ;;  %v2910_v11 = vld [vmem:[%s4785_s6 + $0xcc] sm:$0xf0] }
 0x138   : > { %v607_v12 = vpop.xlane.xlu1 %606  ;;  %v2709_v13 = vor.u32 %v2910_v11, %v2708_v10  ;;  %v2662_v10 = vld [vmem:[%s4785_s6 + $0x70] sm:$0xf0]  ;;  %v2668_v11 = vld [vmem:[%s4785_s6 + $0x68] sm:$0xf] }
 0x139   : > { %v642_v16 = vmul.f32 %v3309_v51, %v607_v12  ;;  %v2908_v12 = vld [vmem:[%s4785_s6 + $0xc4] sm:$0xf] }
 0x13a   : > { %1176 = vmatpush.bf16.msrb.mxu1 %v2709_v13  ;;  %v2665_v13 = vor.u32 %v2896_v6, %v2662_v10  ;;  %v2620_v10 = vld [vmem:[%s4785_s6 + $0x8] sm:$0xf] }
 0x13b   : > { %v3347_v21 = vsub.f32 %v3306_v44, %v642_v16  ;;  %v2710_v16 = vld [vmem:[%s4785_s6 + $0xd0] sm:$0xf0] }
 0x13c   : > { %v2713_v19 = vor.u32 %v2908_v12, %v2710_v16  ;;  %v2899_v12 = vld [vmem:[%s4785_s6 + $0x74] sm:$0xf0] }
 0x13d   : > { %v674_v26 = vmul.f32 %v3347_v21, %v3347_v21  ;;  %v2669_v16 = vor.u32 %v2899_v12, %v2668_v11  ;;  %v2887_v12 = vld [vmem:[%s4785_s6 + $0x14] sm:$0xf0] }
 0x13e   : > { %1225 = vmatpush.bf16.msrb.mxu2 %v2713_v19  ;;  %v2673_v19 = vor.u32 %v2897_v17, %v2670_v18  ;;  %v2621_v17 = vor.u32 %v2887_v12, %v2620_v10 }
 0x13f   : > { %693 = vadd.xlane.f32.xlu2 %v674_v26  ;;  %697 = vadd.xlane.f32.xlu0 %v676_v27  ;;  %v2721_v26 = vor.u32 %v2909_v24, %v2718_v25  ;;  %v2692_v27 = vld [vmem:[%s4785_s6 + $0xa0] sm:$0xf]  ;;  %v2894_v24 = vld [vmem:[%s4785_s6 + $0x4c] sm:$0xf0]  ;;  %v2892_v25 = vld [vmem:[%s4785_s6 + $0x44] sm:$0xf] }
 0x140   : > { %618 = vadd.xlane.f32.xlu1 %v3355_v28  ;;  %v2693_v35 = vor.u32 %v2906_v29, %v2692_v27  ;;  %v2646_v27 = vld [vmem:[%s4785_s6 + $0x50] sm:$0xf0]  ;;  %v2652_v29 = vld [vmem:[%s4785_s6 + $0x48] sm:$0xf] }
 0x141   : > { %1323 = vmatpush.bf16.msrb.mxu0 %v2721_v26  ;;  %v2645_v26 = vor.u32 %v2894_v24, %v2644_v20  ;;  %v2653_v37 = vor.u32 %v2895_v34, %v2652_v29 }
 0x142   : > { %1177 = vmatpush.bf16.msrb.mxu1 %v2693_v35  ;;  %1226 = vmatpush.bf16.msrb.mxu2 %v2697_v42  ;;  %v2649_v35 = vor.u32 %v2892_v25, %v2646_v27 }
 0x145   : > { %1324 = vmatpush.bf16.msrb.mxu0 %v2705_v49 }
 0x146   : > { %1178 = vmatpush.bf16.msrb.mxu1 %v2677_v55  ;;  %1227 = vmatpush.bf16.msrb.mxu2 %v2681_v61  ;;  %v2638_v61 = vld [vmem:[%s4785_s6 + $0x38] sm:$0xf0] }
 0x147   : > { %695 = vadd.xlane.f32.xlu2 %v675_v38  ;;  %699 = vadd.xlane.f32.xlu0 %v677_v41  ;;  %v2700_v38 = vld [vmem:[%s4785_s6 + $0xa8] sm:$0xf]  ;;  %v2907_v41 = vld [vmem:[%s4785_s6 + $0xb4] sm:$0xf0]  ;;  %v2641_v1 = vor.u32 %v2889_v60, %v2638_v61  ;;  %v579_v60 = vpop.f32.mrf.mxu3 }
 0x148   : > { %620 = vadd.xlane.f32.xlu1 %v3366_v36  ;;  %v2701_v43 = vor.u32 %v2907_v41, %v2700_v38  ;;  %v2893_v38 = vld [vmem:[%s4785_s6 + $0x4c] sm:$0xf]  ;;  %v2654_v41 = vld [vmem:[%s4785_s6 + $0x58] sm:$0xf0] }
 0x149   : > { %1325 = vmatpush.bf16.msrb.mxu0 %v2689_v3  ;;  %v2657_v42 = vor.u32 %v2893_v38, %v2654_v41  ;;  %v2886_v3 = vld [vmem:[%s4785_s6 + $0xc] sm:$0xf0] }
 0x14a   : > { %1275 = vmatpush.bf16.msrb.mxu3 %v2701_v43  ;;  %1179 = vmatpush.bf16.msrb.mxu1 %v2661_v7  ;;  %v2628_v43 = vld [vmem:[%s4785_s6 + $0x20] sm:$0xf]  ;;  %v2613_v6 = vor.u32 %v2886_v3, %v2612_v2  ;;  %v2614_v7 = vld [vmem:[%s4785_s6 + $0x10] sm:$0xf0]  ;;  %v580_v3 = vadd.f32 %v3271_v15, %v579_v60 }
 0x14b   : > { %1228 = vmatpush.bf16.msrb.mxu2 %v2665_v13  ;;  %v2629_v49 = vor.u32 %v2890_v45, %v2628_v43  ;;  %v2617_v11 = vor.u32 %v2884_v4, %v2614_v7  ;;  %v2885_v13 = vld [vmem:[%s4785_s6 + $0xc] sm:$0xf] }
 0x14d   : > { %1326 = vmatpush.bf16.msrb.mxu0 %v2673_v19 }
 0x14e   : > { %1276 = vmatpush.bf16.msrb.mxu3 %v2685_v62  ;;  %1180 = vmatpush.bf16.msrb.mxu1 %v2645_v26 }
 0x14f   : > { %622 = vadd.xlane.f32.xlu2 %v3377_v47  ;;  %626 = vadd.xlane.f32.xlu0 %v3379_v48 }
 0x150   : > { %1229 = vmatpush.bf16.msrb.mxu2 %v2649_v35 }
 0x151   : > { %1327 = vmatpush.bf16.msrb.mxu0 %v2657_v42 }
 0x152   : > { %1277 = vmatpush.bf16.msrb.mxu3 %v2669_v16  ;;  %1181 = vmatpush.bf16.msrb.mxu1 %v2629_v49  ;;  %v2622_v16 = vld [vmem:[%s4785_s6 + $0x18] sm:$0xf0] }
 0x153   : > { %v2625_v18 = vor.u32 %v2885_v13, %v2622_v16 }
 0x154   : > { %1230 = vmatpush.bf16.msrb.mxu2 %v2633_v58 }
 0x155   : > { %1328 = vmatpush.bf16.msrb.mxu0 %v2641_v1 }
 0x156   : > { %1278 = vmatpush.bf16.msrb.mxu3 %v2653_v37  ;;  %1182 = vmatpush.bf16.msrb.mxu1 %v2613_v6 }
 0x157   : > { %624 = vadd.xlane.f32.xlu2 %v3387_v56  ;;  %628 = vadd.xlane.f32.xlu0 %v3389_v57 }
 0x158   : > { %1231 = vmatpush.bf16.msrb.mxu2 %v2617_v11 }
 0x159   : > { %1329 = vmatpush.bf16.msrb.mxu0 %v2625_v18 }
 0x15a   : > { %1279 = vmatpush.bf16.msrb.mxu3 %v2637_v59 }
 0x15e   : > { %1280 = vmatpush.bf16.msrb.mxu3 %v2621_v17 }
 0x19a   : > { %v688_v55 = vpop.xlane.xlu0 %687 }
 0x19b   : > { %v719_v62 = vmul.f32 %v688_v55, %v3309_v51 }
 0x19d   : > { %v735_v5 = vadd.f32 1e-05, %v719_v62 }
 0x19f   : > { %2987 = vrsqrt.f32 %v735_v5  ;;  %vm757_vm2 = vweird.f32 %v735_v5 }
 0x1a2   : > { %v690_v19 = vpop.xlane.xlu1 %689  ;;  %v615_v20 = vpop.xlane.xlu0 %614 }
 0x1a3   : > { %v720_v24 = vmul.f32 %v690_v19, %v3309_v51  ;;  %v646_v25 = vmul.f32 %v3309_v51, %v615_v20 }
 0x1a5   : > { %v2988_v26 = vpop.eup %2987  ;;  %v736_v27 = vadd.f32 1e-05, %v720_v24  ;;  %v3589_v29 = vsub.f32 %v3323_v0, %v646_v25  ;;  %v3629_v25 = vld [vmem:[%s4783_s4] ss:$0 sm:$0xff] }
 0x1a6   : > { %v752_v34 = vmul.f32 %v2988_v26, %v735_v5  ;;  %vm758_vm1 = vweird.f32 %v2988_v26  ;;  %v400_v5 = vld [vmem:[%s3266_s20 + $0x78] sm:$0xff] }
 0x1a7   : > { %2989 = vrsqrt.f32 %v736_v27  ;;  %v678_v35 = vmul.f32 %v3589_v29, %v3589_v29  ;;  %vm3603_vm3 = vmor %vm757_vm2, %vm758_vm1  ;;  %vm767_vm5 = vweird.f32 %v736_v27  ;;  %v3623_v24 = vadd.f32 %v580_v3, %v400_v5 }
 0x1a8   : > { %v753_v37 = vmul.f32 %v2988_v26, %v752_v34 }
 0x1a9   : > { %701 = vadd.xlane.f32.xlu1 %v678_v35  ;;  %4817 = vst [vmem:[#allocation14_spill] sm:$0xff] %v3623_v24 }
 0x1aa   : > { %v754_v38 = vmul.f32 0.5, %v753_v37  ;;  %v692_v41 = vpop.xlane.xlu1 %691  ;;  %v617_v42 = vpop.xlane.xlu0 %616 }
 0x1ab   : > { %v721_v43 = vmul.f32 %v692_v41, %v3309_v51  ;;  %v647_v45 = vmul.f32 %v3309_v51, %v617_v42 }
 0x1ac   : > { %v755_v46 = vsub.f32 1.5, %v754_v38 }
 0x1ad   : > { %v2990_v49 = vpop.eup %2989  ;;  %v3595_v50 = vadd.f32 1e-05, %v721_v43  ;;  %v3598_v52 = vsub.f32 %v3331_v8, %v647_v45 }
 0x1ae   : > { %v762_v53 = vmul.f32 %v2990_v49, %v736_v27  ;;  %v756_v58 = vmul.f32 %v2988_v26, %v755_v46  ;;  %vm768_vm4 = vweird.f32 %v2990_v49  ;;  %v3644_v46 = vld [vmem:[%s4784_s5] ss:$0 sm:$0xff] }
 0x1af   : > { %2991 = vrsqrt.f32 %v3595_v50  ;;  %v679_v55 = vmul.f32 %v3598_v52, %v3598_v52  ;;  %vm769_vm6 = vmor %vm767_vm5, %vm768_vm4  ;;  %vm777_vm8 = vweird.f32 %v3595_v50 }
 0x1b0   : > { %v763_v59 = vmul.f32 %v2990_v49, %v762_v53  ;;  %v760_v10 = vsel %vm3603_vm3, %v2988_v26, %v756_v58 }
 0x1b1   : > { %703 = vadd.xlane.f32.xlu1 %v679_v55  ;;  %v911_v20 = vmul.f32 %v760_v10, %v3313_v54 }
 0x1b2   : > { %v764_v61 = vmul.f32 0.5, %v763_v59  ;;  %v694_v62 = vpop.xlane.xlu2 %693  ;;  %v698_v1 = vpop.xlane.xlu0 %697 }
 0x1b3   : > { %v722_v4 = vmul.f32 %v694_v62, %v3309_v51  ;;  %v619_v6 = vpop.xlane.xlu1 %618  ;;  %v724_v7 = vmul.f32 %v698_v1, %v3309_v51  ;;  %v930_v43 = vmul.f32 %v3629_v25, %v911_v20 }
 0x1b4   : > { %v765_v11 = vsub.f32 1.5, %v764_v61  ;;  %v648_v12 = vmul.f32 %v3309_v51, %v619_v6 }
 0x1b5   : > { %v2992_v13 = vpop.eup %2991  ;;  %v3614_v16 = vadd.f32 1e-05, %v722_v4  ;;  %v3616_v17 = vadd.f32 1e-05, %v724_v7  ;;  %v949_v1 = vadd.f32 %v3644_v46, %v930_v43 }
 0x1b6   : > { %v766_v18 = vmul.f32 %v2990_v49, %v765_v11  ;;  %v772_v15 = vmul.f32 %v2992_v13, %v3595_v50  ;;  %v3620_v19 = vsub.f32 %v3355_v28, %v648_v12  ;;  %vm778_vm7 = vweird.f32 %v2992_v13 }
 0x1b7   : > { %2993 = vrsqrt.f32 %v3614_v16  ;;  %vm3661_vm9 = vmor %vm777_vm8, %vm778_vm7  ;;  %vm787_vm11 = vweird.f32 %v3614_v16  ;;  %vm807_vm1 = vweird.f32 %v3616_v17 }
 0x1b8   : > { %v770_v26 = vsel %vm769_vm6, %v2990_v49, %v766_v18  ;;  %v773_v34 = vmul.f32 %v2992_v13, %v772_v15  ;;  %2995 = vrsqrt.f32 %v3616_v17  ;;  %v680_v27 = vmul.f32 %v3620_v19, %v3620_v19 }
 0x1b9   : > { %v912_v35 = vmul.f32 %v770_v26, %v3321_v63  ;;  %630 = vadd.xlane.f32.xlu1 %v3623_v24 }
 0x1ba   : > { %v774_v54 = vmul.f32 0.5, %v773_v34  ;;  %705 = vadd.xlane.f32.xlu2 %v680_v27  ;;  %v696_v37 = vpop.xlane.xlu2 %695  ;;  %v3636_v38 = vpop.xlane.xlu0 %699 }
 0x1bb   : > { %v723_v41 = vmul.f32 %v696_v37, %v3309_v51  ;;  %v621_v42 = vpop.xlane.xlu1 %620  ;;  %v931_v45 = vmul.f32 %v3629_v25, %v912_v35 }
 0x1bc   : > { %v775_v63 = vsub.f32 1.5, %v774_v54  ;;  %v649_v49 = vmul.f32 %v3309_v51, %v621_v42 }
 0x1bd   : > { %v2994_v53 = vpop.eup %2993  ;;  %v3647_v55 = vadd.f32 1e-05, %v723_v41  ;;  %v950_v58 = vadd.f32 %v3644_v46, %v931_v45 }
 0x1be   : > { %v3650_v59 = vpop.eup %2995  ;;  %v776_v60 = vmul.f32 %v2992_v13, %v775_v63  ;;  %v782_v61 = vmul.f32 %v2994_v53, %v3614_v16  ;;  %v3654_v62 = vsub.f32 %v3366_v36, %v649_v49  ;;  %vm788_vm10 = vweird.f32 %v2994_v53 }
 0x1bf   : > { %2997 = vrsqrt.f32 %v3647_v55  ;;  %v802_v3 = vmul.f32 %v3650_v59, %v3616_v17  ;;  %v965_v7 = vpack.c.bf16 %v950_v58, %v949_v1  ;;  %vm789_vm12 = vmor %vm787_vm11, %vm788_vm10  ;;  %vm808_vm14 = vweird.f32 %v3650_v59 }
 0x1c0   : > { %v783_v2 = vmul.f32 %v2994_v53, %v782_v61  ;;  %v681_v6 = vmul.f32 %v3654_v62, %v3654_v62  ;;  %v780_v10 = vsel %vm3661_vm9, %v2992_v13, %v776_v60  ;;  %vm797_vm15 = vweird.f32 %v3647_v55  ;;  %vm809_vm2 = vmor %vm807_vm1, %vm808_vm14 }
 0x1c1   : > { %1183 = vmatmul.bf16.vlgmr.msrb.gmra.mxu1 %v965_v7  ;;  %v803_v20 = vmul.f32 %v3650_v59, %v802_v3  ;;  %1232 = vmatmul.bf16.vlgmr.msrb.gmra.mxu2 %v965_v7  ;;  %v913_v34 = vmul.f32 %v780_v10, %v3334_v9 }
 0x1c2   : > { %v784_v11 = vmul.f32 0.5, %v783_v2  ;;  %v623_v5 = vpop.xlane.xlu2 %622  ;;  %v627_v12 = vpop.xlane.xlu0 %626  ;;  %707 = vadd.xlane.f32.xlu2 %v681_v6  ;;  %1281 = vmatmul.bf16.vlgmr.msrb.gmra.mxu3 %v965_v7 }
 0x1c3   : > { %v650_v50 = vmul.f32 %v3309_v51, %v623_v5  ;;  %v652_v18 = vmul.f32 %v3309_v51, %v627_v12  ;;  %1330 = vmatmul.bf16.vlgmr.msrb.gmra.mxu0 %v965_v7  ;;  %v804_v42 = vmul.f32 0.5, %v803_v20  ;;  %v932_v63 = vmul.f32 %v3629_v25, %v913_v34 }
 0x1c4   : > { %v785_v15 = vsub.f32 1.5, %v784_v11 }
 0x1c5   : > { %v2998_v26 = vpop.eup %2997  ;;  %v3674_v13 = vsub.f32 %v3377_v47, %v650_v50  ;;  %v3677_v27 = vsub.f32 %v3379_v48, %v652_v18  ;;  %v805_v1 = vsub.f32 1.5, %v804_v42  ;;  %v951_v4 = vadd.f32 %v3644_v46, %v932_v63 }
 0x1c6   : > { %v786_v35 = vmul.f32 %v2994_v53, %v785_v15  ;;  %v792_v54 = vmul.f32 %v2998_v26, %v3647_v55  ;;  %vm798_vm13 = vweird.f32 %v2998_v26 }
 0x1c7   : > { %v682_v37 = vmul.f32 %v3674_v13, %v3674_v13  ;;  %v684_v9 = vmul.f32 %v3677_v27, %v3677_v27  ;;  %v806_v12 = vmul.f32 %v3650_v59, %v805_v1  ;;  %vm799_vm0 = vmor %vm797_vm15, %vm798_vm13 }
 0x1c8   : > { %v790_v41 = vsel %vm789_vm12, %v2994_v53, %v786_v35  ;;  %v793_v43 = vmul.f32 %v2998_v26, %v792_v54 }
 0x1c9   : > { %v914_v45 = vmul.f32 %v790_v41, %v3347_v21  ;;  %709 = vadd.xlane.f32.xlu0 %v682_v37  ;;  %v810_v18 = vsel %vm809_vm2, %v3650_v59, %v806_v12  ;;  %v725_v59 = vmul.f32 %v3636_v38, %v3309_v51 }
 0x1ca   : > { %v794_v49 = vmul.f32 0.5, %v793_v43  ;;  %v625_v58 = vpop.xlane.xlu2 %624  ;;  %v629_v16 = vpop.xlane.xlu0 %628  ;;  %713 = vadd.xlane.f32.xlu2 %v684_v9  ;;  %v916_v20 = vmul.f32 %v810_v18, %v3341_v14 }
 0x1cb   : > { %v651_v60 = vmul.f32 %v3309_v51, %v625_v58  ;;  %v653_v61 = vmul.f32 %v3309_v51, %v629_v16  ;;  %v933_v53 = vmul.f32 %v3629_v25, %v914_v45 }
 0x1cc   : > { %v795_v2 = vsub.f32 1.5, %v794_v49  ;;  %v935_v55 = vmul.f32 %v3629_v25, %v916_v20 }
 0x1cd   : > { %v3691_v3 = vsub.f32 %v3387_v56, %v651_v60  ;;  %v3694_v21 = vsub.f32 %v3389_v57, %v653_v61  ;;  %v952_v6 = vadd.f32 %v3644_v46, %v933_v53 }
 0x1ce   : > { %v796_v7 = vmul.f32 %v2998_v26, %v795_v2  ;;  %v954_v17 = vadd.f32 %v3644_v46, %v935_v55 }
 0x1cf   : > { %v966_v10 = vpack.c.bf16 %v952_v6, %v951_v4  ;;  %v683_v11 = vmul.f32 %v3691_v3, %v3691_v3  ;;  %v685_v5 = vmul.f32 %v3694_v21, %v3694_v21 }
 0x1d0   : > { %v800_v50 = vsel %vm799_vm0, %v2998_v26, %v796_v7 }
 0x1d1   : > { %711 = vadd.xlane.f32.xlu1 %v683_v11  ;;  %715 = vadd.xlane.f32.xlu0 %v685_v5  ;;  %v915_v15 = vmul.f32 %v800_v50, %v3360_v30  ;;  %v741_v30 = vadd.f32 1e-05, %v725_v59 }
 0x1d2   : > { %1188 = vmatmul.bf16.gmra.mxu1 %v966_v10  ;;  %1237 = vmatmul.bf16.gmra.mxu2 %v966_v10 }
 0x1d3   : > { %1286 = vmatmul.bf16.gmra.mxu3 %v966_v10  ;;  %1335 = vmatmul.bf16.gmra.mxu0 %v966_v10  ;;  %v934_v34 = vmul.f32 %v3629_v25, %v915_v15  ;;  %2999 = vrsqrt.f32 %v741_v30  ;;  %vm817_vm4 = vweird.f32 %v741_v30 }
 0x1d5   : > { %v953_v35 = vadd.f32 %v3644_v46, %v934_v34 }
 0x1d7   : > { %v967_v26 = vpack.c.bf16 %v954_v17, %v953_v35 }
 0x1d9   : > { %v3000_v54 = vpop.eup %2999 }
 0x1da   : > { %v812_v14 = vmul.f32 %v3000_v54, %v741_v30  ;;  %vm818_vm3 = vweird.f32 %v3000_v54 }
 0x1db   : > { %vm819_vm5 = vmor %vm817_vm4, %vm818_vm3 }
 0x1dc   : > { %v813_v37 = vmul.f32 %v3000_v54, %v812_v14 }
 0x1de   : > { %v814_v9 = vmul.f32 0.5, %v813_v37 }
 0x1e0   : > { %v815_v45 = vsub.f32 1.5, %v814_v9 }
 0x1e2   : > { %1193 = vmatmul.bf16.gmra.mxu1 %v967_v26  ;;  %1242 = vmatmul.bf16.gmra.mxu2 %v967_v26  ;;  %v816_v16 = vmul.f32 %v3000_v54, %v815_v45 }
 0x1e3   : > { %1291 = vmatmul.bf16.gmra.mxu3 %v967_v26  ;;  %1340 = vmatmul.bf16.gmra.mxu0 %v967_v26 }
 0x1e4   : > { %v820_v53 = vsel %vm819_vm5, %v3000_v54, %v816_v16 }
 0x1e5   : > { %v917_v11 = vmul.f32 %v820_v53, %v3363_v33 }
 0x1e7   : > { %v936_v55 = vmul.f32 %v3629_v25, %v917_v11 }
 0x1e9   : > { %v955_v59 = vadd.f32 %v3644_v46, %v936_v55 }
 0x21c   : > { %v702_v41 = vpop.xlane.xlu1 %701 }
 0x21d   : > { %v726_v42 = vmul.f32 %v702_v41, %v3309_v51 }
 0x21f   : > { %v742_v43 = vadd.f32 1e-05, %v726_v42 }
 0x221   : > { %3001 = vrsqrt.f32 %v742_v43  ;;  %vm827_vm7 = vweird.f32 %v742_v43 }
 0x224   : > { %v704_v63 = vpop.xlane.xlu1 %703 }
 0x225   : > { %v727_v49 = vmul.f32 %v704_v63, %v3309_v51 }
 0x227   : > { %v3002_v58 = vpop.eup %3001  ;;  %v3717_v38 = vadd.f32 1e-05, %v727_v49 }
 0x228   : > { %v822_v60 = vmul.f32 %v3002_v58, %v742_v43  ;;  %vm828_vm6 = vweird.f32 %v3002_v58 }
 0x229   : > { %3003 = vrsqrt.f32 %v3717_v38  ;;  %vm829_vm8 = vmor %vm827_vm7, %vm828_vm6  ;;  %vm837_vm11 = vweird.f32 %v3717_v38 }
 0x22a   : > { %v823_v61 = vmul.f32 %v3002_v58, %v822_v60 }
 0x22c   : > { %v824_v1 = vmul.f32 0.5, %v823_v61  ;;  %v631_v2 = vpop.xlane.xlu1 %630 }
 0x22d   : > { %v706_v4 = vpop.xlane.xlu2 %705  ;;  %v654_v6 = vmul.f32 %v3309_v51, %v631_v2 }
 0x22e   : > { %v825_v7 = vsub.f32 1.5, %v824_v1  ;;  %v728_v10 = vmul.f32 %v706_v4, %v3309_v51 }
 0x22f   : > { %v3724_v5 = vsub.f32 %v3623_v24, %v654_v6  ;;  %v3004_v15 = vpop.eup %3003 }
 0x230   : > { %v826_v12 = vmul.f32 %v3002_v58, %v825_v7  ;;  %v744_v50 = vadd.f32 1e-05, %v728_v10  ;;  %v832_v33 = vmul.f32 %v3004_v15, %v3717_v38  ;;  %vm838_vm9 = vweird.f32 %v3004_v15 }
 0x231   : > { %v686_v18 = vmul.f32 %v3724_v5, %v3724_v5  ;;  %vm839_vm12 = vmor %vm837_vm11, %vm838_vm9 }
 0x232   : > { %v830_v20 = vsel %vm829_vm8, %v3002_v58, %v826_v12  ;;  %3005 = vrsqrt.f32 %v744_v50  ;;  %v833_v14 = vmul.f32 %v3004_v15, %v832_v33  ;;  %vm847_vm13 = vweird.f32 %v744_v50 }
 0x233   : > { %v918_v34 = vmul.f32 %v830_v20, %v3589_v29  ;;  %717 = vadd.xlane.f32.xlu1 %v686_v18 }
 0x234   : > { %v834_v9 = vmul.f32 0.5, %v833_v14 }
 0x235   : > { %v937_v35 = vmul.f32 %v3629_v25, %v918_v34  ;;  %v708_v17 = vpop.xlane.xlu2 %707 }
 0x236   : > { %v729_v26 = vmul.f32 %v708_v17, %v3309_v51  ;;  %v835_v16 = vsub.f32 1.5, %v834_v9 }
 0x237   : > { %v956_v30 = vadd.f32 %v3644_v46, %v937_v35 }
 0x238   : > { %v3006_v54 = vpop.eup %3005  ;;  %v3735_v41 = vadd.f32 1e-05, %v729_v26  ;;  %v836_v4 = vmul.f32 %v3004_v15, %v835_v16 }
 0x239   : > { %v842_v37 = vmul.f32 %v3006_v54, %v744_v50  ;;  %v968_v29 = vpack.c.bf16 %v956_v30, %v955_v59  ;;  %vm848_vm10 = vweird.f32 %v3006_v54 }
 0x23a   : > { %3007 = vrsqrt.f32 %v3735_v41  ;;  %vm849_vm14 = vmor %vm847_vm13, %vm848_vm10  ;;  %v840_v34 = vsel %vm839_vm12, %v3004_v15, %v836_v4  ;;  %vm857_vm3 = vweird.f32 %v3735_v41  ;;  %v2938_v4 = vld [vmem:[%s4787_s8 + $0xb0] sm:$0xff] }
 0x23b   : > { %v843_v42 = vmul.f32 %v3006_v54, %v842_v37  ;;  %1198 = vmatmul.bf16.gmra.mxu1 %v968_v29  ;;  %1247 = vmatmul.bf16.gmra.mxu2 %v968_v29  ;;  %v919_v17 = vmul.f32 %v840_v34, %v3598_v52  ;;  %v2929_v34 = vld [vmem:[%s4787_s8 + $0x68] sm:$0xff] }
 0x23c   : > { %1296 = vmatmul.bf16.gmra.mxu3 %v968_v29  ;;  %1345 = vmatmul.bf16.gmra.mxu0 %v968_v29  ;;  %v710_v43 = vpop.xlane.xlu0 %709 }
 0x23d   : > { %v844_v45 = vmul.f32 0.5, %v843_v42  ;;  %v730_v63 = vmul.f32 %v710_v43, %v3309_v51  ;;  %v714_v61 = vpop.xlane.xlu2 %713  ;;  %v938_v14 = vmul.f32 %v3629_v25, %v919_v17  ;;  %v2921_v17 = vld [vmem:[%s4787_s8 + $0x28] sm:$0xff] }
 0x23e   : > { %v732_v1 = vmul.f32 %v714_v61, %v3309_v51 }
 0x23f   : > { %v746_v49 = vadd.f32 1e-05, %v730_v63  ;;  %v845_v60 = vsub.f32 1.5, %v844_v45 }
 0x240   : > { %v3008_v58 = vpop.eup %3007  ;;  %v3745_v18 = vadd.f32 1e-05, %v732_v1  ;;  %v2947_v1 = vld [vmem:[%s4787_s8 + $0xf8] sm:$0xff] }
 0x241   : > { %3009 = vrsqrt.f32 %v746_v49  ;;  %v852_v53 = vmul.f32 %v3008_v58, %v3735_v41  ;;  %v846_v6 = vmul.f32 %v3006_v54, %v845_v60  ;;  %vm858_vm0 = vweird.f32 %v3008_v58  ;;  %v2931_v41 = vld [vmem:[%s4787_s8 + $0x78] sm:$0xff]  ;;  %2386 = vmatpush.bf16.msra.mxu0 %v2947_v1 }
 0x242   : > { %vm867_vm1 = vweird.f32 %v746_v49  ;;  %vm859_vm4 = vmor %vm857_vm3, %vm858_vm0  ;;  %2288 = vmatpush.bf16.msra.mxu2 %v2931_v41  ;;  %vm887_vm9 = vweird.f32 %v3745_v18 }
 0x243   : > { %v853_v11 = vmul.f32 %v3008_v58, %v852_v53  ;;  %v850_v55 = vsel %vm849_vm14, %v3006_v54, %v846_v6 }
 0x244   : > { %v712_v2 = vpop.xlane.xlu1 %711  ;;  %v920_v38 = vmul.f32 %v850_v55, %v3620_v19  ;;  %v957_v19 = vadd.f32 %v3644_v46, %v938_v14 }
 0x245   : > { %v731_v7 = vmul.f32 %v712_v2, %v3309_v51  ;;  %v854_v35 = vmul.f32 0.5, %v853_v11  ;;  %v2930_v2 = vld [vmem:[%s4787_s8 + $0x70] sm:$0xff] }
 0x246   : > { %v939_v15 = vmul.f32 %v3629_v25, %v920_v38  ;;  %v2946_v11 = vld [vmem:[%s4787_s8 + $0xf0] sm:$0xff]  ;;  %2289 = vmatpush.bf16.msra.mxu2 %v2930_v2 }
 0x247   : > { %v3010_v10 = vpop.eup %3009  ;;  %v3743_v12 = vadd.f32 1e-05, %v731_v7  ;;  %v855_v59 = vsub.f32 1.5, %v854_v35  ;;  %v2922_v7 = vld [vmem:[%s4787_s8 + $0x30] sm:$0xff]  ;;  %2387 = vmatpush.bf16.msra.mxu0 %v2946_v11 }
 0x248   : > { %v862_v20 = vmul.f32 %v3010_v10, %v746_v49  ;;  %vm868_vm15 = vweird.f32 %v3010_v10  ;;  %v958_v42 = vadd.f32 %v3644_v46, %v939_v15 }
 0x249   : > { %3011 = vrsqrt.f32 %v3743_v12  ;;  %v856_v29 = vmul.f32 %v3008_v58, %v855_v59  ;;  %vm869_vm2 = vmor %vm867_vm1, %vm868_vm15  ;;  %vm877_vm7 = vweird.f32 %v3743_v12 }
 0x24a   : > { %v863_v33 = vmul.f32 %v3010_v10, %v862_v20  ;;  %3013 = vrsqrt.f32 %v3745_v18  ;;  %v969_v45 = vpack.c.bf16 %v958_v42, %v957_v19  ;;  %2290 = vmatpush.bf16.msra.mxu2 %v2929_v34 }
 0x24b   : > { %v860_v63 = vsel %vm859_vm4, %v3008_v58, %v856_v29  ;;  %v2939_v58 = vld [vmem:[%s4787_s8 + $0xb8] sm:$0xff] }
 0x24c   : > { %v864_v50 = vmul.f32 0.5, %v863_v33  ;;  %1203 = vmatmul.bf16.gmra.mxu1 %v969_v45  ;;  %1252 = vmatmul.bf16.gmra.mxu2 %v969_v45  ;;  %v921_v61 = vmul.f32 %v860_v63, %v3654_v62  ;;  %v2937_v33 = vld [vmem:[%s4787_s8 + $0xa8] sm:$0xff]  ;;  %v1282_v63 = vpop.f32.mrf.mxu3 }
 0x24d   : > { %1301 = vmatmul.bf16.gmra.mxu3 %v969_v45  ;;  %1350 = vmatmul.bf16.gmra.mxu0 %v969_v45 }
 0x24e   : > { %v865_v26 = vsub.f32 1.5, %v864_v50  ;;  %2337 = vmatpush.bf16.msra.mxu3 %v2939_v58  ;;  %v2945_v50 = vld [vmem:[%s4787_s8 + $0xe8] sm:$0xff] }
 0x24f   : > { %v3751_v30 = vpop.eup %3011  ;;  %2388 = vmatpush.bf16.msra.mxu0 %v2945_v50 }
 0x250   : > { %v866_v54 = vmul.f32 %v3010_v10, %v865_v26  ;;  %v3755_v37 = vpop.eup %3013  ;;  %v872_v52 = vmul.f32 %v3751_v30, %v3743_v12  ;;  %vm878_vm5 = vweird.f32 %v3751_v30 }
 0x251   : > { %v882_v43 = vmul.f32 %v3755_v37, %v3745_v18  ;;  %vm888_vm6 = vweird.f32 %v3755_v37  ;;  %vm879_vm8 = vmor %vm877_vm7, %vm878_vm5  ;;  %v1184_v18 = vpop.f32.mrf.mxu1 }
 0x252   : > { %v870_v9 = vsel %vm869_vm2, %v3010_v10, %v866_v54  ;;  %v873_v16 = vmul.f32 %v3751_v30, %v872_v52  ;;  %v940_v10 = vmul.f32 %v3629_v25, %v921_v61  ;;  %2338 = vmatpush.bf16.msra.mxu3 %v2938_v4  ;;  %vm889_vm10 = vmor %vm887_vm9, %vm888_vm6 }
 0x253   : > { %v922_v49 = vmul.f32 %v870_v9, %v3674_v13  ;;  %v883_v60 = vmul.f32 %v3755_v37, %v882_v43  ;;  %v2923_v13 = vld [vmem:[%s4787_s8 + $0x38] sm:$0xff]  ;;  %v716_v43 = vpop.xlane.xlu0 %715 }
 0x254   : > { %v874_v53 = vmul.f32 0.5, %v873_v16  ;;  %2239 = vmatpush.bf16.msra.mxu1 %v2923_v13  ;;  %v959_v38 = vadd.f32 %v3644_v46, %v940_v10  ;;  %v733_v9 = vmul.f32 %v716_v43, %v3309_v51 }
 0x255   : > { %v941_v62 = vmul.f32 %v3629_v25, %v922_v49  ;;  %v884_v6 = vmul.f32 0.5, %v883_v60  ;;  %v1005_v49 = vld [vmem:[%s4786_s7] sm:$0xf] }
 0x256   : > { %v875_v20 = vsub.f32 1.5, %v874_v53  ;;  %2339 = vmatpush.bf16.msra.mxu3 %v2937_v33  ;;  %v3826_v41 = vperm.slane %v1005_v49, 0  ;;  %v3830_v58 = vperm.slane %v1005_v49, 1  ;;  %v3832_v13 = vperm.slane %v1005_v49, 3 }
 0x257   : > { %v960_v55 = vadd.f32 %v3644_v46, %v941_v62  ;;  %v885_v35 = vsub.f32 1.5, %v884_v6  ;;  %v1284_v62 = vpop.f32.mrf.mxu3  ;;  %v3836_v6 = vperm.slane %v1005_v49, 2 }
 0x258   : > { %2240 = vmatpush.bf16.msra.mxu1 %v2922_v7  ;;  %v876_v26 = vmul.f32 %v3751_v30, %v875_v20  ;;  %v1185_v1 = vadd.f32 %v1184_v18, %v3826_v41 }
 0x259   : > { %v970_v59 = vpack.c.bf16 %v960_v55, %v959_v38  ;;  %v886_v14 = vmul.f32 %v3755_v37, %v885_v35  ;;  %v1186_v16 = vpop.f32.mrf.mxu1  ;;  %v3849_v33 = vadd.f32 %v1282_v63, %v3836_v6 }
 0x25a   : > { %v880_v15 = vsel %vm879_vm8, %v3751_v30, %v876_v26  ;;  %v3839_v7 = vadd.f32 %v1186_v16, %v3826_v41  ;;  %v1435_v20 = vmul.f32 0.044715, %v1185_v1 }
 0x25b   : > { %v890_v54 = vsel %vm889_vm10, %v3755_v37, %v886_v14  ;;  %v923_v29 = vmul.f32 %v880_v15, %v3691_v3  ;;  %v1331_v37 = vpop.f32.mrf.mxu0  ;;  %v749_v3 = vadd.f32 1e-05, %v733_v9  ;;  %v1437_v14 = vmul.f32 0.044715, %v3849_v33 }
 0x25c   : > { %2241 = vmatpush.bf16.msra.mxu1 %v2921_v17  ;;  %1257 = vmatmul.bf16.gmra.mxu2 %v970_v59  ;;  %v924_v52 = vmul.f32 %v890_v54, %v3677_v27  ;;  %v1233_v27 = vpop.f32.mrf.mxu2  ;;  %v3845_v11 = vadd.f32 %v1331_v37, %v3832_v13  ;;  %v1439_v35 = vmul.f32 0.044715, %v3839_v7  ;;  %v1499_v50 = vmul.f32 %v1435_v20, %v1185_v1 }
 0x25d   : > { %1208 = vmatmul.bf16.gmra.mxu1 %v970_v59  ;;  %1306 = vmatmul.bf16.gmra.mxu3 %v970_v59  ;;  %v942_v12 = vmul.f32 %v3629_v25, %v923_v29  ;;  %3015 = vrsqrt.f32 %v749_v3  ;;  %v3842_v10 = vadd.f32 %v1233_v27, %v3830_v58  ;;  %v3860_v54 = vadd.f32 %v1284_v62, %v3836_v6 }
 0x25e   : > { %1355 = vmatmul.bf16.gmra.mxu0 %v970_v59  ;;  %v943_v19 = vmul.f32 %v3629_v25, %v924_v52  ;;  %v1438_v38 = vmul.f32 0.044715, %v3845_v11  ;;  %v1503_v15 = vmul.f32 %v1439_v35, %v3839_v7  ;;  %v1563_v18 = vmul.f32 %v1499_v50, %v1185_v1 }
 0x25f   : > { %v961_v42 = vadd.f32 %v3644_v46, %v942_v12  ;;  %v1436_v17 = vmul.f32 0.044715, %v3842_v10  ;;  %v1287_v12 = vpop.f32.mrf.mxu3  ;;  %v1501_v9 = vmul.f32 %v1437_v14, %v3849_v33  ;;  %v1441_v27 = vmul.f32 0.044715, %v3860_v54 }
 0x260   : > { %v962_v30 = vadd.f32 %v3644_v46, %v943_v19  ;;  %vm897_vm12 = vweird.f32 %v749_v3 }
 0x261   : > { %v1189_v4 = vpop.f32.mrf.mxu1  ;;  %v1500_v52 = vmul.f32 %v1436_v17, %v3842_v10  ;;  %v1565_v20 = vmul.f32 %v1501_v9, %v3849_v33 }
 0x262   : > { %v971_v45 = vpack.c.bf16 %v962_v30, %v961_v42  ;;  %v1502_v42 = vmul.f32 %v1438_v38, %v3845_v11 }
 0x263   : > { %v1333_v60 = vpop.f32.mrf.mxu0  ;;  %v3828_v61 = vpop.eup %3015  ;;  %v1564_v63 = vmul.f32 %v1500_v52, %v3842_v10 }
 0x264   : > { %v1235_v53 = vpop.f32.mrf.mxu2  ;;  %v892_v2 = vmul.f32 %v3828_v61, %v749_v3  ;;  %v3868_v37 = vadd.f32 %v1333_v60, %v3832_v13  ;;  %v1566_v49 = vmul.f32 %v1502_v42, %v3845_v11  ;;  %vm898_vm11 = vweird.f32 %v3828_v61 }
 0x265   : > { %v3855_v59 = vadd.f32 %v1235_v53, %v3830_v58  ;;  %v1627_v53 = vadd.f32 %v1563_v18, %v1185_v1  ;;  %v1505_v60 = vmul.f32 %v1441_v27, %v3860_v54  ;;  %v1628_v17 = vadd.f32 %v1564_v63, %v3842_v10  ;;  %vm3881_vm13 = vmor %vm897_vm12, %vm898_vm11 }
 0x266   : > { %v893_v34 = vmul.f32 %v3828_v61, %v892_v2  ;;  %v1629_v3 = vadd.f32 %v1565_v20, %v3849_v33  ;;  %v3896_v27 = vadd.f32 %v1189_v4, %v3826_v41  ;;  %v2944_v20 = vld [vmem:[%s4787_s8 + $0xe0] sm:$0xff] }
 0x267   : > { %v1440_v30 = vmul.f32 0.044715, %v3855_v59  ;;  %v1691_v14 = vmul.f32 0.7978846, %v1627_v53  ;;  %v1289_v18 = vpop.f32.mrf.mxu3  ;;  %v1569_v9 = vmul.f32 %v1505_v60, %v3860_v54  ;;  %v2936_v53 = vld [vmem:[%s4787_s8 + $0xa0] sm:$0xff]  ;;  %2389 = vmatpush.bf16.msra.mxu0 %v2944_v20 }
 0x268   : > { %v894_v26 = vmul.f32 0.5, %v893_v34  ;;  %v1442_v34 = vmul.f32 0.044715, %v3868_v37  ;;  %2340 = vmatpush.bf16.msra.mxu3 %v2936_v53  ;;  %v3961_v53 = vadd.f32 %v1289_v18, %v3836_v6  ;;  %v3974_v18 = vmul.f32 0.5, %v3849_v33 }
 0x269   : > { %v1191_v19 = vpop.f32.mrf.mxu1  ;;  %v1504_v62 = vmul.f32 %v1440_v30, %v3855_v59  ;;  %3017 = vtanh.f32 %v1691_v14 }
 0x26a   : > { %v895_v43 = vsub.f32 1.5, %v894_v26  ;;  %v3885_v26 = vmul.f32 0.5, %v1185_v1  ;;  %v1506_v30 = vmul.f32 %v1442_v34, %v3868_v37  ;;  %v1692_v1 = vmul.f32 0.7978846, %v1628_v17 }
 0x26b   : > { %v1336_v55 = vpop.f32.mrf.mxu0  ;;  %v1568_v42 = vmul.f32 %v1504_v62, %v3855_v59  ;;  %v1693_v17 = vmul.f32 0.7978846, %v1629_v3 }
 0x26c   : > { %1262 = vmatmul.bf16.gmra.mxu2 %v971_v45  ;;  %v1238_v29 = vpop.f32.mrf.mxu2  ;;  %v896_v2 = vmul.f32 %v3828_v61, %v895_v43  ;;  %v3899_v63 = vadd.f32 %v1336_v55, %v3832_v13  ;;  %v1570_v38 = vmul.f32 %v1506_v30, %v3868_v37 }
 0x26d   : > { %1213 = vmatmul.bf16.gmra.mxu1 %v971_v45  ;;  %1311 = vmatmul.bf16.gmra.mxu3 %v971_v45  ;;  %v3915_v55 = vadd.f32 %v1238_v29, %v3830_v58  ;;  %v2935_v29 = vld [vmem:[%s4787_s8 + $0x98] sm:$0xff] }
 0x26e   : > { %1360 = vmatmul.bf16.gmra.mxu0 %v971_v45  ;;  %v1567_v45 = vmul.f32 %v1503_v15, %v3839_v7  ;;  %v1630_v15 = vadd.f32 %v1566_v49, %v3845_v11  ;;  %v900_v52 = vsel %vm3881_vm13, %v3828_v61, %v896_v2  ;;  %v3902_v61 = vadd.f32 %v1191_v19, %v3826_v41  ;;  %v2928_v49 = vld [vmem:[%s4787_s8 + $0x60] sm:$0xff] }
 0x26f   : > { %v2920_v2 = vld [vmem:[%s4787_s8 + $0x20] sm:$0xff]  ;;  %v925_v4 = vmul.f32 %v900_v52, %v3694_v21  ;;  %v3918_v19 = vadd.f32 %v1287_v12, %v3836_v6  ;;  %2291 = vmatpush.bf16.msra.mxu2 %v2928_v49  ;;  %v2927_v21 = vld [vmem:[%s4787_s8 + $0x58] sm:$0xff]  ;;  %v1632_v12 = vadd.f32 %v1568_v42, %v3855_v59  ;;  %v1443_v52 = vmul.f32 0.044715, %v3896_v27  ;;  %2341 = vmatpush.bf16.msra.mxu3 %v2935_v29 }
 0x270   : > { %v1631_v35 = vadd.f32 %v1567_v45, %v3839_v7  ;;  %v3926_v34 = vmul.f32 0.7978846, %v1630_v15  ;;  %2242 = vmatpush.bf16.msra.mxu1 %v2920_v2  ;;  %v1633_v15 = vadd.f32 %v1569_v9, %v3860_v54  ;;  %v1447_v14 = vmul.f32 0.044715, %v3902_v61 }
 0x271   : > { %v1194_v43 = vpop.f32.mrf.mxu1  ;;  %v3946_v42 = vmul.f32 0.044715, %v3915_v55  ;;  %v944_v30 = vmul.f32 %v3629_v25, %v925_v4  ;;  %v1696_v49 = vmul.f32 0.7978846, %v1632_v12  ;;  %v2919_v25 = vld [vmem:[%s4787_s8 + $0x18] sm:$0xff]  ;;  %v3018_v4 = vpop.eup %3017  ;;  %v1507_v33 = vmul.f32 %v1443_v52, %v3896_v27 }
 0x272   : > { %v1695_v45 = vmul.f32 0.7978846, %v1631_v35  ;;  %v3921_v62 = vadd.f32 %v1194_v43, %v3826_v41  ;;  %v3936_v35 = vmul.f32 0.5, %v3845_v11  ;;  %v3942_v43 = vmul.f32 0.044715, %v3899_v63 }
 0x273   : > { %v1338_v16 = vpop.f32.mrf.mxu0  ;;  %v3949_v11 = vmul.f32 0.044715, %v3918_v19  ;;  %2292 = vmatpush.bf16.msra.mxu2 %v2927_v21  ;;  %v1292_v21 = vpop.f32.mrf.mxu3 }
 0x274   : > { %v1240_v50 = vpop.f32.mrf.mxu2  ;;  %3019 = vtanh.f32 %v1695_v45  ;;  %v1451_v3 = vmul.f32 0.044715, %v3921_v62  ;;  %v3954_v9 = vadd.f32 %v1338_v16, %v3832_v13  ;;  %v1372_v16 = vmul.f32 0.5, %v3842_v10  ;;  %2243 = vmatpush.bf16.msra.mxu1 %v2919_v25  ;;  %v2943_v10 = vld [vmem:[%s4787_s8 + $0xd8] sm:$0xff] }
 0x275   : > { %3021 = vtanh.f32 %v1692_v1  ;;  %v3957_v45 = vadd.f32 %v1240_v50, %v3830_v58  ;;  %v1375_v1 = vmul.f32 0.5, %v3839_v7  ;;  %v1697_v50 = vmul.f32 0.7978846, %v1633_v15  ;;  %2390 = vmatpush.bf16.msra.mxu0 %v2943_v10 }
 0x276   : > { %v3971_v7 = vmul.f32 0.5, %v3855_v59  ;;  %3023 = vtanh.f32 %v1693_v17  ;;  %v3978_v24 = vmul.f32 %v1451_v3, %v3921_v62  ;;  %v3984_v15 = vadd.f32 %v3644_v46, %v944_v30 }
 0x277   : > { %v3987_v59 = vmul.f32 0.5, %v3860_v54  ;;  %3025 = vtanh.f32 %v1696_v49  ;;  %v1634_v25 = vadd.f32 %v1570_v38, %v3868_v37  ;;  %v3997_v56 = vadd.f32 %v1292_v21, %v3836_v6 }
 0x278   : > { %3027 = vtanh.f32 %v1697_v50  ;;  %v1571_v49 = vmul.f32 %v1507_v33, %v3896_v27  ;;  %v1448_v10 = vmul.f32 0.044715, %v3957_v45 }
 0x279   : > { %v1196_v29 = vpop.f32.mrf.mxu1  ;;  %3029 = vtanh.f32 %v3926_v34  ;;  %v1698_v50 = vmul.f32 0.7978846, %v1634_v25 }
 0x27a   : > { %v3020_v12 = vpop.eup %3019  ;;  %v4000_v46 = vadd.f32 %v1196_v29, %v3826_v41  ;;  %v1635_v28 = vadd.f32 %v1571_v49, %v3896_v27  ;;  %v1512_v8 = vmul.f32 %v1448_v10, %v3957_v45 }
 0x27b   : > { %v1341_v60 = vpop.f32.mrf.mxu0  ;;  %v3022_v17 = vpop.eup %3021  ;;  %v1823_v30 = vadd.f32 1.0, %v3020_v12 }
 0x27c   : > { %v3964_v2 = vadd.f32 %v1341_v60, %v3832_v13  ;;  %v1243_v20 = vpop.f32.mrf.mxu2  ;;  %v1511_v60 = vmul.f32 %v1447_v14, %v3902_v61  ;;  %v1820_v38 = vadd.f32 1.0, %v3022_v17  ;;  %v3024_v21 = vpop.eup %3023  ;;  %v4024_v17 = vmul.f32 0.5, %v3896_v27 }
 0x27d   : > { %v3991_v14 = vadd.f32 %v1243_v20, %v3830_v58  ;;  %v4005_v20 = vmul.f32 0.5, %v3868_v37  ;;  %v1453_v37 = vmul.f32 0.044715, %v3997_v56  ;;  %v3026_v34 = vpop.eup %3025  ;;  %v4021_v33 = vmul.f32 %v1823_v30, %v1375_v1 }
 0x27e   : > { %v1454_v48 = vmul.f32 0.044715, %v3964_v2  ;;  %v1821_v36 = vadd.f32 1.0, %v3024_v21  ;;  %v4039_v30 = vmul.f32 %v1820_v38, %v1372_v16  ;;  %v1449_v21 = vmul.f32 0.044715, %v3961_v53 }
 0x27f   : > { %v1452_v29 = vmul.f32 0.044715, %v3991_v14  ;;  %v1576_v40 = vmul.f32 %v1512_v8, %v3957_v45  ;;  %v1509_v16 = vmul.f32 %v3949_v11, %v3918_v19 }
 0x280   : > { %v4014_v12 = vmul.f32 %v1454_v48, %v3964_v2  ;;  %v3028_v48 = vpop.eup %3027  ;;  %v4057_v10 = vmul.f32 %v1821_v36, %v3974_v18  ;;  %v1513_v11 = vmul.f32 %v1449_v21, %v3961_v53 }
 0x281   : > { %v4037_v1 = vmul.f32 %v1452_v29, %v3991_v14  ;;  %v3030_v0 = vpop.eup %3029  ;;  %v1825_v38 = vadd.f32 1.0, %v3028_v48  ;;  %v1294_v29 = vpop.f32.mrf.mxu3 }
 0x283   : > { %v1343_v54 = vpop.f32.mrf.mxu0  ;;  %v4078_v8 = vmul.f32 %v1825_v38, %v3987_v59  ;;  %v2926_v59 = vld [vmem:[%s4787_s8 + $0x50] sm:$0xff]  ;;  %v1640_v38 = vadd.f32 %v1576_v40, %v3957_v45 }
 0x284   : > { %2293 = vmatpush.bf16.msra.mxu2 %v2926_v59 }
 0x285   : > { %v1949_v59 = vpack.c.bf16 %v4078_v8, %v4057_v10 }
 0x2a6   : > { %v718_v57 = vpop.xlane.xlu1 %717 }
 0x2a7   : > { %v734_v3 = vmul.f32 %v718_v57, %v3309_v51  ;;  %v1575_v51 = vmul.f32 %v1511_v60, %v3902_v61  ;;  %v1819_v57 = vadd.f32 1.0, %v3018_v4  ;;  %v1455_v4 = vmul.f32 0.044715, %v4000_v46 }
 0x2a8   : > { %v4019_v60 = vadd.f32 %v1343_v54, %v3832_v13  ;;  %v1508_v54 = vmul.f32 %v3946_v42, %v3915_v55  ;;  %v1245_v42 = vpop.f32.mrf.mxu2 }
 0x2a9   : > { %v4002_v52 = vadd.f32 1e-05, %v734_v3  ;;  %v4027_v3 = vmul.f32 0.5, %v3902_v61  ;;  %v1639_v25 = vadd.f32 %v1575_v51, %v3902_v61  ;;  %v4031_v47 = vmul.f32 %v1819_v57, %v3885_v26 }
 0x2aa   : > { %v4043_v61 = vmul.f32 %v1453_v37, %v3997_v56  ;;  %v4046_v26 = vmul.f32 %v1455_v4, %v4000_v46  ;;  %v1458_v27 = vmul.f32 0.044715, %v4019_v60  ;;  %v1824_v51 = vadd.f32 1.0, %v3026_v34 }
 0x2ab   : > { %3031 = vrsqrt.f32 %v4002_v52  ;;  %v1703_v49 = vmul.f32 0.7978846, %v1639_v25  ;;  %v1699_v37 = vmul.f32 0.7978846, %v1635_v28  ;;  %v1572_v4 = vmul.f32 %v1508_v54, %v3915_v55 }
 0x2ac   : > { %3033 = vtanh.f32 %v1698_v50  ;;  %v1822_v34 = vadd.f32 1.0, %v3030_v0  ;;  %v1450_v25 = vmul.f32 0.044715, %v3954_v9  ;;  %v4065_v48 = vmul.f32 %v1458_v27, %v4019_v60 }
 0x2ad   : > { %v4068_v32 = vadd.f32 %v1245_v42, %v3830_v58  ;;  %v4072_v28 = vmul.f32 %v1824_v51, %v3971_v7  ;;  %v4075_v0 = vadd.f32 %v1294_v29, %v3836_v6  ;;  %3035 = vtanh.f32 %v1703_v49  ;;  %v2918_v7 = vld [vmem:[%s4787_s8 + $0x10] sm:$0xff] }
 0x2ae   : > { %3037 = vtanh.f32 %v1699_v37  ;;  %v1636_v27 = vadd.f32 %v1572_v4, %v3915_v55  ;;  %v1510_v42 = vmul.f32 %v3942_v43, %v3899_v63  ;;  %v2934_v51 = vld [vmem:[%s4787_s8 + $0x90] sm:$0xff]  ;;  %v1573_v49 = vmul.f32 %v1509_v16, %v3918_v19  ;;  %2244 = vmatpush.bf16.msra.mxu1 %v2918_v7  ;;  %v2933_v7 = vld [vmem:[%s4787_s8 + $0x88] sm:$0xff] }
 0x2af   : > { %v1514_v43 = vmul.f32 %v1450_v25, %v3954_v9  ;;  %v1456_v21 = vmul.f32 0.044715, %v4068_v32  ;;  %v4102_v4 = vmul.f32 %v1822_v34, %v3936_v35  ;;  %vm907_vm15 = vweird.f32 %v4002_v52  ;;  %2342 = vmatpush.bf16.msra.mxu3 %v2934_v51 }
 0x2b0   : > { %v4108_v16 = vmul.f32 0.5, %v3915_v55  ;;  %v1577_v25 = vmul.f32 %v1513_v11, %v3961_v53  ;;  %v1574_v34 = vmul.f32 %v1510_v42, %v3899_v63  ;;  %v2917_v55 = vld [vmem:[%s4787_s8 + $0x8] sm:$0xff]  ;;  %v1704_v51 = vmul.f32 0.7978846, %v1640_v38 }
 0x2b1   : > { %v4049_v57 = vpop.eup %3031  ;;  %v2925_v11 = vld [vmem:[%s4787_s8 + $0x48] sm:$0xff]  ;;  %v1578_v42 = vmul.f32 %v1514_v43, %v3954_v9  ;;  %v1579_v38 = vmul.f32 %v3978_v24, %v3921_v62  ;;  %v4147_v43 = vmul.f32 0.5, %v3957_v45 }
 0x2b2   : > { %v902_v50 = vmul.f32 %v4049_v57, %v4002_v52  ;;  %v3034_v18 = vpop.eup %3033  ;;  %vm908_vm14 = vweird.f32 %v4049_v57  ;;  %v1700_v52 = vmul.f32 0.7978846, %v1636_v27  ;;  %v1637_v27 = vadd.f32 %v1573_v49, %v3918_v19  ;;  %2245 = vmatpush.bf16.msra.mxu1 %v2917_v55  ;;  %2294 = vmatpush.bf16.msra.mxu2 %v2925_v11 }
 0x2b3   : > { %v1826_v37 = vadd.f32 1.0, %v3034_v18  ;;  %vm4115_vm0 = vmor %vm907_vm15, %vm908_vm14  ;;  %v3036_v18 = vpop.eup %3035  ;;  %2343 = vmatpush.bf16.msra.mxu3 %v2933_v7  ;;  %v1638_v24 = vadd.f32 %v1574_v34, %v3899_v63  ;;  %v4175_v55 = vmul.f32 0.5, %v3918_v19  ;;  %v4178_v11 = vmul.f32 0.5, %v3961_v53  ;;  %v3148_v7 = vld [vmem:[%s4784_s5] ss:$0 sm:$0xff] }
 0x2b4   : > { %v903_v36 = vmul.f32 %v4049_v57, %v902_v50  ;;  %v2942_v50 = vld [vmem:[%s4787_s8 + $0xd0] sm:$0xff]  ;;  %3039 = vtanh.f32 %v1700_v52  ;;  %v2940_v52 = vld [vmem:[%s4787_s8 + $0xc0] sm:$0xff] }
 0x2b5   : > { %2391 = vmatpush.bf16.msra.mxu0 %v2942_v50  ;;  %v1520_v50 = vmul.f32 %v1456_v21, %v4068_v32  ;;  %v4141_v44 = vmul.f32 %v1826_v37, %v4005_v20  ;;  %v1641_v21 = vadd.f32 %v1577_v25, %v3961_v53  ;;  %v1831_v20 = vadd.f32 1.0, %v3036_v18  ;;  %v2916_v37 = vld [vmem:[%s4787_s8] sm:$0xff] }
 0x2b6   : > { %v904_v54 = vmul.f32 0.5, %v903_v36  ;;  %v1457_v36 = vmul.f32 0.044715, %v4075_v0  ;;  %3041 = vtanh.f32 %v1704_v51  ;;  %v1642_v25 = vadd.f32 %v1578_v42, %v3954_v9  ;;  %2246 = vmatpush.bf16.msra.mxu1 %v2916_v37 }
 0x2b7   : > { %v1643_v42 = vadd.f32 %v1579_v38, %v3921_v62  ;;  %v4186_v19 = vmul.f32 %v1831_v20, %v4027_v3  ;;  %v4189_v53 = vmul.f32 0.5, %v3899_v63  ;;  %v1584_v38 = vmul.f32 %v1520_v50, %v4068_v32 }
 0x2b8   : > { %v905_v29 = vsub.f32 1.5, %v904_v54  ;;  %v4153_v35 = vpop.f32.mrf.mxu1  ;;  %v4199_v3 = vmul.f32 0.5, %v3954_v9  ;;  %v4202_v63 = vmul.f32 0.5, %v3921_v62  ;;  %v4205_v20 = vmul.f32 0.5, %v4000_v46 }
 0x2b9   : > { %2392 = vmatpush.bf16.msra.mxu0 %v2941_v23  ;;  %v2932_v23 = vld [vmem:[%s4787_s8 + $0x80] sm:$0xff]  ;;  %v1581_v50 = vmul.f32 %v4043_v61, %v3997_v56  ;;  %v4210_v9 = vmul.f32 0.5, %v3991_v14  ;;  %v1582_v61 = vmul.f32 %v4014_v12, %v3964_v2 }
 0x2ba   : > { %v906_v54 = vmul.f32 %v4049_v57, %v905_v29  ;;  %v3038_v29 = vpop.eup %3037  ;;  %2344 = vmatpush.bf16.msra.mxu3 %v2932_v23 }
 0x2bb   : > { %v1827_v18 = vadd.f32 1.0, %v3038_v29  ;;  %v1702_v29 = vmul.f32 0.7978846, %v1638_v24  ;;  %v3040_v37 = vpop.eup %3039  ;;  %v1645_v12 = vadd.f32 %v1581_v50, %v3997_v56 }
 0x2bc   : > { %v910_v40 = vsel %vm4115_vm0, %v4049_v57, %v906_v54  ;;  %v1583_v57 = vmul.f32 %v4046_v26, %v4000_v46  ;;  %v1521_v54 = vmul.f32 %v1457_v36, %v4075_v0  ;;  %v2924_v26 = vld [vmem:[%s4787_s8 + $0x40] sm:$0xff]  ;;  %v1346_v36 = vpop.f32.mrf.mxu0 }
 0x2bd   : > { %v926_v49 = vmul.f32 %v910_v40, %v3724_v5  ;;  %v3147_v5 = vld [vmem:[%s4783_s4] ss:$0 sm:$0xff]  ;;  %v1701_v40 = vmul.f32 0.7978846, %v1637_v27  ;;  %2295 = vmatpush.bf16.msra.mxu2 %v2924_v26  ;;  %v1705_v27 = vmul.f32 0.7978846, %v1641_v21  ;;  %2393 = vmatpush.bf16.msra.mxu0 %v2940_v52 }
 0x2be   : > { %v1706_v21 = vmul.f32 0.7978846, %v1642_v25  ;;  %v1828_v52 = vadd.f32 1.0, %v3040_v37 }
 0x2bf   : > { %v945_v45 = vmul.f32 %v3147_v5, %v926_v49  ;;  %v1647_v49 = vadd.f32 %v1583_v57, %v4000_v46  ;;  %v1580_v5 = vmul.f32 %v4037_v1, %v3991_v14  ;;  %3043 = vtanh.f32 %v1701_v40  ;;  %v3042_v1 = vpop.eup %3041  ;;  %v1297_v26 = vpop.f32.mrf.mxu3 }
 0x2c0   : > { %v4196_v57 = vmul.f32 %v1827_v18, %v4024_v17  ;;  %3045 = vtanh.f32 %v1705_v27  ;;  %v1248_v17 = vpop.f32.mrf.mxu2  ;;  %v1585_v46 = vmul.f32 %v1521_v54, %v4075_v0  ;;  %v1648_v40 = vadd.f32 %v1584_v38, %v4068_v32  ;;  %v1201_v25 = vpop.f32.mrf.mxu1 }
 0x2c1   : > { %v964_v51 = vadd.f32 %v3148_v7, %v945_v45  ;;  %v1711_v24 = vmul.f32 0.7978846, %v1647_v49  ;;  %3047 = vtanh.f32 %v1702_v29  ;;  %v1644_v62 = vadd.f32 %v1580_v5, %v3991_v14 }
 0x2c2   : > { %3049 = vtanh.f32 %v1706_v21  ;;  %v1832_v18 = vadd.f32 1.0, %v3042_v1  ;;  %v4220_v7 = vmul.f32 0.5, %v4068_v32  ;;  %v1586_v14 = vmul.f32 %v4065_v48, %v4019_v60 }
 0x2c3   : > { %v972_v45 = vpack.c.bf16 %v964_v51, %v3984_v15  ;;  %v1707_v15 = vmul.f32 0.7978846, %v1643_v42  ;;  %v4226_v51 = vadd.f32 %v4153_v35, %v3826_v41  ;;  %v4229_v27 = vadd.f32 %v1346_v36, %v3832_v13 }
 0x2c4   : > { %3051 = vtanh.f32 %v1711_v24  ;;  %v1348_v42 = vpop.f32.mrf.mxu0  ;;  %v1708_v49 = vmul.f32 0.7978846, %v1644_v62  ;;  %v4233_v32 = vmul.f32 0.5, %v3997_v56  ;;  %v1649_v29 = vadd.f32 %v1585_v46, %v4075_v0 }
 0x2c5   : > { %1218 = vmatmul.bf16.gmra.mxu1 %v972_v45  ;;  %1267 = vmatmul.bf16.gmra.mxu2 %v972_v45  ;;  %v3044_v54 = vpop.eup %3043  ;;  %3053 = vtanh.f32 %v1707_v15  ;;  %v4237_v5 = vadd.f32 %v1201_v25, %v3826_v41  ;;  %v1712_v35 = vmul.f32 0.7978846, %v1648_v40  ;;  %v1646_v36 = vadd.f32 %v1582_v61, %v3964_v2 }
 0x2c6   : > { %1316 = vmatmul.bf16.gmra.mxu3 %v972_v45  ;;  %1365 = vmatmul.bf16.gmra.mxu0 %v972_v45  ;;  %v3046_v48 = vpop.eup %3045  ;;  %v4240_v45 = vmul.f32 0.5, %v4075_v0  ;;  %v4244_v38 = vmul.f32 %v1828_v52, %v4108_v16  ;;  %v4247_v37 = vmul.f32 %v1832_v18, %v4147_v43  ;;  %v1829_v56 = vadd.f32 1.0, %v3044_v54 }
 0x2c7   : > { %v3048_v21 = vpop.eup %3047  ;;  %v1650_v1 = vadd.f32 %v1586_v14, %v4019_v60  ;;  %v1459_v24 = vmul.f32 0.044715, %v4226_v51  ;;  %v1462_v50 = vmul.f32 0.044715, %v4229_v27  ;;  %v4253_v0 = vadd.f32 %v1348_v42, %v3832_v13 }
 0x2c8   : > { %v3050_v15 = vpop.eup %3049  ;;  %v1709_v62 = vmul.f32 0.7978846, %v1645_v12  ;;  %v4256_v46 = vadd.f32 %v1248_v17, %v3830_v58  ;;  %v4259_v16 = vadd.f32 %v1297_v26, %v3836_v6  ;;  %3055 = vtanh.f32 %v1708_v49  ;;  %v1250_v14 = vpop.f32.mrf.mxu2 }
 0x2c9   : > { %v1713_v43 = vmul.f32 0.7978846, %v1649_v29  ;;  %v1463_v61 = vmul.f32 0.044715, %v4237_v5  ;;  %v1833_v25 = vadd.f32 1.0, %v3046_v48  ;;  %3057 = vtanh.f32 %v1712_v35  ;;  %v1299_v29 = vpop.f32.mrf.mxu3 }
 0x2ca   : > { %v3052_v40 = vpop.eup %3051  ;;  %v1710_v52 = vmul.f32 0.7978846, %v1646_v36  ;;  %v1952_v54 = vpack.c.bf16 %v4247_v37, %v4244_v38  ;;  %v1830_v12 = vadd.f32 1.0, %v3048_v21  ;;  %v1834_v42 = vadd.f32 1.0, %v3050_v15 }
 0x2cb   : > { %v3054_v18 = vpop.eup %3053  ;;  %v1714_v17 = vmul.f32 0.7978846, %v1650_v1  ;;  %v1523_v23 = vmul.f32 %v1459_v24, %v4226_v51  ;;  %v1526_v26 = vmul.f32 %v1462_v50, %v4229_v27  ;;  %v1466_v49 = vmul.f32 0.044715, %v4253_v0 }
 0x2cc   : > { %3059 = vtanh.f32 %v1709_v62  ;;  %v1460_v48 = vmul.f32 0.044715, %v4256_v46  ;;  %v1461_v35 = vmul.f32 0.044715, %v4259_v16  ;;  %v1839_v36 = vadd.f32 1.0, %v3052_v40 }
 0x2cd   : > { %3061 = vtanh.f32 %v1713_v43  ;;  %v1527_v34 = vmul.f32 %v1463_v61, %v4237_v5  ;;  %v4271_v21 = vadd.f32 %v1250_v14, %v3830_v58  ;;  %v4274_v1 = vmul.f32 %v1833_v25, %v4178_v11  ;;  %v1204_v61 = vpop.f32.mrf.mxu1 }
 0x2ce   : > { %3063 = vtanh.f32 %v1710_v52  ;;  %v3056_v15 = vpop.eup %3055  ;;  %v4277_v24 = vadd.f32 %v1299_v29, %v3836_v6  ;;  %v4280_v50 = vmul.f32 %v1834_v42, %v4199_v3  ;;  %v1835_v62 = vadd.f32 1.0, %v3054_v18 }
 0x2cf   : > { %3065 = vtanh.f32 %v1714_v17  ;;  %v3058_v40 = vpop.eup %3057  ;;  %v1530_v43 = vmul.f32 %v1466_v49, %v4253_v0  ;;  %v4824_v14 = vpack.c.bf16 %v4021_v33, %v4031_v47  ;;  %v4825_v11 = vpack.c.bf16 %v4072_v28, %v4039_v30  ;;  %v1351_v17 = vpop.f32.mrf.mxu0 }
 0x2d0   : > { %v1390_v25 = vmul.f32 0.5, %v3964_v2  ;;  %v1587_v52 = vmul.f32 %v1523_v23, %v4226_v51  ;;  %v1590_v3 = vmul.f32 %v1526_v26, %v4229_v27  ;;  %v1524_v18 = vmul.f32 %v1460_v48, %v4256_v46 }
 0x2d1   : > { %v1525_v42 = vmul.f32 %v1461_v35, %v4259_v16  ;;  %v4826_v47 = vpack.c.bf16 %v4141_v44, %v4102_v4  ;;  %v4301_v33 = vmul.f32 %v1839_v36, %v4205_v20  ;;  %v1394_v2 = vmul.f32 0.5, %v4019_v60  ;;  %v1253_v36 = vpop.f32.mrf.mxu2 }
 0x2d2   : > { %v3060_v30 = vpop.eup %3059  ;;  %v1464_v28 = vmul.f32 0.044715, %v4271_v21  ;;  %v4306_v23 = vmul.f32 %v1829_v56, %v4175_v55  ;;  %v1836_v26 = vadd.f32 1.0, %v3056_v15  ;;  %v1591_v49 = vmul.f32 %v1527_v34, %v4237_v5 }
 0x2d3   : > { %v3062_v10 = vpop.eup %3061  ;;  %v1465_v8 = vmul.f32 0.044715, %v4277_v24  ;;  %v4311_v44 = vmul.f32 %v1830_v12, %v4189_v53  ;;  %v4314_v4 = vmul.f32 %v1835_v62, %v4202_v63  ;;  %v1651_v55 = vadd.f32 %v1587_v52, %v4226_v51 }
 0x2d4   : > { %v3064_v60 = vpop.eup %3063  ;;  %v1953_v20 = vpack.c.bf16 %v4274_v1, %v4306_v23  ;;  %v1594_v56 = vmul.f32 %v1530_v43, %v4253_v0  ;;  %v1654_v34 = vadd.f32 %v1590_v3, %v4229_v27  ;;  %v1588_v63 = vmul.f32 %v1524_v18, %v4256_v46 }
 0x2d5   : > { %2247 = vmatmul.bf16.vlgmr.msra.gmra.mxu1 %v4824_v14  ;;  %2296 = vmatmul.bf16.vlgmr.msra.gmra.mxu2 %v4825_v11  ;;  %v3066_v29 = vpop.eup %3065  ;;  %v1954_v48 = vpack.c.bf16 %v4280_v50, %v4311_v44  ;;  %v1955_v53 = vpack.c.bf16 %v4301_v33, %v4314_v4  ;;  %v1589_v12 = vmul.f32 %v1525_v42, %v4259_v16  ;;  %v1837_v62 = vadd.f32 1.0, %v3060_v30  ;;  %v1302_v14 = vpop.f32.mrf.mxu3 }
 0x2d6   : > { %2345 = vmatmul.bf16.vlgmr.msra.gmra.mxu3 %v1949_v59  ;;  %2394 = vmatmul.bf16.vlgmr.msra.gmra.mxu0 %v4826_v47  ;;  %v1840_v59 = vadd.f32 1.0, %v3058_v40  ;;  %v1528_v35 = vmul.f32 %v1464_v28, %v4271_v21  ;;  %v4329_v15 = vmul.f32 %v1836_v26, %v4210_v9  ;;  %v1655_v40 = vadd.f32 %v1591_v49, %v4237_v5  ;;  %v1206_v3 = vpop.f32.mrf.mxu1 }
 0x2d7   : > { %v1529_v43 = vmul.f32 %v1465_v8, %v4277_v24  ;;  %v1841_v11 = vadd.f32 1.0, %v3062_v10  ;;  %v1838_v52 = vadd.f32 1.0, %v3064_v60  ;;  %v1842_v18 = vadd.f32 1.0, %v3066_v29  ;;  %v1353_v60 = vpop.f32.mrf.mxu0 }
 0x2d8   : > { %v4334_v50 = vmul.f32 %v1840_v59, %v4220_v7  ;;  %v1715_v42 = vmul.f32 0.7978846, %v1651_v55  ;;  %v1658_v47 = vadd.f32 %v1594_v56, %v4253_v0  ;;  %v1718_v28 = vmul.f32 0.7978846, %v1654_v34 }
 0x2d9   : > { %v4338_v9 = vadd.f32 %v1204_v61, %v3826_v41  ;;  %v4341_v30 = vadd.f32 %v1206_v3, %v3826_v41  ;;  %v1652_v26 = vadd.f32 %v1588_v63, %v4256_v46  ;;  %v1653_v49 = vadd.f32 %v1589_v12, %v4259_v16 }
 0x2da   : > { %v4346_v7 = vadd.f32 %v1253_v36, %v3830_v58  ;;  %v4349_v10 = vmul.f32 %v1837_v62, %v4233_v32  ;;  %v1719_v8 = vmul.f32 0.7978846, %v1655_v40  ;;  %v1592_v44 = vmul.f32 %v1528_v35, %v4271_v21 }
 0x2db   : > { %v4353_v59 = vadd.f32 %v1302_v14, %v3836_v6  ;;  %v1471_v61 = vmul.f32 0.044715, %v4341_v30  ;;  %v4357_v55 = vmul.f32 %v1841_v11, %v4240_v45  ;;  %v1593_v56 = vmul.f32 %v1529_v43, %v4277_v24  ;;  %v1255_v45 = vpop.f32.mrf.mxu2 }
 0x2dc   : > { %v4360_v34 = vmul.f32 %v1838_v52, %v1390_v25  ;;  %v4362_v29 = vmul.f32 %v1842_v18, %v1394_v2  ;;  %3067 = vtanh.f32 %v1715_v42  ;;  %v1722_v32 = vmul.f32 0.7978846, %v1658_v47 }
 0x2dd   : > { %v1467_v63 = vmul.f32 0.044715, %v4338_v9  ;;  %v1716_v12 = vmul.f32 0.7978846, %v1652_v26  ;;  %v1717_v35 = vmul.f32 0.7978846, %v1653_v49  ;;  %3069 = vtanh.f32 %v1718_v28  ;;  %v1304_v14 = vpop.f32.mrf.mxu3 }
 0x2de   : > { %v4366_v36 = vadd.f32 %v1351_v17, %v3832_v13  ;;  %v1468_v62 = vmul.f32 0.044715, %v4346_v7  ;;  %3071 = vtanh.f32 %v1719_v8  ;;  %v1656_v40 = vadd.f32 %v1592_v44, %v4271_v21 }
 0x2df   : > { %v1469_v25 = vmul.f32 0.044715, %v4353_v59  ;;  %v1535_v2 = vmul.f32 %v1471_v61, %v4341_v30  ;;  %v4373_v43 = vadd.f32 %v1255_v45, %v3830_v58  ;;  %v1657_v11 = vadd.f32 %v1593_v56, %v4277_v24 }
 0x2e0   : > { %v4827_v17 = vpack.c.bf16 %v4186_v19, %v4196_v57  ;;  %v1956_v52 = vpack.c.bf16 %v4334_v50, %v4329_v15  ;;  %3073 = vtanh.f32 %v1722_v32  ;;  %v1531_v42 = vmul.f32 %v1467_v63, %v4338_v9  ;;  %v4392_v19 = vpop.f32.mrf.mxu1  ;;  %v4410_v32 = vpop.f32.mrf.mxu0 }
 0x2e1   : > { %v4390_v47 = vadd.f32 %v1304_v14, %v3836_v6  ;;  %v1395_v57 = vmul.f32 0.5, %v4226_v51  ;;  %3075 = vtanh.f32 %v1716_v12  ;;  %v1470_v37 = vmul.f32 0.044715, %v4366_v36 }
 0x2e2   : > { %v3068_v38 = vpop.eup %3067  ;;  %v1720_v28 = vmul.f32 0.7978846, %v1656_v40  ;;  %3077 = vtanh.f32 %v1717_v35  ;;  %v1533_v49 = vmul.f32 %v1469_v25, %v4353_v59  ;;  %v1472_v8 = vmul.f32 0.044715, %v4373_v43 }
 0x2e3   : > { %v3070_v26 = vpop.eup %3069  ;;  %v1721_v44 = vmul.f32 0.7978846, %v1657_v11  ;;  %v1599_v1 = vmul.f32 %v1535_v2, %v4341_v30  ;;  %v1396_v51 = vmul.f32 0.5, %v4256_v46  ;;  %v1398_v61 = vmul.f32 0.5, %v4229_v27 }
 0x2e4   : > { %v3072_v23 = vpop.eup %3071  ;;  %v1473_v56 = vmul.f32 0.044715, %v4390_v47  ;;  %v1399_v63 = vmul.f32 0.5, %v4237_v5  ;;  %v1843_v12 = vadd.f32 1.0, %v3068_v38  ;;  %v1595_v35 = vmul.f32 %v1531_v42, %v4338_v9 }
 0x2e5   : > { %2252 = vmatmul.bf16.gmra.mxu1 %v4827_v17  ;;  %2301 = vmatmul.bf16.gmra.mxu2 %v1952_v54  ;;  %v1532_v54 = vmul.f32 %v1468_v62, %v4346_v7  ;;  %v1534_v45 = vmul.f32 %v1470_v37, %v4366_v36  ;;  %3079 = vtanh.f32 %v1720_v28  ;;  %v1846_v46 = vadd.f32 1.0, %v3070_v26  ;;  %v4419_v25 = vpop.f32.mrf.mxu3 }
 0x2e6   : > { %2350 = vmatmul.bf16.gmra.mxu3 %v1953_v20  ;;  %2399 = vmatmul.bf16.gmra.mxu0 %v1954_v48  ;;  %v4404_v20 = vadd.f32 %v1353_v60, %v3832_v13  ;;  %v1397_v48 = vmul.f32 0.5, %v4259_v16  ;;  %v3074_v62 = vpop.eup %3073  ;;  %v4415_v60 = vpop.f32.mrf.mxu2  ;;  %v1536_v27 = vmul.f32 %v1472_v8, %v4373_v43  ;;  %3081 = vtanh.f32 %v1721_v44 }
 0x2e7   : > { %v1596_v16 = vmul.f32 %v1532_v54, %v4346_v7  ;;  %v3076_v40 = vpop.eup %3075  ;;  %v1663_v5 = vadd.f32 %v1599_v1, %v4341_v30  ;;  %v1597_v2 = vmul.f32 %v1533_v49, %v4353_v59  ;;  %v1847_v17 = vadd.f32 1.0, %v3072_v23 }
 0x2e8   : > { %v3078_v14 = vpop.eup %3077  ;;  %v1474_v11 = vmul.f32 0.044715, %v4404_v20  ;;  %v1400_v42 = vmul.f32 0.5, %v4271_v21  ;;  %v1402_v38 = vmul.f32 0.5, %v4253_v0  ;;  %v1537_v37 = vmul.f32 %v1473_v56, %v4390_v47  ;;  %v1211_v18 = vpop.f32.mrf.mxu1 }
 0x2e9   : > { %v1401_v54 = vmul.f32 0.5, %v4277_v24  ;;  %v1850_v28 = vadd.f32 1.0, %v3074_v62  ;;  %v1659_v26 = vadd.f32 %v1595_v35, %v4338_v9  ;;  %v4429_v8 = vmul.f32 %v1843_v12, %v1395_v57 }
 0x2ea   : > { %v1844_v44 = vadd.f32 1.0, %v3076_v40  ;;  %v1660_v49 = vadd.f32 %v1596_v16, %v4346_v7  ;;  %v1598_v1 = vmul.f32 %v1534_v45, %v4366_v36  ;;  %v4433_v23 = vmul.f32 %v1846_v46, %v1398_v61 }
 0x2eb   : > { %v1727_v21 = vmul.f32 0.7978846, %v1663_v5  ;;  %v1600_v0 = vmul.f32 %v1536_v27, %v4373_v43  ;;  %v1661_v56 = vadd.f32 %v1597_v2, %v4353_v59  ;;  %v3080_v3 = vpop.eup %3079  ;;  %v1538_v24 = vmul.f32 %v1474_v11, %v4404_v20  ;;  %v1358_v2 = vpop.f32.mrf.mxu0 }
 0x2ec   : > { %v4438_v62 = vmul.f32 %v1847_v17, %v1399_v63  ;;  %v1845_v57 = vadd.f32 1.0, %v3078_v14  ;;  %v4441_v12 = vmul.f32 0.5, %v4338_v9  ;;  %v3082_v35 = vpop.eup %3081  ;;  %v4443_v16 = vmul.f32 %v1850_v28, %v1402_v38 }
 0x2ed   : > { %v1723_v45 = vmul.f32 0.7978846, %v1659_v26  ;;  %v1601_v61 = vmul.f32 %v1537_v37, %v4390_v47  ;;  %v4447_v46 = vmul.f32 0.5, %v4366_v36  ;;  %v4451_v40 = vadd.f32 %v4392_v19, %v3826_v41  ;;  %v1309_v14 = vpop.f32.mrf.mxu3 }
 0x2ee   : > { %v1260_v27 = vpop.f32.mrf.mxu2  ;;  %v4453_v63 = vmul.f32 %v1844_v44, %v1396_v51  ;;  %v1724_v5 = vmul.f32 0.7978846, %v1660_v49  ;;  %v1662_v9 = vadd.f32 %v1598_v1, %v4366_v36  ;;  %v1848_v11 = vadd.f32 1.0, %v3080_v3 }
 0x2ef   : > { %3083 = vtanh.f32 %v1727_v21  ;;  %v1664_v17 = vadd.f32 %v1600_v0, %v4373_v43  ;;  %v1725_v38 = vmul.f32 0.7978846, %v1661_v56  ;;  %v1959_v19 = vpack.c.bf16 %v4438_v62, %v4429_v8 }
 0x2f0   : > { %v1849_v51 = vadd.f32 1.0, %v3082_v35  ;;  %v4465_v36 = vmul.f32 %v1845_v57, %v1397_v48  ;;  %v1602_v3 = vmul.f32 %v1538_v24, %v4404_v20  ;;  %v4469_v37 = vadd.f32 %v1211_v18, %v3826_v41 }
 0x2f1   : > { %v4828_v28 = vpack.c.bf16 %v4357_v55, %v4349_v10  ;;  %v4829_v33 = vpack.c.bf16 %v4362_v29, %v4360_v34  ;;  %v1962_v4 = vpack.c.bf16 %v4443_v16, %v4433_v23  ;;  %3085 = vtanh.f32 %v1723_v45 }
 0x2f2   : > { %v1475_v15 = vmul.f32 0.044715, %v4451_v40  ;;  %v4482_v50 = vmul.f32 0.5, %v4346_v7  ;;  %3087 = vtanh.f32 %v1724_v5  ;;  %v4486_v10 = vadd.f32 %v4415_v60, %v3830_v58  ;;  %v1214_v60 = vpop.f32.mrf.mxu1 }
 0x2f3   : > { %v4488_v55 = vmul.f32 %v1848_v11, %v1400_v42  ;;  %v1728_v34 = vmul.f32 0.7978846, %v1664_v17  ;;  %3089 = vtanh.f32 %v1725_v38  ;;  %v4491_v29 = vadd.f32 %v1260_v27, %v3830_v58 }
 0x2f4   : > { %v4493_v18 = vmul.f32 %v1849_v51, %v1401_v54  ;;  %v1407_v48 = vmul.f32 0.5, %v4341_v30  ;;  %v1666_v7 = vadd.f32 %v1602_v3, %v4404_v20  ;;  %v1479_v44 = vmul.f32 0.044715, %v4469_v37 }
 0x2f5   : > { %2257 = vmatmul.bf16.gmra.mxu1 %v1955_v53  ;;  %2306 = vmatmul.bf16.gmra.mxu2 %v1956_v52  ;;  %v1665_v53 = vadd.f32 %v1601_v61, %v4390_v47  ;;  %v1726_v52 = vmul.f32 0.7978846, %v1662_v9  ;;  %v3084_v26 = vpop.eup %3083  ;;  %v4499_v49 = vadd.f32 %v1309_v14, %v3836_v6  ;;  %v1405_v42 = vmul.f32 0.5, %v4353_v59  ;;  %v4518_v45 = vpop.f32.mrf.mxu3 }
 0x2f6   : > { %2355 = vmatmul.bf16.gmra.mxu3 %v4828_v28  ;;  %2404 = vmatmul.bf16.gmra.mxu0 %v4829_v33  ;;  %v1539_v21 = vmul.f32 %v1475_v15, %v4451_v40  ;;  %v4505_v54 = vadd.f32 %v4410_v32, %v3832_v13  ;;  %v4508_v30 = vadd.f32 %v1358_v2, %v3832_v13  ;;  %v1476_v56 = vmul.f32 0.044715, %v4486_v10  ;;  %v1263_v57 = vpop.f32.mrf.mxu2  ;;  %v1361_v14 = vpop.f32.mrf.mxu0 }
 0x2f7   : > { %v1729_v1 = vmul.f32 0.7978846, %v1665_v53  ;;  %3091 = vtanh.f32 %v1726_v52  ;;  %v3086_v0 = vpop.eup %3085  ;;  %v4513_v24 = vadd.f32 %v4419_v25, %v3836_v6  ;;  %v1960_v59 = vpack.c.bf16 %v4488_v55, %v4453_v63 }
 0x2f8   : > { %3093 = vtanh.f32 %v1728_v34  ;;  %v3088_v35 = vpop.eup %3087  ;;  %v1480_v32 = vmul.f32 0.044715, %v4491_v29  ;;  %v1961_v61 = vpack.c.bf16 %v4493_v18, %v4465_v36  ;;  %v1855_v27 = vadd.f32 1.0, %v3084_v26 }
 0x2f9   : > { %v1730_v5 = vmul.f32 0.7978846, %v1666_v7  ;;  %v3090_v9 = vpop.eup %3089  ;;  %v1543_v2 = vmul.f32 %v1479_v44, %v4469_v37  ;;  %v1481_v25 = vmul.f32 0.044715, %v4499_v49  ;;  %3095 = vtanh.f32 %v1729_v1 }
 0x2fa   : > { %v4525_v63 = vmul.f32 0.5, %v4404_v20  ;;  %v1478_v11 = vmul.f32 0.044715, %v4505_v54  ;;  %v1482_v17 = vmul.f32 0.044715, %v4508_v30  ;;  %v1851_v38 = vadd.f32 1.0, %v3086_v0 }
 0x2fb   : > { %v1603_v51 = vmul.f32 %v1539_v21, %v4451_v40  ;;  %v1540_v36 = vmul.f32 %v1476_v56, %v4486_v10  ;;  %v1477_v3 = vmul.f32 0.044715, %v4513_v24  ;;  %v1408_v28 = vmul.f32 0.5, %v4373_v43  ;;  %v1216_v56 = vpop.f32.mrf.mxu1 }
 0x2fc   : > { %v1852_v33 = vadd.f32 1.0, %v3088_v35  ;;  %v1544_v15 = vmul.f32 %v1480_v32, %v4491_v29  ;;  %v4534_v52 = vmul.f32 %v1855_v27, %v1407_v48  ;;  %v1853_v20 = vadd.f32 1.0, %v3090_v9 }
 0x2fd   : > { %v3092_v53 = vpop.eup %3091  ;;  %3097 = vtanh.f32 %v1730_v5  ;;  %v1545_v34 = vmul.f32 %v1481_v25, %v4499_v49  ;;  %v4538_v18 = vadd.f32 %v1214_v60, %v3826_v41  ;;  %v1409_v7 = vmul.f32 0.5, %v4390_v47 }
 0x2fe   : > { %v3094_v55 = vpop.eup %3093  ;;  %v1607_v26 = vmul.f32 %v1543_v2, %v4469_v37  ;;  %v1542_v43 = vmul.f32 %v1478_v11, %v4505_v54  ;;  %v1546_v44 = vmul.f32 %v1482_v17, %v4508_v30  ;;  %v4545_v1 = vmul.f32 %v1851_v38, %v4441_v12  ;;  %v1265_v2 = vpop.f32.mrf.mxu2 }
 0x2ff   : > { %v1667_v48 = vadd.f32 %v1603_v51, %v4451_v40  ;;  %v3096_v21 = vpop.eup %3095  ;;  %v1541_v0 = vmul.f32 %v1477_v3, %v4513_v24  ;;  %v4550_v60 = vmul.f32 %v1852_v33, %v4482_v50  ;;  %v1854_v35 = vadd.f32 1.0, %v3092_v53 }
 0x300   : > { %v1604_v47 = vmul.f32 %v1540_v36, %v4486_v10  ;;  %v1963_v12 = vpack.c.bf16 %v4534_v52, %v4545_v1  ;;  %v1856_v32 = vadd.f32 1.0, %v3094_v55  ;;  %v4558_v27 = vmul.f32 %v1853_v20, %v1405_v42 }
 0x301   : > { %v1608_v5 = vmul.f32 %v1544_v15, %v4491_v29  ;;  %v1483_v9 = vmul.f32 0.044715, %v4538_v18  ;;  %v4563_v50 = vadd.f32 %v1361_v14, %v3832_v13  ;;  %v1671_v8 = vadd.f32 %v1607_v26, %v4469_v37 }
 0x302   : > { %v1609_v62 = vmul.f32 %v1545_v34, %v4499_v49  ;;  %v4571_v42 = vadd.f32 %v1216_v56, %v3826_v41  ;;  %v1857_v25 = vadd.f32 1.0, %v3096_v21  ;;  %v1731_v11 = vmul.f32 0.7978846, %v1667_v48 }
 0x303   : > { %v1610_v14 = vmul.f32 %v1546_v44, %v4508_v30  ;;  %v4575_v17 = vadd.f32 %v1263_v57, %v3830_v58  ;;  %v1918_v23 = vmul.f32 %v1854_v35, %v4447_v46  ;;  %v1668_v16 = vadd.f32 %v1604_v47, %v4486_v10 }
 0x304   : > { %v4581_v38 = vadd.f32 %v1265_v2, %v3830_v58  ;;  %v1920_v51 = vmul.f32 %v1856_v32, %v1408_v28  ;;  %v1672_v36 = vadd.f32 %v1608_v5, %v4491_v29  ;;  %v1606_v3 = vmul.f32 %v1542_v43, %v4505_v54 }
 0x305   : > { %2262 = vmatmul.bf16.gmra.mxu1 %v1959_v19  ;;  %2311 = vmatmul.bf16.gmra.mxu2 %v1960_v59  ;;  %v3098_v19 = vpop.eup %3097  ;;  %v1314_v59 = vpop.f32.mrf.mxu3  ;;  %v1547_v33 = vmul.f32 %v1483_v9, %v4538_v18  ;;  %v1673_v46 = vadd.f32 %v1609_v62, %v4499_v49  ;;  %v1487_v15 = vmul.f32 0.044715, %v4571_v42  ;;  %v1735_v55 = vmul.f32 0.7978846, %v1671_v8 }
 0x306   : > { %2360 = vmatmul.bf16.gmra.mxu3 %v1961_v61  ;;  %2409 = vmatmul.bf16.gmra.mxu0 %v1962_v4  ;;  %v1363_v61 = vpop.f32.mrf.mxu0  ;;  %v1605_v4 = vmul.f32 %v1541_v0, %v4513_v24  ;;  %v4587_v57 = vadd.f32 %v1314_v59, %v3836_v6  ;;  %v1858_v53 = vadd.f32 1.0, %v3098_v19  ;;  %v1674_v28 = vadd.f32 %v1610_v14, %v4508_v30 }
 0x307   : > { %v4592_v20 = vadd.f32 %v1363_v61, %v3832_v13  ;;  %v1484_v34 = vmul.f32 0.044715, %v4575_v17  ;;  %v4598_v26 = vadd.f32 %v4518_v45, %v3836_v6  ;;  %v1732_v43 = vmul.f32 0.7978846, %v1668_v16 }
 0x308   : > { %v1669_v44 = vadd.f32 %v1605_v4, %v4513_v24  ;;  %v1488_v48 = vmul.f32 0.044715, %v4581_v38  ;;  %v1921_v21 = vmul.f32 %v1857_v25, %v1409_v7  ;;  %v1736_v0 = vmul.f32 0.7978846, %v1672_v36 }
 0x309   : > { %v1670_v56 = vadd.f32 %v1606_v3, %v4505_v54  ;;  %v1489_v35 = vmul.f32 0.044715, %v4587_v57  ;;  %v1922_v47 = vmul.f32 %v1858_v53, %v4525_v63  ;;  %3099 = vtanh.f32 %v1731_v11 }
 0x30a   : > { %v1737_v32 = vmul.f32 0.7978846, %v1673_v46  ;;  %v1551_v5 = vmul.f32 %v1487_v15, %v4571_v42  ;;  %v1490_v45 = vmul.f32 0.044715, %v4592_v20  ;;  %3101 = vtanh.f32 %v1735_v55 }
 0x30b   : > { %v1738_v9 = vmul.f32 0.7978846, %v1674_v28  ;;  %v1548_v2 = vmul.f32 %v1484_v34, %v4575_v17  ;;  %v1485_v8 = vmul.f32 0.044715, %v4598_v26  ;;  %3103 = vtanh.f32 %v1732_v43 }
 0x30c   : > { %v1733_v7 = vmul.f32 0.7978846, %v1669_v44  ;;  %v1486_v62 = vmul.f32 0.044715, %v4563_v50  ;;  %v1552_v19 = vmul.f32 %v1488_v48, %v4581_v38  ;;  %3105 = vtanh.f32 %v1736_v0 }
 0x30d   : > { %v1734_v63 = vmul.f32 0.7978846, %v1670_v56  ;;  %v1553_v59 = vmul.f32 %v1489_v35, %v4587_v57  ;;  %v1964_v25 = vpack.c.bf16 %v1920_v51, %v4550_v60  ;;  %3107 = vtanh.f32 %v1737_v32 }
 0x30e   : > { %v1611_v11 = vmul.f32 %v1547_v33, %v4538_v18  ;;  %v1554_v14 = vmul.f32 %v1490_v45, %v4592_v20  ;;  %v1965_v61 = vpack.c.bf16 %v1921_v21, %v4558_v27  ;;  %3109 = vtanh.f32 %v1738_v9 }
 0x30f   : > { %v1615_v16 = vmul.f32 %v1551_v5, %v4571_v42  ;;  %v3100_v4 = vpop.eup %3099  ;;  %v1549_v36 = vmul.f32 %v1485_v8, %v4598_v26  ;;  %v1966_v3 = vpack.c.bf16 %v1922_v47, %v1918_v23  ;;  %3111 = vtanh.f32 %v1733_v7 }
 0x310   : > { %v1612_v53 = vmul.f32 %v1548_v2, %v4575_v17  ;;  %v3102_v46 = vpop.eup %3101  ;;  %v1550_v60 = vmul.f32 %v1486_v62, %v4563_v50  ;;  %3113 = vtanh.f32 %v1734_v63  ;;  %v1616_v27 = vmul.f32 %v1552_v19, %v4581_v38 }
 0x311   : > { %v3104_v51 = vpop.eup %3103  ;;  %v1675_v33 = vadd.f32 %v1611_v11, %v4538_v18  ;;  %v1617_v23 = vmul.f32 %v1553_v59, %v4587_v57  ;;  %v1411_v55 = vmul.f32 0.5, %v4451_v40  ;;  %v1415_v28 = vmul.f32 0.5, %v4469_v37 }
 0x312   : > { %v3106_v15 = vpop.eup %3105  ;;  %v1679_v34 = vadd.f32 %v1615_v16, %v4571_v42  ;;  %v1618_v52 = vmul.f32 %v1554_v14, %v4592_v20  ;;  %v1413_v43 = vmul.f32 0.5, %v4513_v24  ;;  %v1676_v44 = vadd.f32 %v1612_v53, %v4575_v17 }
 0x313   : > { %v3108_v1 = vpop.eup %3107  ;;  %v1613_v48 = vmul.f32 %v1549_v36, %v4598_v26  ;;  %v1416_v0 = vmul.f32 0.5, %v4491_v29  ;;  %v1417_v40 = vmul.f32 0.5, %v4499_v49  ;;  %v1680_v37 = vadd.f32 %v1616_v27, %v4581_v38 }
 0x314   : > { %v3110_v21 = vpop.eup %3109  ;;  %v1614_v56 = vmul.f32 %v1550_v60, %v4563_v50  ;;  %v1859_v47 = vadd.f32 1.0, %v3100_v4  ;;  %v1863_v32 = vadd.f32 1.0, %v3102_v46  ;;  %v1739_v5 = vmul.f32 0.7978846, %v1675_v33 }
 0x315   : > { %2267 = vmatmul.bf16.gmra.mxu1 %v1963_v12  ;;  %2316 = vmatmul.bf16.gmra.mxu2 %v1964_v25  ;;  %v1412_v12 = vmul.f32 0.5, %v4486_v10  ;;  %v3112_v35 = vpop.eup %3111  ;;  %v1681_v10 = vadd.f32 %v1617_v23, %v4587_v57  ;;  %v1864_v45 = vadd.f32 1.0, %v3106_v15  ;;  %v1414_v9 = vmul.f32 0.5, %v4505_v54 }
 0x316   : > { %2365 = vmatmul.bf16.gmra.mxu3 %v1965_v61  ;;  %2414 = vmatmul.bf16.gmra.mxu0 %v1966_v3  ;;  %v3114_v24 = vpop.eup %3113  ;;  %v1743_v2 = vmul.f32 0.7978846, %v1679_v34  ;;  %v1682_v8 = vadd.f32 %v1618_v52, %v4592_v20  ;;  %v1865_v29 = vadd.f32 1.0, %v3108_v1  ;;  %v1866_v7 = vadd.f32 1.0, %v3110_v21 }
 0x317   : > { %v1740_v49 = vmul.f32 0.7978846, %v1676_v44  ;;  %v1677_v62 = vadd.f32 %v1613_v48, %v4598_v26  ;;  %v1860_v19 = vadd.f32 1.0, %v3104_v51  ;;  %v1418_v63 = vmul.f32 0.5, %v4508_v30 }
 0x318   : > { %v1744_v59 = vmul.f32 0.7978846, %v1680_v37  ;;  %v1678_v25 = vadd.f32 %v1614_v56, %v4563_v50  ;;  %v1861_v11 = vadd.f32 1.0, %v3112_v35  ;;  %v1862_v14 = vadd.f32 1.0, %v3114_v24 }
 0x319   : > { %3115 = vtanh.f32 %v1739_v5  ;;  %v1745_v61 = vmul.f32 0.7978846, %v1681_v10  ;;  %v1927_v16 = vmul.f32 %v1863_v32, %v1415_v28  ;;  %v1928_v54 = vmul.f32 %v1864_v45, %v1416_v0 }
 0x31a   : > { %3117 = vtanh.f32 %v1743_v2  ;;  %v1746_v4 = vmul.f32 0.7978846, %v1682_v8  ;;  %v1929_v36 = vmul.f32 %v1865_v29, %v1417_v40  ;;  %v1930_v3 = vmul.f32 %v1866_v7, %v1418_v63 }
 0x31b   : > { %3119 = vtanh.f32 %v1740_v49  ;;  %v1741_v53 = vmul.f32 0.7978846, %v1677_v62  ;;  %v1923_v46 = vmul.f32 %v1859_v47, %v1411_v55  ;;  %v1924_v60 = vmul.f32 %v1860_v19, %v1412_v12 }
 0x31c   : > { %3121 = vtanh.f32 %v1744_v59  ;;  %v1742_v27 = vmul.f32 0.7978846, %v1678_v25  ;;  %v1925_v30 = vmul.f32 %v1861_v11, %v1413_v43  ;;  %v1926_v51 = vmul.f32 %v1862_v14, %v1414_v9 }
 0x31d   : > { %3123 = vtanh.f32 %v1745_v61  ;;  %v1967_v33 = vpack.c.bf16 %v1927_v16, %v1923_v46  ;;  %v1968_v23 = vpack.c.bf16 %v1928_v54, %v1924_v60  ;;  %v1423_v56 = vmul.f32 0.5, %v4571_v42 }
 0x31e   : > { %3125 = vtanh.f32 %v1746_v4  ;;  %v1969_v34 = vpack.c.bf16 %v1929_v36, %v1925_v30  ;;  %v1970_v28 = vpack.c.bf16 %v1930_v3, %v1926_v51  ;;  %v1424_v47 = vmul.f32 0.5, %v4581_v38 }
 0x31f   : > { %v3116_v15 = vpop.eup %3115  ;;  %3127 = vtanh.f32 %v1741_v53  ;;  %v1425_v5 = vmul.f32 0.5, %v4587_v57  ;;  %v1426_v24 = vmul.f32 0.5, %v4592_v20  ;;  %v1419_v9 = vmul.f32 0.5, %v4538_v18 }
 0x320   : > { %v3118_v52 = vpop.eup %3117  ;;  %3129 = vtanh.f32 %v1742_v27  ;;  %v1867_v35 = vadd.f32 1.0, %v3116_v15  ;;  %v1420_v8 = vmul.f32 0.5, %v4575_v17  ;;  %v1421_v7 = vmul.f32 0.5, %v4598_v26 }
 0x321   : > { %v3120_v1 = vpop.eup %3119  ;;  %v1871_v21 = vadd.f32 1.0, %v3118_v52  ;;  %v1422_v42 = vmul.f32 0.5, %v4563_v50 }
 0x322   : > { %v3122_v55 = vpop.eup %3121  ;;  %v1868_v32 = vadd.f32 1.0, %v3120_v1  ;;  %v1931_v38 = vmul.f32 %v1867_v35, %v1419_v9 }
 0x323   : > { %v3124_v12 = vpop.eup %3123  ;;  %v1872_v0 = vadd.f32 1.0, %v3122_v55  ;;  %v1935_v2 = vmul.f32 %v1871_v21, %v1423_v56 }
 0x324   : > { %v3126_v44 = vpop.eup %3125  ;;  %v1873_v40 = vadd.f32 1.0, %v3124_v12  ;;  %v1932_v19 = vmul.f32 %v1868_v32, %v1420_v8 }
 0x325   : > { %2272 = vmatmul.bf16.gmra.mxu1 %v1967_v33  ;;  %2321 = vmatmul.bf16.gmra.mxu2 %v1968_v23  ;;  %v3128_v43 = vpop.eup %3127  ;;  %v1874_v37 = vadd.f32 1.0, %v3126_v44  ;;  %v1936_v29 = vmul.f32 %v1872_v0, %v1424_v47  ;;  %v1971_v59 = vpack.c.bf16 %v1935_v2, %v1931_v38 }
 0x326   : > { %2370 = vmatmul.bf16.gmra.mxu3 %v1969_v34  ;;  %2419 = vmatmul.bf16.gmra.mxu0 %v1970_v28  ;;  %v3130_v48 = vpop.eup %3129  ;;  %v1869_v10 = vadd.f32 1.0, %v3128_v43  ;;  %v1937_v49 = vmul.f32 %v1873_v40, %v1425_v5 }
 0x327   : > { %v1870_v45 = vadd.f32 1.0, %v3130_v48  ;;  %v1938_v62 = vmul.f32 %v1874_v37, %v1426_v24  ;;  %v1972_v25 = vpack.c.bf16 %v1936_v29, %v1932_v19 }
 0x328   : > { %v1933_v63 = vmul.f32 %v1869_v10, %v1421_v7 }
 0x329   : > { %v1934_v57 = vmul.f32 %v1870_v45, %v1422_v42 }
 0x32a   : > { %v1973_v20 = vpack.c.bf16 %v1937_v49, %v1933_v63 }
 0x32b   : > { %v1974_v11 = vpack.c.bf16 %v1938_v62, %v1934_v57 }
 0x335   : > { %2277 = vmatmul.bf16.gmra.mxu1 %v1971_v59  ;;  %2326 = vmatmul.bf16.gmra.mxu2 %v1972_v25 }
 0x336   : > { %2375 = vmatmul.bf16.gmra.mxu3 %v1973_v20  ;;  %2424 = vmatmul.bf16.gmra.mxu0 %v1974_v11 }
 0x342   : > { %v1219_v18 = vpop.f32.mrf.mxu1 }
 0x343   : > { %v4653_v17 = vadd.f32 %v1219_v18, %v3826_v41  ;;  %v1366_v26 = vpop.f32.mrf.mxu0 }
 0x344   : > { %v4656_v50 = vadd.f32 %v1366_v26, %v3832_v13 }
 0x345   : > { %v1491_v14 = vmul.f32 0.044715, %v4653_v17 }
 0x346   : > { %v1494_v61 = vmul.f32 0.044715, %v4656_v50 }
 0x347   : > { %v1555_v16 = vmul.f32 %v1491_v14, %v4653_v17 }
 0x348   : > { %v1558_v54 = vmul.f32 %v1494_v61, %v4656_v50  ;;  %v1268_v4 = vpop.f32.mrf.mxu2 }
 0x349   : > { %v4663_v36 = vadd.f32 %v1268_v4, %v3830_v58  ;;  %v1317_v3 = vpop.f32.mrf.mxu3  ;;  %v1619_v53 = vmul.f32 %v1555_v16, %v4653_v17 }
 0x34a   : > { %v4667_v46 = vadd.f32 %v1317_v3, %v3836_v6  ;;  %v1221_v60 = vpop.f32.mrf.mxu1  ;;  %v1622_v27 = vmul.f32 %v1558_v54, %v4656_v50 }
 0x34b   : > { %v1492_v30 = vmul.f32 0.044715, %v4663_v36  ;;  %v4672_v51 = vadd.f32 %v1221_v60, %v3826_v41  ;;  %v1368_v33 = vpop.f32.mrf.mxu0  ;;  %v1683_v23 = vadd.f32 %v1619_v53, %v4653_v17 }
 0x34c   : > { %v1493_v15 = vmul.f32 0.044715, %v4667_v46  ;;  %v4677_v34 = vadd.f32 %v1368_v33, %v3832_v13  ;;  %v1686_v28 = vadd.f32 %v1622_v27, %v4656_v50  ;;  %v1427_v27 = vmul.f32 0.5, %v4653_v17 }
 0x34d   : > { %v1556_v52 = vmul.f32 %v1492_v30, %v4663_v36  ;;  %v1495_v1 = vmul.f32 0.044715, %v4672_v51  ;;  %v1747_v44 = vmul.f32 0.7978846, %v1683_v23  ;;  %v1431_v23 = vmul.f32 0.5, %v4672_v51 }
 0x34e   : > { %v1557_v55 = vmul.f32 %v1493_v15, %v4667_v46  ;;  %v1498_v12 = vmul.f32 0.044715, %v4677_v34  ;;  %v1750_v21 = vmul.f32 0.7978846, %v1686_v28  ;;  %v1430_v28 = vmul.f32 0.5, %v4656_v50 }
 0x34f   : > { %v1559_v41 = vmul.f32 %v1495_v1, %v4672_v51  ;;  %v1620_v37 = vmul.f32 %v1556_v52, %v4663_v36  ;;  %3131 = vtanh.f32 %v1747_v44 }
 0x350   : > { %v1562_v43 = vmul.f32 %v1498_v12, %v4677_v34  ;;  %v1270_v48 = vpop.f32.mrf.mxu2  ;;  %v1621_v32 = vmul.f32 %v1557_v55, %v4667_v46  ;;  %3133 = vtanh.f32 %v1750_v21  ;;  %v1434_v55 = vmul.f32 0.5, %v4677_v34 }
 0x351   : > { %v4687_v13 = vadd.f32 %v1270_v48, %v3830_v58  ;;  %v1319_v0 = vpop.f32.mrf.mxu3  ;;  %v1623_v40 = vmul.f32 %v1559_v41, %v4672_v51  ;;  %v4700_v58 = vld [vmem:[%s4788_s9] ss:$0 sm:$0xff]  ;;  %v1684_v9 = vadd.f32 %v1620_v37, %v4663_v36 }
 0x352   : > { %v4692_v56 = vadd.f32 %v1319_v0, %v3836_v6  ;;  %v2248_v35 = vpop.f32.mrf.mxu1  ;;  %v1626_v47 = vmul.f32 %v1562_v43, %v4677_v34  ;;  %v1685_v29 = vadd.f32 %v1621_v32, %v4667_v46 }
 0x353   : > { %v1496_v5 = vmul.f32 0.044715, %v4687_v13  ;;  %v2395_v10 = vpop.f32.mrf.mxu0  ;;  %v1687_v24 = vadd.f32 %v1623_v40, %v4672_v51  ;;  %v1748_v42 = vmul.f32 0.7978846, %v1684_v9  ;;  %v2249_v62 = vadd.f32 %v4700_v58, %v2248_v35 }
 0x354   : > { %v1497_v45 = vmul.f32 0.044715, %v4692_v56  ;;  %v1690_v6 = vadd.f32 %v1626_v47, %v4677_v34  ;;  %v1749_v19 = vmul.f32 0.7978846, %v1685_v29  ;;  %v1428_v34 = vmul.f32 0.5, %v4663_v36 }
 0x355   : > { %v1560_v2 = vmul.f32 %v1496_v5, %v4687_v13  ;;  %v1751_v8 = vmul.f32 0.7978846, %v1687_v24  ;;  %v3132_v59 = vpop.eup %3131 }
 0x356   : > { %v1561_v7 = vmul.f32 %v1497_v45, %v4692_v56  ;;  %v1754_v49 = vmul.f32 0.7978846, %v1690_v6  ;;  %v3134_v18 = vpop.eup %3133  ;;  %v1875_v4 = vadd.f32 1.0, %v3132_v59  ;;  %v1432_v45 = vmul.f32 0.5, %v4687_v13 }
 0x357   : > { %3135 = vtanh.f32 %v1751_v8  ;;  %v1624_v38 = vmul.f32 %v1560_v2, %v4687_v13  ;;  %v1878_v30 = vadd.f32 1.0, %v3134_v18  ;;  %v1429_v2 = vmul.f32 0.5, %v4667_v46 }
 0x358   : > { %v2297_v63 = vpop.f32.mrf.mxu2  ;;  %3137 = vtanh.f32 %v1754_v49  ;;  %v1625_v57 = vmul.f32 %v1561_v7, %v4692_v56  ;;  %v1939_v43 = vmul.f32 %v1875_v4, %v1427_v27  ;;  %v1433_v8 = vmul.f32 0.5, %v4692_v56 }
 0x359   : > { %v2298_v25 = vadd.f32 %v2297_v63, %v2249_v62  ;;  %v2346_v20 = vpop.f32.mrf.mxu3  ;;  %v1688_v11 = vadd.f32 %v1624_v38, %v4687_v13  ;;  %3139 = vtanh.f32 %v1748_v42  ;;  %v1942_v51 = vmul.f32 %v1878_v30, %v1430_v28 }
 0x35a   : > { %v2250_v26 = vpop.f32.mrf.mxu1  ;;  %v1689_v14 = vadd.f32 %v1625_v57, %v4692_v56  ;;  %3141 = vtanh.f32 %v1749_v19 }
 0x35b   : > { %v2347_v61 = vadd.f32 %v2346_v20, %v2298_v25  ;;  %v2397_v16 = vpop.f32.mrf.mxu0  ;;  %v1752_v54 = vmul.f32 0.7978846, %v1688_v11  ;;  %v2251_v17 = vadd.f32 %v4700_v58, %v2250_v26 }
 0x35c   : > { %v1753_v3 = vmul.f32 0.7978846, %v1689_v14 }
 0x35d   : > { %v3136_v53 = vpop.eup %3135  ;;  %v2396_v60 = vadd.f32 %v2395_v10, %v2347_v61  ;;  %3143 = vtanh.f32 %v1752_v54 }
 0x35e   : > { %v3138_v33 = vpop.eup %3137  ;;  %v1879_v15 = vadd.f32 1.0, %v3136_v53  ;;  %3145 = vtanh.f32 %v1753_v3  ;;  %v4830_v3 = vld [vmem:[#allocation5_spill] sm:$0xff] }
 0x35f   : > { %v3140_v52 = vpop.eup %3139  ;;  %v2435_v1 = vadd.f32 %v2396_v60, %v3277_v22  ;;  %v1882_v12 = vadd.f32 1.0, %v3138_v33 }
 0x360   : > { %v3142_v41 = vpop.eup %3141  ;;  %v2299_v44 = vpop.f32.mrf.mxu2  ;;  %v1943_v48 = vmul.f32 %v1879_v15, %v1431_v23  ;;  %v1876_v35 = vadd.f32 1.0, %v3140_v52  ;;  %v4831_v52 = vld [vmem:[#allocation2_spill] sm:$0xff] }
 0x361   : > { %2451 = vst [vmem:[%s4720_s14] sm:$0xff] %v2435_v1  ;;  %v2300_v21 = vadd.f32 %v2299_v44, %v2251_v17  ;;  %v2348_v0 = vpop.f32.mrf.mxu3  ;;  %v1946_v40 = vmul.f32 %v1882_v12, %v1434_v55  ;;  %v1877_v10 = vadd.f32 1.0, %v3142_v41 }
 0x362   : > { %v2253_v37 = vpop.f32.mrf.mxu1  ;;  %v1975_v50 = vpack.c.bf16 %v1943_v48, %v1939_v43  ;;  %v1940_v7 = vmul.f32 %v1876_v35, %v1428_v34 }
 0x363   : > { %v3144_v47 = vpop.eup %3143  ;;  %v2349_v32 = vadd.f32 %v2348_v0, %v2300_v21  ;;  %v2400_v22 = vpop.f32.mrf.mxu0  ;;  %v1978_v5 = vpack.c.bf16 %v1946_v40, %v1942_v51  ;;  %v2254_v62 = vadd.f32 %v4700_v58, %v2253_v37  ;;  %v1941_v38 = vmul.f32 %v1877_v10, %v1429_v2  ;;  %v4832_v0 = vld [vmem:[#allocation3_spill] sm:$0xff]  ;;  %v4833_v10 = vld [vmem:[#allocation4_spill] sm:$0xff] }
 0x364   : > { %v3146_v24 = vpop.eup %3145  ;;  %2282 = vmatmul.bf16.gmra.mxu1 %v1975_v50  ;;  %v1880_v6 = vadd.f32 1.0, %v3144_v47 }
 0x365   : > { %v2398_v9 = vadd.f32 %v2397_v16, %v2349_v32  ;;  %2429 = vmatmul.bf16.gmra.mxu0 %v1978_v5  ;;  %v1881_v29 = vadd.f32 1.0, %v3146_v24 }
 0x366   : > { %v1944_v49 = vmul.f32 %v1880_v6, %v1432_v45 }
 0x367   : > { %v2436_v42 = vadd.f32 %v2398_v9, %v3288_v31  ;;  %v1945_v19 = vmul.f32 %v1881_v29, %v1433_v8 }
 0x368   : > { %v2302_v36 = vpop.f32.mrf.mxu2  ;;  %v1976_v63 = vpack.c.bf16 %v1944_v49, %v1940_v7  ;;  %v4834_v49 = vld [vmem:[#allocation6_spill] sm:$0xff] }
 0x369   : > { %2452 = vst [vmem:[%s4720_s14 + $0x8] sm:$0xff] %v2436_v42  ;;  %v2303_v13 = vadd.f32 %v2302_v36, %v2254_v62  ;;  %v2351_v57 = vpop.f32.mrf.mxu3  ;;  %v1977_v59 = vpack.c.bf16 %v1945_v19, %v1941_v38 }
 0x36a   : > { %v2255_v25 = vpop.f32.mrf.mxu1  ;;  %2331 = vmatmul.bf16.gmra.mxu2 %v1976_v63 }
 0x36b   : > { %v2352_v46 = vadd.f32 %v2351_v57, %v2303_v13  ;;  %2380 = vmatmul.bf16.gmra.mxu3 %v1977_v59  ;;  %v2402_v56 = vpop.f32.mrf.mxu0  ;;  %v2256_v11 = vadd.f32 %v4700_v58, %v2255_v25  ;;  %v4835_v25 = vld [vmem:[#allocation7_spill] sm:$0xff] }
 0x36d   : > { %v2401_v20 = vadd.f32 %v2400_v22, %v2352_v46 }
 0x36f   : > { %v2437_v31 = vadd.f32 %v2401_v20, %v3298_v39 }
 0x370   : > { %v2304_v18 = vpop.f32.mrf.mxu2 }
 0x371   : > { %2453 = vst [vmem:[%s4720_s14 + $0x10] sm:$0xff] %v2437_v31  ;;  %v2305_v26 = vadd.f32 %v2304_v18, %v2256_v11  ;;  %v2353_v14 = vpop.f32.mrf.mxu3 }
 0x372   : > { %v2258_v61 = vpop.f32.mrf.mxu1 }
 0x373   : > { %v2354_v16 = vadd.f32 %v2353_v14, %v2305_v26  ;;  %v2405_v54 = vpop.f32.mrf.mxu0  ;;  %v2259_v60 = vadd.f32 %v4700_v58, %v2258_v61 }
 0x375   : > { %v2403_v4 = vadd.f32 %v2402_v56, %v2354_v16  ;;  %v4836_v16 = vld [vmem:[#allocation8_spill] sm:$0xff] }
 0x377   : > { %v2438_v53 = vadd.f32 %v2403_v4, %v4830_v3 }
 0x378   : > { %v2307_v27 = vpop.f32.mrf.mxu2 }
 0x379   : > { %2454 = vst [vmem:[%s4720_s14 + $0x18] sm:$0xff] %v2438_v53  ;;  %v2308_v30 = vadd.f32 %v2307_v27, %v2259_v60  ;;  %v2356_v33 = vpop.f32.mrf.mxu3 }
 0x37a   : > { %v2260_v39 = vpop.f32.mrf.mxu1 }
 0x37b   : > { %v2357_v23 = vadd.f32 %v2356_v33, %v2308_v30  ;;  %v2407_v15 = vpop.f32.mrf.mxu0  ;;  %v2261_v17 = vadd.f32 %v4700_v58, %v2260_v39  ;;  %v4837_v39 = vld [vmem:[#allocation9_spill] sm:$0xff] }
 0x37d   : > { %v2406_v28 = vadd.f32 %v2405_v54, %v2357_v23 }
 0x37f   : > { %v2439_v1 = vadd.f32 %v2406_v28, %v4831_v52 }
 0x380   : > { %v2309_v55 = vpop.f32.mrf.mxu2 }
 0x381   : > { %2455 = vst [vmem:[%s4720_s14 + $0x20] sm:$0xff] %v2439_v1  ;;  %v2310_v12 = vadd.f32 %v2309_v55, %v2261_v17  ;;  %v2358_v41 = vpop.f32.mrf.mxu3 }
 0x382   : > { %v2263_v44 = vpop.f32.mrf.mxu1 }
 0x383   : > { %v2359_v43 = vadd.f32 %v2358_v41, %v2310_v12  ;;  %v2410_v48 = vpop.f32.mrf.mxu0  ;;  %v2264_v40 = vadd.f32 %v4700_v58, %v2263_v44  ;;  %v4838_v44 = vld [vmem:[#allocation10_spill] sm:$0xff] }
 0x385   : > { %v2408_v21 = vadd.f32 %v2407_v15, %v2359_v43 }
 0x387   : > { %v2440_v51 = vadd.f32 %v2408_v21, %v4832_v0 }
 0x388   : > { %v2312_v37 = vpop.f32.mrf.mxu2 }
 0x389   : > { %2456 = vst [vmem:[%s4720_s14 + $0x28] sm:$0xff] %v2440_v51  ;;  %v2313_v50 = vadd.f32 %v2312_v37, %v2264_v40  ;;  %v2361_v35 = vpop.f32.mrf.mxu3 }
 0x38a   : > { %v2265_v47 = vpop.f32.mrf.mxu1 }
 0x38b   : > { %v2362_v32 = vadd.f32 %v2361_v35, %v2313_v50  ;;  %v2412_v22 = vpop.f32.mrf.mxu0  ;;  %v2266_v34 = vadd.f32 %v4700_v58, %v2265_v47  ;;  %v4839_v47 = vld [vmem:[#allocation12_spill] sm:$0xff] }
 0x38d   : > { %v2411_v5 = vadd.f32 %v2410_v48, %v2362_v32 }
 0x38f   : > { %v2441_v24 = vadd.f32 %v2411_v5, %v4833_v10 }
 0x390   : > { %v2314_v45 = vpop.f32.mrf.mxu2 }
 0x391   : > { %2457 = vst [vmem:[%s4720_s14 + $0x30] sm:$0xff] %v2441_v24  ;;  %v2315_v6 = vadd.f32 %v2314_v45, %v2266_v34  ;;  %v2363_v9 = vpop.f32.mrf.mxu3 }
 0x392   : > { %v2268_v2 = vpop.f32.mrf.mxu1 }
 0x393   : > { %v2364_v8 = vadd.f32 %v2363_v9, %v2315_v6  ;;  %v2415_v29 = vpop.f32.mrf.mxu0  ;;  %v2269_v62 = vadd.f32 %v4700_v58, %v2268_v2  ;;  %v4840_v9 = vld [vmem:[#allocation11_spill] sm:$0xff] }
 0x395   : > { %v2413_v7 = vadd.f32 %v2412_v22, %v2364_v8 }
 0x397   : > { %v2442_v42 = vadd.f32 %v2413_v7, %v4834_v49 }
 0x398   : > { %v2317_v38 = vpop.f32.mrf.mxu2 }
 0x399   : > { %2458 = vst [vmem:[%s4720_s14 + $0x38] sm:$0xff] %v2442_v42  ;;  %v2318_v19 = vadd.f32 %v2317_v38, %v2269_v62  ;;  %v2366_v36 = vpop.f32.mrf.mxu3 }
 0x39a   : > { %v2270_v63 = vpop.f32.mrf.mxu1 }
 0x39b   : > { %v2367_v13 = vadd.f32 %v2366_v36, %v2318_v19  ;;  %v2417_v57 = vpop.f32.mrf.mxu0  ;;  %v2271_v56 = vadd.f32 %v4700_v58, %v2270_v63 }
 0x39d   : > { %v2416_v59 = vadd.f32 %v2415_v29, %v2367_v13  ;;  %v4841_v13 = vld [vmem:[#allocation13_spill] sm:$0xff] }
 0x39f   : > { %v2443_v46 = vadd.f32 %v2416_v59, %v4835_v25 }
 0x3a0   : > { %v2319_v20 = vpop.f32.mrf.mxu2 }
 0x3a1   : > { %2459 = vst [vmem:[%s4720_s14 + $0x40] sm:$0xff] %v2443_v46  ;;  %v2320_v31 = vadd.f32 %v2319_v20, %v2271_v56  ;;  %v2368_v11 = vpop.f32.mrf.mxu3 }
 0x3a2   : > { %v2273_v18 = vpop.f32.mrf.mxu1 }
 0x3a3   : > { %v2369_v26 = vadd.f32 %v2368_v11, %v2320_v31  ;;  %v2420_v61 = vpop.f32.mrf.mxu0  ;;  %v2274_v4 = vadd.f32 %v4700_v58, %v2273_v18  ;;  %v4842_v11 = vld [vmem:[#allocation14_spill] sm:$0xff] }
 0x3a5   : > { %v2418_v14 = vadd.f32 %v2417_v57, %v2369_v26 }
 0x3a7   : > { %v2444_v54 = vadd.f32 %v2418_v14, %v4836_v16 }
 0x3a8   : > { %v2322_v3 = vpop.f32.mrf.mxu2 }
 0x3a9   : > { %2460 = vst [vmem:[%s4720_s14 + $0x48] sm:$0xff] %v2444_v54  ;;  %v2323_v53 = vadd.f32 %v2322_v3, %v2274_v4  ;;  %v2371_v60 = vpop.f32.mrf.mxu3 }
 0x3aa   : > { %v2275_v27 = vpop.f32.mrf.mxu1 }
 0x3ab   : > { %v2372_v30 = vadd.f32 %v2371_v60, %v2323_v53  ;;  %v2276_v15 = vadd.f32 %v4700_v58, %v2275_v27  ;;  %v2422_v28 = vpop.f32.mrf.mxu0 }
 0x3ad   : > { %v2421_v33 = vadd.f32 %v2420_v61, %v2372_v30 }
 0x3af   : > { %v2445_v23 = vadd.f32 %v2421_v33, %v4837_v39 }
 0x3b0   : > { %v2324_v52 = vpop.f32.mrf.mxu2 }
 0x3b1   : > { %2461 = vst [vmem:[%s4720_s14 + $0x50] sm:$0xff] %v2445_v23  ;;  %v2325_v1 = vadd.f32 %v2324_v52, %v2276_v15  ;;  %v2373_v17 = vpop.f32.mrf.mxu3 }
 0x3b2   : > { %v2278_v55 = vpop.f32.mrf.mxu1 }
 0x3b3   : > { %v2374_v12 = vadd.f32 %v2373_v17, %v2325_v1  ;;  %v2279_v48 = vadd.f32 %v4700_v58, %v2278_v55  ;;  %v2425_v40 = vpop.f32.mrf.mxu0 }
 0x3b5   : > { %v2423_v41 = vadd.f32 %v2422_v28, %v2374_v12 }
 0x3b7   : > { %v2446_v43 = vadd.f32 %v2423_v41, %v4838_v44 }
 0x3b8   : > { %v2327_v21 = vpop.f32.mrf.mxu2 }
 0x3b9   : > { %2462 = vst [vmem:[%s4720_s14 + $0x58] sm:$0xff] %v2446_v43  ;;  %v2328_v0 = vadd.f32 %v2327_v21, %v2279_v48  ;;  %v2376_v51 = vpop.f32.mrf.mxu3 }
 0x3ba   : > { %v2280_v50 = vpop.f32.mrf.mxu1 }
 0x3bb   : > { %v2377_v37 = vadd.f32 %v2376_v51, %v2328_v0  ;;  %v2281_v22 = vadd.f32 %v4700_v58, %v2280_v50  ;;  %v2427_v45 = vpop.f32.mrf.mxu0 }
 0x3bd   : > { %v2426_v35 = vadd.f32 %v2425_v40, %v2377_v37 }
 0x3bf   : > { %v2447_v32 = vadd.f32 %v2426_v35, %v4839_v47 }
 0x3c0   : > { %v2329_v5 = vpop.f32.mrf.mxu2 }
 0x3c1   : > { %2463 = vst [vmem:[%s4720_s14 + $0x60] sm:$0xff] %v2447_v32  ;;  %v2330_v10 = vadd.f32 %v2329_v5, %v2281_v22  ;;  %v2378_v24 = vpop.f32.mrf.mxu3 }
 0x3c3   : > { %v2379_v34 = vadd.f32 %v2378_v24, %v2330_v10 }
 0x3c5   : > { %v2428_v6 = vadd.f32 %v2427_v45, %v2379_v34 }
 0x3c7   : > { %v2448_v2 = vadd.f32 %v2428_v6, %v4840_v9 }
 0x3c9   : > { %2464 = vst [vmem:[%s4720_s14 + $0x68] sm:$0xff] %v2448_v2 }
 0x3e1   : > { %v2283_v8 = vpop.f32.mrf.mxu1 }
 0x3e2   : > { %v2284_v29 = vadd.f32 %v4700_v58, %v2283_v8  ;;  %v2430_v62 = vpop.f32.mrf.mxu0 }
 0x3e9   : > { %v2285_v19 = vpop.f32.mrf.mxu1 }
 0x3ea   : > { %v2286_v63 = vadd.f32 %v4700_v58, %v2285_v19  ;;  %v2432_v20 = vpop.f32.mrf.mxu0 }
 0x3ed   : > { %v2332_v7 = vpop.f32.mrf.mxu2 }
 0x3ee   : > { %v2333_v49 = vadd.f32 %v2332_v7, %v2284_v29  ;;  %v2381_v42 = vpop.f32.mrf.mxu3 }
 0x3f0   : > { %v2382_v38 = vadd.f32 %v2381_v42, %v2333_v49 }
 0x3f2   : > { %v2431_v36 = vadd.f32 %v2430_v62, %v2382_v38 }
 0x3f4   : > { %v2449_v57 = vadd.f32 %v2431_v36, %v4841_v13 }
 0x3f5   : > { %v2334_v59 = vpop.f32.mrf.mxu2 }
 0x3f6   : > { %2465 = vst [vmem:[%s4720_s14 + $0x70] sm:$0xff] %v2449_v57  ;;  %v2335_v25 = vadd.f32 %v2334_v59, %v2286_v63  ;;  %v2383_v46 = vpop.f32.mrf.mxu3 }
 0x3f8   : > { %v2384_v56 = vadd.f32 %v2383_v46, %v2335_v25 }
 0x3fa   : > { %v2433_v31 = vadd.f32 %v2432_v20, %v2384_v56 }
 0x3fc   : > { %v2450_v18 = vadd.f32 %v2433_v31, %v4842_v11 }
 0x3fe   : > { %2466 = vst [vmem:[%s4720_s14 + $0x78] sm:$0xff] %v2450_v18 }
 0x3ff PF: > { %s20_s13 = sadd.s32 1, %s3155_s13  }
 0x400   : > { %p17_p4 = scmp.ge.s32.totalorder %s20_s13, 4  }
 0x402   :  { %19 = sbr.rel (!%p17_p4) target bundleno = 1 (0x1), region = 93 }

</bundles_post_ra>
